<compile_context>
chip_gen: v6e
topology: v6e:2x2x1
jax: 0.10.0
libtpu: 0.0.40
codegen_flags: <defaults>
</compile_context>

<pallas_src>
import functools

import jax
import jax.numpy as jnp
import numpy as np
from jax.experimental import pallas as pl
from jax.experimental.pallas import tpu as pltpu


def _ds_layer_kernel(x_ref, w1_ref, b1_ref, w2_ref, b2_ref, w3_ref, b3_ref,
                     o_ref, y1_ref, *, H, W, Wp, C):
    """One batch element per grid step.

    x_ref  : (1, Lp, 3*Cin) bf16  zero-padded, row-flattened, kx-pre-shifted
                                  input (Lp = (H+2)*Wp, Wp = width padded to a
                                  multiple of 8)
    w1_ref : (3, 3*Cin, C) bf16   conv1, horizontal taps fused along K
    w2_ref : (3, 3*C,  C)  bf16   conv2, horizontal taps fused along K
    w3_ref : (1, C)        f32    1x1 prediction conv
    b*_ref : biases, f32
    o_ref  : (1, 1, L)     f32    sigmoid output, lane-dense row (L = H*Wp)
    y1_ref : (Lp, 3*C)     bf16   scratch: padded conv1 activation, 3 kx copies
    """
    L = H * Wp
    Lp = (H + 2) * Wp
    Cin3 = x_ref.shape[-1]
    del Cin3  # (documentation only)

    # ---- conv1: 3 sublane-aligned K-fused MXU matmuls ----------------------
    acc = jnp.zeros((L, C), jnp.float32)
    for ky in range(3):                                   # pure accumulate chain
        acc += jnp.dot(x_ref[0, ky * Wp:ky * Wp + L, :], w1_ref[ky],
                       preferred_element_type=jnp.float32)
    y1 = jnp.maximum(acc + b1_ref[...], 0.0)              # bias + ReLU, f32

    # Valid-column mask computed in-kernel (zero the Wp-W garbage pad columns),
    # then a single f32 -> bf16 cast for the conv2 LHS.
    col = jax.lax.broadcasted_iota(jnp.int32, (L, C), 0) % Wp
    y1 = jnp.where(col < W, y1, 0.0).astype(jnp.bfloat16)

    # ---- re-pad for conv2: zero only the halo rows, then store 3 kx copies --
    y1_ref[:Wp + 1, :] = jnp.zeros((Wp + 1, 3 * C), jnp.bfloat16)
    y1_ref[Wp - 1 + L:, :] = jnp.zeros((Wp + 1, 3 * C), jnp.bfloat16)
    for kx in range(3):
        start = Wp + 1 - kx
        y1_ref[start:start + L, kx * C:(kx + 1) * C] = y1

    # ---- conv2: 3 sublane-aligned K-fused MXU matmuls ------------------------
    acc2 = jnp.zeros((L, C), jnp.float32)
    for ky in range(3):                                   # pure accumulate chain
        acc2 += jnp.dot(y1_ref[ky * Wp:ky * Wp + L, :], w2_ref[ky],
                        preferred_element_type=jnp.float32)
    y2 = jnp.maximum(acc2 + b2_ref[...], 0.0)             # bias + ReLU, f32

    # ---- predlayer: 1x1 conv (channel reduce) + sigmoid, lane-dense row -----
    logit = jnp.sum(y2 * w3_ref[...], axis=-1) + b3_ref[0, :]      # (L,)
    o_ref[0, 0, :] = pl.reciprocal(1.0 + jnp.exp(-logit), approx=True)


def ds_layer_pallas(x_nchw, params):
    """DSLayer forward: NCHW in -> (B, 1, H, W) out, matching PyTorch."""
    B, Cin, H, W = x_nchw.shape
    C = 64
    Wp = ((W + 2 + 7) // 8) * 8          # padded width, multiple of 8 sublanes
    L = H * Wp
    Lp = (H + 2) * Wp

    # NCHW -> NHWC, zero-pad (1 top / 2 bottom rows, 1 left col, right cols out
    # to Wp), flatten rows, then build 3 kx-shifted copies along the channels.
    x_nhwc = jnp.transpose(x_nchw, (0, 2, 3, 1)).astype(jnp.float32)
    x_pad = jnp.pad(x_nhwc, ((0, 0), (1, 2), (1, Wp - W - 1), (0, 0)))
    x_flat = x_pad.reshape(B, (H + 3) * Wp, Cin)
    x_cat = jnp.concatenate([x_flat[:, kx:kx + Lp, :] for kx in range(3)],
                            axis=-1).astype(jnp.bfloat16)           # (B,Lp,3Cin)

    # PyTorch (Cout, Cin, 3, 3) -> (ky, kx*Cin_or_C + c, Cout); bf16 for MXU.
    w1 = jnp.transpose(params["w1"], (2, 3, 1, 0))                   # (3,3,Cin,C)
    w1f = w1.reshape(3, 3 * Cin, C).astype(jnp.bfloat16)
    w2 = jnp.transpose(params["w2"], (2, 3, 1, 0))                   # (3,3,C,C)
    w2f = w2.reshape(3, 3 * C, C).astype(jnp.bfloat16)
    w3 = params["w3"].reshape(1, C).astype(jnp.float32)              # (1,64,1,1)
    b1 = params["b1"].reshape(1, C).astype(jnp.float32)
    b2 = params["b2"].reshape(1, C).astype(jnp.float32)
    b3 = params["b3"].reshape(1, 1).astype(jnp.float32)

    kernel = functools.partial(_ds_layer_kernel, H=H, W=W, Wp=Wp, C=C)

    grid_spec = pltpu.PrefetchScalarGridSpec(
        num_scalar_prefetch=0,
        grid=(B,),
        in_specs=[
            pl.BlockSpec((1, Lp, 3 * Cin), lambda b: (b, 0, 0)),  # x (per batch)
            pl.BlockSpec((3, 3 * Cin, C), lambda b: (0, 0, 0)),   # w1 fused
            pl.BlockSpec((1, C), lambda b: (0, 0)),               # b1
            pl.BlockSpec((3, 3 * C, C), lambda b: (0, 0, 0)),     # w2 fused
            pl.BlockSpec((1, C), lambda b: (0, 0)),               # b2
            pl.BlockSpec((1, C), lambda b: (0, 0)),               # w3
            pl.BlockSpec((1, 1), lambda b: (0, 0)),               # b3
        ],
        out_specs=pl.BlockSpec((1, 1, L), lambda b: (b, 0, 0)),   # lane-dense row
        scratch_shapes=[pltpu.VMEM((Lp, 3 * C), jnp.bfloat16)],
    )

    out_flat = pl.pallas_call(
        kernel,
        out_shape=jax.ShapeDtypeStruct((B, 1, L), jnp.float32),
        grid_spec=grid_spec,
        compiler_params=pltpu.CompilerParams(
            dimension_semantics=("parallel",)),
    )(x_cat, w1f, b1, w2f, b2, w3, b3)

    # (B, 1, L) -> (B, H, Wp) -> crop the pad columns -> NCHW (B, 1, H, W)
    out = out_flat.reshape(B, H, Wp)[:, :, :W]
    return out[:, None, :, :]


def _init_params(key, c_in):
    """Deterministic stand-in for PyTorch's default conv init."""
    ks = jax.random.split(key, 6)

    def conv_w(k, cout, cin, kh, kw):
        fan = cin * kh * kw
        return jax.random.normal(k, (cout, cin, kh, kw),
                                 jnp.float32) * (2.0 / fan) ** 0.5

    return {
        "w1": conv_w(ks[0], 64, c_in, 3, 3),
        "b1": jax.random.normal(ks[1], (64,), jnp.float32) * 0.01,
        "w2": conv_w(ks[2], 64, 64, 3, 3),
        "b2": jax.random.normal(ks[3], (64,), jnp.float32) * 0.01,
        "w3": conv_w(ks[4], 1, 64, 1, 1),
        "b3": jax.random.normal(ks[5], (1,), jnp.float32) * 0.01,
    }


def _reference_forward(x, params):
    """Pure-JAX (f32) transcription of the PyTorch forward (for verification)."""
    def conv(t, w):
        dn = jax.lax.conv_dimension_numbers(t.shape, w.shape,
                                            ("NCHW", "OIHW", "NCHW"))
        return jax.lax.conv_general_dilated(t, w, (1, 1), "SAME",
                                            dimension_numbers=dn)

    y = jax.nn.relu(conv(x, params["w1"]) + params["b1"][None, :, None, None])
    y = jax.nn.relu(conv(y, params["w2"]) + params["b2"][None, :, None, None])
    y = conv(y, params["w3"]) + params["b3"][None, :, None, None]
    return jax.nn.sigmoid(y)


if __name__ == "__main__":
    key = jax.random.PRNGKey(0)
    k_x, k_p = jax.random.split(key)

    B, Cin, H, W = 2, 64, 16, 16
    x = jax.random.normal(k_x, (B, Cin, H, W), jnp.float32)
    params = _init_params(k_p, Cin)

    out = ds_layer_pallas(x, params)
    out = jax.block_until_ready(out)

    ref = _reference_forward(x, params)
    assert out.shape == (B, 1, H, W)
    out_np = np.asarray(out)
    ref_np = np.asarray(ref)
    # bf16 MXU matmuls with f32 accumulation + approx-reciprocal sigmoid ->
    # loosened tolerance, plus a tight mean-error check for structural bugs.
    np.testing.assert_allclose(out_np, ref_np, rtol=5e-2, atol=5e-2)
    assert float(np.mean(np.abs(out_np - ref_np))) < 5e-3
    print("KERNEL_OK")
</pallas_src>

<mosaic_0001>
module attributes {stable_mosaic.version = 11 : i64} {
  func.func @_ds_layer_kernel(%arg0: i32, %arg1: memref<1x432x192xbf16, #tpu.memory_space<vmem>>, %arg2: memref<3x192x64xbf16, #tpu.memory_space<vmem>>, %arg3: memref<1x64xf32, #tpu.memory_space<vmem>>, %arg4: memref<3x192x64xbf16, #tpu.memory_space<vmem>>, %arg5: memref<1x64xf32, #tpu.memory_space<vmem>>, %arg6: memref<1x64xf32, #tpu.memory_space<vmem>>, %arg7: memref<1x1xf32, #tpu.memory_space<vmem>>, %arg8: memref<1x1x384xf32, #tpu.memory_space<vmem>>, %arg9: memref<432x192xbf16, #tpu.memory_space<vmem>>) attributes {dimension_semantics = [#tpu.dimension_semantics<parallel>], iteration_bounds = array<i64: 2>, scalar_prefetch = 0 : i64, scratch_operands = 1 : i64, tpu.core_type = #tpu.core_type<tc>, window_params = [{transform_indices = @transform_0, window_bounds = array<i64: 1, 432, 192>}, {pipeline_mode = #tpu.pipeline_mode<synchronous>, transform_indices = @transform_1, window_bounds = array<i64: 3, 192, 64>}, {pipeline_mode = #tpu.pipeline_mode<synchronous>, transform_indices = @transform_2, window_bounds = array<i64: 1, 64>}, {pipeline_mode = #tpu.pipeline_mode<synchronous>, transform_indices = @transform_3, window_bounds = array<i64: 3, 192, 64>}, {pipeline_mode = #tpu.pipeline_mode<synchronous>, transform_indices = @transform_4, window_bounds = array<i64: 1, 64>}, {pipeline_mode = #tpu.pipeline_mode<synchronous>, transform_indices = @transform_5, window_bounds = array<i64: 1, 64>}, {pipeline_mode = #tpu.pipeline_mode<synchronous>, transform_indices = @transform_6, window_bounds = array<i64: 1, 1>}, {transform_indices = @transform_7, window_bounds = array<i64: 1, 1, 384>}]} {
    %cst = arith.constant 0.000000e+00 : f32
    %0 = vector.broadcast %cst : f32 to vector<384x64xf32>
    %c0 = arith.constant 0 : index
    %c0_0 = arith.constant 0 : index
    %c0_1 = arith.constant 0 : index
    %1 = vector.load %arg1[%c0, %c0_0, %c0_1] : memref<1x432x192xbf16, #tpu.memory_space<vmem>>, vector<1x384x192xbf16>
    %2 = vector.shape_cast %1 : vector<1x384x192xbf16> to vector<384x192xbf16>
    %c0_2 = arith.constant 0 : index
    %c0_3 = arith.constant 0 : index
    %c0_4 = arith.constant 0 : index
    %3 = vector.load %arg2[%c0_2, %c0_3, %c0_4] : memref<3x192x64xbf16, #tpu.memory_space<vmem>>, vector<1x192x64xbf16>
    %4 = vector.shape_cast %3 : vector<1x192x64xbf16> to vector<192x64xbf16>
    %cst_5 = arith.constant dense<0.000000e+00> : vector<384x64xf32>
    %5 = tpu.matmul %2, %4, %cst_5 {dimension_numbers = #tpu.dot_dimension_numbers<[1], [0], [0], [1], [0, 0, 1, 1], [], []>} : vector<384x192xbf16>, vector<192x64xbf16>, vector<384x64xf32> -> vector<384x64xf32>
    %6 = arith.addf %0, %5 : vector<384x64xf32>
    %c0_6 = arith.constant 0 : index
    %c24 = arith.constant 24 : index
    %c0_7 = arith.constant 0 : index
    %7 = vector.load %arg1[%c0_6, %c24, %c0_7] : memref<1x432x192xbf16, #tpu.memory_space<vmem>>, vector<1x384x192xbf16>
    %8 = vector.shape_cast %7 : vector<1x384x192xbf16> to vector<384x192xbf16>
    %c1 = arith.constant 1 : index
    %c0_8 = arith.constant 0 : index
    %c0_9 = arith.constant 0 : index
    %9 = vector.load %arg2[%c1, %c0_8, %c0_9] : memref<3x192x64xbf16, #tpu.memory_space<vmem>>, vector<1x192x64xbf16>
    %10 = vector.shape_cast %9 : vector<1x192x64xbf16> to vector<192x64xbf16>
    %cst_10 = arith.constant dense<0.000000e+00> : vector<384x64xf32>
    %11 = tpu.matmul %8, %10, %cst_10 {dimension_numbers = #tpu.dot_dimension_numbers<[1], [0], [0], [1], [0, 0, 1, 1], [], []>} : vector<384x192xbf16>, vector<192x64xbf16>, vector<384x64xf32> -> vector<384x64xf32>
    %12 = arith.addf %6, %11 : vector<384x64xf32>
    %c0_11 = arith.constant 0 : index
    %c48 = arith.constant 48 : index
    %c0_12 = arith.constant 0 : index
    %13 = vector.load %arg1[%c0_11, %c48, %c0_12] : memref<1x432x192xbf16, #tpu.memory_space<vmem>>, vector<1x384x192xbf16>
    %14 = vector.shape_cast %13 : vector<1x384x192xbf16> to vector<384x192xbf16>
    %c2 = arith.constant 2 : index
    %c0_13 = arith.constant 0 : index
    %c0_14 = arith.constant 0 : index
    %15 = vector.load %arg2[%c2, %c0_13, %c0_14] : memref<3x192x64xbf16, #tpu.memory_space<vmem>>, vector<1x192x64xbf16>
    %16 = vector.shape_cast %15 : vector<1x192x64xbf16> to vector<192x64xbf16>
    %cst_15 = arith.constant dense<0.000000e+00> : vector<384x64xf32>
    %17 = tpu.matmul %14, %16, %cst_15 {dimension_numbers = #tpu.dot_dimension_numbers<[1], [0], [0], [1], [0, 0, 1, 1], [], []>} : vector<384x192xbf16>, vector<192x64xbf16>, vector<384x64xf32> -> vector<384x64xf32>
    %18 = arith.addf %12, %17 : vector<384x64xf32>
    %c0_16 = arith.constant 0 : index
    %c0_17 = arith.constant 0 : index
    %19 = vector.load %arg3[%c0_16, %c0_17] : memref<1x64xf32, #tpu.memory_space<vmem>>, vector<1x64xf32>
    %20 = vector.broadcast %19 : vector<1x64xf32> to vector<384x64xf32>
    %21 = arith.addf %18, %20 : vector<384x64xf32>
    %cst_18 = arith.constant 0.000000e+00 : f32
    %22 = vector.broadcast %cst_18 : f32 to vector<384x64xf32>
    %23 = arith.maximumf %21, %22 : vector<384x64xf32>
    %24 = tpu.iota {dimensions = array<i32: 0>} : vector<384x64xi32>
    %c24_i32 = arith.constant 24 : i32
    %c0_i32 = arith.constant 0 : i32
    %25 = arith.cmpi eq, %c24_i32, %c0_i32 : i32
    %c1_i32 = arith.constant 1 : i32
    %26 = arith.select %25, %c1_i32, %c24_i32 : i32
    %27 = vector.broadcast %26 : i32 to vector<384x64xi32>
    %28 = arith.remsi %24, %27 : vector<384x64xi32>
    %c0_i32_19 = arith.constant 0 : i32
    %29 = vector.broadcast %c0_i32_19 : i32 to vector<384x64xi32>
    %30 = arith.cmpi ne, %28, %29 : vector<384x64xi32>
    %c0_i32_20 = arith.constant 0 : i32
    %31 = vector.broadcast %c0_i32_20 : i32 to vector<384x64xi32>
    %32 = arith.cmpi slt, %28, %31 : vector<384x64xi32>
    %c0_i32_21 = arith.constant 0 : i32
    %33 = arith.cmpi slt, %26, %c0_i32_21 : i32
    %34 = vector.broadcast %33 : i1 to vector<384x64xi1>
    %35 = vector.broadcast %34 : vector<384x64xi1> to vector<384x64xi1>
    %36 = arith.xori %32, %35 : vector<384x64xi1>
    %37 = arith.andi %36, %30 : vector<384x64xi1>
    %38 = vector.broadcast %26 : i32 to vector<384x64xi32>
    %39 = arith.addi %28, %38 : vector<384x64xi32>
    %40 = arith.select %37, %39, %28 : vector<384x64xi1>, vector<384x64xi32>
    %c16_i32 = arith.constant 16 : i32
    %41 = vector.broadcast %c16_i32 : i32 to vector<384x64xi32>
    %42 = arith.cmpi slt, %40, %41 : vector<384x64xi32>
    %cst_22 = arith.constant 0.000000e+00 : f32
    %43 = vector.broadcast %cst_22 : f32 to vector<384x64xf32>
    %44 = arith.select %42, %23, %43 : vector<384x64xi1>, vector<384x64xf32>
    %45 = arith.truncf %44 : vector<384x64xf32> to vector<384x64xbf16>
    %cst_23 = arith.constant 0.000000e+00 : bf16
    %46 = vector.broadcast %cst_23 : bf16 to vector<25x192xbf16>
    %c0_24 = arith.constant 0 : index
    %c0_25 = arith.constant 0 : index
    %47 = vector.load %arg9[%c0_24, %c0_25] : memref<432x192xbf16, #tpu.memory_space<vmem>>, vector<25x192xbf16>
    tpu.vector_store %arg9[%c0_24, %c0_25], %46 {strides = array<i32>} : memref<432x192xbf16, #tpu.memory_space<vmem>>, vector<25x192xbf16>,
    %cst_26 = arith.constant 0.000000e+00 : bf16
    %48 = vector.broadcast %cst_26 : bf16 to vector<25x192xbf16>
    %c407 = arith.constant 407 : index
    %c0_27 = arith.constant 0 : index
    %49 = vector.load %arg9[%c407, %c0_27] : memref<432x192xbf16, #tpu.memory_space<vmem>>, vector<25x192xbf16>
    tpu.vector_store %arg9[%c407, %c0_27], %48 {strides = array<i32>} : memref<432x192xbf16, #tpu.memory_space<vmem>>, vector<25x192xbf16>,
    %c25 = arith.constant 25 : index
    %c0_28 = arith.constant 0 : index
    %50 = vector.load %arg9[%c25, %c0_28] : memref<432x192xbf16, #tpu.memory_space<vmem>>, vector<384x64xbf16>
    tpu.vector_store %arg9[%c25, %c0_28], %45 {strides = array<i32>} : memref<432x192xbf16, #tpu.memory_space<vmem>>, vector<384x64xbf16>,
    %c24_29 = arith.constant 24 : index
    %c64 = arith.constant 64 : index
    %51 = vector.load %arg9[%c24_29, %c64] : memref<432x192xbf16, #tpu.memory_space<vmem>>, vector<384x64xbf16>
    tpu.vector_store %arg9[%c24_29, %c64], %45 {strides = array<i32>} : memref<432x192xbf16, #tpu.memory_space<vmem>>, vector<384x64xbf16>,
    %c23 = arith.constant 23 : index
    %c128 = arith.constant 128 : index
    %52 = vector.load %arg9[%c23, %c128] : memref<432x192xbf16, #tpu.memory_space<vmem>>, vector<384x64xbf16>
    tpu.vector_store %arg9[%c23, %c128], %45 {strides = array<i32>} : memref<432x192xbf16, #tpu.memory_space<vmem>>, vector<384x64xbf16>,
    %cst_30 = arith.constant 0.000000e+00 : f32
    %53 = vector.broadcast %cst_30 : f32 to vector<384x64xf32>
    %c0_31 = arith.constant 0 : index
    %c0_32 = arith.constant 0 : index
    %54 = vector.load %arg9[%c0_31, %c0_32] : memref<432x192xbf16, #tpu.memory_space<vmem>>, vector<384x192xbf16>
    %c0_33 = arith.constant 0 : index
    %c0_34 = arith.constant 0 : index
    %c0_35 = arith.constant 0 : index
    %55 = vector.load %arg4[%c0_33, %c0_34, %c0_35] : memref<3x192x64xbf16, #tpu.memory_space<vmem>>, vector<1x192x64xbf16>
    %56 = vector.shape_cast %55 : vector<1x192x64xbf16> to vector<192x64xbf16>
    %cst_36 = arith.constant dense<0.000000e+00> : vector<384x64xf32>
    %57 = tpu.matmul %54, %56, %cst_36 {dimension_numbers = #tpu.dot_dimension_numbers<[1], [0], [0], [1], [0, 0, 1, 1], [], []>} : vector<384x192xbf16>, vector<192x64xbf16>, vector<384x64xf32> -> vector<384x64xf32>
    %58 = arith.addf %53, %57 : vector<384x64xf32>
    %c24_37 = arith.constant 24 : index
    %c0_38 = arith.constant 0 : index
    %59 = vector.load %arg9[%c24_37, %c0_38] : memref<432x192xbf16, #tpu.memory_space<vmem>>, vector<384x192xbf16>
    %c1_39 = arith.constant 1 : index
    %c0_40 = arith.constant 0 : index
    %c0_41 = arith.constant 0 : index
    %60 = vector.load %arg4[%c1_39, %c0_40, %c0_41] : memref<3x192x64xbf16, #tpu.memory_space<vmem>>, vector<1x192x64xbf16>
    %61 = vector.shape_cast %60 : vector<1x192x64xbf16> to vector<192x64xbf16>
    %cst_42 = arith.constant dense<0.000000e+00> : vector<384x64xf32>
    %62 = tpu.matmul %59, %61, %cst_42 {dimension_numbers = #tpu.dot_dimension_numbers<[1], [0], [0], [1], [0, 0, 1, 1], [], []>} : vector<384x192xbf16>, vector<192x64xbf16>, vector<384x64xf32> -> vector<384x64xf32>
    %63 = arith.addf %58, %62 : vector<384x64xf32>
    %c48_43 = arith.constant 48 : index
    %c0_44 = arith.constant 0 : index
    %64 = vector.load %arg9[%c48_43, %c0_44] : memref<432x192xbf16, #tpu.memory_space<vmem>>, vector<384x192xbf16>
    %c2_45 = arith.constant 2 : index
    %c0_46 = arith.constant 0 : index
    %c0_47 = arith.constant 0 : index
    %65 = vector.load %arg4[%c2_45, %c0_46, %c0_47] : memref<3x192x64xbf16, #tpu.memory_space<vmem>>, vector<1x192x64xbf16>
    %66 = vector.shape_cast %65 : vector<1x192x64xbf16> to vector<192x64xbf16>
    %cst_48 = arith.constant dense<0.000000e+00> : vector<384x64xf32>
    %67 = tpu.matmul %64, %66, %cst_48 {dimension_numbers = #tpu.dot_dimension_numbers<[1], [0], [0], [1], [0, 0, 1, 1], [], []>} : vector<384x192xbf16>, vector<192x64xbf16>, vector<384x64xf32> -> vector<384x64xf32>
    %68 = arith.addf %63, %67 : vector<384x64xf32>
    %c0_49 = arith.constant 0 : index
    %c0_50 = arith.constant 0 : index
    %69 = vector.load %arg5[%c0_49, %c0_50] : memref<1x64xf32, #tpu.memory_space<vmem>>, vector<1x64xf32>
    %70 = vector.broadcast %69 : vector<1x64xf32> to vector<384x64xf32>
    %71 = arith.addf %68, %70 : vector<384x64xf32>
    %cst_51 = arith.constant 0.000000e+00 : f32
    %72 = vector.broadcast %cst_51 : f32 to vector<384x64xf32>
    %73 = arith.maximumf %71, %72 : vector<384x64xf32>
    %c0_52 = arith.constant 0 : index
    %c0_53 = arith.constant 0 : index
    %74 = vector.load %arg6[%c0_52, %c0_53] : memref<1x64xf32, #tpu.memory_space<vmem>>, vector<1x64xf32>
    %75 = vector.broadcast %74 : vector<1x64xf32> to vector<384x64xf32>
    %76 = arith.mulf %73, %75 : vector<384x64xf32>
    %cst_54 = arith.constant dense<0.000000e+00> : vector<384xf32>
    %77 = vector.multi_reduction <add>, %76, %cst_54 [1] : vector<384x64xf32> to vector<384xf32>
    %c0_55 = arith.constant 0 : index
    %c0_56 = arith.constant 0 : index
    %78 = vector.load %arg7[%c0_55, %c0_56] : memref<1x1xf32, #tpu.memory_space<vmem>>, vector<1x1xf32>
    %79 = vector.shape_cast %78 : vector<1x1xf32> to vector<1xf32>
    %80 = vector.broadcast %79 : vector<1xf32> to vector<384xf32>
    %81 = arith.addf %77, %80 : vector<384xf32>
    %cst_57 = arith.constant 0.000000e+00 : f32
    %82 = vector.broadcast %cst_57 : f32 to vector<384xf32>
    %83 = arith.subf %82, %81 : vector<384xf32>
    %84 = math.exp %83 : vector<384xf32>
    %cst_58 = arith.constant 1.000000e+00 : f32
    %85 = vector.broadcast %cst_58 : f32 to vector<384xf32>
    %86 = arith.addf %85, %84 : vector<384xf32>
    %87 = tpu.reciprocal %86 {approx = true} : vector<384xf32> -> vector<384xf32>
    %c0_59 = arith.constant 0 : index
    %c0_60 = arith.constant 0 : index
    %c0_61 = arith.constant 0 : index
    %88 = vector.load %arg8[%c0_59, %c0_60, %c0_61] : memref<1x1x384xf32, #tpu.memory_space<vmem>>, vector<1x1x384xf32>
    %89 = vector.shape_cast %88 : vector<1x1x384xf32> to vector<384xf32>
    %90 = vector.shape_cast %87 : vector<384xf32> to vector<1x1x384xf32>
    tpu.vector_store %arg8[%c0_59, %c0_60, %c0_61], %90 {strides = array<i32>} : memref<1x1x384xf32, #tpu.memory_space<vmem>>, vector<1x1x384xf32>,
    return
  }
  func.func @transform_0(%arg0: i32) -> (i32, i32, i32) {
    %c0_i32 = arith.constant 0 : i32
    %c0_i32_0 = arith.constant 0 : i32
    %c0_i32_1 = arith.constant 0 : i32
    return %arg0, %c0_i32, %c0_i32_0 : i32, i32, i32
  }
  func.func @transform_1(%arg0: i32) -> (i32, i32, i32) {
    %c0_i32 = arith.constant 0 : i32
    %c0_i32_0 = arith.constant 0 : i32
    %c0_i32_1 = arith.constant 0 : i32
    %c0_i32_2 = arith.constant 0 : i32
    return %c0_i32, %c0_i32_0, %c0_i32_1 : i32, i32, i32
  }
  func.func @transform_2(%arg0: i32) -> (i32, i32) {
    %c0_i32 = arith.constant 0 : i32
    %c0_i32_0 = arith.constant 0 : i32
    %c0_i32_1 = arith.constant 0 : i32
    return %c0_i32, %c0_i32_0 : i32, i32
  }
  func.func @transform_3(%arg0: i32) -> (i32, i32, i32) {
    %c0_i32 = arith.constant 0 : i32
    %c0_i32_0 = arith.constant 0 : i32
    %c0_i32_1 = arith.constant 0 : i32
    %c0_i32_2 = arith.constant 0 : i32
    return %c0_i32, %c0_i32_0, %c0_i32_1 : i32, i32, i32
  }
  func.func @transform_4(%arg0: i32) -> (i32, i32) {
    %c0_i32 = arith.constant 0 : i32
    %c0_i32_0 = arith.constant 0 : i32
    %c0_i32_1 = arith.constant 0 : i32
    return %c0_i32, %c0_i32_0 : i32, i32
  }
  func.func @transform_5(%arg0: i32) -> (i32, i32) {
    %c0_i32 = arith.constant 0 : i32
    %c0_i32_0 = arith.constant 0 : i32
    %c0_i32_1 = arith.constant 0 : i32
    return %c0_i32, %c0_i32_0 : i32, i32
  }
  func.func @transform_6(%arg0: i32) -> (i32, i32) {
    %c0_i32 = arith.constant 0 : i32
    %c0_i32_0 = arith.constant 0 : i32
    %c0_i32_1 = arith.constant 0 : i32
    return %c0_i32, %c0_i32_0 : i32, i32
  }
  func.func @transform_7(%arg0: i32) -> (i32, i32, i32) {
    %c0_i32 = arith.constant 0 : i32
    %c0_i32_0 = arith.constant 0 : i32
    %c0_i32_1 = arith.constant 0 : i32
    return %arg0, %c0_i32, %c0_i32_0 : i32, i32, i32
  }
}

</mosaic_0001>

<bundles_post_ra>
// kernel: tpu_custom_call.1
= control target key start
LH: loop header
LB: loop body
LE: loop exit
PB: predicated region body
PF: predicated region fallthrough
CT: control target
= control target key end

     0   :  { %s18674_s0 = inlined_call_operand.vmem [shape: bf16[2,432,192], index: 0, kind: input, shape index: {}]   ;;  %s18675_s1 = inlined_call_operand.vmem [shape: bf16[3,192,64], index: 1, kind: input, shape index: {}]   ;;  %s18676_s2 = inlined_call_operand.vmem [shape: f32[1,64], index: 2, kind: input, shape index: {}]   ;;  %s18677_s3 = inlined_call_operand.vmem [shape: bf16[3,192,64], index: 3, kind: input, shape index: {}]   ;;  %s18678_s4 = inlined_call_operand.vmem [shape: f32[1,64], index: 4, kind: input, shape index: {}]   ;;  %s18679_s5 = inlined_call_operand.vmem [shape: f32[1,64], index: 5, kind: input, shape index: {}]   ;;  %s18680_s6 = inlined_call_operand.<no memory space> [shape: f32[1,1], index: 6, kind: input, shape index: {}]   ;;  %s18681_s7 = inlined_call_operand.hbm [shape: f32[2,1,384], index: 7, kind: output, shape index: {}]  }
   0x1   :  { %v12_v0 = vstv %s18680_s6 }
   0x2   :  { %13 = vst [vmem:[#allocation3] sm:$0x1] %v12_v0 }
   0x3   :  { %14 = vsyncpa [#allocation5], 0 }
   0x4   :  { %16 = vsyncpa [#allocation5 + $0x1], 0  ;;  %s12646_s26 = smov 0   ;;  %s12648_s27 = smov 0  }
   0x5   :  { %s12650_s28 = smov 0   ;;  %s12652_s29 = smov 0  }
   0x6 LB: > { %s12667_s6 = sadd.s32 4294967295, %s12597_s29   ;;  %s11285_s30 = sadd.s32 4294967294, %s12597_s29   ;;  %s12597_s29 = sphi %s12652_s29, %s19719_s29   ;;  %s12593_s28 = sphi %s12650_s28, %s19718_s28   ;;  %s12589_s27 = sphi %s12648_s27, %s19717_s27   ;;  %s12585_s26 = sphi %s12646_s26, %s19716_s26  }
   0x7   : > { %s12671_s8 = sadd.s32 1, %s12597_s29   ;;  %s181_s9 = sadd.s32 1, %s12593_s28 }
   0x8   : > { %s178_s10 = ssub.s32 %s12597_s29, %s12671_s8  ;;  %p191_p0 = scmp.ne.s32.totalorder %s12593_s28, %s12589_s27 }
   0x9   : > { %p179_p1 = scmp.eq.s32.totalorder %s178_s10, 0  ;;  %p192_p2 = scmp.eq.s32.totalorder %s12667_s6, 1 }
   0xa   : > { %p197_p3 = scmp.ne.s32.totalorder %s12589_s27, %s12585_s26  ;;  %p198_p4 = scmp.eq.s32.totalorder %s11285_s30, 1 }
   0xb   : > { %s12682_s11 = scalar_select %p179_p1, %s12593_s28, %s181_s9  }
   0xc   : > { %p12684_p5 = por %p192_p2, %p191_p0  ;;  %p12688_p6 = por %p198_p4, %p197_p3 }
   0xd   : > { %p11288_p7 = scmp.ge.s32.totalorder %s12597_s29, 1  ;;  %p242_p8 = scmp.lt.s32.totalorder %s12597_s29, 3 }
   0xf   : > { %p243_p9 = pnand %p11288_p7, %p242_p8 }
  0x11   : > { %246 = sbr.rel (%p243_p9) target bundleno = 1882 (0x75a), region = 48 }
  0x16   : > { %v12135_v1 = vld [vmem:[%s18675_s1 + $0x98] sm:$0xff]   ;;  %v18684_v2 = vmov 0   ;;  %v12137_v4 = vld [vmem:[%s18675_s1 + $0x90] sm:$0xff]   ;;  %v12139_v6 = vld [vmem:[%s18675_s1 + $0x88] sm:$0xff]   ;;  %p274_p10 = scmp.lt.s32.totalorder %s12667_s6, 1  ;;  %vm18688_vm0 = vcmask 523264  }
  0x17   : > { %741 = vmatprep.subr.bf16.mxu0 %v18684_v2  ;;  %1191 = vmatprep.subr.bf16.mxu1 %v18684_v2  ;;  %v12136_v3 = vld [vmem:[%s18675_s1 + $0x38] sm:$0xff]   ;;  %v12138_v5 = vld [vmem:[%s18675_s1 + $0x30] sm:$0xff]   ;;  %v12140_v7 = vld [vmem:[%s18675_s1 + $0x28] sm:$0xff]   ;;  %vm3162_vm1 = vcmask 1043456   ;;  %vm3163_vm2 = vcmask 523268   ;;  %vm3168_vm4 = vcmask 1040384  }
  0x18   : > { %742 = vmatpush1.bf16.msra.mxu0 %v12135_v1  ;;  %12133 = vset.pattern.permute.xlu1 %v18684_v2  ;;  %v12141_v8 = vld [vmem:[%s18675_s1 + $0x80] sm:$0xff]   ;;  %s275_s15 = scalar_select %p274_p10, %s12667_s6, 1  ;;  %v12143_v10 = vld [vmem:[%s18675_s1 + $0x78] sm:$0xff]   ;;  %v12145_v12 = vld [vmem:[%s18675_s1 + $0x70] sm:$0xff]   ;;  %vm18686_vm5 = vsmask.f32 256 }
  0x19   : > { %1192 = vmatpush1.bf16.msra.mxu1 %v12136_v3  ;;  %743 = vmatprep.subr.bf16.mxu0 %v18684_v2  ;;  %v12142_v9 = vld [vmem:[%s18675_s1 + $0x20] sm:$0xff]   ;;  %v12144_v11 = vld [vmem:[%s18675_s1 + $0x18] sm:$0xff]   ;;  %v12146_v13 = vld [vmem:[%s18675_s1 + $0x10] sm:$0xff]   ;;  %vm3171_vm6 = vcmask 520196   ;;  %vm3172_vm7 = vsmask.f32 4352 }
  0x1a   : > { %1193 = vmatprep.subr.bf16.mxu1 %v18684_v2  ;;  %12134 = vset.pattern.permute.xlu0 %v18684_v2  ;;  %s11993_s20 = smul.u32 432, %s275_s15  ;;  %v12147_v14 = vld [vmem:[%s18675_s1 + $0x68] sm:$0xff]   ;;  %v12149_v20 = vld [vmem:[%s18675_s1 + $0x60] sm:$0xff]   ;;  %v12151_v22 = vld [vmem:[%s18675_s1 + $0xb8] sm:$0xff]   ;;  %s12600_s30 = smov 64  }
  0x1b   : > { %v12148_v15 = vld [vmem:[%s18675_s1 + $0x8] sm:$0xff]   ;;  %v12150_v21 = vld [vmem:[%s18675_s1] sm:$0xff]   ;;  %v12152_v23 = vld [vmem:[%s18675_s1 + $0x58] sm:$0xff]   ;;  %s271_s16 = sand.u32 1, %s12589_s27   ;;  %s12090_s18 = smul.u32 48, %s12667_s6 }
  0x1c   : > { %744 = vmatpush1.bf16.msra.mxu0 %v12137_v4  ;;  %s12749_s9 = scalar_lea.vmem %s18674_s0, %s11993_s20  ;;  %v12153_v24 = vld [vmem:[%s18675_s1 + $0xb0] sm:$0xff]   ;;  %v12155_v26 = vld [vmem:[%s18675_s1 + $0xa8] sm:$0xff]   ;;  %v12157_v28 = vld [vmem:[%s18675_s1 + $0xa0] sm:$0xff]   ;;  %s11992_s17 = smul.u32 3, %s271_s16 }
  0x1d   : > { %1194 = vmatpush1.bf16.msra.mxu1 %v12138_v5  ;;  %745 = vmatprep.subr.bf16.mxu0 %v18684_v2  ;;  %v12760_v16 = vld [vmem:[%s12749_s9 + $0x18] sm:$0xff]  ;;  %v12763_v17 = vld [vmem:[%s12749_s9 + $0x20] sm:$0xff]  ;;  %v12154_v25 = vld [vmem:[%s18675_s1 + $0x50] sm:$0xff]   ;;  %s11224_s22 = scalar_lea.hbm %s18681_s7, %s12090_s18  ;;  %s11212_s23 = scalar_lea.sflag [#allocation5], %s271_s16 }
  0x1e   : > { %1195 = vmatprep.subr.bf16.mxu1 %v18684_v2  ;;  %v11315_v18 = vcombine.high %v12760_v16, %v12763_v17  ;;  %v12162_v19 = vld [vmem:[%s12749_s9 + $0x4] ss:$8 sps:$4 sm:$0xff]   ;;  %v12160_v30 = vld [vmem:[%s12749_s9] ss:$8 sps:$4 sm:$0xff]   ;;  %v12164_v31 = vld [vmem:[%s18675_s1 + $0xf8] sm:$0xff]   ;;  %v11314_v35 = vcombine.low %v12760_v16, %v12763_v17  ;;  %s12602_s6 = smov [#allocation4]  }
  0x1f   : > { %11458 = vmatprep.mubr.msk.bf16.mxu1 %vm18688_vm0, %v12162_v19  ;;  %v12156_v27 = vld [vmem:[%s18675_s1 + $0x48] sm:$0xff]   ;;  %v12158_v29 = vld [vmem:[%s18675_s1 + $0x40] sm:$0xff]   ;;  %v286_v33 = vld [vmem:[%s12749_s9 + $0x30] sm:$0xff]  ;;  %s12541_s25 = sshll.u32 %s12602_s6, 4  ;;  %s12542_s25 = int_to_ptr.vmem [resolvable:$false] %s12541_s25 }
  0x20   : > { %746 = vmatpush1.bf16.msra.mxu0 %v12139_v6  ;;  %11374 = vmatprep.mubr.msk.bf16.mxu0 %vm18688_vm0, %v11315_v18  ;;  %v285_v32 = vld [vmem:[%s12749_s9 + $0x28] sm:$0xff]  ;;  %v282_v34 = vld [vmem:[%s12749_s9 + $0x10] sm:$0xff]  ;;  %v287_v38 = vld [vmem:[%s12749_s9 + $0x38] sm:$0xff] }
  0x21   : > { %1196 = vmatpush1.bf16.msra.mxu1 %v12140_v7  ;;  %747 = vmatprep.subr.bf16.mxu0 %v18684_v2  ;;  %v11317_v36 = vcombine.high %v285_v32, %v286_v33  ;;  %v11401_v37 = vcombine.high %v282_v34, %v12760_v16  ;;  %v288_v39 = vld [vmem:[%s12749_s9 + $0x40] sm:$0xff]  ;;  %v12173_v40 = vld [vmem:[%s18675_s1 + $0xf0] sm:$0xff]   ;;  %v11316_v41 = vcombine.low %v285_v32, %v286_v33  ;;  %v12182_v42 = vld [vmem:[%s18675_s1 + $0xe8] sm:$0xff]  }
  0x22   : > { %1197 = vmatprep.subr.bf16.mxu1 %v18684_v2  ;;  %v11400_v43 = vcombine.low %v282_v34, %v12760_v16  ;;  %v11319_v44 = vcombine.high %v287_v38, %v288_v39  ;;  %v11403_v45 = vcombine.high %v12763_v17, %v285_v32  ;;  %v289_v46 = vld [vmem:[%s12749_s9 + $0x48] sm:$0xff]  ;;  %v290_v47 = vld [vmem:[%s12749_s9 + $0x50] sm:$0xff]  ;;  %v12191_v48 = vld [vmem:[%s18675_s1 + $0xe0] sm:$0xff]   ;;  %v11318_v49 = vcombine.low %v287_v38, %v288_v39 }
  0x23   : > { %v12200_v50 = vld [vmem:[%s18675_s1 + $0xd8] sm:$0xff]   ;;  %v11402_v51 = vcombine.low %v12763_v17, %v285_v32  ;;  %v11321_v52 = vcombine.high %v289_v46, %v290_v47  ;;  %v12848_v53 = vcombine.high %v286_v33, %v287_v38  ;;  %v292_v55 = vld [vmem:[%s12749_s9 + $0x60] sm:$0xff]  ;;  %v12209_v56 = vld [vmem:[%s18675_s1 + $0xd0] sm:$0xff]   ;;  %v11320_v57 = vcombine.low %v289_v46, %v290_v47 }
  0x24   : > { %748 = vmatpush1.bf16.msra.mxu0 %v12141_v8  ;;  %v291_v54 = vld [vmem:[%s12749_s9 + $0x58] sm:$0xff]  ;;  %v12218_v58 = vld [vmem:[%s18675_s1 + $0xc8] sm:$0xff]   ;;  %v12863_v59 = vcombine.low %v286_v33, %v287_v38  ;;  %v12865_v61 = vcombine.high %v288_v39, %v289_v46  ;;  %v294_v63 = vld [vmem:[%s12749_s9 + $0x70] sm:$0xff]  ;;  %v12878_v3 = vcombine.low %v288_v39, %v289_v46 }
  0x25   : > { %1198 = vmatpush1.bf16.msra.mxu1 %v12142_v9  ;;  %749 = vmatprep.subr.bf16.mxu0 %v18684_v2  ;;  %v11323_v60 = vcombine.high %v291_v54, %v292_v55  ;;  %v293_v62 = vld [vmem:[%s12749_s9 + $0x68] sm:$0xff]  ;;  %v12227_v0 = vld [vmem:[%s18675_s1 + $0xc0] sm:$0xff]   ;;  %v11322_v1 = vcombine.low %v291_v54, %v292_v55  ;;  %v12880_v5 = vcombine.high %v290_v47, %v291_v54  ;;  %v12236_v6 = vld [vmem:[%s18675_s1 + $0x118] sm:$0xff]  }
  0x26   : > { %1199 = vmatprep.subr.bf16.mxu1 %v18684_v2  ;;  %v11325_v4 = vcombine.high %v293_v62, %v294_v63  ;;  %v295_v7 = vld [vmem:[%s12749_s9 + $0x78] sm:$0xff]  ;;  %v296_v8 = vld [vmem:[%s12749_s9 + $0x80] sm:$0xff]  ;;  %v12245_v9 = vld [vmem:[%s18675_s1 + $0x110] sm:$0xff]   ;;  %v12911_v18 = vcombine.low %v292_v55, %v293_v62 }
  0x27   : > { %v298_v16 = vld [vmem:[%s12749_s9 + $0x90] sm:$0xff]  ;;  %v11326_v17 = vcombine.low %v295_v7, %v296_v8  ;;  %v303_v34 = vld [vmem:[%s12749_s9 + $0xb8] sm:$0xff]  ;;  %vm3164_vm3 = vmor %vm3163_vm2, %vm3162_vm1 }
  0x28   : > { %750 = vmatpush1.bf16.msra.mxu0 %v12143_v10  ;;  %v11324_v10 = vcombine.low %v293_v62, %v294_v63  ;;  %v307_v46 = vld [vmem:[%s12749_s9 + $0xd8] sm:$0xff]  ;;  %3165 = vst.msk [vmem:[#allocation2] sm:$0xff] %vm3164_vm3, %v18684_v2  ;;  %3166 = vst.msk [vmem:[#allocation2 + $0x8] sm:$0xff] %vm3164_vm3, %v18684_v2 }
  0x29   : > { %1200 = vmatpush1.bf16.msra.mxu1 %v12144_v11  ;;  %751 = vmatprep.subr.bf16.mxu0 %v18684_v2  ;;  %v12896_v11 = vcombine.low %v290_v47, %v291_v54  ;;  %v308_v47 = vld [vmem:[%s12749_s9 + $0xe0] sm:$0xff]  ;;  %v310_v54 = vld [vmem:[%s12749_s9 + $0xf0] sm:$0xff]  ;;  %3167 = vst.msk [vmem:[#allocation2 + $0x10] sm:$0xff] %vm3164_vm3, %v18684_v2  ;;  %3189 = vst.msk [vmem:[#allocation2 + $0x1a0] sm:$0xff] %vm3164_vm3, %v18684_v2 }
  0x2a   : > { %1201 = vmatprep.subr.bf16.mxu1 %v18684_v2  ;;  %3190 = vst.msk [vmem:[#allocation2 + $0x1a8] sm:$0xff] %vm3164_vm3, %v18684_v2  ;;  %3188 = vst.msk [vmem:[#allocation2 + $0x198] sm:$0xff] %vm3164_vm3, %v18684_v2 }
  0x2b   : > { %vm3170_vm8 = vmand %vm3168_vm4, %vm18686_vm5 }
  0x2c   : > { %752 = vmatpush1.bf16.msra.mxu0 %v12145_v12  ;;  %v11327_v12 = vcombine.high %v295_v7, %v296_v8  ;;  %vm3173_vm9 = vmand %vm3171_vm6, %vm3172_vm7 }
  0x2d   : > { %1202 = vmatpush1.bf16.msra.mxu1 %v12146_v13  ;;  %753 = vmatprep.subr.bf16.mxu0 %v18684_v2  ;;  %v12898_v13 = vcombine.high %v292_v55, %v293_v62  ;;  %v11338_v55 = vcombine.low %v307_v46, %v308_v47  ;;  %v312_v62 = vld [vmem:[%s12749_s9 + $0x100] sm:$0xff]  ;;  %vm3174_vm10 = vmor %vm3173_vm9, %vm3170_vm8 }
  0x2e   : > { %1203 = vmatprep.subr.bf16.mxu1 %v18684_v2 }
  0x30   : > { %754 = vmatpush1.bf16.msra.mxu0 %v12147_v14  ;;  %v12254_v14 = vld [vmem:[%s18675_s1 + $0x108] sm:$0xff]  }
  0x31   : > { %1204 = vmatpush1.bf16.msra.mxu1 %v12148_v15  ;;  %755 = vmatprep.subr.bf16.mxu0 %v18684_v2  ;;  %v297_v15 = vld [vmem:[%s12749_s9 + $0x88] sm:$0xff] }
  0x32   : > { %1205 = vmatprep.subr.bf16.mxu1 %v18684_v2  ;;  %v11329_v19 = vcombine.high %v297_v15, %v298_v16 }
  0x34   : > { %756 = vmatpush1.bf16.msra.mxu0 %v12149_v20  ;;  %v12913_v20 = vcombine.high %v294_v63, %v295_v7 }
  0x35   : > { %1206 = vmatpush1.bf16.msra.mxu1 %v12150_v21  ;;  %765 = vmatprep.subr.bf16.mxu0 %v18684_v2  ;;  %v12263_v21 = vld [vmem:[%s18675_s1 + $0x100] sm:$0xff]  }
  0x36   : > { %1215 = vmatprep.subr.bf16.mxu1 %v18684_v2 }
  0x38   : > { %766 = vmatpush2.bf16.msra.mxu0 %v12151_v22  ;;  %v299_v22 = vld [vmem:[%s12749_s9 + $0x98] sm:$0xff] }
  0x39   : > { %1216 = vmatpush2.bf16.msra.mxu1 %v12152_v23  ;;  %767 = vmatprep.subr.bf16.mxu0 %v18684_v2  ;;  %v300_v23 = vld [vmem:[%s12749_s9 + $0xa0] sm:$0xff]  ;;  %v12937_v33 = vcombine.high %v298_v16, %v299_v22 }
  0x3a   : > { %1217 = vmatprep.subr.bf16.mxu1 %v18684_v2 }
  0x3c   : > { %768 = vmatpush2.bf16.msra.mxu0 %v12153_v24  ;;  %v11328_v24 = vcombine.low %v297_v15, %v298_v16 }
  0x3d   : > { %1218 = vmatpush2.bf16.msra.mxu1 %v12154_v25  ;;  %769 = vmatprep.subr.bf16.mxu0 %v18684_v2  ;;  %v12925_v25 = vcombine.low %v294_v63, %v295_v7  ;;  %v314_v7 = vld [vmem:[%s12749_s9 + $0x110] sm:$0xff] }
  0x3e   : > { %1219 = vmatprep.subr.bf16.mxu1 %v18684_v2 }
  0x40   : > { %770 = vmatpush2.bf16.msra.mxu0 %v12155_v26  ;;  %v11331_v26 = vcombine.high %v299_v22, %v300_v23 }
  0x41   : > { %1220 = vmatpush2.bf16.msra.mxu1 %v12156_v27  ;;  %771 = vmatprep.subr.bf16.mxu0 %v18684_v2  ;;  %v12927_v27 = vcombine.high %v296_v8, %v297_v15 }
  0x42   : > { %1221 = vmatprep.subr.bf16.mxu1 %v18684_v2 }
  0x44   : > { %772 = vmatpush2.bf16.msra.mxu0 %v12157_v28  ;;  %v301_v28 = vld [vmem:[%s12749_s9 + $0xa8] sm:$0xff] }
  0x45   : > { %1222 = vmatpush2.bf16.msra.mxu1 %v12158_v29  ;;  %1849 = vmatprep.subr.bf16.mxu0 %v18684_v2  ;;  %v302_v29 = vld [vmem:[%s12749_s9 + $0xb0] sm:$0xff]  ;;  %v12947_v39 = vcombine.high %v300_v23, %v301_v28 }
  0x46   : > { %4852 = vmatprep.subr.bf16.mxu1 %v18684_v2  ;;  %v11333_v32 = vcombine.high %v301_v28, %v302_v29 }
  0x47   : > { %774 = vmatmul.mubr.bf16.vlgmr.msra.gmra.mxu0 %v11314_v35  ;;  %v304_v35 = vld [vmem:[%s12749_s9 + $0xc0] sm:$0xff] }
  0x48   : > { %1224 = vmatmul.mubr.bf16.vlgmr.msra.gmra.mxu1 %v12160_v30  ;;  %1850 = vmatpush1.bf16.msra.mxu0 %v12164_v31  ;;  %v11330_v30 = vcombine.low %v299_v22, %v300_v23  ;;  %v12935_v31 = vcombine.low %v296_v8, %v297_v15  ;;  %v11335_v38 = vcombine.high %v303_v34, %v304_v35  ;;  %v316_v15 = vld [vmem:[%s12749_s9 + $0x120] sm:$0xff] }
  0x49   : > { %11375 = vmatprep.mubr.msk.bf16.mxu0 %vm18688_vm0, %v11317_v36  ;;  %11459 = vmatprep.mubr.msk.bf16.mxu1 %vm18688_vm0, %v11401_v37  ;;  %v11332_v36 = vcombine.low %v301_v28, %v302_v29  ;;  %v12945_v37 = vcombine.low %v298_v16, %v299_v22  ;;  %v317_v22 = vld [vmem:[%s12749_s9 + $0x128] sm:$0xff] }
  0x4a   : > { %1851 = vmatprep.subr.bf16.mxu0 %v18684_v2 }
  0x4c   : > { %1852 = vmatpush1.bf16.msra.mxu0 %v12173_v40  ;;  %v305_v40 = vld [vmem:[%s12749_s9 + $0xc8] sm:$0xff] }
  0x4d   : > { %1853 = vmatprep.subr.bf16.mxu0 %v18684_v2 }
  0x4f   : > { %782 = vmatmul.mubr.bf16.gmra.mxu0 %v11316_v41  ;;  %v306_v41 = vld [vmem:[%s12749_s9 + $0xd0] sm:$0xff] }
  0x50   : > { %1232 = vmatmul.mubr.bf16.gmra.mxu1 %v11400_v43  ;;  %11376 = vmatprep.mubr.msk.bf16.mxu0 %vm18688_vm0, %v11319_v44  ;;  %v12955_v43 = vcombine.low %v300_v23, %v301_v28  ;;  %v11337_v44 = vcombine.high %v305_v40, %v306_v41  ;;  %v318_v23 = vld [vmem:[%s12749_s9 + $0x130] sm:$0xff] }
  0x51   : > { %11460 = vmatprep.mubr.msk.bf16.mxu1 %vm18688_vm0, %v11403_v45  ;;  %1854 = vmatpush1.bf16.msra.mxu0 %v12182_v42  ;;  %v11334_v42 = vcombine.low %v303_v34, %v304_v35  ;;  %v12957_v45 = vcombine.high %v302_v29, %v303_v34  ;;  %v11349_v28 = vcombine.high %v317_v22, %v318_v23 }
  0x52   : > { %1855 = vmatprep.subr.bf16.mxu0 %v18684_v2 }
  0x55   : > { %1856 = vmatpush1.bf16.msra.mxu0 %v12191_v48  ;;  %v11336_v48 = vcombine.low %v305_v40, %v306_v41 }
  0x56   : > { %1857 = vmatprep.subr.bf16.mxu0 %v18684_v2 }
  0x57   : > { %790 = vmatmul.mubr.bf16.gmra.mxu0 %v11318_v49  ;;  %v12965_v49 = vcombine.low %v302_v29, %v303_v34  ;;  %v11348_v34 = vcombine.low %v317_v22, %v318_v23 }
  0x58   : > { %1240 = vmatmul.mubr.bf16.gmra.mxu1 %v11402_v51  ;;  %11377 = vmatprep.mubr.msk.bf16.mxu0 %vm18688_vm0, %v11321_v52  ;;  %v12967_v51 = vcombine.high %v304_v35, %v305_v40  ;;  %v309_v52 = vld [vmem:[%s12749_s9 + $0xe8] sm:$0xff] }
  0x59   : > { %11461 = vmatprep.mubr.msk.bf16.mxu1 %vm18688_vm0, %v12848_v53  ;;  %1858 = vmatpush1.bf16.msra.mxu0 %v12200_v50  ;;  %v11339_v50 = vcombine.high %v307_v46, %v308_v47  ;;  %v11340_v63 = vcombine.low %v309_v52, %v310_v54 }
  0x5a   : > { %1859 = vmatprep.subr.bf16.mxu0 %v18684_v2 }
  0x5d   : > { %1860 = vmatpush1.bf16.msra.mxu0 %v12209_v56  ;;  %v12975_v56 = vcombine.low %v304_v35, %v305_v40  ;;  %v321_v40 = vld [vmem:[%s12749_s9 + $0x148] sm:$0xff] }
  0x5e   : > { %1861 = vmatprep.subr.bf16.mxu0 %v18684_v2 }
  0x5f   : > { %798 = vmatmul.mubr.bf16.gmra.mxu0 %v11320_v57  ;;  %v11341_v57 = vcombine.high %v309_v52, %v310_v54 }
  0x60   : > { %1248 = vmatmul.mubr.bf16.gmra.mxu1 %v12863_v59  ;;  %11378 = vmatprep.mubr.msk.bf16.mxu0 %vm18688_vm0, %v11323_v60  ;;  %v311_v60 = vld [vmem:[%s12749_s9 + $0xf8] sm:$0xff] }
  0x61   : > { %11462 = vmatprep.mubr.msk.bf16.mxu1 %vm18688_vm0, %v12865_v61  ;;  %1862 = vmatpush1.bf16.msra.mxu0 %v12218_v58  ;;  %v12977_v58 = vcombine.high %v306_v41, %v307_v46  ;;  %v11342_v8 = vcombine.low %v311_v60, %v312_v62 }
  0x62   : > { %1863 = vmatprep.subr.bf16.mxu0 %v18684_v2 }
  0x65   : > { %1864 = vmatpush1.bf16.msra.mxu0 %v12227_v0  ;;  %v12985_v0 = vcombine.low %v306_v41, %v307_v46  ;;  %v322_v41 = vld [vmem:[%s12749_s9 + $0x150] sm:$0xff] }
  0x66   : > { %1873 = vmatprep.subr.bf16.mxu0 %v18684_v2  ;;  %v11353_v46 = vcombine.high %v321_v40, %v322_v41 }
  0x67   : > { %806 = vmatmul.mubr.bf16.gmra.mxu0 %v11322_v1  ;;  %v11343_v1 = vcombine.high %v311_v60, %v312_v62 }
  0x68   : > { %1256 = vmatmul.mubr.bf16.gmra.mxu1 %v12878_v3  ;;  %11379 = vmatprep.mubr.msk.bf16.mxu0 %vm18688_vm0, %v11325_v4  ;;  %v12987_v4 = vcombine.high %v308_v47, %v309_v52 }
  0x69   : > { %11463 = vmatprep.mubr.msk.bf16.mxu1 %vm18688_vm0, %v12880_v5  ;;  %1874 = vmatpush2.bf16.msra.mxu0 %v12236_v6  ;;  %v313_v6 = vld [vmem:[%s12749_s9 + $0x108] sm:$0xff] }
  0x6a   : > { %1875 = vmatprep.subr.bf16.mxu0 %v18684_v2  ;;  %v11344_v16 = vcombine.low %v313_v6, %v314_v7 }
  0x6d   : > { %1876 = vmatpush2.bf16.msra.mxu0 %v12245_v9  ;;  %v12995_v9 = vcombine.low %v308_v47, %v309_v52  ;;  %v11352_v52 = vcombine.low %v321_v40, %v322_v41 }
  0x6e   : > { %1877 = vmatprep.subr.bf16.mxu0 %v18684_v2 }
  0x6f   : > { %814 = vmatmul.mubr.bf16.gmra.mxu0 %v11324_v10  ;;  %v11345_v10 = vcombine.high %v313_v6, %v314_v7 }
  0x70   : > { %1264 = vmatmul.mubr.bf16.gmra.mxu1 %v12896_v11  ;;  %11380 = vmatprep.mubr.msk.bf16.mxu0 %vm18688_vm0, %v11327_v12  ;;  %v12997_v12 = vcombine.high %v310_v54, %v311_v60 }
  0x71   : > { %11464 = vmatprep.mubr.msk.bf16.mxu1 %vm18688_vm0, %v12898_v13  ;;  %1878 = vmatpush2.bf16.msra.mxu0 %v12254_v14  ;;  %v315_v14 = vld [vmem:[%s12749_s9 + $0x118] sm:$0xff] }
  0x72   : > { %1879 = vmatprep.subr.bf16.mxu0 %v18684_v2  ;;  %v13017_v29 = vcombine.high %v314_v7, %v315_v14  ;;  %v13025_v35 = vcombine.low %v314_v7, %v315_v14 }
  0x75   : > { %1880 = vmatpush2.bf16.msra.mxu0 %v12263_v21  ;;  %v13007_v21 = vcombine.high %v312_v62, %v313_v6 }
  0x76   : > { %5302 = vmatprep.subr.bf16.mxu0 %v18684_v2 }
  0x77   : > { %822 = vmatmul.mubr.bf16.gmra.mxu0 %v11326_v17  ;;  %v13005_v17 = vcombine.low %v310_v54, %v311_v60  ;;  %v325_v60 = vld [vmem:[%s12749_s9 + $0x168] sm:$0xff] }
  0x78   : > { %1272 = vmatmul.mubr.bf16.gmra.mxu1 %v12911_v18  ;;  %11381 = vmatprep.mubr.msk.bf16.mxu0 %vm18688_vm0, %v11329_v19  ;;  %v11347_v19 = vcombine.high %v315_v14, %v316_v15 }
  0x79   : > { %11465 = vmatprep.mubr.msk.bf16.mxu1 %vm18688_vm0, %v12913_v20 }
  0x7f   : > { %830 = vmatmul.mubr.bf16.gmra.mxu0 %v11328_v24  ;;  %v11346_v24 = vcombine.low %v315_v14, %v316_v15 }
  0x80   : > { %1280 = vmatmul.mubr.bf16.gmra.mxu1 %v12925_v25  ;;  %11382 = vmatprep.mubr.msk.bf16.mxu0 %vm18688_vm0, %v11331_v26  ;;  %v13015_v26 = vcombine.low %v312_v62, %v313_v6  ;;  %v326_v62 = vld [vmem:[%s12749_s9 + $0x170] sm:$0xff] }
  0x81   : > { %11466 = vmatprep.mubr.msk.bf16.mxu1 %vm18688_vm0, %v12927_v27  ;;  %v11357_v6 = vcombine.high %v325_v60, %v326_v62  ;;  %v11356_v14 = vcombine.low %v325_v60, %v326_v62 }
  0x87   : > { %838 = vmatmul.mubr.bf16.gmra.mxu0 %v11330_v30  ;;  %v319_v30 = vld [vmem:[%s12749_s9 + $0x138] sm:$0xff] }
  0x88   : > { %1288 = vmatmul.mubr.bf16.gmra.mxu1 %v12935_v31  ;;  %11383 = vmatprep.mubr.msk.bf16.mxu0 %vm18688_vm0, %v11333_v32  ;;  %v320_v32 = vld [vmem:[%s12749_s9 + $0x140] sm:$0xff]  ;;  %v13037_v47 = vcombine.high %v318_v23, %v319_v30  ;;  %v13045_v54 = vcombine.low %v318_v23, %v319_v30  ;;  %v13080_v23 = vld [vmem:[%s12749_s9 + $0x190] sm:$0xff] }
  0x89   : > { %11467 = vmatprep.mubr.msk.bf16.mxu1 %vm18688_vm0, %v12937_v33 }
  0x8f   : > { %846 = vmatmul.mubr.bf16.gmra.mxu0 %v11332_v36  ;;  %v11351_v36 = vcombine.high %v319_v30, %v320_v32 }
  0x90   : > { %1296 = vmatmul.mubr.bf16.gmra.mxu1 %v12945_v37  ;;  %11384 = vmatprep.mubr.msk.bf16.mxu0 %vm18688_vm0, %v11335_v38  ;;  %v13027_v38 = vcombine.high %v316_v15, %v317_v22 }
  0x91   : > { %11468 = vmatprep.mubr.msk.bf16.mxu1 %vm18688_vm0, %v12947_v39 }
  0x97   : > { %854 = vmatmul.mubr.bf16.gmra.mxu0 %v11334_v42  ;;  %v11350_v42 = vcombine.low %v319_v30, %v320_v32 }
  0x98   : > { %1304 = vmatmul.mubr.bf16.gmra.mxu1 %v12955_v43  ;;  %11385 = vmatprep.mubr.msk.bf16.mxu0 %vm18688_vm0, %v11337_v44  ;;  %v13035_v44 = vcombine.low %v316_v15, %v317_v22  ;;  %v13077_v22 = vld [vmem:[%s12749_s9 + $0x188] sm:$0xff] }
  0x99   : > { %11469 = vmatprep.mubr.msk.bf16.mxu1 %vm18688_vm0, %v12957_v45  ;;  %v11361_v30 = vcombine.high %v13077_v22, %v13080_v23 }
  0x9f   : > { %862 = vmatmul.mubr.bf16.gmra.mxu0 %v11336_v48  ;;  %v323_v48 = vld [vmem:[%s12749_s9 + $0x158] sm:$0xff] }
  0xa0   : > { %1312 = vmatmul.mubr.bf16.gmra.mxu1 %v12965_v49  ;;  %11386 = vmatprep.mubr.msk.bf16.mxu0 %vm18688_vm0, %v11339_v50  ;;  %v324_v50 = vld [vmem:[%s12749_s9 + $0x160] sm:$0xff]  ;;  %v13057_v7 = vcombine.high %v322_v41, %v323_v48  ;;  %v13067_v15 = vcombine.low %v322_v41, %v323_v48 }
  0xa1   : > { %11470 = vmatprep.mubr.msk.bf16.mxu1 %vm18688_vm0, %v12967_v51 }
  0xa7   : > { %870 = vmatmul.mubr.bf16.gmra.mxu0 %v11338_v55  ;;  %v11355_v55 = vcombine.high %v323_v48, %v324_v50 }
  0xa8   : > { %1320 = vmatmul.mubr.bf16.gmra.mxu1 %v12975_v56  ;;  %11387 = vmatprep.mubr.msk.bf16.mxu0 %vm18688_vm0, %v11341_v57  ;;  %v13047_v57 = vcombine.high %v320_v32, %v321_v40 }
  0xa9   : > { %11471 = vmatprep.mubr.msk.bf16.mxu1 %vm18688_vm0, %v12977_v58 }
  0xaf   : > { %878 = vmatmul.mubr.bf16.gmra.mxu0 %v11340_v63  ;;  %v11354_v63 = vcombine.low %v323_v48, %v324_v50 }
  0xb0   : > { %1328 = vmatmul.mubr.bf16.gmra.mxu1 %v12985_v0  ;;  %11388 = vmatprep.mubr.msk.bf16.mxu0 %vm18688_vm0, %v11343_v1  ;;  %v13055_v1 = vcombine.low %v320_v32, %v321_v40 }
  0xb1   : > { %11472 = vmatprep.mubr.msk.bf16.mxu1 %vm18688_vm0, %v12987_v4 }
  0xb7   : > { %886 = vmatmul.mubr.bf16.gmra.mxu0 %v11342_v8  ;;  %v327_v8 = vld [vmem:[%s12749_s9 + $0x178] sm:$0xff] }
  0xb8   : > { %1336 = vmatmul.mubr.bf16.gmra.mxu1 %v12995_v9  ;;  %11389 = vmatprep.mubr.msk.bf16.mxu0 %vm18688_vm0, %v11345_v10  ;;  %v13065_v10 = vld [vmem:[%s12749_s9 + $0x180] sm:$0xff]  ;;  %v13087_v32 = vcombine.high %v326_v62, %v327_v8 }
  0xb9   : > { %11473 = vmatprep.mubr.msk.bf16.mxu1 %vm18688_vm0, %v12997_v12 }
  0xbf   : > { %894 = vmatmul.mubr.bf16.gmra.mxu0 %v11344_v16  ;;  %v11359_v16 = vcombine.high %v327_v8, %v13065_v10 }
  0xc0   : > { %1344 = vmatmul.mubr.bf16.gmra.mxu1 %v13005_v17  ;;  %11390 = vmatprep.mubr.msk.bf16.mxu0 %vm18688_vm0, %v11347_v19  ;;  %v13070_v19 = vcombine.high %v324_v50, %v325_v60 }
  0xc1   : > { %11474 = vmatprep.mubr.msk.bf16.mxu1 %vm18688_vm0, %v13007_v21 }
  0xc7   : > { %902 = vmatmul.mubr.bf16.gmra.mxu0 %v11346_v24  ;;  %v11358_v24 = vcombine.low %v327_v8, %v13065_v10 }
  0xc8   : > { %1352 = vmatmul.mubr.bf16.gmra.mxu1 %v13015_v26  ;;  %11391 = vmatprep.mubr.msk.bf16.mxu0 %vm18688_vm0, %v11349_v28  ;;  %v13083_v28 = vcombine.low %v324_v50, %v325_v60 }
  0xc9   : > { %11475 = vmatprep.mubr.msk.bf16.mxu1 %vm18688_vm0, %v13017_v29 }
  0xcf   : > { %910 = vmatmul.mubr.bf16.gmra.mxu0 %v11348_v34  ;;  %v11360_v34 = vcombine.low %v13077_v22, %v13080_v23 }
  0xd0   : > { %1360 = vmatmul.mubr.bf16.gmra.mxu1 %v13025_v35  ;;  %11392 = vmatprep.mubr.msk.bf16.mxu0 %vm18688_vm0, %v11351_v36  ;;  %v13095_v36 = vcombine.low %v326_v62, %v327_v8 }
  0xd1   : > { %11476 = vmatprep.mubr.msk.bf16.mxu1 %vm18688_vm0, %v13027_v38 }
  0xd7   : > { %918 = vmatmul.mubr.bf16.gmra.mxu0 %v11350_v42 }
  0xd8   : > { %1368 = vmatmul.mubr.bf16.gmra.mxu1 %v13035_v44  ;;  %11393 = vmatprep.mubr.msk.bf16.mxu0 %vm18688_vm0, %v11353_v46 }
  0xd9   : > { %11477 = vmatprep.mubr.msk.bf16.mxu1 %vm18688_vm0, %v13037_v47 }
  0xdf   : > { %926 = vmatmul.mubr.bf16.gmra.mxu0 %v11352_v52 }
  0xe0   : > { %1376 = vmatmul.mubr.bf16.gmra.mxu1 %v13045_v54  ;;  %11394 = vmatprep.mubr.msk.bf16.mxu0 %vm18688_vm0, %v11355_v55 }
  0xe1   : > { %11478 = vmatprep.mubr.msk.bf16.mxu1 %vm18688_vm0, %v13047_v57 }
  0xe7   : > { %934 = vmatmul.mubr.bf16.gmra.mxu0 %v11354_v63 }
  0xe8   : > { %1384 = vmatmul.mubr.bf16.gmra.mxu1 %v13055_v1  ;;  %11395 = vmatprep.mubr.msk.bf16.mxu0 %vm18688_vm0, %v11357_v6 }
  0xe9   : > { %11479 = vmatprep.mubr.msk.bf16.mxu1 %vm18688_vm0, %v13057_v7 }
  0xef   : > { %942 = vmatmul.mubr.bf16.gmra.mxu0 %v11356_v14 }
  0xf0   : > { %1392 = vmatmul.mubr.bf16.gmra.mxu1 %v13067_v15  ;;  %11396 = vmatprep.mubr.msk.bf16.mxu0 %vm18688_vm0, %v11359_v16 }
  0xf1   : > { %11480 = vmatprep.mubr.msk.bf16.mxu1 %vm18688_vm0, %v13070_v19 }
  0xf7   : > { %950 = vmatmul.mubr.bf16.gmra.mxu0 %v11358_v24 }
  0xf8   : > { %1400 = vmatmul.mubr.bf16.gmra.mxu1 %v13083_v28  ;;  %11397 = vmatprep.mubr.msk.bf16.mxu0 %vm18688_vm0, %v11361_v30  ;;  %v12268_v30 = vld [vmem:[%s18677_s3 + $0x98] sm:$0xff]  }
  0xf9   : > { %11481 = vmatprep.mubr.msk.bf16.mxu1 %vm18688_vm0, %v13087_v32  ;;  %4853 = vmatpush1.bf16.msra.mxu1 %v12268_v30  ;;  %v12269_v30 = vld [vmem:[%s18677_s3 + $0x90] sm:$0xff]  }
  0xfa   : > { %4854 = vmatprep.subr.bf16.mxu1 %v18684_v2 }
  0xfd   : > { %4855 = vmatpush1.bf16.msra.mxu1 %v12269_v30  ;;  %v12272_v30 = vld [vmem:[%s18677_s3 + $0x88] sm:$0xff]  }
  0xfe   : > { %4856 = vmatprep.subr.bf16.mxu1 %v18684_v2 }
  0xff   : > { %958 = vmatmul.mubr.bf16.gmra.mxu0 %v11360_v34 }
 0x100   : > { %1408 = vmatmul.mubr.bf16.gmra.mxu1 %v13095_v36  ;;  %11566 = vmatprep.mubr.msk.bf16.mxu0 %vm18688_vm0, %v12848_v53 }
 0x101   : > { %4857 = vmatpush1.bf16.msra.mxu1 %v12272_v30  ;;  %v12278_v30 = vld [vmem:[%s18677_s3 + $0x80] sm:$0xff]  }
 0x102   : > { %4858 = vmatprep.subr.bf16.mxu1 %v18684_v2 }
 0x105   : > { %4859 = vmatpush1.bf16.msra.mxu1 %v12278_v30 }
 0x106   : > { %4860 = vmatprep.subr.bf16.mxu1 %v18684_v2 }
 0x107   : > { %v775_v40 = vpop.f32.mrf.mxu0  ;;  %1882 = vmatmul.mubr.bf16.vlgmr.msra.gmra.mxu0 %v12863_v59 }
 0x108   : > { %v1225_v41 = vpop.f32.mrf.mxu1  ;;  %11567 = vmatprep.mubr.msk.bf16.mxu0 %vm18688_vm0, %v12865_v61 }
 0x109   : > { %v13103_v42 = vadd.f32 %v1225_v41, %v775_v40  ;;  %v777_v46 = vpop.f32.mrf.mxu0 }
 0x10a   : > { %v1227_v48 = vpop.f32.mrf.mxu1 }
 0x10b   : > { %v778_v50 = vpop.f32.mrf.mxu0 }
 0x10c   : > { %v1228_v52 = vpop.f32.mrf.mxu1 }
 0x10d   : > { %v13105_v55 = vadd.f32 %v1228_v52, %v778_v50  ;;  %v780_v60 = vpop.f32.mrf.mxu0 }
 0x10e   : > { %v1230_v62 = vpop.f32.mrf.mxu1 }
 0x10f   : > { %v783_v63 = vpop.f32.mrf.mxu0  ;;  %1890 = vmatmul.mubr.bf16.gmra.mxu0 %v12878_v3 }
 0x110   : > { %v1233_v53 = vpop.f32.mrf.mxu1  ;;  %11568 = vmatprep.mubr.msk.bf16.mxu0 %vm18688_vm0, %v12880_v5 }
 0x111   : > { %v13110_v59 = vadd.f32 %v1233_v53, %v783_v63  ;;  %v785_v61 = vpop.f32.mrf.mxu0 }
 0x112   : > { %v1235_v6 = vpop.f32.mrf.mxu1 }
 0x113   : > { %18854 = vst [vmem:[#allocation7_spill] sm:$0xff] %v13110_v59  ;;  %v786_v8 = vpop.f32.mrf.mxu0  ;;  %v18938_v59 = vmov 0 }
 0x114   : > { %v1236_v14 = vpop.f32.mrf.mxu1 }
 0x115   : > { %v13112_v16 = vadd.f32 %v1236_v14, %v786_v8  ;;  %v788_v24 = vpop.f32.mrf.mxu0 }
 0x116   : > { %v1238_v34 = vpop.f32.mrf.mxu1 }
 0x117   : > { %18855 = vst [vmem:[#allocation8_spill] sm:$0xff] %v13112_v16  ;;  %v791_v40 = vpop.f32.mrf.mxu0  ;;  %1898 = vmatmul.mubr.bf16.gmra.mxu0 %v12896_v11 }
 0x118   : > { %v1241_v3 = vpop.f32.mrf.mxu1  ;;  %11569 = vmatprep.mubr.msk.bf16.mxu0 %vm18688_vm0, %v12898_v13 }
 0x119   : > { %v13121_v5 = vadd.f32 %v1241_v3, %v791_v40  ;;  %v793_v41 = vpop.f32.mrf.mxu0 }
 0x11a   : > { %v1243_v46 = vpop.f32.mrf.mxu1 }
 0x11b   : > { %18856 = vst [vmem:[#allocation9_spill] sm:$0xff] %v13121_v5  ;;  %v794_v48 = vpop.f32.mrf.mxu0  ;;  %v12286_v5 = vld [vmem:[%s18677_s3 + $0x28] sm:$0xff]  }
 0x11c   : > { %v1244_v50 = vpop.f32.mrf.mxu1 }
 0x11d   : > { %v13123_v52 = vadd.f32 %v1244_v50, %v794_v48  ;;  %v796_v60 = vpop.f32.mrf.mxu0 }
 0x11e   : > { %v1246_v62 = vpop.f32.mrf.mxu1 }
 0x11f   : > { %18857 = vst [vmem:[#allocation10_spill] sm:$0xff] %v13123_v52  ;;  %v799_v63 = vpop.f32.mrf.mxu0  ;;  %1906 = vmatmul.mubr.bf16.gmra.mxu0 %v12911_v18 }
 0x120   : > { %v1249_v11 = vpop.f32.mrf.mxu1  ;;  %11570 = vmatprep.mubr.msk.bf16.mxu0 %vm18688_vm0, %v12913_v20 }
 0x121   : > { %v13128_v13 = vadd.f32 %v1249_v11, %v799_v63  ;;  %v801_v53 = vpop.f32.mrf.mxu0 }
 0x122   : > { %v1251_v61 = vpop.f32.mrf.mxu1 }
 0x123   : > { %18858 = vst [vmem:[#allocation11_spill] sm:$0xff] %v13128_v13  ;;  %v802_v6 = vpop.f32.mrf.mxu0 }
 0x124   : > { %v1252_v8 = vpop.f32.mrf.mxu1 }
 0x125   : > { %v13130_v14 = vadd.f32 %v1252_v8, %v802_v6  ;;  %v804_v24 = vpop.f32.mrf.mxu0 }
 0x126   : > { %v1254_v34 = vpop.f32.mrf.mxu1 }
 0x127   : > { %18859 = vst [vmem:[#allocation12_spill] sm:$0xff] %v13130_v14  ;;  %v807_v40 = vpop.f32.mrf.mxu0  ;;  %1914 = vmatmul.mubr.bf16.gmra.mxu0 %v12925_v25 }
 0x128   : > { %v1257_v18 = vpop.f32.mrf.mxu1  ;;  %11571 = vmatprep.mubr.msk.bf16.mxu0 %vm18688_vm0, %v12927_v27 }
 0x129   : > { %v13139_v20 = vadd.f32 %v1257_v18, %v807_v40  ;;  %v809_v3 = vpop.f32.mrf.mxu0 }
 0x12a   : > { %v1259_v41 = vpop.f32.mrf.mxu1 }
 0x12b   : > { %18860 = vst [vmem:[#allocation13_spill] sm:$0xff] %v13139_v20  ;;  %v810_v46 = vpop.f32.mrf.mxu0 }
 0x12c   : > { %v1260_v48 = vpop.f32.mrf.mxu1 }
 0x12d   : > { %v13141_v50 = vadd.f32 %v1260_v48, %v810_v46  ;;  %v812_v60 = vpop.f32.mrf.mxu0 }
 0x12e   : > { %v1262_v62 = vpop.f32.mrf.mxu1 }
 0x12f   : > { %18861 = vst [vmem:[#allocation14_spill] sm:$0xff] %v13141_v50  ;;  %v815_v63 = vpop.f32.mrf.mxu0  ;;  %1922 = vmatmul.mubr.bf16.gmra.mxu0 %v12935_v31 }
 0x130   : > { %v1265_v25 = vpop.f32.mrf.mxu1  ;;  %11572 = vmatprep.mubr.msk.bf16.mxu0 %vm18688_vm0, %v12937_v33 }
 0x131   : > { %v13146_v27 = vadd.f32 %v1265_v25, %v815_v63  ;;  %v817_v11 = vpop.f32.mrf.mxu0 }
 0x132   : > { %v1267_v53 = vpop.f32.mrf.mxu1 }
 0x133   : > { %18862 = vst [vmem:[#allocation15_spill] sm:$0xff] %v13146_v27  ;;  %v818_v61 = vpop.f32.mrf.mxu0 }
 0x134   : > { %v1268_v6 = vpop.f32.mrf.mxu1 }
 0x135   : > { %v13148_v8 = vadd.f32 %v1268_v6, %v818_v61  ;;  %v820_v24 = vpop.f32.mrf.mxu0 }
 0x136   : > { %v1270_v34 = vpop.f32.mrf.mxu1 }
 0x137   : > { %18863 = vst [vmem:[#allocation16_spill] sm:$0xff] %v13148_v8  ;;  %v823_v40 = vpop.f32.mrf.mxu0  ;;  %1930 = vmatmul.mubr.bf16.gmra.mxu0 %v12945_v37 }
 0x138   : > { %v1273_v31 = vpop.f32.mrf.mxu1  ;;  %11573 = vmatprep.mubr.msk.bf16.mxu0 %vm18688_vm0, %v12947_v39 }
 0x139   : > { %v13157_v33 = vadd.f32 %v1273_v31, %v823_v40  ;;  %v825_v18 = vpop.f32.mrf.mxu0 }
 0x13a   : > { %v1275_v3 = vpop.f32.mrf.mxu1 }
 0x13b   : > { %18864 = vst [vmem:[#allocation17_spill] sm:$0xff] %v13157_v33  ;;  %v826_v41 = vpop.f32.mrf.mxu0 }
 0x13c   : > { %v1276_v46 = vpop.f32.mrf.mxu1 }
 0x13d   : > { %v13159_v48 = vadd.f32 %v1276_v46, %v826_v41  ;;  %v828_v60 = vpop.f32.mrf.mxu0 }
 0x13e   : > { %v1278_v62 = vpop.f32.mrf.mxu1 }
 0x13f   : > { %18865 = vst [vmem:[#allocation18_spill] sm:$0xff] %v13159_v48  ;;  %v831_v63 = vpop.f32.mrf.mxu0  ;;  %1938 = vmatmul.mubr.bf16.gmra.mxu0 %v12955_v43 }
 0x140   : > { %v1281_v37 = vpop.f32.mrf.mxu1  ;;  %11574 = vmatprep.mubr.msk.bf16.mxu0 %vm18688_vm0, %v12957_v45 }
 0x141   : > { %v13164_v39 = vadd.f32 %v1281_v37, %v831_v63  ;;  %v833_v25 = vpop.f32.mrf.mxu0 }
 0x142   : > { %v1283_v11 = vpop.f32.mrf.mxu1 }
 0x143   : > { %18866 = vst [vmem:[#allocation19_spill] sm:$0xff] %v13164_v39  ;;  %v834_v53 = vpop.f32.mrf.mxu0 }
 0x144   : > { %v1284_v61 = vpop.f32.mrf.mxu1 }
 0x145   : > { %v13166_v6 = vadd.f32 %v1284_v61, %v834_v53  ;;  %v836_v24 = vpop.f32.mrf.mxu0  ;;  %v3175_v53 = vld [vmem:[#allocation2 + $0x18] sm:$0x11] }
 0x146   : > { %v1286_v34 = vpop.f32.mrf.mxu1 }
 0x147   : > { %18867 = vst [vmem:[#allocation20_spill] sm:$0xff] %v13166_v6  ;;  %v839_v40 = vpop.f32.mrf.mxu0  ;;  %1946 = vmatmul.mubr.bf16.gmra.mxu0 %v12965_v49  ;;  %v3176_v34 = vsel %vm3174_vm10, 0, %v3175_v53  ;;  %v19059_v6 = vmov 0 }
 0x148   : > { %v1289_v43 = vpop.f32.mrf.mxu1  ;;  %11575 = vmatprep.mubr.msk.bf16.mxu0 %vm18688_vm0, %v12967_v51  ;;  %3177 = vst [vmem:[#allocation2 + $0x18] sm:$0x11] %v3176_v34  ;;  %v18682_v34 = vlaneseq }
 0x149   : > { %v13175_v45 = vadd.f32 %v1289_v43, %v839_v40  ;;  %v841_v31 = vpop.f32.mrf.mxu0  ;;  %v12279_v43 = vld [vmem:[%s18677_s3 + $0x78] sm:$0xff]  }
 0x14a   : > { %v1291_v18 = vpop.f32.mrf.mxu1  ;;  %4861 = vmatpush1.bf16.msra.mxu1 %v12279_v43 }
 0x14b   : > { %18868 = vst [vmem:[#allocation21_spill] sm:$0xff] %v13175_v45  ;;  %v842_v3 = vpop.f32.mrf.mxu0  ;;  %4862 = vmatprep.subr.bf16.mxu1 %v18684_v2  ;;  %v18895_v45 = vmov 0 }
 0x14c   : > { %v1292_v41 = vpop.f32.mrf.mxu1 }
 0x14d   : > { %v13177_v46 = vadd.f32 %v1292_v41, %v842_v3  ;;  %v844_v60 = vpop.f32.mrf.mxu0 }
 0x14e   : > { %v1294_v49 = vpop.f32.mrf.mxu1 }
 0x14f   : > { %18869 = vst [vmem:[#allocation22_spill] sm:$0xff] %v13177_v46  ;;  %v847_v51 = vpop.f32.mrf.mxu0  ;;  %1954 = vmatmul.mubr.bf16.gmra.mxu0 %v12975_v56 }
 0x150   : > { %v1297_v62 = vpop.f32.mrf.mxu1  ;;  %11576 = vmatprep.mubr.msk.bf16.mxu0 %vm18688_vm0, %v12977_v58 }
 0x151   : > { %v13188_v63 = vadd.f32 %v1297_v62, %v847_v51  ;;  %v849_v37 = vpop.f32.mrf.mxu0 }
 0x152   : > { %v1299_v25 = vpop.f32.mrf.mxu1 }
 0x153   : > { %18870 = vst [vmem:[#allocation23_spill] sm:$0xff] %v13188_v63  ;;  %v850_v11 = vpop.f32.mrf.mxu0 }
 0x154   : > { %v1300_v61 = vpop.f32.mrf.mxu1 }
 0x155   : > { %v13191_v24 = vadd.f32 %v1300_v61, %v850_v11  ;;  %v852_v56 = vpop.f32.mrf.mxu0 }
 0x156   : > { %v1302_v30 = vpop.f32.mrf.mxu1 }
 0x157   : > { %18871 = vst [vmem:[#allocation24_spill] sm:$0xff] %v13191_v24  ;;  %v855_v58 = vpop.f32.mrf.mxu0  ;;  %1962 = vmatmul.mubr.bf16.gmra.mxu0 %v12985_v0 }
 0x158   : > { %v1305_v40 = vpop.f32.mrf.mxu1  ;;  %11577 = vmatprep.mubr.msk.bf16.mxu0 %vm18688_vm0, %v12987_v4 }
 0x159   : > { %v13199_v31 = vadd.f32 %v1305_v40, %v855_v58  ;;  %v857_v18 = vpop.f32.mrf.mxu0 }
 0x15a   : > { %v1307_v3 = vpop.f32.mrf.mxu1  ;;  %v13217_v18 = vshrl.u32 %v18682_v34, 7 }
 0x15b   : > { %18872 = vst [vmem:[#allocation25_spill] sm:$0xff] %v13199_v31  ;;  %v858_v41 = vpop.f32.mrf.mxu0  ;;  %v12280_v3 = vld [vmem:[%s18677_s3 + $0x70] sm:$0xff]  }
 0x15c   : > { %v1308_v60 = vpop.f32.mrf.mxu1  ;;  %18877 = vst [vmem:[#allocation30_spill] sm:$0xff] %v13217_v18  ;;  %4863 = vmatpush1.bf16.msra.mxu1 %v12280_v3  ;;  %v13488_v27 = vadd.s32 120, %v13217_v18 }
 0x15d   : > { %v13202_v49 = vadd.f32 %v1308_v60, %v858_v41  ;;  %v860_v0 = vpop.f32.mrf.mxu0  ;;  %4864 = vmatprep.subr.bf16.mxu1 %v18684_v2 }
 0x15e   : > { %v1310_v51 = vpop.f32.mrf.mxu1  ;;  %v2227_v0 = vadd.s32 8, %v13217_v18 }
 0x15f   : > { %18873 = vst [vmem:[#allocation26_spill] sm:$0xff] %v13202_v49  ;;  %v863_v62 = vpop.f32.mrf.mxu0  ;;  %1970 = vmatmul.mubr.bf16.gmra.mxu0 %v12995_v9  ;;  %v12282_v49 = vld [vmem:[%s18677_s3 + $0x60] sm:$0xff]  }
 0x160   : > { %v1313_v4 = vpop.f32.mrf.mxu1  ;;  %11578 = vmatprep.mubr.msk.bf16.mxu0 %vm18688_vm0, %v12997_v12 }
 0x161   : > { %v13207_v37 = vadd.f32 %v1313_v4, %v863_v62  ;;  %v865_v25 = vpop.f32.mrf.mxu0  ;;  %v2228_v62 = vadd.s32 16, %v13217_v18 }
 0x162   : > { %v1315_v11 = vpop.f32.mrf.mxu1 }
 0x163   : > { %18874 = vst [vmem:[#allocation27_spill] sm:$0xff] %v13207_v37  ;;  %v866_v53 = vpop.f32.mrf.mxu0  ;;  %v13228_v25 = vmul.u32.u64.low 2863311531, %v13217_v18  ;;  %v13229_v11 = vmul.u32.u64.high 2863311531, %v13217_v18, %v13228_v25 }
 0x164   : > { %v1316_v61 = vpop.f32.mrf.mxu1 }
 0x165   : > { %v13209_v56 = vadd.f32 %v1316_v61, %v866_v53  ;;  %v868_v30 = vpop.f32.mrf.mxu0  ;;  %v2280_v34 = vshrl.u32 %v13229_v11, 4 }
 0x166   : > { %v1318_v58 = vpop.f32.mrf.mxu1  ;;  %v13232_v61 = vmul.u32.u64.low 2863311531, %v2227_v0  ;;  %v13233_v30 = vmul.u32.u64.high 2863311531, %v2227_v0, %v13232_v61 }
 0x167   : > { %18875 = vst [vmem:[#allocation28_spill] sm:$0xff] %v13209_v56  ;;  %v871_v40 = vpop.f32.mrf.mxu0  ;;  %1978 = vmatmul.mubr.bf16.gmra.mxu0 %v13005_v17 }
 0x168   : > { %v1321_v43 = vpop.f32.mrf.mxu1  ;;  %11579 = vmatprep.mubr.msk.bf16.mxu0 %vm18688_vm0, %v13007_v21 }
 0x169   : > { %v13214_v9 = vadd.f32 %v1321_v43, %v871_v40  ;;  %v873_v12 = vpop.f32.mrf.mxu0  ;;  %v13238_v40 = vadd.s32 24, %v13217_v18 }
 0x16a   : > { %v1323_v41 = vpop.f32.mrf.mxu1 }
 0x16b   : > { %18876 = vst [vmem:[#allocation29_spill] sm:$0xff] %v13214_v9  ;;  %v874_v60 = vpop.f32.mrf.mxu0  ;;  %v13242_v3 = vmul.u32.u64.low 2863311531, %v2228_v62  ;;  %v13243_v41 = vmul.u32.u64.high 2863311531, %v2228_v62, %v13242_v3 }
 0x16c   : > { %v1324_v17 = vpop.f32.mrf.mxu1 }
 0x16d   : > { %v13224_v51 = vadd.f32 %v1324_v17, %v874_v60  ;;  %v876_v21 = vpop.f32.mrf.mxu0 }
 0x16e   : > { %v1326_v4 = vpop.f32.mrf.mxu1 }
 0x16f   : > { %18878 = vst [vmem:[#allocation31_spill] sm:$0xff] %v13224_v51  ;;  %v879_v53 = vpop.f32.mrf.mxu0  ;;  %1986 = vmatmul.mubr.bf16.gmra.mxu0 %v13015_v26  ;;  %v13246_v26 = vmul.u32.u64.low 2863311531, %v13238_v40  ;;  %v13247_v4 = vmul.u32.u64.high 2863311531, %v13238_v40, %v13246_v26 }
 0x170   : > { %v1329_v58 = vpop.f32.mrf.mxu1  ;;  %11580 = vmatprep.mubr.msk.bf16.mxu0 %vm18688_vm0, %v13017_v29  ;;  %v13269_v26 = vadd.s32 48, %v13217_v18 }
 0x171   : > { %v13240_v43 = vadd.f32 %v1329_v58, %v879_v53  ;;  %v881_v12 = vpop.f32.mrf.mxu0  ;;  %v2291_v53 = vshrl.u32 %v13233_v30, 4  ;;  %v2281_v30 = vmul.u32 24, %v2280_v34 }
 0x172   : > { %v1331_v60 = vpop.f32.mrf.mxu1  ;;  %v13257_v12 = vadd.s32 32, %v13217_v18 }
 0x173   : > { %18879 = vst [vmem:[#allocation32_spill] sm:$0xff] %v13240_v43  ;;  %v882_v17 = vpop.f32.mrf.mxu0 }
 0x174   : > { %v1332_v21 = vpop.f32.mrf.mxu1 }
 0x175   : > { %v13249_v25 = vadd.f32 %v1332_v21, %v882_v17  ;;  %v884_v61 = vpop.f32.mrf.mxu0  ;;  %v2302_v17 = vshrl.u32 %v13243_v41, 4  ;;  %v13263_v21 = vadd.s32 40, %v13217_v18 }
 0x176   : > { %v1334_v29 = vpop.f32.mrf.mxu1  ;;  %v2292_v61 = vmul.u32 24, %v2291_v53  ;;  %v13284_v53 = vsub.s32 %v13217_v18, %v2281_v30 }
 0x177   : > { %18880 = vst [vmem:[#allocation33_spill] sm:$0xff] %v13249_v25  ;;  %v887_v2 = vpop.f32.mrf.mxu0  ;;  %1994 = vmatmul.mubr.bf16.gmra.mxu0 %v13025_v35  ;;  %v12281_v35 = vld [vmem:[%s18677_s3 + $0x68] sm:$0xff]   ;;  %v2313_v29 = vshrl.u32 %v13247_v4, 4  ;;  %v13280_v34 = vmul.u32.u64.low 2863311531, %v13263_v21  ;;  %v13281_v43 = vmul.u32.u64.high 2863311531, %v13263_v21, %v13280_v34 }
 0x178   : > { %v1337_v58 = vpop.f32.mrf.mxu1  ;;  %11581 = vmatprep.mubr.msk.bf16.mxu0 %vm18688_vm0, %v13027_v38  ;;  %4865 = vmatpush1.bf16.msra.mxu1 %v12281_v35  ;;  %v13287_v4 = vmul.u32.u64.low 2863311531, %v13269_v26  ;;  %v13288_v35 = vmul.u32.u64.high 2863311531, %v13269_v26, %v13287_v4  ;;  %vm2802_vm11 = vcmp.ne.s32.totalorder %v13284_v53, 0  ;;  %vm2850_vm12 = vcmp.lt.s32.totalorder %v13284_v53, 0 }
 0x179   : > { %v13259_v3 = vadd.f32 %v1337_v58, %v887_v2  ;;  %v889_v60 = vpop.f32.mrf.mxu0  ;;  %v13273_v41 = vmul.u32.u64.low 2863311531, %v13257_v12  ;;  %v13274_v58 = vmul.u32.u64.high 2863311531, %v13257_v12, %v13273_v41  ;;  %vm13369_vm4 = vmand %vm2850_vm12, %vm2802_vm11 }
 0x17a   : > { %v1339_v11 = vpop.f32.mrf.mxu1  ;;  %v18882_v60 = vmov 0   ;;  %v13291_v41 = vadd.s32 56, %v13217_v18 }
 0x17b   : > { %18881 = vst [vmem:[#allocation34_spill] sm:$0xff] %v13259_v3  ;;  %v890_v38 = vpop.f32.mrf.mxu0  ;;  %4866 = vmatprep.subr.bf16.mxu1 %v18882_v60  ;;  %v2303_v11 = vmul.u32 24, %v2302_v17 }
 0x17c   : > { %v1340_v2 = vpop.f32.mrf.mxu1  ;;  %4867 = vmatpush1.bf16.msra.mxu1 %v12282_v49 }
 0x17d   : > { %v13277_v3 = vadd.f32 %v1340_v2, %v890_v38  ;;  %v892_v25 = vpop.f32.mrf.mxu0  ;;  %v13300_v2 = vsub.s32 %v2228_v62, %v2303_v11  ;;  %4876 = vmatprep.subr.bf16.mxu1 %v18882_v60 }
 0x17e   : > { %v1342_v51 = vpop.f32.mrf.mxu1  ;;  %v13294_v25 = vsub.s32 %v2227_v0, %v2292_v61  ;;  %v13309_v0 = vadd.s32 24, %v13284_v53  ;;  %v2324_v61 = vshrl.u32 %v13274_v58, 4  ;;  %v2346_v58 = vshrl.u32 %v13288_v35, 4 }
 0x17f   : > { %18883 = vst [vmem:[#allocation35_spill] sm:$0xff] %v13277_v3  ;;  %v895_v9 = vpop.f32.mrf.mxu0  ;;  %2002 = vmatmul.mubr.bf16.gmra.mxu0 %v13035_v44  ;;  %v2314_v51 = vmul.u32 24, %v2313_v29  ;;  %v13304_v4 = vmul.u32.u64.low 2863311531, %v13291_v41  ;;  %v13305_v3 = vmul.u32.u64.high 2863311531, %v13291_v41, %v13304_v4  ;;  %v13321_v29 = vadd.s32 72, %v13217_v18 }
 0x180   : > { %v1345_v17 = vpop.f32.mrf.mxu1  ;;  %11582 = vmatprep.mubr.msk.bf16.mxu0 %vm18688_vm0, %v13037_v47  ;;  %vm2803_vm13 = vcmp.ne.s32.totalorder %v13294_v25, 0  ;;  %v13313_v47 = vadd.s32 64, %v13217_v18  ;;  %vm2851_vm14 = vcmp.lt.s32.totalorder %v13294_v25, 0  ;;  %vm2804_vm15 = vcmp.ne.s32.totalorder %v13300_v2, 0 }
 0x181   : > { %v13298_v38 = vadd.f32 %v1345_v17, %v895_v9  ;;  %v897_v30 = vpop.f32.mrf.mxu0  ;;  %v13317_v62 = vsub.s32 %v13238_v40, %v2314_v51  ;;  %vm2852_vm1 = vcmp.lt.s32.totalorder %v13300_v2, 0  ;;  %v13332_v40 = vadd.s32 24, %v13300_v2  ;;  %vm13385_vm6 = vmand %vm2851_vm14, %vm2803_vm13 }
 0x182   : > { %v1347_v34 = vpop.f32.mrf.mxu1  ;;  %v13326_v30 = vadd.s32 24, %v13294_v25  ;;  %v13336_v51 = vadd.s32 80, %v13217_v18  ;;  %v2325_v35 = vmul.u32 24, %v2324_v61  ;;  %vm13405_vm7 = vmand %vm2852_vm1, %vm2804_vm15  ;;  %v19014_v61 = vmov 0 }
 0x183   : > { %18884 = vst [vmem:[#allocation36_spill] sm:$0xff] %v13298_v38  ;;  %v898_v44 = vpop.f32.mrf.mxu0  ;;  %v2335_v34 = vshrl.u32 %v13281_v43, 4  ;;  %v13344_v43 = vadd.s32 88, %v13217_v18  ;;  %vm2805_vm2 = vcmp.ne.s32.totalorder %v13317_v62, 0  ;;  %vm2853_vm3 = vcmp.lt.s32.totalorder %v13317_v62, 0 }
 0x184   : > { %v1348_v9 = vpop.f32.mrf.mxu1  ;;  %v13413_v49 = vsub.s32 %v13257_v12, %v2325_v35  ;;  %vm13422_vm8 = vmand %vm2853_vm3, %vm2805_vm2 }
 0x185   : > { %v13323_v11 = vadd.f32 %v1348_v9, %v898_v44  ;;  %v900_v17 = vpop.f32.mrf.mxu0  ;;  %v2336_v37 = vmul.u32 24, %v2335_v34  ;;  %v18896_v45 = vsel %vm13422_vm8, 4294967295, %v18895_v45 }
 0x186   : > { %v1350_v4 = vpop.f32.mrf.mxu1  ;;  %v13340_v9 = vmul.u32.u64.low 2863311531, %v13313_v47  ;;  %v13341_v17 = vmul.u32.u64.high 2863311531, %v13313_v47, %v13340_v9  ;;  %18893 = vst [vmem:[#allocation39_spill] sm:$0xff] %v13413_v49  ;;  %vm2806_vm9 = vcmp.ne.s32.totalorder %v13413_v49, 0  ;;  %vm2854_vm10 = vcmp.lt.s32.totalorder %v13413_v49, 0 }
 0x187   : > { %18885 = vst [vmem:[#allocation37_spill] sm:$0xff] %v13323_v11  ;;  %v903_v44 = vpop.f32.mrf.mxu0  ;;  %2010 = vmatmul.mubr.bf16.gmra.mxu0 %v13045_v54  ;;  %v13347_v4 = vadd.s32 96, %v13217_v18  ;;  %v13353_v54 = vmul.u32.u64.low 2863311531, %v13321_v29  ;;  %v13354_v38 = vmul.u32.u64.high 2863311531, %v13321_v29, %v13353_v54  ;;  %v13427_v39 = vsub.s32 %v13263_v21, %v2336_v37  ;;  %vm13547_vm2 = vmand %vm2854_vm10, %vm2806_vm9 }
 0x188   : > { %v1353_v11 = vpop.f32.mrf.mxu1  ;;  %11583 = vmatprep.mubr.msk.bf16.mxu0 %vm18688_vm0, %v13047_v57  ;;  %v13363_v57 = vadd.s32 104, %v13217_v18  ;;  %v13375_v34 = vmul.u32.u64.low 2863311531, %v13336_v51  ;;  %v13376_v54 = vmul.u32.u64.high 2863311531, %v13336_v51, %v13375_v34  ;;  %v13463_v37 = vadd.s32 112, %v13217_v18 }
 0x189   : > { %v13356_v56 = vadd.f32 %v1353_v11, %v903_v44  ;;  %v905_v9 = vpop.f32.mrf.mxu0  ;;  %v2347_v11 = vmul.u32 24, %v2346_v58  ;;  %v2357_v44 = vshrl.u32 %v13305_v3, 4  ;;  %18897 = vst [vmem:[#allocation41_spill] sm:$0xff] %v13427_v39  ;;  %vm2807_vm11 = vcmp.ne.s32.totalorder %v13427_v39, 0 }
 0x18a   : > { %v1355_v31 = vpop.f32.mrf.mxu1  ;;  %v13390_v24 = vmul.u32.u64.low 2863311531, %v13344_v43  ;;  %v13391_v58 = vmul.u32.u64.high 2863311531, %v13344_v43, %v13390_v24  ;;  %v13394_v3 = vmul.u32.u64.low 2863311531, %v13347_v4  ;;  %v13395_v63 = vmul.u32.u64.high 2863311531, %v13347_v4, %v13394_v3 }
 0x18b   : > { %18886 = vst [vmem:[#allocation38_spill] sm:$0xff] %v13356_v56  ;;  %v906_v9 = vpop.f32.mrf.mxu0  ;;  %v13379_v56 = vld [vmem:[%s12749_s9 + $0x198] sm:$0xff]  ;;  %v13410_v24 = vadd.s32 24, %v13317_v62  ;;  %v13430_v48 = vmul.u32.u64.low 2863311531, %v13363_v57  ;;  %v13431_v12 = vmul.u32.u64.high 2863311531, %v13363_v57, %v13430_v48  ;;  %v13451_v21 = vsub.s32 %v13269_v26, %v2347_v11 }
 0x18c   : > { %v1356_v34 = vpop.f32.mrf.mxu1  ;;  %vm2855_vm12 = vcmp.lt.s32.totalorder %v13427_v39, 0  ;;  %v2401_v48 = vshrl.u32 %v13391_v58, 4  ;;  %v13495_v58 = vadd.s32 128, %v13217_v18 }
 0x18d   : > { %v13416_v3 = vadd.f32 %v1356_v34, %v906_v9  ;;  %v908_v46 = vpop.f32.mrf.mxu0  ;;  %18898 = vst [vmem:[#allocation42_spill] sm:$0xff] %v13451_v21  ;;  %vm2808_vm13 = vcmp.ne.s32.totalorder %v13451_v21, 0  ;;  %vm2856_vm14 = vcmp.lt.s32.totalorder %v13451_v21, 0  ;;  %vm13564_vm9 = vmand %vm2855_vm12, %vm2807_vm11 }
 0x18e   : > { %v1358_v35 = vpop.f32.mrf.mxu1  ;;  %v2412_v46 = vshrl.u32 %v13395_v63, 4  ;;  %vm13586_vm11 = vmand %vm2856_vm14, %vm2808_vm13 }
 0x18f   : > { %18894 = vst [vmem:[#allocation40_spill] sm:$0xff] %v13416_v3  ;;  %v2358_v3 = vmul.u32 24, %v2357_v44  ;;  %v911_v33 = vpop.f32.mrf.mxu0  ;;  %2018 = vmatmul.mubr.bf16.gmra.mxu0 %v13055_v1  ;;  %v2368_v35 = vshrl.u32 %v13341_v17, 4  ;;  %v2379_v44 = vshrl.u32 %v13354_v38, 4  ;;  %v13469_v17 = vadd.s32 24, %v13413_v49 }
 0x190   : > { %v1361_v34 = vpop.f32.mrf.mxu1  ;;  %11584 = vmatprep.mubr.msk.bf16.mxu0 %vm18688_vm0, %v13057_v7  ;;  %v13474_v1 = vadd.s32 24, %v13427_v39 }
 0x191   : > { %v13465_v26 = vadd.f32 %v1361_v34, %v911_v33  ;;  %v913_v11 = vpop.f32.mrf.mxu0  ;;  %18900 = vst [vmem:[#allocation44_spill] sm:$0xff] %v13469_v17  ;;  %v13477_v38 = vsub.s32 %v13291_v41, %v2358_v3  ;;  %v2390_v33 = vshrl.u32 %v13376_v54, 4  ;;  %v2423_v3 = vshrl.u32 %v13431_v12, 4 }
 0x192   : > { %v1363_v7 = vpop.f32.mrf.mxu1  ;;  %18901 = vst [vmem:[#allocation45_spill] sm:$0xff] %v13474_v1  ;;  %v2369_v11 = vmul.u32 24, %v2368_v35  ;;  %v13498_v35 = vadd.s32 24, %v13451_v21  ;;  %v12288_v21 = vld [vmem:[%s18677_s3 + $0x20] sm:$0xff]  }
 0x193   : > { %18899 = vst [vmem:[#allocation43_spill] sm:$0xff] %v13465_v26  ;;  %18902 = vst [vmem:[#allocation46_spill] sm:$0xff] %v13477_v38  ;;  %v914_v34 = vpop.f32.mrf.mxu0  ;;  %v2380_v7 = vmul.u32 24, %v2379_v44  ;;  %v13484_v26 = vmul.u32.u64.low 2863311531, %v13463_v37  ;;  %v13485_v8 = vmul.u32.u64.high 2863311531, %v13463_v37, %v13484_v26  ;;  %vm2809_vm15 = vcmp.ne.s32.totalorder %v13477_v38, 0 }
 0x194   : > { %v1364_v9 = vpop.f32.mrf.mxu1  ;;  %18904 = vst [vmem:[#allocation48_spill] sm:$0xff] %v13498_v35  ;;  %v2391_v44 = vmul.u32 24, %v2390_v33  ;;  %v13502_v26 = vadd.s32 136, %v13217_v18  ;;  %vm2857_vm1 = vcmp.lt.s32.totalorder %v13477_v38, 0  ;;  %v13507_v12 = vsub.s32 %v13313_v47, %v2369_v11  ;;  %v12284_v47 = vld [vmem:[%s18677_s3 + $0x38] sm:$0xff]  }
 0x195   : > { %v13490_v41 = vadd.f32 %v1364_v9, %v914_v34  ;;  %v916_v54 = vpop.f32.mrf.mxu0  ;;  %v2402_v34 = vmul.u32 24, %v2401_v48  ;;  %v13515_v33 = vsub.s32 %v13321_v29, %v2380_v7  ;;  %v2424_v11 = vmul.u32 24, %v2423_v3  ;;  %v12283_v29 = vld [vmem:[%s18677_s3 + $0xb8] sm:$0xff]   ;;  %5303 = vmatpush1.bf16.msra.mxu0 %v12284_v47  ;;  %vm13601_vm10 = vmand %vm2857_vm1, %vm2809_vm15 }
 0x196   : > { %v1366_v63 = vpop.f32.mrf.mxu1  ;;  %18905 = vst [vmem:[#allocation49_spill] sm:$0xff] %v13507_v12  ;;  %v2413_v54 = vmul.u32 24, %v2412_v46  ;;  %v13534_v14 = vsub.s32 %v13336_v51, %v2391_v44  ;;  %vm2810_vm3 = vcmp.ne.s32.totalorder %v13507_v12, 0  ;;  %vm2858_vm5 = vcmp.lt.s32.totalorder %v13507_v12, 0  ;;  %4877 = vmatpush2.bf16.msra.mxu1 %v12283_v29  ;;  %5304 = vmatprep.subr.bf16.mxu0 %v18882_v60 }
 0x197   : > { %18903 = vst [vmem:[#allocation47_spill] sm:$0xff] %v13490_v41  ;;  %v919_v9 = vpop.f32.mrf.mxu0  ;;  %2026 = vmatmul.mubr.bf16.gmra.mxu0 %v13067_v15  ;;  %v13512_v41 = vadd.s32 24, %v13477_v38  ;;  %18907 = vst [vmem:[#allocation51_spill] sm:$0xff] %v13515_v33  ;;  %v13518_v50 = vmul.u32.u64.low 2863311531, %v13488_v27  ;;  %v13519_v15 = vmul.u32.u64.high 2863311531, %v13488_v27, %v13518_v50  ;;  %v13554_v51 = vsub.s32 %v13344_v43, %v2402_v34  ;;  %4878 = vmatprep.subr.bf16.mxu1 %v18882_v60 }
 0x198   : > { %v1369_v63 = vpop.f32.mrf.mxu1  ;;  %11585 = vmatprep.mubr.msk.bf16.mxu0 %vm18688_vm0, %v13070_v19  ;;  %v13527_v19 = vmul.u32.u64.low 2863311531, %v13495_v58  ;;  %v13528_v20 = vmul.u32.u64.high 2863311531, %v13495_v58, %v13527_v19  ;;  %18909 = vst [vmem:[#allocation53_spill] sm:$0xff] %v13534_v14  ;;  %v13537_v50 = vmul.u32.u64.low 2863311531, %v13502_v26  ;;  %v13538_v13 = vmul.u32.u64.high 2863311531, %v13502_v26, %v13537_v50  ;;  %vm13616_vm15 = vmand %vm2858_vm5, %vm2810_vm3 }
 0x199   : > { %18906 = vst [vmem:[#allocation50_spill] sm:$0xff] %v13512_v41  ;;  %v13524_v48 = vadd.f32 %v1369_v63, %v919_v9  ;;  %v921_v46 = vpop.f32.mrf.mxu0  ;;  %v13541_v9 = vadd.s32 144, %v13217_v18  ;;  %v18910_v63 = vmov 0  ;;  %18912 = vst [vmem:[#allocation54_spill] sm:$0xff] %v13554_v51  ;;  %v13557_v44 = vsub.s32 %v13347_v4, %v2413_v54  ;;  %v12285_v4 = vld [vmem:[%s18677_s3 + $0x30] sm:$0xff]  }
 0x19a   : > { %v1371_v7 = vpop.f32.mrf.mxu1  ;;  %v18911_v63 = vsel %vm13547_vm2, 4294967295, %v18910_v63  ;;  %v18914_v46 = vmov 0  ;;  %v13569_v19 = vadd.s32 24, %v13507_v12  ;;  %v2434_v43 = vshrl.u32 %v13485_v8, 4  ;;  %5305 = vmatpush1.bf16.msra.mxu0 %v12285_v4 }
 0x19b   : > { %18908 = vst [vmem:[#allocation52_spill] sm:$0xff] %v13524_v48  ;;  %v922_v3 = vpop.f32.mrf.mxu0  ;;  %18913 = vst [vmem:[#allocation55_spill] sm:$0xff] %v13557_v44  ;;  %v18915_v46 = vsel %vm13564_vm9, 4294967295, %v18914_v46  ;;  %v13577_v34 = vadd.s32 152, %v13217_v18  ;;  %v18919_v7 = vmov 0  ;;  %v13592_v8 = vadd.s32 24, %v13515_v33  ;;  %5306 = vmatprep.subr.bf16.mxu0 %v18882_v60 }
 0x19c   : > { %v1372_v47 = vpop.f32.mrf.mxu1  ;;  %18916 = vst [vmem:[#allocation56_spill] sm:$0xff] %v18915_v46  ;;  %18917 = vst [vmem:[#allocation57_spill] sm:$0xff] %v13569_v19  ;;  %v18920_v7 = vsel %vm13586_vm11, 4294967295, %v18919_v7  ;;  %v13595_v50 = vsub.s32 %v13363_v57, %v2424_v11  ;;  %vm2813_vm1 = vcmp.ne.s32.totalorder %v13554_v51, 0  ;;  %vm2861_vm14 = vcmp.lt.s32.totalorder %v13554_v51, 0 }
 0x19d   : > { %v13580_v54 = vadd.f32 %v1372_v47, %v922_v3  ;;  %v924_v29 = vpop.f32.mrf.mxu0  ;;  %18921 = vst [vmem:[#allocation59_spill] sm:$0xff] %v18920_v7  ;;  %18922 = vst [vmem:[#allocation60_spill] sm:$0xff] %v13592_v8  ;;  %v18924_v3 = vmov 0  ;;  %vm18930_vm8 = vcmp.ne.s32.totalorder %v13515_v33, 0  ;;  %vm18931_vm5 = vcmp.lt.s32.totalorder %v13515_v33, 0 }
 0x19e   : > { %18923 = vst [vmem:[#allocation61_spill] sm:$0xff] %v13595_v50  ;;  %v1374_v48 = vpop.f32.mrf.mxu1  ;;  %v18925_v3 = vsel %vm13601_vm10, 4294967295, %v18924_v3  ;;  %v13608_v47 = vmul.u32.u64.low 2863311531, %v13541_v9  ;;  %v13609_v29 = vmul.u32.u64.high 2863311531, %v13541_v9, %v13608_v47  ;;  %vm13631_vm3 = vmand %vm18931_vm5, %vm18930_vm8  ;;  %v2435_v4 = vmul.u32 24, %v2434_v43  ;;  %5307 = vmatpush1.bf16.msra.mxu0 %v12286_v5 }
 0x19f   : > { %18918 = vst [vmem:[#allocation58_spill] sm:$0xff] %v13580_v54  ;;  %18926 = vst [vmem:[#allocation62_spill] sm:$0xff] %v18925_v3  ;;  %v927_v57 = vpop.f32.mrf.mxu0  ;;  %2034 = vmatmul.mubr.bf16.gmra.mxu0 %v13083_v28  ;;  %v18927_v48 = vmov 0  ;;  %v18932_v28 = vmov 0  ;;  %v2445_v47 = vshrl.u32 %v13519_v15, 4  ;;  %vm18937_vm8 = vcmp.lt.s32.totalorder %v13534_v14, 0  ;;  %5308 = vmatprep.subr.bf16.mxu0 %v18882_v60 }
 0x1a0   : > { %v18928_v48 = vsel %vm13616_vm15, 4294967295, %v18927_v48  ;;  %v1377_v11 = vpop.f32.mrf.mxu1  ;;  %11586 = vmatprep.mubr.msk.bf16.mxu0 %vm18688_vm0, %v13087_v32  ;;  %v18933_v28 = vsel %vm13631_vm3, 4294967295, %v18932_v28  ;;  %v13637_v54 = vmul.u32.u64.low 2863311531, %v13577_v34  ;;  %v13638_v52 = vmul.u32.u64.high 2863311531, %v13577_v34, %v13637_v54 }
 0x1a1   : > { %18929 = vst [vmem:[#allocation63_spill] sm:$0xff] %v18928_v48  ;;  %18934 = vst [vmem:[#allocation64_spill] sm:$0xff] %v18933_v28  ;;  %v13643_v32 = vadd.f32 %v1377_v11, %v927_v57  ;;  %v929_v16 = vpop.f32.mrf.mxu0  ;;  %vm18936_vm0 = vcmp.ne.s32.totalorder %v13534_v14, 0  ;;  %vm2815_vm12 = vcmp.ne.s32.totalorder %v13595_v50, 0  ;;  %v2456_v15 = vshrl.u32 %v13528_v20, 4 }
 0x1a2   : > { %vm13649_vm5 = vmand %vm18937_vm8, %vm18936_vm0  ;;  %v1379_v43 = vpop.f32.mrf.mxu1  ;;  %v13665_v57 = vadd.s32 24, %v13534_v14  ;;  %v18942_v20 = vmov 0  ;;  %v2467_v11 = vshrl.u32 %v13538_v13, 4  ;;  %v13681_v16 = vadd.s32 24, %v13554_v51  ;;  %5309 = vmatpush1.bf16.msra.mxu0 %v12288_v21 }
 0x1a3   : > { %18935 = vst [vmem:[#allocation65_spill] sm:$0xff] %v13643_v32  ;;  %v18939_v59 = vsel %vm13649_vm5, 4294967295, %v18938_v59  ;;  %vm13671_vm0 = vmand %vm2861_vm14, %vm2813_vm1  ;;  %v930_v43 = vpop.f32.mrf.mxu0  ;;  %vm18946_vm8 = vcmp.ne.s32.totalorder %v13557_v44, 0  ;;  %vm18947_vm13 = vcmp.lt.s32.totalorder %v13557_v44, 0  ;;  %v18948_v32 = vmov 0  ;;  %5310 = vmatprep.subr.bf16.mxu0 %v18882_v60 }
 0x1a4   : > { %18940 = vst [vmem:[#allocation66_spill] sm:$0xff] %v18939_v59  ;;  %18941 = vst [vmem:[#allocation67_spill] sm:$0xff] %v13665_v57  ;;  %v18943_v20 = vsel %vm13671_vm0, 4294967295, %v18942_v20  ;;  %v13692_v13 = vadd.s32 24, %v13557_v44  ;;  %v13695_v5 = vadd.s32 24, %v13595_v50  ;;  %v1380_v54 = vpop.f32.mrf.mxu1  ;;  %v18954_v7 = vmov 0 }
 0x1a5   : > { %18944 = vst [vmem:[#allocation68_spill] sm:$0xff] %v18943_v20  ;;  %18945 = vst [vmem:[#allocation69_spill] sm:$0xff] %v13681_v16  ;;  %v13715_v39 = vsub.s32 %v13463_v37, %v2435_v4  ;;  %v2446_v1 = vmul.u32 24, %v2445_v47  ;;  %v13720_v38 = vadd.f32 %v1380_v54, %v930_v43  ;;  %v932_v48 = vpop.f32.mrf.mxu0  ;;  %v2457_v12 = vmul.u32 24, %v2456_v15  ;;  %v12289_v15 = vld [vmem:[%s18677_s3 + $0x18] sm:$0xff]  }
 0x1a6   : > { %vm13687_vm14 = vmand %vm18947_vm13, %vm18946_vm8  ;;  %18951 = vst [vmem:[#allocation71_spill] sm:$0xff] %v13692_v13  ;;  %vm18953_vm13 = vcmp.lt.s32.totalorder %v13595_v50, 0  ;;  %v13727_v19 = vadd.s32 160, %v13217_v18  ;;  %v1382_v41 = vpop.f32.mrf.mxu1  ;;  %v2468_v4 = vmul.u32 24, %v2467_v11  ;;  %v2478_v47 = vshrl.u32 %v13609_v29, 4  ;;  %5311 = vmatpush1.bf16.msra.mxu0 %v12289_v15  ;;  %v12290_v15 = vld [vmem:[%s18677_s3 + $0x10] sm:$0xff]  }
 0x1a7   : > { %v18949_v32 = vsel %vm13687_vm14, 4294967295, %v18948_v32  ;;  %18952 = vst [vmem:[#allocation72_spill] sm:$0xff] %v13695_v5  ;;  %vm13710_vm1 = vmand %vm18953_vm13, %vm2815_vm12  ;;  %v13735_v48 = vadd.s32 168, %v13217_v18  ;;  %v935_v54 = vpop.f32.mrf.mxu0  ;;  %2042 = vmatmul.mubr.bf16.gmra.mxu0 %v13095_v36  ;;  %v13752_v29 = vadd.s32 176, %v13217_v18  ;;  %v18958_v11 = vcombine.high %v13065_v10, %v13077_v22  ;;  %5312 = vmatprep.subr.bf16.mxu0 %v18882_v60 }
 0x1a8   : > { %18950 = vst [vmem:[#allocation70_spill] sm:$0xff] %v18949_v32  ;;  %v18955_v7 = vsel %vm13710_vm1, 4294967295, %v18954_v7  ;;  %18957 = vst [vmem:[#allocation74_spill] sm:$0xff] %v13720_v38  ;;  %v1385_v36 = vpop.f32.mrf.mxu1  ;;  %vm18959_vm12 = vcmask 523264   ;;  %v13761_v43 = vsub.s32 %v13488_v27, %v2446_v1  ;;  %v2489_v21 = vshrl.u32 %v13638_v52, 4  ;;  %v12287_v27 = vld [vmem:[%s18677_s3 + $0xb0] sm:$0xff]  }
 0x1a9   : > { %18956 = vst [vmem:[#allocation73_spill] sm:$0xff] %v18955_v7  ;;  %11587 = vmatprep.mubr.msk.bf16.mxu0 %vm18959_vm12, %v18958_v11  ;;  %v13767_v41 = vadd.f32 %v1385_v36, %v935_v54  ;;  %v937_v37 = vpop.f32.mrf.mxu0  ;;  %v13770_v35 = vsub.s32 %v13495_v58, %v2457_v12  ;;  %v13773_v11 = vmul.u32.u64.low 2863311531, %v13727_v19  ;;  %v13774_v38 = vmul.u32.u64.high 2863311531, %v13727_v19, %v13773_v11  ;;  %4879 = vmatpush2.bf16.msra.mxu1 %v12287_v27  ;;  %vm18966_vm8 = vmmov %vm18959_vm12 }
 0x1aa   : > { %18960 = vst [vmem:[#allocation75_spill] sm:$0xff] %v13761_v43  ;;  %v1387_v1 = vpop.f32.mrf.mxu1  ;;  %v13780_v52 = vsub.s32 %v13502_v26, %v2468_v4  ;;  %v2479_v50 = vmul.u32 24, %v2478_v47  ;;  %v13783_v54 = vmul.u32.u64.low 2863311531, %v13735_v48  ;;  %v13784_v36 = vmul.u32.u64.high 2863311531, %v13735_v48, %v13783_v54  ;;  %4880 = vmatprep.subr.bf16.mxu1 %v18882_v60  ;;  %5313 = vmatpush1.bf16.msra.mxu0 %v12290_v15 }
 0x1ab   : > { %18961 = vst [vmem:[#allocation76_spill] sm:$0xff] %v13767_v41  ;;  %v938_v58 = vpop.f32.mrf.mxu0  ;;  %v13787_v12 = vadd.s32 24, %v13715_v39  ;;  %v13790_v37 = vmul.u32.u64.low 2863311531, %v13752_v29  ;;  %v13791_v11 = vmul.u32.u64.high 2863311531, %v13752_v29, %v13790_v37  ;;  %v13795_v26 = vadd.s32 184, %v13217_v18  ;;  %5314 = vmatprep.subr.bf16.mxu0 %v18882_v60 }
 0x1ac   : > { %v1388_v4 = vpop.f32.mrf.mxu1  ;;  %v2490_v47 = vmul.u32 24, %v2489_v21  ;;  %v13803_v27 = vadd.s32 192, %v13217_v18  ;;  %v13809_v37 = vadd.s32 24, %v13761_v43  ;;  %v13813_v41 = vadd.s32 200, %v13217_v18 }
 0x1ad   : > { %v13806_v1 = vadd.f32 %v1388_v4, %v938_v58  ;;  %v940_v54 = vpop.f32.mrf.mxu0  ;;  %v13818_v5 = vsub.s32 %v13541_v9, %v2479_v50  ;;  %v13821_v58 = vadd.s32 208, %v13217_v18  ;;  %v13833_v9 = vadd.s32 216, %v13217_v18 }
 0x1ae   : > { %18963 = vst [vmem:[#allocation78_spill] sm:$0xff] %v13809_v37  ;;  %v1390_v21 = vpop.f32.mrf.mxu1  ;;  %v18964_v54 = vcombine.low %v13065_v10, %v13077_v22  ;;  %v18965_v15 = vcombine.high %v13080_v23, %v13379_v56  ;;  %v13840_v10 = vsub.s32 %v13577_v34, %v2490_v47  ;;  %v12291_v22 = vld [vmem:[%s18677_s3 + $0x8] sm:$0xff]   ;;  %v13850_v7 = vadd.s32 224, %v13217_v18 }
 0x1af   : > { %18962 = vst [vmem:[#allocation77_spill] sm:$0xff] %v13806_v1  ;;  %v943_v4 = vpop.f32.mrf.mxu0  ;;  %v13828_v21 = vmul.u32.u64.low 2863311531, %v13795_v26  ;;  %v13829_v1 = vmul.u32.u64.high 2863311531, %v13795_v26, %v13828_v21  ;;  %v13856_v32 = vmul.u32.u64.low 2863311531, %v13813_v41  ;;  %v13857_v34 = vmul.u32.u64.high 2863311531, %v13813_v41, %v13856_v32  ;;  %5315 = vmatpush1.bf16.msra.mxu0 %v12291_v22 }
 0x1b0   : > { %2050 = vmatmul.mubr.bf16.gmra.mxu0 %v18964_v54  ;;  %v1393_v50 = vpop.f32.mrf.mxu1  ;;  %18967 = vst [vmem:[#allocation79_spill] sm:$0xff] %v13840_v10  ;;  %v13846_v54 = vmul.u32.u64.low 2863311531, %v13803_v27  ;;  %v13847_v21 = vmul.u32.u64.high 2863311531, %v13803_v27, %v13846_v54  ;;  %vm18970_vm12 = vcmp.lt.s32.totalorder %v13715_v39, 0  ;;  %v18971_v51 = vmov 0  ;;  %5316 = vmatprep.subr.bf16.mxu0 %v18882_v60 }
 0x1b1   : > { %11588 = vmatprep.mubr.msk.bf16.mxu0 %vm18966_vm8, %v18965_v15  ;;  %v13852_v44 = vadd.f32 %v1393_v50, %v943_v4  ;;  %v945_v13 = vpop.f32.mrf.mxu0  ;;  %v2500_v15 = vshrl.u32 %v13774_v38, 4  ;;  %vm18969_vm8 = vcmp.ne.s32.totalorder %v13715_v39, 0  ;;  %v2511_v4 = vshrl.u32 %v13784_v36, 4  ;;  %v12275_v32 = vld [vmem:[%s12749_s9 + $0x1a4] ss:$8 sps:$4 sm:$0xff]  }
 0x1b2   : > { %v1395_v47 = vpop.f32.mrf.mxu1  ;;  %vm13863_vm13 = vmand %vm18970_vm12, %vm18969_vm8  ;;  %v13870_v38 = vmul.u32.u64.low 2863311531, %v13821_v58  ;;  %v13871_v13 = vmul.u32.u64.high 2863311531, %v13821_v58, %v13870_v38  ;;  %vm18973_vm14 = vcmp.ne.s32.totalorder %v13761_v43, 0  ;;  %vm18974_vm0 = vcmp.lt.s32.totalorder %v13761_v43, 0 }
 0x1b3   : > { %18968 = vst [vmem:[#allocation80_spill] sm:$0xff] %v13852_v44  ;;  %v18972_v51 = vsel %vm13863_vm13, 4294967295, %v18971_v51  ;;  %v946_v50 = vpop.f32.mrf.mxu0  ;;  %vm13878_vm5 = vmand %vm18974_vm0, %vm18973_vm14  ;;  %v18975_v54 = vmov 0  ;;  %vm2868_vm12 = vcmp.lt.s32.totalorder %v13818_v5, 0  ;;  %v2522_v47 = vshrl.u32 %v13791_v11, 4  ;;  %v12293_v11 = vld [vmem:[%s18677_s3] sm:$0xff]  }
 0x1b4   : > { %v18976_v54 = vsel %vm13878_vm5, 4294967295, %v18975_v54  ;;  %v13886_v36 = vmul.u32.u64.low 2863311531, %v13833_v9  ;;  %v13887_v22 = vmul.u32.u64.high 2863311531, %v13833_v9, %v13886_v36  ;;  %v1396_v38 = vpop.f32.mrf.mxu1  ;;  %vm18977_vm8 = vcmp.ne.s32.totalorder %v13770_v35, 0  ;;  %5317 = vmatpush1.bf16.msra.mxu0 %v12293_v11 }
 0x1b5   : > { %vm18978_vm1 = vcmp.lt.s32.totalorder %v13770_v35, 0  ;;  %v18979_v44 = vmov 0  ;;  %v13903_v16 = vmul.u32.u64.low 2863311531, %v13850_v7  ;;  %v13904_v36 = vmul.u32.u64.high 2863311531, %v13850_v7, %v13903_v16  ;;  %v948_v14 = vpop.f32.mrf.mxu0  ;;  %5326 = vmatprep.subr.bf16.mxu0 %v18882_v60 }
 0x1b6   : > { %vm13893_vm3 = vmand %vm18978_vm1, %vm18977_vm8  ;;  %v13906_v20 = vadd.f32 %v1396_v38, %v946_v50  ;;  %v13909_v57 = vadd.s32 24, %v13770_v35  ;;  %vm18982_vm1 = vcmp.ne.s32.totalorder %v13780_v52, 0  ;;  %vm18983_vm8 = vcmp.lt.s32.totalorder %v13780_v52, 0  ;;  %v1398_v28 = vpop.f32.mrf.mxu1 }
 0x1b7   : > { %v18980_v44 = vsel %vm13893_vm3, 4294967295, %v18979_v44  ;;  %vm13915_vm0 = vmand %vm18983_vm8, %vm18982_vm1  ;;  %v18984_v59 = vmov 0  ;;  %v2501_v33 = vmul.u32 24, %v2500_v15  ;;  %v13920_v8 = vadd.s32 232, %v13217_v18  ;;  %v951_v28 = vpop.f32.mrf.mxu0 }
 0x1b8   : > { %18981 = vst [vmem:[#allocation81_spill] sm:$0xff] %v13906_v20  ;;  %v18985_v59 = vsel %vm13915_vm0, 4294967295, %v18984_v59  ;;  %v13923_v16 = vadd.s32 24, %v13780_v52  ;;  %vm18986_vm14 = vcmp.ne.s32.totalorder %v13818_v5, 0  ;;  %v18987_v14 = vmov 0  ;;  %v1401_v17 = vpop.f32.mrf.mxu1 }
 0x1b9   : > { %vm13929_vm15 = vmand %vm2868_vm12, %vm18986_vm14  ;;  %v13934_v50 = vadd.s32 24, %v13818_v5  ;;  %v13937_v15 = vadd.s32 24, %v13840_v10  ;;  %v2512_v38 = vmul.u32 24, %v2511_v4  ;;  %v18989_v20 = vcombine.low %v13080_v23, %v13379_v56 }
 0x1ba   : > { %v18988_v14 = vsel %vm13929_vm15, 4294967295, %v18987_v14  ;;  %vm18990_vm1 = vcmp.ne.s32.totalorder %v13840_v10, 0  ;;  %vm18991_vm12 = vcmp.lt.s32.totalorder %v13840_v10, 0  ;;  %v18992_v3 = vmov 0  ;;  %v1403_v37 = vpop.f32.mrf.mxu1 }
 0x1bb   : > { %2058 = vmatmul.mubr.bf16.gmra.mxu0 %v18989_v20  ;;  %vm13946_vm14 = vmand %vm18991_vm12, %vm18990_vm1  ;;  %v2523_v46 = vmul.u32 24, %v2522_v47  ;;  %v2533_v49 = vshrl.u32 %v13829_v1, 4  ;;  %v13953_v4 = vmul.u32.u64.low 2863311531, %v13920_v8  ;;  %v13954_v11 = vmul.u32.u64.high 2863311531, %v13920_v8, %v13953_v4  ;;  %v12294_v1 = vld [vmem:[%s18677_s3 + $0x58] sm:$0xff]  }
 0x1bc   : > { %v18993_v3 = vsel %vm13946_vm14, 4294967295, %v18992_v3  ;;  %vm18995_vm8 = vcmask 523264   ;;  %v2544_v20 = vshrl.u32 %v13847_v21, 4  ;;  %v13970_v47 = vadd.s32 240, %v13217_v18  ;;  %v953_v4 = vpop.f32.mrf.mxu0  ;;  %v12292_v21 = vld [vmem:[%s18677_s3 + $0xa8] sm:$0xff]   ;;  %5327 = vmatpush2.bf16.msra.mxu0 %v12294_v1 }
 0x1bd   : > { %18994 = vst [vmem:[#allocation82_spill] sm:$0xff] %v18993_v3  ;;  %11589 = vmatprep.mubr.msk.bf16.mxu0 %vm18995_vm8, %v12275_v32  ;;  %v13972_v32 = vadd.f32 %v1401_v17, %v951_v28  ;;  %v13979_v56 = vsub.s32 %v13727_v19, %v2501_v33  ;;  %v2555_v43 = vshrl.u32 %v13857_v34, 4  ;;  %v2566_v19 = vshrl.u32 %v13871_v13, 4  ;;  %v12277_v37 = vld [vmem:[%s12749_s9 + $0x1a0] ss:$8 sps:$4 sm:$0xff]   ;;  %4881 = vmatpush2.bf16.msra.mxu1 %v12292_v21  ;;  %v12295_v13 = vld [vmem:[%s18677_s3 + $0x50] sm:$0xff]  }
 0x1be   : > { %v954_v34 = vpop.f32.mrf.mxu0  ;;  %v14000_v4 = vsub.s32 %v13735_v48, %v2512_v38  ;;  %v14003_v17 = vsub.s32 %v13752_v29, %v2523_v46  ;;  %v2534_v23 = vmul.u32 24, %v2533_v49  ;;  %5328 = vmatprep.subr.bf16.mxu0 %v18882_v60  ;;  %v2577_v28 = vshrl.u32 %v13887_v22, 4  ;;  %4882 = vmatprep.subr.bf16.mxu1 %v18882_v60  ;;  %s273_s9 = scalar_lea.vmem [#allocation4], %s11992_s17 }
 0x1bf   : > { %18996 = vst [vmem:[#allocation83_spill] sm:$0xff] %v13972_v32  ;;  %v1404_v32 = vpop.f32.mrf.mxu1  ;;  %v2545_v3 = vmul.u32 24, %v2544_v20  ;;  %v2588_v1 = vshrl.u32 %v13904_v36, 4  ;;  %v14013_v48 = vmul.u32.u64.low 2863311531, %v13970_v47  ;;  %v14014_v46 = vmul.u32.u64.high 2863311531, %v13970_v47, %v14013_v48  ;;  %s11226_s19 = sshll.u32 %s273_s9, 4  ;;  %s11227_s19 = int_to_ptr.vmem [resolvable:$true] %s11226_s19 }
 0x1c0   : > { %18997 = vst [vmem:[#allocation84_spill] sm:$0xff] %v14000_v4  ;;  %18998 = vst [vmem:[#allocation85_spill] sm:$0xff] %v14003_v17  ;;  %v14016_v49 = vadd.f32 %v1404_v32, %v954_v34  ;;  %v956_v29 = vpop.f32.mrf.mxu0  ;;  %v2556_v22 = vmul.u32 24, %v2555_v43  ;;  %v2599_v38 = vshrl.u32 %v13954_v11, 4  ;;  %v14022_v21 = vadd.s32 24, %v13979_v56  ;;  %5329 = vmatpush2.bf16.msra.mxu0 %v12295_v13  ;;  %s12537_s24 = scalar_lea.vmem %s11227_s19, 48  ;;  %p12544_p0 = scmp.lt.s32.totalorder %s11227_s19, %s12542_s25 }
 0x1c1   : > { %v1406_v20 = vpop.f32.mrf.mxu1  ;;  %v2567_v36 = vmul.u32 24, %v2566_v19  ;;  %v14025_v33 = vadd.s32 248, %v13217_v18  ;;  %v14030_v43 = vsub.s32 %v13795_v26, %v2534_v23  ;;  %v2578_v11 = vmul.u32 24, %v2577_v28  ;;  %5330 = vmatprep.subr.bf16.mxu0 %v18882_v60  ;;  %p12538_p11 = scmp.ne.s32.totalorder %s11227_s19, %s12537_s24 }
 0x1c2   : > { %18999 = vst [vmem:[#allocation86_spill] sm:$0xff] %v14016_v49  ;;  %v959_v48 = vpop.f32.mrf.mxu0  ;;  %v14034_v34 = vadd.s32 24, %v14000_v4  ;;  %v14038_v19 = vsub.s32 %v13803_v27, %v2545_v3  ;;  %v2589_v13 = vmul.u32 24, %v2588_v1  ;;  %v14047_v23 = vsub.s32 %v13813_v41, %v2556_v22 }
 0x1c3   : > { %2066 = vmatmul.mubr.bf16.gmra.mxu0 %v12277_v37  ;;  %v1409_v32 = vpop.f32.mrf.mxu1  ;;  %v12296_v37 = vld [vmem:[%s18677_s3 + $0x48] sm:$0xff]   ;;  %v2600_v28 = vmul.u32 24, %v2599_v38  ;;  %v14050_v49 = vsub.s32 %v13821_v58, %v2567_v36  ;;  %v14053_v3 = vmul.u32.u64.low 2863311531, %v14025_v33  ;;  %v14054_v27 = vmul.u32.u64.high 2863311531, %v14025_v33, %v14053_v3  ;;  %p12539_p12 = pnand %p12538_p11, %p12684_p5 }
 0x1c4   : > { %19000 = vst [vmem:[#allocation87_spill] sm:$0xff] %v14038_v19  ;;  %v14043_v29 = vadd.f32 %v1409_v32, %v959_v48  ;;  %v961_v26 = vpop.f32.mrf.mxu0  ;;  %19002 = vst [vmem:[#allocation89_spill] sm:$0xff] %v14047_v23  ;;  %5331 = vmatpush2.bf16.msra.mxu0 %v12296_v37  ;;  %v14057_v1 = vadd.s32 256, %v13217_v18  ;;  %v19004_v41 = vsel %vm13369_vm4, %v13309_v0, %v13284_v53  ;;  %vm19007_vm12 = vcmp.ne.s32.totalorder %v13979_v56, 0 }
 0x1c5   : > { %v1411_v20 = vpop.f32.mrf.mxu1  ;;  %19003 = vst [vmem:[#allocation90_spill] sm:$0xff] %v14050_v49  ;;  %vm14064_vm1 = vcmp.lt.s32.totalorder %v19004_v41, 16  ;;  %vm19008_vm8 = vcmp.lt.s32.totalorder %v13979_v56, 0  ;;  %v14077_v38 = vadd.s32 24, %v14003_v17  ;;  %v14082_v53 = vsub.s32 %v13833_v9, %v2578_v11  ;;  %5332 = vmatprep.subr.bf16.mxu0 %v18882_v60  ;;  %v12298_v9 = vld [vmem:[%s18677_s3 + $0x40] sm:$0xff]   ;;  %p12540_p13 = pneg %p12539_p12 }
 0x1c6   : > { %19001 = vst [vmem:[#allocation88_spill] sm:$0xff] %v14043_v29  ;;  %v962_v48 = vpop.f32.mrf.mxu0  ;;  %vm14072_vm14 = vmand %vm19008_vm8, %vm19007_vm12  ;;  %vm19012_vm4 = vcmp.ne.s32.totalorder %v14000_v4, 0  ;;  %vm19013_vm12 = vcmp.lt.s32.totalorder %v14000_v4, 0  ;;  %v14096_v36 = vsub.s32 %v13850_v7, %v2589_v13  ;;  %v2610_v11 = vshrl.u32 %v14014_v46, 4  ;;  %v14107_v26 = vld [vmem:[%s18676_s2] ss:$0 sm:$0xff] }
 0x1c7   : > { %19011 = vst [vmem:[#allocation91_spill] sm:$0xff] %v14082_v53  ;;  %v1412_v0 = vpop.f32.mrf.mxu1  ;;  %vm14089_vm8 = vmand %vm19013_vm12, %vm19012_vm4  ;;  %vm19019_vm4 = vcmp.ne.s32.totalorder %v14003_v17, 0  ;;  %vm19020_vm12 = vcmp.lt.s32.totalorder %v14003_v17, 0  ;;  %v14120_v46 = vsub.s32 %v13920_v8, %v2600_v28  ;;  %vm19024_vm5 = vcmp.ne.s32.totalorder %v14030_v43, 0  ;;  %v12301_v20 = vld [vmem:[#allocation2 + $0x4] ss:$8 sps:$4 sm:$0xff]  }
 0x1c8   : > { %v19015_v61 = vsel %vm14089_vm8, 4294967295, %v19014_v61  ;;  %19017 = vst [vmem:[#allocation93_spill] sm:$0xff] %v14096_v36  ;;  %v14102_v32 = vadd.f32 %v1412_v0, %v962_v48  ;;  %v964_v37 = vpop.f32.mrf.mxu0  ;;  %vm14113_vm15 = vmand %vm19020_vm12, %vm19019_vm4  ;;  %vm19025_vm13 = vcmp.lt.s32.totalorder %v14030_v43, 0  ;;  %5333 = vmatpush2.bf16.msra.mxu0 %v12298_v9  ;;  %v19028_v41 = vsel %vm13385_vm6, %v13326_v30, %v13294_v25  ;;  %v12299_v25 = vld [vmem:[#allocation2] ss:$8 sps:$4 sm:$0xff]   ;;  %v19115_v29 = vld [vmem:[#allocation10_spill] sm:$0xff] }
 0x1c9   : > { %19016 = vst [vmem:[#allocation92_spill] sm:$0xff] %v19015_v61  ;;  %19023 = vst [vmem:[#allocation95_spill] sm:$0xff] %v14120_v46  ;;  %v14133_v3 = vmul.u32.u64.low 2863311531, %v14057_v1  ;;  %v14134_v48 = vmul.u32.u64.high 2863311531, %v14057_v1, %v14133_v3  ;;  %v1414_v8 = vpop.f32.mrf.mxu1  ;;  %v19029_v0 = vmov 0  ;;  %v14146_v9 = vadd.s32 24, %v14030_v43 }
 0x1ca   : > { %19018 = vst [vmem:[#allocation94_spill] sm:$0xff] %v14102_v32  ;;  %vm14126_vm10 = vmand %vm19025_vm13, %vm19024_vm5  ;;  %v1883_v28 = vpop.f32.mrf.mxu0  ;;  %vm14141_vm5 = vcmp.lt.s32.totalorder %v19028_v41, 16  ;;  %vm19031_vm13 = vcmp.ne.s32.totalorder %v14038_v19, 0  ;;  %vm19032_vm12 = vcmp.lt.s32.totalorder %v14038_v19, 0  ;;  %v19033_v37 = vmov 0 }
 0x1cb   : > { %v19030_v0 = vsel %vm14141_vm5, 4294967295, %v19029_v0  ;;  %vm14152_vm4 = vmand %vm19032_vm12, %vm19031_vm13  ;;  %v14157_v31 = vadd.s32 24, %v14038_v19  ;;  %v2074_v30 = vadd.f32 %v1883_v28, %v13103_v42  ;;  %vm19037_vm0 = vcmp.ne.s32.totalorder %v14047_v23, 0 }
 0x1cc   : > { %v19034_v37 = vsel %vm14152_vm4, 4294967295, %v19033_v37  ;;  %vm19038_vm11 = vcmp.lt.s32.totalorder %v14047_v23, 0  ;;  %v19039_v3 = vmov 0  ;;  %vm2830_vm12 = vcmp.ne.s32.totalorder %v14096_v36, 0  ;;  %v1885_v41 = vpop.f32.mrf.mxu0 }
 0x1cd   : > { %19035 = vst [vmem:[#allocation96_spill] sm:$0xff] %v19034_v37  ;;  %19036 = vst [vmem:[#allocation97_spill] sm:$0xff] %v14157_v31  ;;  %vm2878_vm13 = vcmp.lt.s32.totalorder %v14096_v36, 0  ;;  %vm19042_vm2 = vcmask 523264   ;;  %v2611_v8 = vmul.u32 24, %v2610_v11  ;;  %v14174_v32 = vadd.s32 24, %v14047_v23 }
 0x1ce   : > { %vm14166_vm9 = vmand %vm19038_vm11, %vm19037_vm0  ;;  %11807 = vmatprep.mubr.msk.bf16.mxu0 %vm19042_vm2, %v12301_v20  ;;  %vm19044_vm3 = vcmp.ne.s32.totalorder %v14050_v49, 0  ;;  %vm19045_vm6 = vcmp.lt.s32.totalorder %v14050_v49, 0  ;;  %v19046_v42 = vmov 0  ;;  %v14185_v28 = vadd.s32 24, %v14050_v49  ;;  %v12297_v20 = vld [vmem:[%s18677_s3 + $0xa0] sm:$0xff]   ;;  %v19107_v31 = vld [vmem:[#allocation59_spill] sm:$0xff] }
 0x1cf   : > { %v19040_v3 = vsel %vm14166_vm9, 4294967295, %v19039_v3  ;;  %19043 = vst [vmem:[#allocation99_spill] sm:$0xff] %v14174_v32  ;;  %vm14180_vm5 = vmand %vm19045_vm6, %vm19044_vm3  ;;  %5335 = vmatmul.mubr.bf16.vlgmr.msra.gmra.mxu0 %v12299_v25  ;;  %v2129_v11 = vadd.f32 %v14107_v26, %v2074_v30  ;;  %vm19050_vm3 = vcmp.ne.s32.totalorder %v14082_v53, 0  ;;  %vm19051_vm6 = vcmp.lt.s32.totalorder %v14082_v53, 0  ;;  %v1886_v30 = vpop.f32.mrf.mxu0  ;;  %4883 = vmatpush2.bf16.msra.mxu1 %v12297_v20  ;;  %v19109_v37 = vld [vmem:[#allocation48_spill] sm:$0xff] }
 0x1d0   : > { %19041 = vst [vmem:[#allocation98_spill] sm:$0xff] %v19040_v3  ;;  %v19047_v42 = vsel %vm14180_vm5, 4294967295, %v19046_v42  ;;  %19049 = vst [vmem:[#allocation101_spill] sm:$0xff] %v14185_v28  ;;  %v19052_v10 = vmov 0  ;;  %v2621_v25 = vshrl.u32 %v14054_v27, 4  ;;  %v19055_v41 = vsel %vm13405_vm7, %v13332_v40, %v13300_v2  ;;  %5960 = vmatprep.subr.bf16.mxu1 %v18882_v60  ;;  %v19102_v28 = vld [vmem:[#allocation9_spill] sm:$0xff] }
 0x1d1   : > { %19048 = vst [vmem:[#allocation100_spill] sm:$0xff] %v19047_v42  ;;  %vm14205_vm2 = vmand %vm19051_vm6, %vm19050_vm3  ;;  %vm14215_vm0 = vcmp.lt.s32.totalorder %v19055_v41, 16  ;;  %v14224_v4 = vadd.s32 24, %v14082_v53  ;;  %v14235_v2 = vadd.s32 24, %v14096_v36  ;;  %v14238_v40 = vadd.s32 24, %v14120_v46 }
 0x1d2   : > { %v19053_v10 = vsel %vm14205_vm2, 4294967295, %v19052_v10  ;;  %vm14230_vm3 = vmand %vm2878_vm13, %vm2830_vm12  ;;  %v2177_v27 = vmax.f32 %v2129_v11, 0.0  ;;  %v2075_v41 = vadd.f32 %v1886_v30, %v13105_v55  ;;  %vm19064_vm12 = vcmp.ne.s32.totalorder %v14120_v46, 0  ;;  %v1888_v55 = vpop.f32.mrf.mxu0 }
 0x1d3   : > { %19054 = vst [vmem:[#allocation102_spill] sm:$0xff] %v19053_v10  ;;  %19058 = vst [vmem:[#allocation103_spill] sm:$0xff] %v14224_v4  ;;  %v19060_v6 = vsel %vm14230_vm3, 4294967295, %v19059_v6  ;;  %vm19065_vm13 = vcmp.lt.s32.totalorder %v14120_v46, 0  ;;  %v19066_v17 = vmov 0  ;;  %v14254_v20 = vsub.s32 %v13970_v47, %v2611_v8  ;;  %v19120_v4 = vld [vmem:[#allocation50_spill] sm:$0xff] }
 0x1d4   : > { %19061 = vst [vmem:[#allocation104_spill] sm:$0xff] %v19060_v6  ;;  %19062 = vst [vmem:[#allocation105_spill] sm:$0xff] %v14235_v2  ;;  %v14270_v47 = vadd.s32 264, %v13217_v18  ;;  %v2130_v8 = vadd.f32 %v14107_v26, %v2075_v41  ;;  %v3090_v55 = vsel %vm14064_vm1, %v2177_v27, 0.0  ;;  %v2622_v11 = vmul.u32 24, %v2621_v25  ;;  %v1891_v19 = vpop.f32.mrf.mxu0  ;;  %v19081_v2 = vld [vmem:[#allocation44_spill] sm:$0xff] }
 0x1d5   : > { %19063 = vst [vmem:[#allocation106_spill] sm:$0xff] %v14238_v40  ;;  %vm14249_vm11 = vmand %vm19065_vm13, %vm19064_vm12  ;;  %v2632_v60 = vshrl.u32 %v14134_v48, 4  ;;  %v11944_v3 = vpack.c.bf16 %v3090_v55, %v3090_v55  ;;  %vm19069_vm13 = vnez %v18896_v45  ;;  %v14299_v27 = vadd.s32 24, %v14254_v20  ;;  %v19082_v6 = vld [vmem:[#allocation39_spill] sm:$0xff] }
 0x1d6   : > { %v19067_v17 = vsel %vm14249_vm11, 4294967295, %v19066_v17  ;;  %v19070_v30 = vsel %vm19069_vm13, %v13410_v24, %v13317_v62  ;;  %v2178_v62 = vmax.f32 %v2130_v8, 0.0  ;;  %v19073_v24 = vld [vmem:[#allocation7_spill] sm:$0xff]  ;;  %v14302_v41 = vadd.s32 272, %v13217_v18 }
 0x1d7   : > { %19068 = vst [vmem:[#allocation107_spill] sm:$0xff] %v19067_v17  ;;  %vm14281_vm7 = vcmp.lt.s32.totalorder %v19070_v30, 16  ;;  %v2076_v25 = vadd.f32 %v1891_v19, %v19073_v24  ;;  %v1893_v30 = vpop.f32.mrf.mxu0  ;;  %3852 = vrot.lane.b32.xlu0 %v11944_v3, %s12600_s30  ;;  %v3314_v55 = vshrl.u32 %v11944_v3, 16  ;;  %v3317_v48 = vshll.u32 %v11944_v3, 16  ;;  %v4338_v24 = vld [vmem:[#allocation2 + $0x14] sm:$0x8] }
 0x1d8   : > { %v14306_v22 = vmul.u32.u64.low 2863311531, %v14270_v47  ;;  %v14307_v36 = vmul.u32.u64.high 2863311531, %v14270_v47, %v14306_v22  ;;  %vm19074_vm1 = vsmask.f32 7950  ;;  %vm19075_vm13 = vcmask 519171  }
 0x1d9   : > { %v2131_v8 = vadd.f32 %v14107_v26, %v2076_v25  ;;  %vm14313_vm12 = vmand %vm19075_vm13, %vm19074_vm1  ;;  %vm19078_vm6 = vnez %v19030_v0  ;;  %v14320_v45 = vsub.s32 %v14025_v33, %v2622_v11  ;;  %v14322_v3 = vmul.u32 24, %v2632_v60  ;;  %v1894_v17 = vpop.f32.mrf.mxu0 }
 0x1da   : > { %v3091_v30 = vsel %vm19078_vm6, %v2178_v62, 0.0  ;;  %v3316_v46 = vrot.slane %v3314_v55, 7  ;;  %v4048_v40 = vrot.slane %v3317_v48, 5  ;;  %v4049_v22 = vrot.slane %v3314_v55, 4  ;;  %v19086_v62 = vld [vmem:[#allocation8_spill] sm:$0xff] }
 0x1db   : > { %19079 = vst [vmem:[#allocation7_spill] sm:$0xff] %v14320_v45  ;;  %v11945_v25 = vpack.c.bf16 %v3091_v30, %v3091_v30  ;;  %vm19080_vm11 = vnez %v18911_v63  ;;  %v2179_v0 = vmax.f32 %v2131_v8, 0.0  ;;  %v2077_v33 = vadd.f32 %v1894_v17, %v19086_v62  ;;  %v1896_v30 = vpop.f32.mrf.mxu0  ;;  %v3796_v17 = vld [vmem:[#allocation2 + $0x18] sm:$0xf] }
 0x1dc   : > { %v19083_v53 = vsel %vm19080_vm11, %v19081_v2, %v19082_v6  ;;  %v14335_v60 = vmul.u32.u64.low 2863311531, %v14302_v41  ;;  %v14336_v11 = vmul.u32.u64.high 2863311531, %v14302_v41, %v14335_v60  ;;  %v3319_v55 = vor.u32 %v3317_v48, %v3316_v46 }
 0x1dd   : > { %vm14329_vm1 = vcmp.lt.s32.totalorder %v19083_v53, 16  ;;  %v4050_v10 = vor.u32 %v4049_v22, %v4048_v40  ;;  %v4339_v63 = vsel %vm14313_vm12, %v4048_v40, %v4338_v24  ;;  %v3322_v49 = vshrl.u32 %v11945_v25, 16  ;;  %3854 = vrot.lane.b32.xlu0 %v11945_v25, %s12600_s30  ;;  %v1899_v62 = vpop.f32.mrf.mxu0 }
 0x1de   : > { %vm19087_vm11 = vsmask.f32 7938  ;;  %vm19088_vm6 = vcmask 519168   ;;  %4340 = vst [vmem:[#allocation2 + $0x14] sm:$0x8] %v4339_v63  ;;  %v2132_v6 = vadd.f32 %v14107_v26, %v2077_v33  ;;  %v3325_v2 = vshll.u32 %v11945_v25, 16 }
 0x1df   : > { %vm14344_vm13 = vmand %vm19088_vm6, %vm19087_vm11  ;;  %v3092_v48 = vsel %vm14215_vm0, %v2179_v0, 0.0  ;;  %v14352_v40 = vadd.s32 24, %v14320_v45  ;;  %v4051_v8 = vrot.slane %v4050_v10, 4  ;;  %v3324_v19 = vrot.slane %v3322_v49, 7  ;;  %v19095_v63 = vld [vmem:[#allocation56_spill] sm:$0xff]  ;;  %v19097_v25 = vld [vmem:[#allocation45_spill] sm:$0xff]  ;;  %v1901_v32 = vpop.f32.mrf.mxu0 }
 0x1e0   : > { %vm19091_vm12 = vsmask.f32 7440  ;;  %vm19092_vm3 = vsmask.f32 3328  ;;  %v4054_v22 = vrot.slane %v3322_v49, 4  ;;  %v11946_v60 = vpack.c.bf16 %v3092_v48, %v3092_v48  ;;  %v19098_v33 = vld [vmem:[#allocation41_spill] sm:$0xff] }
 0x1e1   : > { %vm14356_vm2 = vmor %vm19092_vm3, %vm19091_vm12  ;;  %vm19096_vm11 = vnez %v19095_v63  ;;  %v2180_v10 = vmax.f32 %v2132_v6, 0.0  ;;  %v4052_v30 = vrot.slane %v3325_v2, 5  ;;  %v2078_v42 = vadd.f32 %v1899_v62, %v19102_v28 }
 0x1e2   : > { %v19099_v61 = vsel %vm19096_vm11, %v19097_v25, %v19098_v33  ;;  %v3797_v23 = vsel %vm14344_vm13, %v3319_v55, %v3796_v17  ;;  %3856 = vrot.lane.b32.xlu1 %v11946_v60, %s12600_s30  ;;  %v3331_v49 = vshrl.u32 %v11946_v60, 16  ;;  %v3334_v48 = vshll.u32 %v11946_v60, 16  ;;  %v1902_v60 = vpop.f32.mrf.mxu0 }
 0x1e3   : > { %vm14365_vm0 = vcmp.lt.s32.totalorder %v19099_v61, 16  ;;  %vm19103_vm3 = vsmask.f32 4368  ;;  %vm19104_vm6 = vsmask.f32 256  ;;  %v3327_v25 = vor.u32 %v3325_v2, %v3324_v19 }
 0x1e4   : > { %vm14375_vm12 = vmor %vm19104_vm6, %vm19103_vm3  ;;  %3798 = vst [vmem:[#allocation2 + $0x18] sm:$0xf] %v3797_v23  ;;  %v3320_v6 = vrot.slane %v3316_v46, 4  ;;  %v4055_v33 = vor.u32 %v4054_v22, %v4052_v30  ;;  %v4053_v28 = vsel %vm14356_vm2, %v4051_v8, %v4052_v30  ;;  %v2133_v55 = vadd.f32 %v14107_v26, %v2078_v42  ;;  %v19110_v23 = vld [vmem:[#allocation42_spill] sm:$0xff] }
 0x1e5   : > { %v3093_v32 = vsel %vm14281_vm7, %v2180_v10, 0.0  ;;  %v3333_v53 = vrot.slane %v3331_v49, 7  ;;  %v4057_v17 = vrot.slane %v3334_v48, 5  ;;  %v4059_v62 = vrot.slane %v3331_v49, 4  ;;  %v1904_v49 = vpop.f32.mrf.mxu0 }
 0x1e6   : > { %v11947_v61 = vpack.c.bf16 %v3093_v32, %v3093_v32  ;;  %vm19108_vm13 = vnez %v19107_v31  ;;  %vm19114_vm3 = vcmask 519168   ;;  %v4056_v42 = vrot.slane %v4055_v33, 4 }
 0x1e7   : > { %v19111_v2 = vsel %vm19108_vm13, %v19109_v37, %v19110_v23  ;;  %4341 = vst.msk [vmem:[#allocation2 + $0x1c] sm:$0xf] %vm19114_vm3, %v4053_v28  ;;  %v2181_v8 = vmax.f32 %v2133_v55, 0.0  ;;  %v2079_v22 = vadd.f32 %v1902_v60, %v19115_v29  ;;  %v3328_v10 = vsel %vm14375_vm12, %v3320_v6, %v3327_v25  ;;  %vm19116_vm7 = vmmov %vm19114_vm3  ;;  %v1907_v23 = vpop.f32.mrf.mxu0  ;;  %v19118_v29 = vld [vmem:[#allocation62_spill] sm:$0xff] }
 0x1e8   : > { %vm14389_vm11 = vcmp.lt.s32.totalorder %v19111_v2, 16  ;;  %v4060_v30 = vor.u32 %v4059_v62, %v4057_v17  ;;  %v3340_v32 = vshrl.u32 %v11947_v61, 16  ;;  %v3343_v31 = vshll.u32 %v11947_v61, 16  ;;  %3858 = vrot.lane.b32.xlu1 %v11947_v61, %s12600_s30  ;;  %3800 = vst.msk [vmem:[#allocation2 + $0x20] sm:$0xf] %vm19116_vm7, %v3328_v10  ;;  %v19117_v2 = vld [vmem:[#allocation11_spill] sm:$0xff]  ;;  %vm19125_vm13 = vmmov %vm19114_vm3 }
 0x1e9   : > { %v3336_v37 = vor.u32 %v3334_v48, %v3333_v53  ;;  %v4058_v33 = vsel %vm14356_vm2, %v4056_v42, %v4057_v17  ;;  %v2134_v28 = vadd.f32 %v14107_v26, %v2079_v22  ;;  %v3094_v25 = vsel %vm14329_vm1, %v2181_v8, 0.0  ;;  %v19121_v8 = vld [vmem:[#allocation46_spill] sm:$0xff] }
 0x1ea   : > { %v3329_v6 = vrot.slane %v3324_v19, 4  ;;  %v4061_v55 = vrot.slane %v4060_v30, 4  ;;  %4342 = vst.msk [vmem:[#allocation2 + $0x24] sm:$0xf] %vm19114_vm3, %v4058_v33  ;;  %v3342_v62 = vrot.slane %v3340_v32, 7  ;;  %v4062_v60 = vrot.slane %v3343_v31, 5 }
 0x1eb   : > { %v4064_v61 = vrot.slane %v3340_v32, 4  ;;  %v2182_v48 = vmax.f32 %v2134_v28, 0.0  ;;  %v2080_v17 = vadd.f32 %v1907_v23, %v19117_v2  ;;  %v11948_v42 = vpack.c.bf16 %v3094_v25, %v3094_v25  ;;  %v1909_v32 = vpop.f32.mrf.mxu0 }
 0x1ec   : > { %vm19119_vm6 = vnez %v19118_v29  ;;  %v3337_v10 = vsel %vm14375_vm12, %v3329_v6, %v3336_v37  ;;  %v4063_v49 = vsel %vm14356_vm2, %v4061_v55, %v4062_v60  ;;  %v3345_v33 = vor.u32 %v3343_v31, %v3342_v62  ;;  %v19126_v55 = vld [vmem:[#allocation63_spill] sm:$0xff] }
 0x1ed   : > { %v19122_v19 = vsel %vm19119_vm6, %v19120_v4, %v19121_v8  ;;  %v4065_v30 = vor.u32 %v4064_v61, %v4062_v60  ;;  %3801 = vst.msk [vmem:[#allocation2 + $0x28] sm:$0xf] %vm19114_vm3, %v3337_v10  ;;  %v3338_v28 = vrot.slane %v3333_v53, 4  ;;  %v2135_v25 = vadd.f32 %v14107_v26, %v2080_v17  ;;  %3860 = vrot.lane.b32.xlu0 %v11948_v42, %s12600_s30  ;;  %v1910_v61 = vpop.f32.mrf.mxu0  ;;  %v19128_v60 = vld [vmem:[#allocation57_spill] sm:$0xff]  ;;  %v19134_v10 = vld [vmem:[#allocation12_spill] sm:$0xff] }
 0x1ee   : > { %vm14415_vm1 = vcmp.lt.s32.totalorder %v19122_v19, 16  ;;  %4343 = vst.msk [vmem:[#allocation2 + $0x2c] sm:$0xf] %vm19125_vm13, %v4063_v49  ;;  %v3349_v23 = vshrl.u32 %v11948_v42, 16  ;;  %v3352_v2 = vshll.u32 %v11948_v42, 16  ;;  %v3095_v37 = vsel %vm14365_vm0, %v2182_v48, 0.0  ;;  %vm19133_vm0 = vmmov %vm19116_vm7 }
 0x1ef   : > { %v4066_v6 = vrot.slane %v4065_v30, 4  ;;  %v11949_v29 = vpack.c.bf16 %v3095_v37, %v3095_v37  ;;  %vm19127_vm6 = vnez %v19126_v55  ;;  %v19129_v4 = vld [vmem:[#allocation49_spill] sm:$0xff]  ;;  %v3346_v17 = vsel %vm14375_vm12, %v3338_v28, %v3345_v33  ;;  %v1912_v49 = vpop.f32.mrf.mxu0  ;;  %vm19135_vm13 = vmmov %vm19133_vm0 }
 0x1f0   : > { %v19130_v31 = vsel %vm19127_vm6, %v19128_v60, %v19129_v4  ;;  %v2643_v42 = vshrl.u32 %v14307_v36, 4  ;;  %v2183_v8 = vmax.f32 %v2135_v25, 0.0  ;;  %v3351_v0 = vrot.slane %v3349_v23, 7  ;;  %3802 = vst.msk [vmem:[#allocation2 + $0x30] sm:$0xf] %vm19133_vm0, %v3346_v17  ;;  %v19137_v49 = vld [vmem:[#allocation64_spill] sm:$0xff] }
 0x1f1   : > { %vm14434_vm3 = vcmp.lt.s32.totalorder %v19130_v31, 16  ;;  %v4067_v48 = vrot.slane %v3352_v2, 5  ;;  %v4069_v19 = vrot.slane %v3349_v23, 4  ;;  %v2081_v30 = vadd.f32 %v1910_v61, %v19134_v10  ;;  %3862 = vrot.lane.b32.xlu1 %v11949_v29, %s12600_s30  ;;  %v1915_v31 = vpop.f32.mrf.mxu0  ;;  %v19166_v53 = vld [vmem:[#allocation69_spill] sm:$0xff] }
 0x1f2   : > { %v3358_v32 = vshrl.u32 %v11949_v29, 16  ;;  %v3361_v37 = vshll.u32 %v11949_v29, 16  ;;  %v3347_v55 = vrot.slane %v3342_v62, 4  ;;  %v3096_v36 = vsel %vm14389_vm11, %v2183_v8, 0.0  ;;  %v19136_v29 = vld [vmem:[#allocation13_spill] sm:$0xff] }
 0x1f3   : > { %v4068_v60 = vsel %vm14356_vm2, %v4066_v6, %v4067_v48  ;;  %v4070_v33 = vor.u32 %v4069_v19, %v4067_v48  ;;  %v3354_v28 = vor.u32 %v3352_v2, %v3351_v0  ;;  %v2136_v25 = vadd.f32 %v14107_v26, %v2081_v30  ;;  %v19139_v6 = vld [vmem:[#allocation60_spill] sm:$0xff]  ;;  %v19140_v48 = vld [vmem:[#allocation51_spill] sm:$0xff] }
 0x1f4   : > { %4344 = vst.msk [vmem:[#allocation2 + $0x34] sm:$0xf] %vm19135_vm13, %v4068_v60  ;;  %v14450_v23 = vrot.slane %v3358_v32, 7  ;;  %v4072_v61 = vrot.slane %v3361_v37, 5  ;;  %v4074_v4 = vrot.slane %v3358_v32, 4  ;;  %v2082_v62 = vadd.f32 %v1915_v31, %v19136_v29  ;;  %v1917_v60 = vpop.f32.mrf.mxu0 }
 0x1f5   : > { %v4071_v17 = vrot.slane %v4070_v33, 4  ;;  %v11950_v10 = vpack.c.bf16 %v3096_v36, %v3096_v36  ;;  %vm19138_vm6 = vnez %v19137_v49  ;;  %vm19144_vm0 = vcmp.ne.s32.totalorder %v14254_v20, 0 }
 0x1f6   : > { %v19141_v46 = vsel %vm19138_vm6, %v19139_v6, %v19140_v48  ;;  %vm19145_vm13 = vcmp.lt.s32.totalorder %v14254_v20, 0  ;;  %v3355_v19 = vsel %vm14375_vm12, %v3347_v55, %v3354_v28  ;;  %v2184_v30 = vmax.f32 %v2136_v25, 0.0  ;;  %v19153_v25 = vld [vmem:[#allocation66_spill] sm:$0xff] }
 0x1f7   : > { %vm14458_vm11 = vcmp.lt.s32.totalorder %v19141_v46, 16  ;;  %vm14466_vm7 = vmand %vm19145_vm13, %vm19144_vm0  ;;  %v4075_v32 = vor.u32 %v4074_v4, %v4072_v61  ;;  %vm19148_vm5 = vcmask 519168   ;;  %v3356_v33 = vrot.slane %v3351_v0, 4  ;;  %3864 = vrot.lane.b32.xlu0 %v11950_v10, %s12600_s30  ;;  %v19156_v4 = vld [vmem:[#allocation53_spill] sm:$0xff] }
 0x1f8   : > { %3803 = vst.msk [vmem:[#allocation2 + $0x38] sm:$0xf] %vm19148_vm5, %v3355_v19  ;;  %v3363_v36 = vor.u32 %v3361_v37, %v14450_v23  ;;  %v4073_v31 = vsel %vm14356_vm2, %v4071_v17, %v4072_v61  ;;  %v2137_v29 = vadd.f32 %v14107_v26, %v2082_v62  ;;  %v3367_v49 = vshrl.u32 %v11950_v10, 16  ;;  %v1918_v37 = vpop.f32.mrf.mxu0  ;;  %v19155_v61 = vld [vmem:[#allocation67_spill] sm:$0xff] }
 0x1f9   : > { %v3370_v6 = vshll.u32 %v11950_v10, 16  ;;  %vm19149_vm6 = vcmp.ne.s32.totalorder %v14320_v45, 0  ;;  %vm19150_vm0 = vcmp.lt.s32.totalorder %v14320_v45, 0  ;;  %v19151_v55 = vmov 0  ;;  %4345 = vst.msk [vmem:[#allocation2 + $0x3c] sm:$0xf] %vm19148_vm5, %v4073_v31 }
 0x1fa   : > { %vm14482_vm13 = vmand %vm19150_vm0, %vm19149_vm6  ;;  %v4076_v0 = vrot.slane %v4075_v32, 4  ;;  %v3097_v28 = vsel %vm14415_vm1, %v2184_v30, 0.0  ;;  %vm19154_vm9 = vnez %v19153_v25  ;;  %v3364_v48 = vsel %vm14375_vm12, %v3356_v33, %v3363_v36  ;;  %v19161_v32 = vld [vmem:[#allocation14_spill] sm:$0xff]  ;;  %v1920_v31 = vpop.f32.mrf.mxu0  ;;  %v19199_v10 = vld [vmem:[#allocation19_spill] sm:$0xff] }
 0x1fb   : > { %v19152_v55 = vsel %vm14482_vm13, 4294967295, %v19151_v55  ;;  %v19157_v17 = vsel %vm19154_vm9, %v19155_v61, %v19156_v4  ;;  %v2185_v46 = vmax.f32 %v2137_v29, 0.0  ;;  %v14504_v22 = vrot.slane %v3367_v49, 7  ;;  %vm19160_vm1 = vmmov %vm19148_vm5 }
 0x1fc   : > { %vm14494_vm4 = vcmp.lt.s32.totalorder %v19157_v17, 16  ;;  %v4077_v19 = vrot.slane %v3370_v6, 5  ;;  %v4079_v30 = vrot.slane %v3367_v49, 4  ;;  %3804 = vst.msk [vmem:[#allocation2 + $0x40] sm:$0xf] %vm19160_vm1, %v3364_v48  ;;  %v2083_v60 = vadd.f32 %v1918_v37, %v19161_v32  ;;  %vm19162_vm9 = vmmov %vm19160_vm1  ;;  %v1923_v48 = vpop.f32.mrf.mxu0  ;;  %v19163_v32 = vld [vmem:[#allocation15_spill] sm:$0xff] }
 0x1fd   : > { %v11951_v25 = vpack.c.bf16 %v3097_v28, %v3097_v28  ;;  %v14514_v4 = vsub.s32 %v14057_v1, %v14322_v3  ;;  %v3098_v29 = vsel %vm14434_vm3, %v2185_v46, 0.0  ;;  %v14520_v49 = vmul.u32 24, %v2643_v42  ;;  %v19167_v46 = vld [vmem:[#allocation54_spill] sm:$0xff] }
 0x1fe   : > { %v4078_v33 = vsel %vm14356_vm2, %v4076_v0, %v4077_v19  ;;  %v4080_v36 = vor.u32 %v4079_v30, %v4077_v19  ;;  %v2138_v37 = vadd.f32 %v14107_v26, %v2083_v60  ;;  %v14525_v1 = vpack.c.bf16 %v3098_v29, %v3098_v29  ;;  %v19164_v19 = vld [vmem:[#allocation68_spill] sm:$0xff]  ;;  %v1925_v61 = vpop.f32.mrf.mxu0 }
 0x1ff   : > { %4346 = vst.msk [vmem:[#allocation2 + $0x44] sm:$0xf] %vm19162_vm9, %v4078_v33  ;;  %v3376_v28 = vshrl.u32 %v11951_v25, 16  ;;  %v3379_v17 = vshll.u32 %v11951_v25, 16  ;;  %3866 = vrot.lane.b32.xlu1 %v11951_v25, %s12600_s30  ;;  %v2084_v0 = vadd.f32 %v1923_v48, %v19163_v32  ;;  %vm19165_vm6 = vnez %v19164_v19 }
 0x200   : > { %v4081_v3 = vrot.slane %v4080_v36, 4  ;;  %v19168_v42 = vsel %vm19165_vm6, %v19166_v53, %v19167_v46  ;;  %v2654_v60 = vshrl.u32 %v14336_v11, 4  ;;  %v3372_v31 = vor.u32 %v3370_v6, %v14504_v22  ;;  %3868 = vrot.lane.b32.xlu0 %v14525_v1, %s12600_s30  ;;  %v19171_v46 = vld [vmem:[#allocation70_spill] sm:$0xff] }
 0x201   : > { %vm14533_vm3 = vcmp.lt.s32.totalorder %v19168_v42, 16  ;;  %v2186_v25 = vmax.f32 %v2138_v37, 0.0  ;;  %v4082_v33 = vrot.slane %v3379_v17, 5  ;;  %v4084_v29 = vrot.slane %v3376_v28, 4  ;;  %v1926_v37 = vpop.f32.mrf.mxu0  ;;  %v19174_v42 = vld [vmem:[#allocation55_spill] sm:$0xff] }
 0x202   : > { %v3365_v36 = vrot.slane %v14450_v23, 4  ;;  %v2139_v48 = vadd.f32 %v14107_v26, %v2084_v0  ;;  %v14546_v53 = vadd.s32 280, %v13217_v18  ;;  %vm19172_vm0 = vnez %v19171_v46  ;;  %v19173_v23 = vld [vmem:[#allocation71_spill] sm:$0xff] }
 0x203   : > { %v4083_v11 = vsel %vm14356_vm2, %v4081_v3, %v4082_v33  ;;  %v4085_v6 = vor.u32 %v4084_v29, %v4082_v33  ;;  %v3099_v61 = vsel %vm14458_vm11, %v2186_v25, 0.0  ;;  %v19175_v0 = vsel %vm19172_vm0, %v19173_v23, %v19174_v42  ;;  %vm19180_vm11 = vmmov %vm19160_vm1  ;;  %v19181_v23 = vld [vmem:[#allocation16_spill] sm:$0xff] }
 0x204   : > { %vm14557_vm5 = vcmp.lt.s32.totalorder %v19175_v0, 16  ;;  %v3373_v32 = vsel %vm14375_vm12, %v3365_v36, %v3372_v31  ;;  %v14563_v19 = vrot.slane %v3376_v28, 7  ;;  %4347 = vst.msk [vmem:[#allocation2 + $0x4c] sm:$0xf] %vm19160_vm1, %v4083_v11  ;;  %v2187_v3 = vmax.f32 %v2139_v48, 0.0  ;;  %v1928_v0 = vpop.f32.mrf.mxu0 }
 0x205   : > { %v19178_v2 = vshll.u32 %v14525_v1, 16  ;;  %v19179_v33 = vshrl.u32 %v14525_v1, 16  ;;  %3805 = vst.msk [vmem:[#allocation2 + $0x48] sm:$0xf] %vm19180_vm11, %v3373_v32  ;;  %v4086_v46 = vrot.slane %v4085_v6, 4  ;;  %v2085_v42 = vadd.f32 %v1926_v37, %v19181_v23 }
 0x206   : > { %v14572_v45 = vpack.c.bf16 %v3099_v61, %v3099_v61  ;;  %v2655_v31 = vmul.u32 24, %v2654_v60  ;;  %v3100_v36 = vsel %vm14494_vm4, %v2187_v3, 0.0  ;;  %v1931_v60 = vpop.f32.mrf.mxu0  ;;  %vm19182_vm4 = vmmov %vm19160_vm1  ;;  %v19183_v61 = vld [vmem:[#allocation17_spill] sm:$0xff]  ;;  %v3381_v0 = vor.u32 %v3379_v17, %v14563_v19 }
 0x207   : > { %v4087_v25 = vrot.slane %v19178_v2, 5  ;;  %v4089_v29 = vrot.slane %v19179_v33, 4  ;;  %v14577_v48 = vmul.u32.u64.low 2863311531, %v14546_v53  ;;  %v14578_v11 = vmul.u32.u64.high 2863311531, %v14546_v53, %v14577_v48 }
 0x208   : > { %v2140_v32 = vadd.f32 %v14107_v26, %v2085_v42  ;;  %v3394_v6 = vshrl.u32 %v14572_v45, 16  ;;  %v18772_v37 = vshll.u32 %v14572_v45, 16  ;;  %3870 = vrot.lane.b32.xlu1 %v14572_v45, %s12600_s30  ;;  %v2086_v3 = vadd.f32 %v1931_v60, %v19183_v61 }
 0x209   : > { %v4090_v28 = vor.u32 %v4089_v29, %v4087_v25  ;;  %v4088_v2 = vsel %vm14356_vm2, %v4086_v46, %v4087_v25  ;;  %v14590_v33 = vpack.c.bf16 %v3100_v36, %v3100_v36  ;;  %v19184_v29 = vld [vmem:[#allocation73_spill] sm:$0xff]  ;;  %v19186_v25 = vld [vmem:[#allocation72_spill] sm:$0xff]  ;;  %v1933_v36 = vpop.f32.mrf.mxu0  ;;  %v3374_v60 = vrot.slane %v14504_v22, 4 }
 0x20a   : > { %4348 = vst.msk [vmem:[#allocation2 + $0x54] sm:$0xf] %vm19182_vm4, %v4088_v2  ;;  %vm19185_vm9 = vnez %v19184_v29  ;;  %v19187_v46 = vld [vmem:[#allocation61_spill] sm:$0xff]  ;;  %v2188_v48 = vmax.f32 %v2140_v32, 0.0  ;;  %v4094_v2 = vrot.slane %v3394_v6, 4  ;;  %v2141_v61 = vadd.f32 %v14107_v26, %v2086_v3 }
 0x20b   : > { %v4091_v62 = vrot.slane %v4090_v28, 4  ;;  %v19188_v23 = vsel %vm19185_vm9, %v19186_v25, %v19187_v46  ;;  %v4092_v28 = vrot.slane %v18772_v37, 5  ;;  %v3403_v29 = vshrl.u32 %v14590_v33, 16  ;;  %3872 = vrot.lane.b32.xlu0 %v14590_v33, %s12600_s30  ;;  %v1934_v3 = vpop.f32.mrf.mxu0  ;;  %vm19195_vm9 = vmmov %vm19160_vm1 }
 0x20c   : > { %vm14597_vm6 = vcmp.lt.s32.totalorder %v19188_v23, 16  ;;  %v18770_v25 = vshll.u32 %v14590_v33, 16  ;;  %vm2834_vm0 = vcmp.ne.s32.totalorder %v14514_v4, 0  ;;  %v14616_v17 = vsub.s32 %v14270_v47, %v14520_v49 }
 0x20d   : > { %v4093_v22 = vsel %vm14356_vm2, %v4091_v62, %v4092_v28  ;;  %v4095_v32 = vor.u32 %v4094_v2, %v4092_v28  ;;  %v3101_v46 = vsel %vm14533_vm3, %v2188_v48, 0.0  ;;  %vm19191_vm11 = vnez %v18972_v51  ;;  %vm19196_vm3 = vmmov %vm19160_vm1  ;;  %v1936_v28 = vpop.f32.mrf.mxu0 }
 0x20e   : > { %v19192_v23 = vsel %vm19191_vm11, %v13787_v12, %v13715_v39  ;;  %v3382_v47 = vsel %vm14375_vm12, %v3374_v60, %v3381_v0  ;;  %4349 = vst.msk [vmem:[#allocation2 + $0x5c] sm:$0xf] %vm19195_vm9, %v4093_v22  ;;  %v2189_v49 = vmax.f32 %v2141_v61, 0.0  ;;  %v4097_v62 = vrot.slane %v18770_v25, 5  ;;  %v19197_v12 = vld [vmem:[#allocation18_spill] sm:$0xff]  ;;  %v19219_v25 = vld [vmem:[#allocation21_spill] sm:$0xff] }
 0x20f   : > { %vm14627_vm4 = vcmp.lt.s32.totalorder %v19192_v23, 16  ;;  %v4099_v30 = vrot.slane %v3403_v29, 4  ;;  %v14639_v51 = vadd.s32 24, %v14514_v4  ;;  %3806 = vst.msk [vmem:[#allocation2 + $0x50] sm:$0xf] %vm19196_vm3, %v3382_v47  ;;  %v4096_v39 = vrot.slane %v4095_v32, 4  ;;  %vm19198_vm3 = vmmov %vm19160_vm1 }
 0x210   : > { %v2087_v48 = vadd.f32 %v1934_v3, %v19197_v12  ;;  %v14643_v2 = vpack.c.bf16 %v3101_v46, %v3101_v46  ;;  %v14646_v0 = vsub.s32 %v14302_v41, %v2655_v31  ;;  %v3102_v61 = vsel %vm14557_vm5, %v2189_v49, 0.0  ;;  %v1939_v41 = vpop.f32.mrf.mxu0  ;;  %v19201_v49 = vld [vmem:[#allocation78_spill] sm:$0xff] }
 0x211   : > { %v4100_v60 = vor.u32 %v4099_v30, %v4097_v62  ;;  %v4098_v22 = vsel %vm14356_vm2, %v4096_v39, %v4097_v62  ;;  %v2088_v23 = vadd.f32 %v1939_v41, %v19199_v10  ;;  %v14661_v47 = vpack.c.bf16 %v3102_v61, %v3102_v61  ;;  %v19202_v62 = vld [vmem:[#allocation75_spill] sm:$0xff] }
 0x212   : > { %v2142_v32 = vadd.f32 %v14107_v26, %v2087_v48  ;;  %v3412_v3 = vshrl.u32 %v14643_v2, 16  ;;  %v18767_v46 = vshll.u32 %v14643_v2, 16  ;;  %3874 = vrot.lane.b32.xlu1 %v14643_v2, %s12600_s30  ;;  %4350 = vst.msk [vmem:[#allocation2 + $0x64] sm:$0xf] %vm19198_vm3, %v4098_v22  ;;  %vm19200_vm5 = vnez %v18976_v54  ;;  %v1941_v61 = vpop.f32.mrf.mxu0 }
 0x213   : > { %v4101_v31 = vrot.slane %v4100_v60, 4  ;;  %v19203_v30 = vsel %vm19200_vm5, %v19201_v49, %v19202_v62  ;;  %v14673_v12 = vadd.s32 24, %v14616_v17  ;;  %v2143_v54 = vadd.f32 %v14107_v26, %v2088_v23  ;;  %3876 = vrot.lane.b32.xlu0 %v14661_v47, %s12600_s30  ;;  %v19238_v61 = vld [vmem:[#allocation23_spill] sm:$0xff] }
 0x214   : > { %vm14668_vm9 = vcmp.lt.s32.totalorder %v19203_v30, 16  ;;  %v2190_v48 = vmax.f32 %v2142_v32, 0.0  ;;  %v4102_v28 = vrot.slane %v18767_v46, 5  ;;  %v4104_v60 = vrot.slane %v3412_v3, 4  ;;  %v1942_v62 = vpop.f32.mrf.mxu0 }
 0x215   : > { %v18771_v22 = vshrl.u32 %v14661_v47, 16  ;;  %v18768_v41 = vshll.u32 %v14661_v47, 16  ;;  %v14686_v32 = vadd.s32 288, %v13217_v18  ;;  %vm19206_vm5 = vnez %v18980_v44 }
 0x216   : > { %v4103_v10 = vsel %vm14356_vm2, %v4101_v31, %v4102_v28  ;;  %v4105_v49 = vor.u32 %v4104_v60, %v4102_v28  ;;  %v3103_v30 = vsel %vm14597_vm6, %v2190_v48, 0.0  ;;  %v19207_v23 = vsel %vm19206_vm5, %v13909_v57, %v13770_v35  ;;  %v19210_v35 = vld [vmem:[#allocation20_spill] sm:$0xff]  ;;  %v1944_v28 = vpop.f32.mrf.mxu0 }
 0x217   : > { %vm14697_vm3 = vcmp.lt.s32.totalorder %v19207_v23, 16  ;;  %4351 = vst.msk [vmem:[#allocation2 + $0x6c] sm:$0xf] %vm19160_vm1, %v4103_v10  ;;  %v2191_v46 = vmax.f32 %v2143_v54, 0.0  ;;  %v4107_v31 = vrot.slane %v18768_v41, 5  ;;  %v4109_v42 = vrot.slane %v18771_v22, 4 }
 0x218   : > { %v14708_v44 = vadd.s32 24, %v14646_v0  ;;  %v4106_v48 = vrot.slane %v4105_v49, 4  ;;  %v2089_v57 = vadd.f32 %v1942_v62, %v19210_v35  ;;  %v14711_v60 = vpack.c.bf16 %v3103_v30, %v3103_v30 }
 0x219   : > { %vm19211_vm6 = vcmp.lt.s32.totalorder %v14514_v4, 0  ;;  %v2665_v10 = vshrl.u32 %v14578_v11, 4  ;;  %v4110_v23 = vor.u32 %v4109_v42, %v4107_v31  ;;  %v3104_v41 = vsel %vm14627_vm4, %v2191_v46, 0.0  ;;  %v1947_v42 = vpop.f32.mrf.mxu0 }
 0x21a   : > { %vm14717_vm1 = vmand %vm19211_vm6, %vm2834_vm0  ;;  %vm19214_vm5 = vcmp.ne.s32.totalorder %v14616_v17, 0  ;;  %vm19215_vm11 = vcmp.lt.s32.totalorder %v14616_v17, 0  ;;  %v14733_v62 = vmul.u32.u64.low 2863311531, %v14686_v32  ;;  %v14734_v30 = vmul.u32.u64.high 2863311531, %v14686_v32, %v14733_v62  ;;  %3878 = vrot.lane.b32.xlu1 %v14711_v60, %s12600_s30 }
 0x21b   : > { %vm14728_vm13 = vmand %vm19215_vm11, %vm19214_vm5  ;;  %v4108_v35 = vsel %vm14356_vm2, %v4106_v48, %v4107_v31  ;;  %v2144_v11 = vadd.f32 %v14107_v26, %v2089_v57  ;;  %v18774_v36 = vshrl.u32 %v14711_v60, 16  ;;  %v18773_v46 = vshll.u32 %v14711_v60, 16 }
 0x21c   : > { %v4111_v28 = vrot.slane %v4110_v23, 4  ;;  %vm19218_vm0 = vcmask 519168   ;;  %v2090_v22 = vadd.f32 %v1947_v42, %v19219_v25  ;;  %v14745_v37 = vpack.c.bf16 %v3104_v41, %v3104_v41  ;;  %v1949_v41 = vpop.f32.mrf.mxu0  ;;  %v4394_v25 = vld [vmem:[#allocation2 + $0x10] sm:$0xff] }
 0x21d   : > { %4352 = vst.msk [vmem:[#allocation2 + $0x74] sm:$0xf] %vm19218_vm0, %v4108_v35  ;;  %vm19221_vm4 = vnez %v18985_v59  ;;  %vm19225_vm6 = vcmp.ne.s32.totalorder %v14646_v0, 0  ;;  %vm19226_vm5 = vcmp.lt.s32.totalorder %v14646_v0, 0  ;;  %v2192_v59 = vmax.f32 %v2144_v11, 0.0 }
 0x21e   : > { %19220 = vst [vmem:[#allocation44_spill] sm:$0xff] %v14745_v37  ;;  %v19222_v31 = vsel %vm19221_vm4, %v13923_v16, %v13780_v52  ;;  %vm14764_vm0 = vmand %vm19226_vm5, %vm19225_vm6  ;;  %v4112_v52 = vrot.slane %v18773_v46, 5  ;;  %v4114_v16 = vrot.slane %v18774_v36, 4  ;;  %v2145_v62 = vadd.f32 %v14107_v26, %v2090_v22  ;;  %3880 = vrot.lane.b32.xlu0 %v14745_v37, %s12600_s30  ;;  %v1950_v41 = vpop.f32.mrf.mxu0 }
 0x21f   : > { %vm14752_vm11 = vcmp.lt.s32.totalorder %v19222_v31, 16  ;;  %v3439_v35 = vshrl.u32 %v14745_v37, 16  ;;  %v18775_v42 = vshll.u32 %v14745_v37, 16  ;;  %v2666_v11 = vmul.u32 24, %v2665_v10 }
 0x220   : > { %v4113_v31 = vsel %vm14356_vm2, %v4111_v28, %v4112_v52  ;;  %v4115_v46 = vor.u32 %v4114_v16, %v4112_v52  ;;  %v3105_v57 = vsel %vm14668_vm9, %v2192_v59, 0.0  ;;  %vm19229_vm4 = vnez %v18988_v14  ;;  %v19235_v16 = vld [vmem:[#allocation22_spill] sm:$0xff]  ;;  %v1952_v10 = vpop.f32.mrf.mxu0 }
 0x221   : > { %v19230_v22 = vsel %vm19229_vm4, %v13934_v50, %v13818_v5  ;;  %v19233_v28 = vshrl.u32 %v14525_v1, 16  ;;  %vm19234_vm5 = vcmask 519168   ;;  %v2193_v39 = vmax.f32 %v2145_v62, 0.0 }
 0x222   : > { %vm14790_vm6 = vcmp.lt.s32.totalorder %v19230_v22, 16  ;;  %4353 = vst.msk [vmem:[#allocation2 + $0x7c] sm:$0xf] %vm19234_vm5, %v4113_v31  ;;  %v4117_v14 = vrot.slane %v18775_v42, 5  ;;  %v4119_v5 = vrot.slane %v3439_v35, 4  ;;  %v14809_v50 = vrot.slane %v3394_v6, 7  ;;  %vm19237_vm9 = vmmov %vm19234_vm5 }
 0x223   : > { %v14800_v52 = vrot.slane %v19233_v28, 7  ;;  %v4116_v59 = vrot.slane %v4115_v46, 4  ;;  %v2091_v22 = vadd.f32 %v1950_v41, %v19235_v16  ;;  %v14812_v36 = vpack.c.bf16 %v3105_v57, %v3105_v57 }
 0x224   : > { %v14816_v31 = vrot.slane %v3403_v29, 7  ;;  %v4120_v62 = vor.u32 %v4119_v5, %v4117_v14  ;;  %v3106_v28 = vsel %vm14697_vm3, %v2193_v39, 0.0  ;;  %v14821_v42 = vsub.s32 %v14546_v53, %v2666_v11  ;;  %v1955_v29 = vpop.f32.mrf.mxu0  ;;  %v19240_v11 = vld [vmem:[#allocation82_spill] sm:$0xff] }
 0x225   : > { %19236 = vst [vmem:[#allocation39_spill] sm:$0xff] %v14812_v36  ;;  %v4118_v6 = vsel %vm14356_vm2, %v4116_v59, %v4117_v14  ;;  %v2146_v46 = vadd.f32 %v14107_v26, %v2091_v22  ;;  %v3448_v41 = vshrl.u32 %v14812_v36, 16  ;;  %v18776_v57 = vshll.u32 %v14812_v36, 16  ;;  %3882 = vrot.lane.b32.xlu1 %v14812_v36, %s12600_s30  ;;  %v19242_v14 = vld [vmem:[#allocation79_spill] sm:$0xff] }
 0x226   : > { %v4121_v10 = vrot.slane %v4120_v62, 4  ;;  %4354 = vst.msk [vmem:[#allocation2 + $0x84] sm:$0xf] %vm19237_vm9, %v4118_v6  ;;  %v2092_v39 = vadd.f32 %v1955_v29, %v19238_v61  ;;  %v14832_v53 = vpack.c.bf16 %v3106_v28, %v3106_v28  ;;  %vm19241_vm3 = vnez %v19240_v11  ;;  %v1957_v29 = vpop.f32.mrf.mxu0 }
 0x227   : > { %v19243_v5 = vsel %vm19241_vm3, %v13937_v15, %v19242_v14  ;;  %v3383_v16 = vrot.slane %v14563_v19, 4  ;;  %v14846_v22 = vrot.slane %v3412_v3, 7  ;;  %v2194_v62 = vmax.f32 %v2146_v46, 0.0 }
 0x228   : > { %19239 = vst [vmem:[#allocation8_spill] sm:$0xff] %v14832_v53  ;;  %vm14839_vm4 = vcmp.lt.s32.totalorder %v19243_v5, 16  ;;  %v4122_v28 = vrot.slane %v18776_v57, 5  ;;  %v4124_v6 = vrot.slane %v3448_v41, 4  ;;  %v2147_v15 = vadd.f32 %v14107_v26, %v2092_v39  ;;  %3884 = vrot.lane.b32.xlu0 %v14832_v53, %s12600_s30  ;;  %v1958_v5 = vpop.f32.mrf.mxu0  ;;  %v14975_v57 = vld [vmem:[%s18676_s2] ss:$0 sm:$0xff] }
 0x229   : > { %v3457_v61 = vshrl.u32 %v14832_v53, 16  ;;  %v18777_v11 = vshll.u32 %v14832_v53, 16  ;;  %v19246_v19 = vshll.u32 %v14525_v1, 16  ;;  %v3107_v29 = vsel %vm14752_vm11, %v2194_v62, 0.0 }
 0x22a   : > { %v4123_v46 = vsel %vm14356_vm2, %v4121_v10, %v4122_v28  ;;  %v4125_v14 = vor.u32 %v4124_v6, %v4122_v28  ;;  %v19247_v39 = vsel %vm14072_vm14, %v14022_v21, %v13979_v56  ;;  %vm2837_vm9 = vcmp.ne.s32.totalorder %v14821_v42, 0  ;;  %v19251_v28 = vld [vmem:[#allocation24_spill] sm:$0xff]  ;;  %v1960_v21 = vpop.f32.mrf.mxu0 }
 0x22b   : > { %v3390_v3 = vor.u32 %v19246_v19, %v14800_v52  ;;  %vm14869_vm5 = vcmp.lt.s32.totalorder %v19247_v39, 16  ;;  %vm19250_vm3 = vcmask 519168   ;;  %v2195_v1 = vmax.f32 %v2147_v15, 0.0 }
 0x22c   : > { %4355 = vst.msk [vmem:[#allocation2 + $0x8c] sm:$0xf] %vm19250_vm3, %v4123_v46  ;;  %v4127_v10 = vrot.slane %v18777_v11, 5  ;;  %v4129_v48 = vrot.slane %v3457_v61, 4  ;;  %v2676_v58 = vshrl.u32 %v14734_v30, 4  ;;  %v4126_v62 = vrot.slane %v4125_v14, 4  ;;  %v1963_v23 = vpop.f32.mrf.mxu0  ;;  %vm19253_vm11 = vmmov %vm19250_vm3 }
 0x22d   : > { %v2093_v56 = vadd.f32 %v1958_v5, %v19251_v28  ;;  %v14881_v6 = vpack.c.bf16 %v3107_v29, %v3107_v29  ;;  %vm2885_vm14 = vcmp.lt.s32.totalorder %v14821_v42, 0  ;;  %v3108_v15 = vsel %vm14790_vm6, %v2195_v1, 0.0  ;;  %vm19254_vm6 = vmmov %vm19250_vm3 }
 0x22e   : > { %v4130_v19 = vor.u32 %v4129_v48, %v4127_v10  ;;  %v14887_v46 = vadd.s32 24, %v14821_v42  ;;  %v3391_v39 = vsel %vm14375_vm12, %v3383_v16, %v3390_v3  ;;  %v4128_v30 = vsel %vm14356_vm2, %v4126_v62, %v4127_v10  ;;  %v19255_v48 = vld [vmem:[#allocation25_spill] sm:$0xff]  ;;  %v19258_v62 = vld [vmem:[#allocation84_spill] sm:$0xff] }
 0x22f   : > { %19252 = vst [vmem:[#allocation56_spill] sm:$0xff] %v14881_v6  ;;  %v2148_v14 = vadd.f32 %v14107_v26, %v2093_v56  ;;  %v18785_v5 = vshrl.u32 %v14881_v6, 16  ;;  %v18778_v29 = vshll.u32 %v14881_v6, 16  ;;  %3886 = vrot.lane.b32.xlu1 %v14881_v6, %s12600_s30  ;;  %3807 = vst.msk [vmem:[#allocation2 + $0x58] sm:$0xf] %vm19253_vm11, %v3391_v39  ;;  %v2094_v16 = vadd.f32 %v1963_v23, %v19255_v48 }
 0x230   : > { %v4131_v1 = vrot.slane %v4130_v19, 4  ;;  %4356 = vst.msk [vmem:[#allocation2 + $0x94] sm:$0xf] %vm19254_vm6, %v4128_v30  ;;  %v14901_v3 = vpack.c.bf16 %v3108_v15, %v3108_v15  ;;  %v19259_v28 = vsel %vm14089_vm8, %v14034_v34, %v19258_v62  ;;  %v2677_v21 = vmul.u32 24, %v2676_v58  ;;  %v1965_v30 = vpop.f32.mrf.mxu0  ;;  %vm19267_vm11 = vmmov %vm19254_vm6 }
 0x231   : > { %vm14908_vm3 = vcmp.lt.s32.totalorder %v19259_v28, 16  ;;  %v2196_v11 = vmax.f32 %v2148_v14, 0.0  ;;  %v4132_v19 = vrot.slane %v18778_v29, 5  ;;  %v4134_v39 = vrot.slane %v18785_v5, 4 }
 0x232   : > { %19256 = vst [vmem:[#allocation45_spill] sm:$0xff] %v14901_v3  ;;  %v14917_v15 = vadd.s32 296, %v13217_v18  ;;  %v2149_v23 = vadd.f32 %v14107_v26, %v2094_v16  ;;  %v18782_v34 = vshrl.u32 %v14901_v3, 16  ;;  %v18780_v48 = vshll.u32 %v14901_v3, 16  ;;  %3888 = vrot.lane.b32.xlu0 %v14901_v3, %s12600_s30  ;;  %v1966_v62 = vpop.f32.mrf.mxu0  ;;  %v19262_v26 = vld [vmem:[#allocation85_spill] sm:$0xff] }
 0x233   : > { %v3392_v58 = vrot.slane %v14800_v52, 4  ;;  %v4133_v14 = vsel %vm14356_vm2, %v4131_v1, %v4132_v19  ;;  %v4135_v10 = vor.u32 %v4134_v39, %v4132_v19  ;;  %v3109_v28 = vsel %vm14839_vm4, %v2196_v11, 0.0  ;;  %v19268_v19 = vld [vmem:[#allocation26_spill] sm:$0xff]  ;;  %vm19272_vm4 = vmmov %vm19254_vm6 }
 0x234   : > { %v19263_v16 = vsel %vm14113_vm15, %v14077_v38, %v19262_v26  ;;  %v19266_v52 = vshll.u32 %v14572_v45, 16  ;;  %4357 = vst.msk [vmem:[#allocation2 + $0x9c] sm:$0xf] %vm19267_vm11, %v4133_v14  ;;  %v2197_v1 = vmax.f32 %v2149_v23, 0.0  ;;  %v4137_v59 = vrot.slane %v18780_v48, 5  ;;  %v1968_v26 = vpop.f32.mrf.mxu0  ;;  %vm14960_vm15 = vmand %vm2885_vm14, %vm2837_vm9 }
 0x235   : > { %vm14934_vm8 = vcmp.lt.s32.totalorder %v19263_v16, 16  ;;  %v4139_v7 = vrot.slane %v18782_v34, 4  ;;  %v14947_v11 = vsub.s32 %v14686_v32, %v2677_v21  ;;  %v4136_v38 = vrot.slane %v4135_v10, 4 }
 0x236   : > { %v3399_v29 = vor.u32 %v19266_v52, %v14809_v50  ;;  %v2095_v39 = vadd.f32 %v1966_v62, %v19268_v19  ;;  %v14950_v16 = vpack.c.bf16 %v3109_v28, %v3109_v28  ;;  %v3110_v23 = vsel %vm14869_vm5, %v2197_v1, 0.0  ;;  %v1971_v52 = vpop.f32.mrf.mxu0  ;;  %vm19274_vm5 = vmmov %vm19272_vm4 }
 0x237   : > { %v4140_v14 = vor.u32 %v4139_v7, %v4137_v59  ;;  %v14965_v21 = vmul.u32.u64.low 2863311531, %v14917_v15  ;;  %v14966_v10 = vmul.u32.u64.high 2863311531, %v14917_v15, %v14965_v21  ;;  %v19273_v1 = vshrl.u32 %v14661_v47, 16 }
 0x238   : > { %19269 = vst [vmem:[#allocation41_spill] sm:$0xff] %v14950_v16  ;;  %v3400_v45 = vsel %vm14375_vm12, %v3392_v58, %v3399_v29  ;;  %v4138_v29 = vsel %vm14356_vm2, %v4136_v38, %v4137_v59  ;;  %v2150_v58 = vadd.f32 %v14975_v57, %v2095_v39  ;;  %v18781_v62 = vshrl.u32 %v14950_v16, 16  ;;  %3890 = vrot.lane.b32.xlu1 %v14950_v16, %s12600_s30  ;;  %v19275_v38 = vld [vmem:[#allocation27_spill] sm:$0xff] }
 0x239   : > { %3808 = vst.msk [vmem:[#allocation2 + $0x60] sm:$0xf] %vm19272_vm4, %v3400_v45  ;;  %v18779_v28 = vshll.u32 %v14950_v16, 16  ;;  %v14984_v7 = vrot.slane %v19273_v1, 7  ;;  %v4141_v59 = vrot.slane %v4140_v14, 4  ;;  %v2096_v19 = vadd.f32 %v1971_v52, %v19275_v38 }
 0x23a   : > { %4358 = vst.msk [vmem:[#allocation2 + $0xa4] sm:$0xf] %vm19274_vm5, %v4138_v29  ;;  %v14988_v26 = vpack.c.bf16 %v3110_v23, %v3110_v23  ;;  %v19276_v39 = vsel %vm14126_vm10, %v14146_v9, %v14030_v43  ;;  %v2198_v21 = vmax.f32 %v2150_v58, 0.0  ;;  %v4144_v14 = vrot.slane %v18781_v62, 4  ;;  %v1973_v29 = vpop.f32.mrf.mxu0 }
 0x23b   : > { %vm14995_vm9 = vcmp.lt.s32.totalorder %v19276_v39, 16  ;;  %v4142_v1 = vrot.slane %v18779_v28, 5  ;;  %v2151_v23 = vadd.f32 %v14975_v57, %v2096_v19  ;;  %vm2838_vm10 = vcmp.ne.s32.totalorder %v14947_v11, 0  ;;  %v19279_v29 = vld [vmem:[#allocation96_spill] sm:$0xff]  ;;  %v19281_v19 = vld [vmem:[#allocation97_spill] sm:$0xff]  ;;  %v19282_v28 = vld [vmem:[#allocation87_spill] sm:$0xff] }
 0x23c   : > { %v18784_v43 = vshrl.u32 %v14988_v26, 16  ;;  %v18783_v9 = vshll.u32 %v14988_v26, 16  ;;  %3892 = vrot.lane.b32.xlu0 %v14988_v26, %s12600_s30  ;;  %v1974_v38 = vpop.f32.mrf.mxu0  ;;  %v3111_v39 = vsel %vm14908_vm3, %v2198_v21, 0.0  ;;  %vm19280_vm14 = vnez %v19279_v29 }
 0x23d   : > { %v4143_v58 = vsel %vm14356_vm2, %v4141_v59, %v4142_v1  ;;  %v4145_v52 = vor.u32 %v4144_v14, %v4142_v1  ;;  %v19283_v48 = vsel %vm19280_vm14, %v19281_v19, %v19282_v28  ;;  %vm2886_vm11 = vcmp.lt.s32.totalorder %v14947_v11, 0 }
 0x23e   : > { %vm15022_vm6 = vcmp.lt.s32.totalorder %v19283_v48, 16  ;;  %v19286_v62 = vshrl.u32 %v14711_v60, 16  ;;  %4359 = vst.msk [vmem:[#allocation2 + $0xac] sm:$0xf] %vm19272_vm4, %v4143_v58  ;;  %v2199_v59 = vmax.f32 %v2151_v23, 0.0  ;;  %v4147_v56 = vrot.slane %v18783_v9, 5  ;;  %v1976_v14 = vpop.f32.mrf.mxu0  ;;  %vm15056_vm3 = vmand %vm2886_vm11, %vm2838_vm10 }
 0x23f   : > { %v4149_v21 = vrot.slane %v18784_v43, 4  ;;  %v4146_v28 = vrot.slane %v4145_v52, 4  ;;  %v19287_v48 = vld [vmem:[#allocation28_spill] sm:$0xff]  ;;  %v15037_v29 = vpack.c.bf16 %v3111_v39, %v3111_v39  ;;  %v15040_v19 = vadd.s32 24, %v14947_v11  ;;  %v19293_v14 = vld [vmem:[#allocation29_spill] sm:$0xff] }
 0x240   : > { %v15029_v34 = vrot.slane %v19286_v62, 7  ;;  %v2097_v1 = vadd.f32 %v1974_v38, %v19287_v48  ;;  %v15044_v62 = vrot.slane %v3439_v35, 7  ;;  %v15048_v23 = vrot.slane %v3448_v41, 7  ;;  %v1979_v30 = vpop.f32.mrf.mxu0  ;;  %v19297_v43 = vld [vmem:[#allocation89_spill] sm:$0xff]  ;;  %v19403_v38 = vld [vmem:[#allocation47_spill] sm:$0xff] }
 0x241   : > { %v4150_v58 = vor.u32 %v4149_v21, %v4147_v56  ;;  %v3112_v52 = vsel %vm14934_vm8, %v2199_v59, 0.0  ;;  %v4148_v35 = vsel %vm14356_vm2, %v4146_v28, %v4147_v56  ;;  %3894 = vrot.lane.b32.xlu1 %v15037_v29, %s12600_s30  ;;  %v15069_v59 = vrot.slane %v3457_v61, 7  ;;  %vm19292_vm8 = vmmov %vm19272_vm4  ;;  %v19294_v28 = vld [vmem:[#allocation98_spill] sm:$0xff] }
 0x242   : > { %19288 = vst [vmem:[#allocation9_spill] sm:$0xff] %v15048_v23  ;;  %v2152_v39 = vadd.f32 %v14975_v57, %v2097_v1  ;;  %4360 = vst.msk [vmem:[#allocation2 + $0xb4] sm:$0xf] %vm19292_vm8, %v4148_v35  ;;  %v2098_v9 = vadd.f32 %v1979_v30, %v19293_v14  ;;  %v15073_v56 = vpack.c.bf16 %v3112_v52, %v3112_v52  ;;  %vm19295_vm5 = vnez %v19294_v28  ;;  %v19296_v1 = vld [vmem:[#allocation99_spill] sm:$0xff]  ;;  %v19307_v52 = vld [vmem:[#allocation101_spill] sm:$0xff] }
 0x243   : > { %19291 = vst [vmem:[#allocation59_spill] sm:$0xff] %v15069_v59  ;;  %v4151_v48 = vrot.slane %v4150_v58, 4  ;;  %v19298_v5 = vsel %vm19295_vm5, %v19296_v1, %v19297_v43  ;;  %v19301_v61 = vshll.u32 %v15037_v29, 16  ;;  %v19302_v58 = vshrl.u32 %v15037_v29, 16  ;;  %v1981_v59 = vpop.f32.mrf.mxu0 }
 0x244   : > { %vm15080_vm10 = vcmp.lt.s32.totalorder %v19298_v5, 16  ;;  %v2200_v21 = vmax.f32 %v2152_v39, 0.0  ;;  %v2153_v30 = vadd.f32 %v14975_v57, %v2098_v9  ;;  %3896 = vrot.lane.b32.xlu0 %v15073_v56, %s12600_s30  ;;  %v15098_v39 = vadd.s32 304, %v13217_v18  ;;  %v19308_v5 = vld [vmem:[#allocation90_spill] sm:$0xff] }
 0x245   : > { %v4152_v53 = vrot.slane %v19301_v61, 5  ;;  %v4154_v35 = vrot.slane %v19302_v58, 4  ;;  %v19303_v14 = vshrl.u32 %v14881_v6, 16  ;;  %v1982_v61 = vpop.f32.mrf.mxu0  ;;  %v19305_v58 = vld [vmem:[#allocation100_spill] sm:$0xff]  ;;  %v2687_v23 = vshrl.u32 %v14966_v10, 4 }
 0x246   : > { %v3113_v9 = vsel %vm14995_vm9, %v2200_v21, 0.0  ;;  %vm19306_vm14 = vnez %v19305_v58  ;;  %v19315_v21 = vshrl.u32 %v15073_v56, 16  ;;  %v19317_v13 = vshrl.u32 %v14950_v16, 16  ;;  %vm19319_vm9 = vmmov %vm19272_vm4 }
 0x247   : > { %v15102_v59 = vrot.slane %v19303_v14, 7  ;;  %v4153_v28 = vsel %vm14356_vm2, %v4151_v48, %v4152_v53  ;;  %v4155_v1 = vor.u32 %v4154_v35, %v4152_v53  ;;  %v19309_v43 = vsel %vm19306_vm14, %v19307_v52, %v19308_v5  ;;  %v1984_v5 = vpop.f32.mrf.mxu0 }
 0x248   : > { %vm15113_vm11 = vcmp.lt.s32.totalorder %v19309_v43, 16  ;;  %v19312_v14 = vshrl.u32 %v14901_v3, 16  ;;  %4361 = vst.msk [vmem:[#allocation2 + $0xbc] sm:$0xf] %vm19272_vm4, %v4153_v28  ;;  %v2201_v53 = vmax.f32 %v2153_v30, 0.0  ;;  %v19314_v48 = vshll.u32 %v15073_v56, 16 }
 0x249   : > { %19304 = vst [vmem:[#allocation48_spill] sm:$0xff] %v15102_v59  ;;  %v4159_v35 = vrot.slane %v19315_v21, 4  ;;  %v4156_v58 = vrot.slane %v4155_v1, 4  ;;  %v19316_v59 = vld [vmem:[#allocation31_spill] sm:$0xff]  ;;  %v15127_v43 = vpack.c.bf16 %v3113_v9, %v3113_v9  ;;  %v1987_v10 = vpop.f32.mrf.mxu0  ;;  %v15145_v9 = vrot.slane %v19317_v13, 7  ;;  %v19320_v21 = vld [vmem:[#allocation32_spill] sm:$0xff] }
 0x24a   : > { %v15119_v6 = vrot.slane %v19312_v14, 7  ;;  %v4157_v45 = vrot.slane %v19314_v48, 5  ;;  %v2099_v52 = vadd.f32 %v1982_v61, %v19316_v59  ;;  %v3114_v14 = vsel %vm15022_vm6, %v2201_v53, 0.0  ;;  %v19324_v5 = vld [vmem:[#allocation91_spill] sm:$0xff] }
 0x24b   : > { %v15133_v30 = vmul.u32.u64.low 2863311531, %v15098_v39  ;;  %v15134_v28 = vmul.u32.u64.high 2863311531, %v15098_v39, %v15133_v30  ;;  %3898 = vrot.lane.b32.xlu1 %v15127_v43, %s12600_s30  ;;  %19318 = vst [vmem:[#allocation10_spill] sm:$0xff] %v15145_v9  ;;  %v19328_v13 = vshll.u32 %v15127_v43, 16  ;;  %v1989_v9 = vpop.f32.mrf.mxu0  ;;  %v19343_v36 = vshrl.u32 %v15037_v29, 16 }
 0x24c   : > { %19313 = vst [vmem:[#allocation42_spill] sm:$0xff] %v15119_v6  ;;  %v4160_v3 = vor.u32 %v4159_v35, %v4157_v45  ;;  %v4158_v48 = vsel %vm14356_vm2, %v4156_v58, %v4157_v45  ;;  %v2154_v1 = vadd.f32 %v14975_v57, %v2099_v52  ;;  %v2100_v35 = vadd.f32 %v1987_v10, %v19320_v21  ;;  %v19321_v58 = vld [vmem:[#allocation102_spill] sm:$0xff]  ;;  %v19323_v52 = vld [vmem:[#allocation103_spill] sm:$0xff]  ;;  %v19331_v9 = vld [vmem:[#allocation104_spill] sm:$0xff] }
 0x24d   : > { %4362 = vst.msk [vmem:[#allocation2 + $0xc4] sm:$0xf] %vm19319_vm9, %v4158_v48  ;;  %v15149_v45 = vpack.c.bf16 %v3114_v14, %v3114_v14  ;;  %vm19322_vm6 = vnez %v19321_v58  ;;  %v4162_v16 = vrot.slane %v19328_v13, 5  ;;  %v2688_v10 = vmul.u32 24, %v2687_v23  ;;  %v1990_v13 = vpop.f32.mrf.mxu0 }
 0x24e   : > { %v4161_v53 = vrot.slane %v4160_v3, 4  ;;  %v19325_v30 = vsel %vm19322_vm6, %v19323_v52, %v19324_v5  ;;  %v2202_v61 = vmax.f32 %v2154_v1, 0.0  ;;  %v19329_v3 = vshrl.u32 %v15127_v43, 16 }
 0x24f   : > { %vm15156_vm8 = vcmp.lt.s32.totalorder %v19325_v30, 16  ;;  %v2155_v14 = vadd.f32 %v14975_v57, %v2100_v35  ;;  %3900 = vrot.lane.b32.xlu0 %v15149_v45, %s12600_s30  ;;  %v19330_v1 = vshll.u32 %v14590_v33, 16  ;;  %vm19332_vm5 = vnez %v19331_v9  ;;  %v19333_v35 = vld [vmem:[#allocation105_spill] sm:$0xff] }
 0x250   : > { %v4164_v48 = vrot.slane %v19329_v3, 4  ;;  %v4163_v5 = vsel %vm14356_vm2, %v4161_v53, %v4162_v16  ;;  %v3115_v23 = vsel %vm15080_vm10, %v2202_v61, 0.0  ;;  %v19334_v3 = vld [vmem:[#allocation93_spill] sm:$0xff]  ;;  %v3401_v33 = vrot.slane %v14809_v50, 4  ;;  %vm19342_vm10 = vmmov %vm19272_vm4 }
 0x251   : > { %v3408_v52 = vor.u32 %v19330_v1, %v14816_v31  ;;  %v19335_v21 = vsel %vm19332_vm5, %v19333_v35, %v19334_v3  ;;  %v19338_v1 = vshrl.u32 %v14988_v26, 16  ;;  %4363 = vst.msk [vmem:[#allocation2 + $0xcc] sm:$0xf] %vm19272_vm4, %v4163_v5  ;;  %v19339_v41 = vshll.u32 %v15149_v45, 16  ;;  %v1992_v3 = vpop.f32.mrf.mxu0 }
 0x252   : > { %v4165_v30 = vor.u32 %v4164_v48, %v4162_v16  ;;  %vm15181_vm14 = vcmp.lt.s32.totalorder %v19335_v21, 16  ;;  %v2203_v16 = vmax.f32 %v2155_v14, 0.0  ;;  %v19340_v53 = vshrl.u32 %v15149_v45, 16  ;;  %v19341_v21 = vld [vmem:[#allocation33_spill] sm:$0xff] }
 0x253   : > { %v15188_v6 = vrot.slane %v19338_v1, 7  ;;  %v4167_v61 = vrot.slane %v19339_v41, 5  ;;  %v2101_v35 = vadd.f32 %v1990_v13, %v19341_v21  ;;  %v15196_v37 = vpack.c.bf16 %v3115_v23, %v3115_v23 }
 0x254   : > { %v4169_v48 = vrot.slane %v19340_v53, 4  ;;  %v4166_v9 = vrot.slane %v4165_v30, 4  ;;  %v15199_v50 = vsub.s32 %v14917_v15, %v2688_v10  ;;  %v3116_v5 = vsel %vm15113_vm11, %v2203_v16, 0.0  ;;  %v1995_v15 = vpop.f32.mrf.mxu0  ;;  %vm19344_vm11 = vmmov %vm19272_vm4 }
 0x255   : > { %v2698_v14 = vshrl.u32 %v15134_v28, 4  ;;  %v3409_v41 = vsel %vm14375_vm12, %v3401_v33, %v3408_v52  ;;  %v2156_v13 = vadd.f32 %v14975_v57, %v2101_v35  ;;  %v3538_v23 = vshrl.u32 %v15196_v37, 16  ;;  %3902 = vrot.lane.b32.xlu1 %v15196_v37, %s12600_s30  ;;  %v19345_v52 = vld [vmem:[#allocation34_spill] sm:$0xff] }
 0x256   : > { %v4170_v1 = vor.u32 %v4169_v48, %v4167_v61  ;;  %v4168_v30 = vsel %vm14356_vm2, %v4166_v9, %v4167_v61  ;;  %v18799_v53 = vshll.u32 %v15196_v37, 16  ;;  %3809 = vst.msk [vmem:[#allocation2 + $0x68] sm:$0xf] %vm19342_vm10, %v3409_v41  ;;  %v15216_v28 = vrot.slane %v19343_v36, 7  ;;  %v19346_v61 = vld [vmem:[#allocation107_spill] sm:$0xff]  ;;  %v19348_v48 = vld [vmem:[#allocation106_spill] sm:$0xff] }
 0x257   : > { %4364 = vst.msk [vmem:[#allocation2 + $0xd4] sm:$0xf] %vm19344_vm11, %v4168_v30  ;;  %v2102_v33 = vadd.f32 %v1995_v15, %v19345_v52  ;;  %v15220_v16 = vpack.c.bf16 %v3116_v5, %v3116_v5  ;;  %vm19347_vm9 = vnez %v19346_v61  ;;  %v19349_v9 = vld [vmem:[#allocation95_spill] sm:$0xff]  ;;  %v2204_v3 = vmax.f32 %v2156_v13, 0.0  ;;  %v1997_v30 = vpop.f32.mrf.mxu0 }
 0x258   : > { %v4171_v10 = vrot.slane %v4170_v1, 4  ;;  %v19350_v21 = vsel %vm19347_vm9, %v19348_v48, %v19349_v9  ;;  %v4172_v41 = vrot.slane %v18799_v53, 5  ;;  %v4174_v1 = vrot.slane %v3538_v23, 4 }
 0x259   : > { %vm15227_vm6 = vcmp.lt.s32.totalorder %v19350_v21, 16  ;;  %vm3996_vm5 = vcmask 1043968   ;;  %vm2839_vm4 = vcmp.ne.s32.totalorder %v15199_v50, 0  ;;  %v2157_v5 = vadd.f32 %v14975_v57, %v2102_v33  ;;  %3904 = vrot.lane.b32.xlu0 %v15220_v16, %s12600_s30  ;;  %v1998_v48 = vpop.f32.mrf.mxu0 }
 0x25a   : > { %v3547_v15 = vshrl.u32 %v15220_v16, 16  ;;  %v18797_v36 = vshll.u32 %v15220_v16, 16  ;;  %v2699_v13 = vmul.u32 24, %v2698_v14  ;;  %v4173_v52 = vsel %vm14356_vm2, %v4171_v10, %v4172_v41 }
 0x25b   : > { %v4175_v61 = vor.u32 %v4174_v1, %v4172_v41  ;;  %v3117_v9 = vsel %vm15156_vm8, %v2204_v3, 0.0  ;;  %v19353_v33 = vsel %vm14466_vm7, %v14299_v27, %v14254_v20  ;;  %vm2887_vm11 = vcmp.lt.s32.totalorder %v15199_v50, 0  ;;  %v19358_v27 = vld [vmem:[#allocation35_spill] sm:$0xff]  ;;  %v2000_v41 = vpop.f32.mrf.mxu0 }
 0x25c   : > { %vm15250_vm10 = vcmp.lt.s32.totalorder %v19353_v33, 16  ;;  %v19356_v14 = vshrl.u32 %v15073_v56, 16  ;;  %vm19357_vm9 = vcmask 519168   ;;  %v2205_v10 = vmax.f32 %v2157_v5, 0.0 }
 0x25d   : > { %4365 = vst.msk [vmem:[#allocation2 + $0xdc] sm:$0xf] %vm19357_vm9, %v4173_v52  ;;  %v4177_v59 = vrot.slane %v18797_v36, 5  ;;  %v4179_v8 = vrot.slane %v3547_v15, 4  ;;  %v4176_v20 = vrot.slane %v4175_v61, 4  ;;  %v2103_v3 = vadd.f32 %v1998_v48, %v19358_v27  ;;  %vm19359_vm7 = vmmov %vm19357_vm9 }
 0x25e   : > { %v15257_v30 = vrot.slane %v19356_v14, 7  ;;  %v15265_v1 = vpack.c.bf16 %v3117_v9, %v3117_v9  ;;  %v15268_v33 = vadd.s32 24, %v15199_v50  ;;  %v3118_v52 = vsel %vm15181_vm14, %v2205_v10, 0.0  ;;  %vm15300_vm9 = vmand %vm2887_vm11, %vm2839_vm4 }
 0x25f   : > { %v4180_v14 = vor.u32 %v4179_v8, %v4177_v59  ;;  %v15273_v5 = vsub.s32 %v15098_v39, %v2699_v13  ;;  %v3410_v36 = vrot.slane %v14816_v31, 4  ;;  %v4178_v61 = vsel %vm14356_vm2, %v4176_v20, %v4177_v59  ;;  %v2003_v8 = vpop.f32.mrf.mxu0  ;;  %v19360_v39 = vld [vmem:[#allocation36_spill] sm:$0xff]  ;;  %v19362_v31 = vld [vmem:[#allocation7_spill] sm:$0xff]  ;;  %vm19372_vm11 = vmmov %vm19359_vm7 }
 0x260   : > { %v2158_v48 = vadd.f32 %v14975_v57, %v2103_v3  ;;  %v18800_v9 = vshrl.u32 %v15265_v1, 16  ;;  %v18798_v27 = vshll.u32 %v15265_v1, 16  ;;  %3906 = vrot.lane.b32.xlu1 %v15265_v1, %s12600_s30  ;;  %4366 = vst.msk [vmem:[#allocation2 + $0xe4] sm:$0xf] %vm19359_vm7, %v4178_v61  ;;  %v2104_v13 = vadd.f32 %v2003_v8, %v19360_v39 }
 0x261   : > { %v4181_v58 = vrot.slane %v4180_v14, 4  ;;  %v15285_v10 = vpack.c.bf16 %v3118_v52, %v3118_v52  ;;  %vm19361_vm8 = vnez %v19152_v55  ;;  %v19368_v41 = vshll.u32 %v14643_v2, 16  ;;  %v2005_v61 = vpop.f32.mrf.mxu0 }
 0x262   : > { %v19363_v59 = vsel %vm19361_vm8, %v14352_v40, %v19362_v31  ;;  %v2206_v55 = vmax.f32 %v2158_v48, 0.0  ;;  %v4182_v40 = vrot.slane %v18798_v27, 5  ;;  %v4184_v52 = vrot.slane %v18800_v9, 4  ;;  %v3853_v27 = vpop.permute.xlu0 %3852 }
 0x263   : > { %vm15292_vm14 = vcmp.lt.s32.totalorder %v19363_v59, 16  ;;  %v3417_v14 = vor.u32 %v19368_v41, %v14846_v22  ;;  %v15312_v8 = vadd.s32 312, %v13217_v18  ;;  %v2159_v39 = vadd.f32 %v14975_v57, %v2104_v13  ;;  %3908 = vrot.lane.b32.xlu0 %v15285_v10, %s12600_s30  ;;  %v2006_v61 = vpop.f32.mrf.mxu0  ;;  %3997 = vst.msk [vmem:[#allocation2 + $0x18] sm:$0xf] %vm3996_vm5, %v3853_v27 }
 0x264   : > { %v18802_v31 = vshrl.u32 %v15285_v10, 16  ;;  %v18801_v59 = vshll.u32 %v15285_v10, 16  ;;  %v4183_v48 = vsel %vm14356_vm2, %v4181_v58, %v4182_v40  ;;  %v4185_v41 = vor.u32 %v4184_v52, %v4182_v40  ;;  %v19376_v52 = vld [vmem:[#allocation37_spill] sm:$0xff] }
 0x265   : > { %v3418_v2 = vsel %vm14375_vm12, %v3410_v36, %v3417_v14  ;;  %v3119_v53 = vsel %vm15227_vm6, %v2206_v55, 0.0  ;;  %v19369_v13 = vsel %vm14717_vm1, %v14639_v51, %v14514_v4  ;;  %v3031_v36 = vsel %vm15300_vm9, %v15268_v33, %v15199_v50  ;;  %vm19374_vm6 = vmmov %vm19359_vm7  ;;  %v12305_v50 = vld [vmem:[%s18677_s3 + $0xe8] sm:$0xff]  }
 0x266   : > { %vm15330_vm4 = vcmp.lt.s32.totalorder %v19369_v13, 16  ;;  %3810 = vst.msk [vmem:[#allocation2 + $0x70] sm:$0xf] %vm19372_vm11, %v3418_v2  ;;  %v19373_v58 = vshrl.u32 %v15127_v43, 16  ;;  %v2207_v54 = vmax.f32 %v2159_v39, 0.0  ;;  %v4187_v4 = vrot.slane %v18801_v59, 5  ;;  %v2008_v13 = vpop.f32.mrf.mxu0  ;;  %vm19386_vm11 = vmmov %vm19374_vm6 }
 0x267   : > { %4367 = vst.msk [vmem:[#allocation2 + $0xec] sm:$0xf] %vm19374_vm6, %v4183_v48  ;;  %v4189_v51 = vrot.slane %v18802_v31, 4  ;;  %v19375_v14 = vshrl.u32 %v15149_v45, 16  ;;  %v4186_v40 = vrot.slane %v4185_v41, 4  ;;  %v2105_v2 = vadd.f32 %v2006_v61, %v19376_v52 }
 0x268   : > { %v15341_v35 = vrot.slane %v19373_v58, 7  ;;  %v15354_v58 = vpack.c.bf16 %v3119_v53, %v3119_v53  ;;  %v3120_v39 = vsel %vm15250_vm10, %v2207_v54, 0.0  ;;  %vm2840_vm1 = vcmp.ne.s32.totalorder %v15273_v5, 0  ;;  %v2011_v21 = vpop.f32.mrf.mxu0  ;;  %v3855_v54 = vpop.permute.xlu0 %3854  ;;  %vm19377_vm10 = vmmov %vm19374_vm6 }
 0x269   : > { %v15351_v55 = vrot.slane %v19375_v14, 7  ;;  %v4190_v48 = vor.u32 %v4189_v51, %v4187_v4  ;;  %v15360_v59 = vmul.u32.u64.low 2863311531, %v15312_v8  ;;  %v15361_v31 = vmul.u32.u64.high 2863311531, %v15312_v8, %v15360_v59  ;;  %v19378_v14 = vld [vmem:[#allocation38_spill] sm:$0xff]  ;;  %3998 = vst.msk [vmem:[#allocation2 + $0x20] sm:$0xf] %vm3996_vm5, %v3855_v54 }
 0x26a   : > { %v4188_v27 = vsel %vm14356_vm2, %v4186_v40, %v4187_v4  ;;  %v2160_v41 = vadd.f32 %v14975_v57, %v2105_v2  ;;  %v3574_v61 = vshrl.u32 %v15354_v58, 16  ;;  %v18803_v53 = vshll.u32 %v15354_v58, 16  ;;  %3910 = vrot.lane.b32.xlu1 %v15354_v58, %s12600_s30 }
 0x26b   : > { %v4191_v51 = vrot.slane %v4190_v48, 4  ;;  %4368 = vst.msk [vmem:[#allocation2 + $0xf4] sm:$0xf] %vm19377_vm10, %v4188_v27  ;;  %v2106_v52 = vadd.f32 %v2011_v21, %v19378_v14  ;;  %v15373_v59 = vpack.c.bf16 %v3120_v39, %v3120_v39  ;;  %v19379_v4 = vsel %vm14728_vm13, %v14673_v12, %v14616_v17  ;;  %v2013_v21 = vpop.f32.mrf.mxu0 }
 0x26c   : > { %vm15380_vm7 = vcmp.lt.s32.totalorder %v19379_v4, 16  ;;  %v19382_v2 = vshll.u32 %v14661_v47, 16  ;;  %v2208_v48 = vmax.f32 %v2160_v41, 0.0  ;;  %v4192_v27 = vrot.slane %v18803_v53, 5  ;;  %v3857_v4 = vpop.permute.xlu1 %3856 }
 0x26d   : > { %v4194_v39 = vrot.slane %v3574_v61, 4  ;;  %v3419_v49 = vrot.slane %v14846_v22, 4  ;;  %v2161_v17 = vadd.f32 %v14975_v57, %v2106_v52  ;;  %v18805_v12 = vshrl.u32 %v15373_v59, 16  ;;  %3912 = vrot.lane.b32.xlu0 %v15373_v59, %s12600_s30  ;;  %v2014_v14 = vpop.f32.mrf.mxu0  ;;  %3999 = vst.msk [vmem:[#allocation2 + $0x28] sm:$0xf] %vm3996_vm5, %v3857_v4 }
 0x26e   : > { %v3426_v13 = vor.u32 %v19382_v2, %v14984_v7  ;;  %v18804_v54 = vshll.u32 %v15373_v59, 16  ;;  %vm2888_vm13 = vcmp.lt.s32.totalorder %v15273_v5, 0  ;;  %v4193_v47 = vsel %vm14356_vm2, %v4191_v51, %v4192_v27  ;;  %v4395_v2 = vld [vmem:[#allocation2 + $0x18] sm:$0xff] }
 0x26f   : > { %v4195_v41 = vor.u32 %v4194_v39, %v4192_v27  ;;  %v3121_v22 = vsel %vm15292_vm14, %v2208_v48, 0.0  ;;  %v19383_v52 = vsel %vm14764_vm0, %v14708_v44, %v14646_v0  ;;  %4369 = vst.msk [vmem:[#allocation2 + $0xfc] sm:$0xf] %vm19386_vm11, %v4193_v47  ;;  %v2209_v51 = vmax.f32 %v2161_v17, 0.0  ;;  %vm19387_vm0 = vmmov %vm19374_vm6  ;;  %v19388_v27 = vld [vmem:[#allocation40_spill] sm:$0xff] }
 0x270   : > { %vm15407_vm8 = vcmp.lt.s32.totalorder %v19383_v52, 16  ;;  %v3427_v53 = vsel %vm14375_vm12, %v3419_v49, %v3426_v13  ;;  %v4197_v20 = vrot.slane %v18804_v54, 5  ;;  %v4199_v48 = vrot.slane %v18805_v12, 4  ;;  %v2016_v13 = vpop.f32.mrf.mxu0  ;;  %v3859_v9 = vpop.permute.xlu1 %3858 }
 0x271   : > { %v2709_v0 = vshrl.u32 %v15361_v31, 4  ;;  %3811 = vst.msk [vmem:[#allocation2 + $0x78] sm:$0xf] %vm19387_vm0, %v3427_v53  ;;  %v4196_v44 = vrot.slane %v4195_v41, 4  ;;  %v2107_v39 = vadd.f32 %v2014_v14, %v19388_v27  ;;  %v15422_v49 = vpack.c.bf16 %v3121_v22, %v3121_v22  ;;  %v4396_v22 = vld [vmem:[#allocation2 + $0x20] sm:$0xff] }
 0x272   : > { %v11750_v17 = vcombine.high %v4394_v25, %v4395_v2  ;;  %v4200_v47 = vor.u32 %v4199_v48, %v4197_v20  ;;  %v11749_v52 = vcombine.low %v4394_v25, %v4395_v2  ;;  %v3122_v54 = vsel %vm15330_vm4, %v2209_v51, 0.0  ;;  %v2019_v4 = vpop.f32.mrf.mxu0  ;;  %vm19390_vm4 = vmmov %vm19387_vm0  ;;  %v19391_v48 = vld [vmem:[#allocation43_spill] sm:$0xff]  ;;  %4000 = vst.msk [vmem:[#allocation2 + $0x30] sm:$0xf] %vm3996_vm5, %v3859_v9 }
 0x273   : > { %v15427_v12 = vadd.s32 24, %v15273_v5  ;;  %v4198_v31 = vsel %vm14356_vm2, %v4196_v44, %v4197_v20  ;;  %v2162_v53 = vadd.f32 %v14975_v57, %v2107_v39  ;;  %v3592_v41 = vshrl.u32 %v15422_v49, 16  ;;  %3914 = vrot.lane.b32.xlu1 %v15422_v49, %s12600_s30 }
 0x274   : > { %v18810_v14 = vshll.u32 %v15422_v49, 16  ;;  %vm19389_vm14 = vcmask 523264   ;;  %v4201_v51 = vrot.slane %v4200_v47, 4  ;;  %4370 = vst.msk [vmem:[#allocation2 + $0x104] sm:$0xf] %vm19390_vm4, %v4198_v31  ;;  %v2108_v25 = vadd.f32 %v2019_v4, %v19391_v48 }
 0x275   : > { %11808 = vmatprep.mubr.msk.bf16.mxu0 %vm19389_vm14, %v11750_v17  ;;  %v15440_v20 = vpack.c.bf16 %v3122_v54, %v3122_v54  ;;  %v11664_v44 = vcombine.high %v4395_v2, %v4396_v22  ;;  %v19393_v27 = vsel %vm14960_vm15, %v14887_v46, %v14821_v42  ;;  %v2210_v13 = vmax.f32 %v2162_v53, 0.0  ;;  %v12303_v54 = vld [vmem:[%s18677_s3 + $0xf8] sm:$0xff]   ;;  %vm15462_vm15 = vmand %vm2888_vm13, %vm2840_vm1 }
 0x276   : > { %5343 = vmatmul.mubr.bf16.gmra.mxu0 %v11749_v52  ;;  %vm15447_vm6 = vcmp.lt.s32.totalorder %v19393_v27, 16  ;;  %v4202_v17 = vrot.slane %v18810_v14, 5  ;;  %v4204_v47 = vrot.slane %v3592_v41, 4  ;;  %v2021_v52 = vpop.f32.mrf.mxu0  ;;  %v2710_v46 = vmul.u32 24, %v2709_v0  ;;  %vm19398_vm10 = vmmov %vm19389_vm14 }
 0x277   : > { %19392 = vst [vmem:[#allocation11_spill] sm:$0xff] %v15440_v20  ;;  %v2163_v32 = vadd.f32 %v14975_v57, %v2108_v25  ;;  %v3601_v31 = vshrl.u32 %v15440_v20, 16  ;;  %v18806_v53 = vshll.u32 %v15440_v20, 16  ;;  %3916 = vrot.lane.b32.xlu0 %v15440_v20, %s12600_s30  ;;  %11723 = vmatprep.mubr.msk.bf16.mxu1 %vm19398_vm10, %v11664_v44  ;;  %v11663_v4 = vcombine.low %v4395_v2, %v4396_v22  ;;  %v15480_v52 = vld [vmem:[#allocation2 + $0x28] sm:$0xff]  ;;  %vm19402_vm13 = vmmov %vm19387_vm0 }
 0x278   : > { %v15474_v9 = vrot.slane %v3538_v23, 7  ;;  %v4203_v48 = vsel %vm14356_vm2, %v4201_v51, %v4202_v17  ;;  %v4205_v0 = vor.u32 %v4204_v47, %v4202_v17  ;;  %v2022_v27 = vpop.f32.mrf.mxu0  ;;  %v3123_v25 = vsel %vm15380_vm7, %v2210_v13, 0.0  ;;  %v3861_v13 = vpop.permute.xlu0 %3860  ;;  %vm19407_vm7 = vmmov %vm19387_vm0 }
 0x279   : > { %v19399_v44 = vsel %vm15056_vm3, %v15040_v19, %v14947_v11  ;;  %4371 = vst.msk [vmem:[#allocation2 + $0x10c] sm:$0xf] %vm19402_vm13, %v4203_v48  ;;  %v2211_v23 = vmax.f32 %v2163_v32, 0.0  ;;  %v4207_v51 = vrot.slane %v18806_v53, 5  ;;  %v4209_v40 = vrot.slane %v3601_v31, 4  ;;  %4885 = vmatmul.mubr.bf16.vlgmr.msra.gmra.mxu1 %v11663_v4  ;;  %v12304_v4 = vld [vmem:[%s18677_s3 + $0xf0] sm:$0xff]   ;;  %vm19406_vm3 = vmmov %vm19398_vm10 }
 0x27a   : > { %vm15487_vm1 = vcmp.lt.s32.totalorder %v19399_v44, 16  ;;  %v3032_v11 = vsel %vm15462_vm15, %v15427_v12, %v15273_v5  ;;  %v4206_v19 = vrot.slane %v4205_v0, 4  ;;  %v2109_v17 = vadd.f32 %v2022_v27, %v19403_v38  ;;  %4001 = vst.msk [vmem:[#allocation2 + $0x38] sm:$0xf] %vm3996_vm5, %v3861_v13  ;;  %5961 = vmatpush1.bf16.msra.mxu1 %v12303_v54  ;;  %v2024_v47 = vpop.f32.mrf.mxu0  ;;  %vm19412_vm9 = vmmov %vm19406_vm3 }
 0x27b   : > { %v15502_v32 = vpack.c.bf16 %v3123_v25, %v3123_v25  ;;  %v11752_v48 = vcombine.high %v4396_v22, %v15480_v52  ;;  %v4210_v44 = vor.u32 %v4209_v40, %v4207_v51  ;;  %v11751_v53 = vcombine.low %v4396_v22, %v15480_v52  ;;  %v3863_v22 = vpop.permute.xlu1 %3862  ;;  %vm19415_vm14 = vmmov %vm19390_vm4 }
 0x27c   : > { %v3124_v5 = vsel %vm15407_vm8, %v2211_v23, 0.0  ;;  %v19405_v12 = vmov 0   ;;  %v15513_v42 = vsub.s32 %v15312_v8, %v2710_v46  ;;  %v4208_v54 = vsel %vm14356_vm2, %v4206_v19, %v4207_v51  ;;  %v2027_v21 = vpop.f32.mrf.mxu0  ;;  %v4398_v23 = vld [vmem:[#allocation2 + $0x30] sm:$0xff]  ;;  %v19408_v8 = vld [vmem:[#allocation52_spill] sm:$0xff]  ;;  %4002 = vst.msk [vmem:[#allocation2 + $0x40] sm:$0xf] %vm3996_vm5, %v3863_v22  ;;  %vm19419_vm15 = vmmov %vm19407_vm7 }
 0x27d   : > { %19404 = vst [vmem:[#allocation62_spill] sm:$0xff] %v15502_v32  ;;  %5962 = vmatprep.subr.bf16.mxu1 %v19405_v12  ;;  %v2164_v0 = vadd.f32 %v14975_v57, %v2109_v17  ;;  %v3610_v27 = vshrl.u32 %v15502_v32, 16  ;;  %v18808_v25 = vshll.u32 %v15502_v32, 16  ;;  %3918 = vrot.lane.b32.xlu1 %v15502_v32, %s12600_s30  ;;  %v4211_v40 = vrot.slane %v4210_v44, 4  ;;  %4372 = vst.msk [vmem:[#allocation2 + $0x114] sm:$0xf] %vm19407_vm7, %v4208_v54 }
 0x27e   : > { %11809 = vmatprep.mubr.msk.bf16.mxu0 %vm19406_vm3, %v11752_v48  ;;  %v2110_v46 = vadd.f32 %v2027_v21, %v19408_v8  ;;  %v15526_v51 = vpack.c.bf16 %v3124_v5, %v3124_v5  ;;  %v11666_v13 = vcombine.high %v15480_v52, %v4398_v23  ;;  %vm15534_vm8 = vcmp.lt.s32.totalorder %v3031_v36, 16  ;;  %v2029_v48 = vpop.f32.mrf.mxu0  ;;  %5963 = vmatpush1.bf16.msra.mxu1 %v12304_v4  ;;  %v19416_v8 = vld [vmem:[#allocation58_spill] sm:$0xff]  ;;  %vm19426_vm13 = vmmov %vm19407_vm7 }
 0x27f   : > { %5351 = vmatmul.mubr.bf16.gmra.mxu0 %v11751_v53  ;;  %v15540_v38 = vrot.slane %v3547_v15, 7  ;;  %v2212_v17 = vmax.f32 %v2164_v0, 0.0  ;;  %v4212_v53 = vrot.slane %v18808_v25, 5  ;;  %v4214_v47 = vrot.slane %v3610_v27, 4  ;;  %5964 = vmatprep.subr.bf16.mxu1 %v19405_v12 }
 0x280   : > { %19409 = vst [vmem:[#allocation50_spill] sm:$0xff] %v15526_v51  ;;  %v2165_v33 = vadd.f32 %v14975_v57, %v2110_v46  ;;  %v18814_v3 = vshrl.u32 %v15526_v51, 16  ;;  %v18807_v15 = vshll.u32 %v15526_v51, 16  ;;  %3920 = vrot.lane.b32.xlu0 %v15526_v51, %s12600_s30  ;;  %11724 = vmatprep.mubr.msk.bf16.mxu1 %vm19412_vm9, %v11666_v13  ;;  %v11665_v36 = vcombine.low %v15480_v52, %v4398_v23  ;;  %v2030_v5 = vpop.f32.mrf.mxu0  ;;  %vm19434_vm9 = vmmov %vm19407_vm7 }
 0x281   : > { %v4213_v4 = vsel %vm14356_vm2, %v4211_v40, %v4212_v53  ;;  %v4215_v44 = vor.u32 %v4214_v47, %v4212_v53  ;;  %v3125_v54 = vsel %vm15447_vm6, %v2212_v17, 0.0  ;;  %vm15560_vm11 = vcmp.lt.s32.totalorder %v3032_v11, 16  ;;  %v3865_v40 = vpop.permute.xlu0 %3864  ;;  %v4399_v39 = vld [vmem:[#allocation2 + $0x38] sm:$0xff]  ;;  %v12306_v47 = vld [vmem:[%s18677_s3 + $0xe0] sm:$0xff]   ;;  %vm19418_vm6 = vmmov %vm19406_vm3 }
 0x282   : > { %vm2841_vm0 = vcmp.ne.s32.totalorder %v15513_v42, 0  ;;  %4373 = vst.msk [vmem:[#allocation2 + $0x11c] sm:$0xf] %vm19415_vm14, %v4213_v4  ;;  %v2213_v21 = vmax.f32 %v2165_v33, 0.0  ;;  %v4217_v52 = vrot.slane %v18807_v15, 5  ;;  %v4219_v22 = vrot.slane %v18814_v3, 4  ;;  %4893 = vmatmul.mubr.bf16.gmra.mxu1 %v11665_v36  ;;  %v2032_v13 = vpop.f32.mrf.mxu0  ;;  %vm19440_vm14 = vmmov %vm19407_vm7 }
 0x283   : > { %vm2889_vm4 = vcmp.lt.s32.totalorder %v15513_v42, 0  ;;  %v4216_v11 = vrot.slane %v4215_v44, 4  ;;  %v2111_v46 = vadd.f32 %v2030_v5, %v19416_v8  ;;  %4003 = vst.msk [vmem:[#allocation2 + $0x48] sm:$0xf] %vm3996_vm5, %v3865_v40  ;;  %v15574_v17 = vpack.c.bf16 %v3125_v54, %v3125_v54  ;;  %5965 = vmatpush1.bf16.msra.mxu1 %v12305_v50 }
 0x284   : > { %v11754_v53 = vcombine.high %v4398_v23, %v4399_v39  ;;  %v4220_v48 = vor.u32 %v4219_v22, %v4217_v52  ;;  %v11753_v33 = vcombine.low %v4398_v23, %v4399_v39  ;;  %v3126_v36 = vsel %vm15487_vm1, %v2213_v21, 0.0  ;;  %5966 = vmatprep.subr.bf16.mxu1 %v19405_v12  ;;  %v2035_v2 = vpop.f32.mrf.mxu0  ;;  %v4400_v23 = vld [vmem:[#allocation2 + $0x40] sm:$0xff]  ;;  %vm15609_vm10 = vmand %vm2889_vm4, %vm2841_vm0 }
 0x285   : > { %19417 = vst [vmem:[#allocation46_spill] sm:$0xff] %v15574_v17  ;;  %v15582_v4 = vadd.s32 24, %v15513_v42  ;;  %v4218_v44 = vsel %vm14356_vm2, %v4216_v11, %v4217_v52  ;;  %v2166_v5 = vadd.f32 %v14975_v57, %v2111_v46  ;;  %v18811_v50 = vshrl.u32 %v15574_v17, 16  ;;  %3922 = vrot.lane.b32.xlu1 %v15574_v17, %s12600_s30  ;;  %v19420_v22 = vld [vmem:[#allocation65_spill] sm:$0xff]  ;;  %vm19425_vm1 = vmmov %vm19406_vm3 }
 0x286   : > { %v18809_v54 = vshll.u32 %v15574_v17, 16  ;;  %11810 = vmatprep.mubr.msk.bf16.mxu0 %vm19418_vm6, %v11754_v53  ;;  %v4221_v21 = vrot.slane %v4220_v48, 4  ;;  %4374 = vst.msk [vmem:[#allocation2 + $0x124] sm:$0xf] %vm19419_vm15, %v4218_v44  ;;  %v2112_v40 = vadd.f32 %v2035_v2, %v19420_v22  ;;  %v15595_v52 = vpack.c.bf16 %v3126_v36, %v3126_v36  ;;  %v3867_v48 = vpop.permute.xlu1 %3866  ;;  %v2037_v25 = vpop.f32.mrf.mxu0  ;;  %v12307_v36 = vld [vmem:[%s18677_s3 + $0xd8] sm:$0xff]   ;;  %vm19430_vm3 = vmmov %vm19425_vm1 }
 0x287   : > { %5359 = vmatmul.mubr.bf16.gmra.mxu0 %v11753_v33  ;;  %v11668_v11 = vcombine.high %v4399_v39, %v4400_v23  ;;  %v19422_v8 = vshrl.u32 %v15265_v1, 16  ;;  %v2214_v13 = vmax.f32 %v2166_v5, 0.0  ;;  %v4224_v53 = vrot.slane %v18811_v50, 4  ;;  %5967 = vmatpush1.bf16.msra.mxu1 %v12306_v47  ;;  %4004 = vst.msk [vmem:[#allocation2 + $0x50] sm:$0xf] %vm3996_vm5, %v3867_v48  ;;  %vm19438_vm0 = vmmov %vm19425_vm1 }
 0x288   : > { %19421 = vst [vmem:[#allocation63_spill] sm:$0xff] %v15595_v52  ;;  %v4222_v15 = vrot.slane %v18809_v54, 5  ;;  %v2167_v44 = vadd.f32 %v14975_v57, %v2112_v40  ;;  %v18813_v5 = vshrl.u32 %v15595_v52, 16  ;;  %v18812_v25 = vshll.u32 %v15595_v52, 16  ;;  %3924 = vrot.lane.b32.xlu0 %v15595_v52, %s12600_s30  ;;  %v3869_v54 = vpop.permute.xlu0 %3868  ;;  %5968 = vmatprep.subr.bf16.mxu1 %v19405_v12  ;;  %vm19451_vm4 = vmmov %vm19407_vm7 }
 0x289   : > { %v15599_v46 = vrot.slane %v19422_v8, 7  ;;  %11725 = vmatprep.mubr.msk.bf16.mxu1 %vm19425_vm1, %v11668_v11  ;;  %v11667_v2 = vcombine.low %v4399_v39, %v4400_v23  ;;  %v2038_v8 = vpop.f32.mrf.mxu0  ;;  %v3127_v40 = vsel %vm15534_vm8, %v2214_v13, 0.0  ;;  %v15628_v48 = vadd.s32 320, %v13217_v18  ;;  %4005 = vst.msk [vmem:[#allocation2 + $0x58] sm:$0xf] %vm3996_vm5, %v3869_v54  ;;  %v19427_v13 = vld [vmem:[#allocation74_spill] sm:$0xff]  ;;  %vm19452_vm6 = vmmov %vm19438_vm0 }
 0x28a   : > { %v4223_v47 = vsel %vm14356_vm2, %v4221_v21, %v4222_v15  ;;  %v4225_v22 = vor.u32 %v4224_v53, %v4222_v15  ;;  %v2215_v14 = vmax.f32 %v2167_v44, 0.0  ;;  %v4227_v39 = vrot.slane %v18812_v25, 5  ;;  %v4401_v15 = vld [vmem:[#allocation2 + $0x48] sm:$0xff]  ;;  %v12308_v25 = vld [vmem:[%s18677_s3 + $0xd0] sm:$0xff]   ;;  %vm19454_vm15 = vmmov %vm19451_vm4 }
 0x28b   : > { %4375 = vst.msk [vmem:[#allocation2 + $0x12c] sm:$0xf] %vm19426_vm13, %v4223_v47  ;;  %v4229_v21 = vrot.slane %v18813_v5, 4  ;;  %4901 = vmatmul.mubr.bf16.gmra.mxu1 %v11667_v2  ;;  %v3033_v19 = vsel %vm15609_vm10, %v15582_v4, %v15513_v42  ;;  %v2113_v53 = vadd.f32 %v2038_v8, %v19427_v13  ;;  %v2040_v47 = vpop.f32.mrf.mxu0  ;;  %v15642_v44 = vpack.c.bf16 %v3127_v40, %v3127_v40  ;;  %vm19456_vm10 = vmmov %vm19438_vm0 }
 0x28c   : > { %v4226_v11 = vrot.slane %v4225_v22, 4  ;;  %v11756_v50 = vcombine.high %v4400_v23, %v4401_v15  ;;  %5969 = vmatpush1.bf16.msra.mxu1 %v12307_v36  ;;  %v19429_v54 = vshrl.u32 %v15285_v10, 16  ;;  %v11755_v3 = vcombine.low %v4400_v23, %v4401_v15 }
 0x28d   : > { %19428 = vst [vmem:[#allocation57_spill] sm:$0xff] %v15642_v44  ;;  %v4230_v5 = vor.u32 %v4229_v21, %v4227_v39  ;;  %v3128_v42 = vsel %vm15560_vm11, %v2215_v14, 0.0  ;;  %5970 = vmatprep.subr.bf16.mxu1 %v19405_v12  ;;  %v2168_v33 = vadd.f32 %v14975_v57, %v2113_v53  ;;  %v18816_v36 = vshrl.u32 %v15642_v44, 16  ;;  %3926 = vrot.lane.b32.xlu1 %v15642_v44, %s12600_s30  ;;  %v2043_v23 = vpop.f32.mrf.mxu0  ;;  %vm19436_vm11 = vmmov %vm19425_vm1 }
 0x28e   : > { %v15649_v2 = vrot.slane %v19429_v54, 7  ;;  %v4228_v4 = vsel %vm14356_vm2, %v4226_v11, %v4227_v39  ;;  %v18815_v22 = vshll.u32 %v15642_v44, 16  ;;  %11811 = vmatprep.mubr.msk.bf16.mxu0 %vm19430_vm3, %v11756_v50  ;;  %v15664_v14 = vrot.slane %v3574_v61, 7 }
 0x28f   : > { %v4231_v0 = vrot.slane %v4230_v5, 4  ;;  %4376 = vst.msk [vmem:[#allocation2 + $0x134] sm:$0xf] %vm19407_vm7, %v4228_v4  ;;  %5367 = vmatmul.mubr.bf16.gmra.mxu0 %v11755_v3  ;;  %v15667_v8 = vpack.c.bf16 %v3128_v42, %v3128_v42  ;;  %vm15669_vm8 = vcmp.lt.s32.totalorder %v3033_v19, 16  ;;  %v19433_v40 = vshrl.u32 %v15373_v59, 16  ;;  %v3871_v5 = vpop.permute.xlu1 %3870  ;;  %v2045_v11 = vpop.f32.mrf.mxu0  ;;  %v4402_v3 = vld [vmem:[#allocation2 + $0x50] sm:$0xff] }
 0x290   : > { %v2216_v50 = vmax.f32 %v2168_v33, 0.0  ;;  %v4232_v21 = vrot.slane %v18815_v22, 5  ;;  %v4234_v61 = vrot.slane %v18816_v36, 4  ;;  %5971 = vmatpush1.bf16.msra.mxu1 %v12308_v25  ;;  %v15683_v19 = vrot.slane %v3592_v41, 7  ;;  %4006 = vst.msk [vmem:[#allocation2 + $0x60] sm:$0xf] %vm3996_vm5, %v3871_v5 }
 0x291   : > { %v15675_v39 = vrot.slane %v19433_v40, 7  ;;  %v18818_v13 = vshrl.u32 %v15667_v8, 16  ;;  %v18817_v53 = vshll.u32 %v15667_v8, 16  ;;  %3928 = vrot.lane.b32.xlu0 %v15667_v8, %s12600_s30  ;;  %v11670_v47 = vcombine.high %v4401_v15, %v4402_v3  ;;  %5972 = vmatprep.subr.bf16.mxu1 %v19405_v12  ;;  %v12309_v25 = vld [vmem:[%s18677_s3 + $0xc8] sm:$0xff]   ;;  %v2046_v42 = vpop.f32.mrf.mxu0  ;;  %v15698_v40 = vld [vmem:[#allocation2 + $0x58] sm:$0xff] }
 0x292   : > { %v4233_v41 = vsel %vm14356_vm2, %v4231_v0, %v4232_v21  ;;  %v4235_v54 = vor.u32 %v4234_v61, %v4232_v21  ;;  %v11669_v4 = vcombine.low %v4401_v15, %v4402_v3  ;;  %v3129_v33 = vsel %vm15669_vm8, %v2216_v50, 0.0  ;;  %v19435_v5 = vld [vmem:[#allocation76_spill] sm:$0xff]  ;;  %v3873_v0 = vpop.permute.xlu0 %3872  ;;  %v19437_v50 = vld [vmem:[#allocation77_spill] sm:$0xff] }
 0x293   : > { %4377 = vst.msk [vmem:[#allocation2 + $0x13c] sm:$0xf] %vm19434_vm9, %v4233_v41  ;;  %v2114_v11 = vadd.f32 %v2043_v23, %v19435_v5  ;;  %v4237_v22 = vrot.slane %v18817_v53, 5  ;;  %v4239_v36 = vrot.slane %v18818_v13, 4  ;;  %11726 = vmatprep.mubr.msk.bf16.mxu1 %vm19436_vm11, %v11670_v47  ;;  %v15708_v15 = vadd.s32 328, %v13217_v18  ;;  %v2048_v61 = vpop.f32.mrf.mxu0  ;;  %vm19459_vm11 = vmmov %vm19451_vm4 }
 0x294   : > { %v4236_v57 = vrot.slane %v4235_v54, 4  ;;  %v2115_v21 = vadd.f32 %v2046_v42, %v19437_v50  ;;  %4007 = vst.msk [vmem:[#allocation2 + $0x68] sm:$0xf] %vm3996_vm5, %v3873_v0  ;;  %4909 = vmatmul.mubr.bf16.gmra.mxu1 %v11669_v4  ;;  %v15712_v23 = vpack.c.bf16 %v3129_v33, %v3129_v33  ;;  %v11758_v41 = vcombine.high %v4402_v3, %v15698_v40  ;;  %v12310_v54 = vld [vmem:[%s18677_s3 + $0xc0] sm:$0xff]  }
 0x295   : > { %v4240_v5 = vor.u32 %v4239_v36, %v4237_v22  ;;  %v11757_v53 = vcombine.low %v4402_v3, %v15698_v40  ;;  %v15717_v47 = vmul.u32.u64.low 2863311531, %v15628_v48  ;;  %v15718_v13 = vmul.u32.u64.high 2863311531, %v15628_v48, %v15717_v47  ;;  %5973 = vmatpush1.bf16.msra.mxu1 %v12309_v25  ;;  %v2051_v25 = vpop.f32.mrf.mxu0 }
 0x296   : > { %v15725_v42 = vrot.slane %v3601_v31, 7  ;;  %v4238_v4 = vsel %vm14356_vm2, %v4236_v57, %v4237_v22  ;;  %v18820_v3 = vshll.u32 %v15712_v23, 16  ;;  %3930 = vrot.lane.b32.xlu1 %v15712_v23, %s12600_s30  ;;  %11812 = vmatprep.mubr.msk.bf16.mxu0 %vm19438_vm0, %v11758_v41  ;;  %v15736_v33 = vrot.slane %v3610_v27, 7  ;;  %v15755_v27 = vld [vmem:[%s18676_s2] ss:$0 sm:$0xff]  ;;  %v3875_v47 = vpop.permute.xlu1 %3874 }
 0x297   : > { %v4241_v0 = vrot.slane %v4240_v5, 4  ;;  %4378 = vst.msk [vmem:[#allocation2 + $0x144] sm:$0xf] %vm19440_vm14, %v4238_v4  ;;  %5375 = vmatmul.mubr.bf16.gmra.mxu0 %v11757_v53  ;;  %v15740_v31 = vmul.u32.u64.low 2863311531, %v15708_v15  ;;  %v15741_v22 = vmul.u32.u64.high 2863311531, %v15708_v15, %v15740_v31  ;;  %5974 = vmatprep.subr.bf16.mxu1 %v19405_v12  ;;  %v19441_v57 = vshrl.u32 %v15526_v51, 16  ;;  %v2053_v4 = vpop.f32.mrf.mxu0  ;;  %vm19463_vm14 = vmmov %vm19452_vm6 }
 0x298   : > { %19439 = vst [vmem:[#allocation49_spill] sm:$0xff] %v15736_v33  ;;  %v19443_v61 = vshrl.u32 %v15574_v17, 16  ;;  %v15758_v53 = vadd.f32 %v15755_v27, %v2114_v11  ;;  %v15762_v5 = vrot.slane %v18820_v3, 5  ;;  %v4404_v31 = vld [vmem:[#allocation2 + $0x60] sm:$0xff]  ;;  %4008 = vst.msk [vmem:[#allocation2 + $0x70] sm:$0xf] %vm3996_vm5, %v3875_v47 }
 0x299   : > { %v15746_v50 = vrot.slane %v19441_v57, 7  ;;  %v15765_v57 = vadd.f32 %v15755_v27, %v2115_v21  ;;  %v11672_v36 = vcombine.high %v15698_v40, %v4404_v31  ;;  %v11671_v17 = vcombine.low %v15698_v40, %v4404_v31  ;;  %5975 = vmatpush1.bf16.msra.mxu1 %v12310_v54  ;;  %v12311_v11 = vld [vmem:[%s18677_s3 + $0x118] sm:$0xff]   ;;  %v2054_v47 = vpop.f32.mrf.mxu0 }
 0x29a   : > { %v15750_v41 = vrot.slane %v19443_v61, 7  ;;  %v2720_v61 = vshrl.u32 %v15718_v13, 4  ;;  %v4243_v4 = vsel %vm14356_vm2, %v4241_v0, %v15762_v5  ;;  %v19445_v21 = vshrl.u32 %v15712_v23, 16  ;;  %5984 = vmatprep.subr.bf16.mxu1 %v19405_v12 }
 0x29b   : > { %19442 = vst [vmem:[#allocation12_spill] sm:$0xff] %v15746_v50  ;;  %v3428_v13 = vrot.slane %v14984_v7, 4  ;;  %v19447_v54 = vshrl.u32 %v15595_v52, 16  ;;  %v19449_v50 = vshrl.u32 %v15642_v44, 16  ;;  %4379 = vst.msk [vmem:[#allocation2 + $0x14c] sm:$0xf] %vm19451_vm4, %v4243_v4  ;;  %11727 = vmatprep.mubr.msk.bf16.mxu1 %vm19452_vm6, %v11672_v36  ;;  %v3877_v7 = vpop.permute.xlu0 %3876 }
 0x29c   : > { %19444 = vst [vmem:[#allocation13_spill] sm:$0xff] %v15750_v41  ;;  %v15779_v3 = vrot.slane %v19445_v21, 4  ;;  %v19446_v41 = vshll.u32 %v14711_v60, 16  ;;  %v2721_v21 = vmul.u32 24, %v2720_v61  ;;  %v2731_v32 = vshrl.u32 %v15741_v22, 4  ;;  %v4405_v60 = vld [vmem:[#allocation2 + $0x68] sm:$0xff]  ;;  %4917 = vmatmul.mubr.bf16.gmra.mxu1 %v11671_v17 }
 0x29d   : > { %v15788_v51 = vrot.slane %v19447_v54, 7  ;;  %v15792_v0 = vrot.slane %v19449_v50, 7  ;;  %4009 = vst.msk [vmem:[#allocation2 + $0x78] sm:$0xf] %vm3996_vm5, %v3877_v7  ;;  %v2056_v54 = vpop.f32.mrf.mxu0  ;;  %v11760_v52 = vcombine.high %v4404_v31, %v4405_v60  ;;  %v11759_v44 = vcombine.low %v4404_v31, %v4405_v60  ;;  %5985 = vmatpush2.bf16.msra.mxu1 %v12311_v11  ;;  %v12312_v17 = vld [vmem:[%s18677_s3 + $0x110] sm:$0xff]  }
 0x29e   : > { %v3435_v40 = vor.u32 %v19446_v41, %v15029_v34  ;;  %v2217_v41 = vmax.f32 %v15758_v53, 0.0  ;;  %v2722_v61 = vsub.s32 %v15628_v48, %v2721_v21  ;;  %v2732_v36 = vmul.u32 24, %v2731_v32  ;;  %v19457_v48 = vld [vmem:[#allocation44_spill] sm:$0xff]  ;;  %5986 = vmatprep.subr.bf16.mxu1 %v19405_v12 }
 0x29f   : > { %19448 = vst [vmem:[#allocation64_spill] sm:$0xff] %v15788_v51  ;;  %19450 = vst [vmem:[#allocation60_spill] sm:$0xff] %v15792_v0  ;;  %v19453_v0 = vld [vmem:[#allocation80_spill] sm:$0xff]  ;;  %v15805_v22 = vadd.s32 336, %v13217_v18  ;;  %v2218_v53 = vmax.f32 %v15765_v57, 0.0  ;;  %v4245_v31 = vor.u32 %v15779_v3, %v15762_v5  ;;  %11813 = vmatprep.mubr.msk.bf16.mxu0 %vm19456_vm10, %v11760_v52  ;;  %v2059_v32 = vpop.f32.mrf.mxu0  ;;  %v3437_v57 = vrot.slane %v15029_v34, 4  ;;  %v3879_v5 = vpop.permute.xlu1 %3878 }
 0x2a0   : > { %v3436_v50 = vsel %vm14375_vm12, %v3428_v13, %v3435_v40  ;;  %v2116_v4 = vadd.f32 %v2051_v25, %v19453_v0  ;;  %v19455_v13 = vld [vmem:[#allocation81_spill] sm:$0xff]  ;;  %v19458_v40 = vshll.u32 %v19457_v48, 16  ;;  %vm2842_vm1 = vcmp.ne.s32.totalorder %v2722_v61, 0  ;;  %5383 = vmatmul.mubr.bf16.gmra.mxu0 %v11759_v44  ;;  %v15825_v7 = vld [vmem:[#allocation2 + $0x70] sm:$0xff] }
 0x2a1   : > { %3812 = vst.msk [vmem:[#allocation2 + $0x80] sm:$0xf] %vm19454_vm15, %v3436_v50  ;;  %v2117_v25 = vadd.f32 %v2054_v47, %v19455_v13  ;;  %vm2890_vm13 = vcmp.lt.s32.totalorder %v2722_v61, 0  ;;  %v2986_v11 = vadd.s32 24, %v2722_v61  ;;  %v2733_v3 = vsub.s32 %v15708_v15, %v2732_v36  ;;  %v2061_v47 = vpop.f32.mrf.mxu0  ;;  %5987 = vmatpush2.bf16.msra.mxu1 %v12312_v17  ;;  %vm19467_vm15 = vmmov %vm19459_vm11 }
 0x2a2   : > { %v3444_v0 = vor.u32 %v19458_v40, %v15044_v62  ;;  %vm2938_vm3 = vmand %vm2890_vm13, %vm2842_vm1  ;;  %v15822_v52 = vmul.u32.u64.low 2863311531, %v15805_v22  ;;  %v15823_v21 = vmul.u32.u64.high 2863311531, %v15805_v22, %v15822_v52  ;;  %v15828_v54 = vadd.s32 344, %v13217_v18  ;;  %4010 = vst.msk [vmem:[#allocation2 + $0x80] sm:$0xf] %vm3996_vm5, %v3879_v5  ;;  %5988 = vmatprep.subr.bf16.mxu1 %v19405_v12  ;;  %v19462_v40 = vld [vmem:[#allocation83_spill] sm:$0xff] }
 0x2a3   : > { %v3034_v50 = vsel %vm2938_vm3, %v2986_v11, %v2722_v61  ;;  %v11674_v44 = vcombine.high %v4405_v60, %v15825_v7  ;;  %v11673_v15 = vcombine.low %v4405_v60, %v15825_v7  ;;  %vm2843_vm8 = vcmp.ne.s32.totalorder %v2733_v3, 0  ;;  %v2062_v13 = vpop.f32.mrf.mxu0  ;;  %v3881_v60 = vpop.permute.xlu0 %3880  ;;  %v19465_v5 = vld [vmem:[#allocation39_spill] sm:$0xff]  ;;  %vm19469_vm13 = vmmov %vm19459_vm11 }
 0x2a4   : > { %v3445_v34 = vsel %vm14375_vm12, %v3437_v57, %v3444_v0  ;;  %vm3082_vm7 = vcmp.lt.s32.totalorder %v3034_v50, 16  ;;  %vm2891_vm9 = vcmp.lt.s32.totalorder %v2733_v3, 0  ;;  %v2987_v36 = vadd.s32 24, %v2733_v3  ;;  %v15843_v17 = vld [vmem:[#allocation2 + $0x78] sm:$0xff]  ;;  %v19464_v57 = vld [vmem:[#allocation9_spill] sm:$0xff] }
 0x2a5   : > { %3813 = vst.msk [vmem:[#allocation2 + $0x88] sm:$0xf] %vm19459_vm11, %v3445_v34  ;;  %v3130_v61 = vsel %vm3082_vm7, %v2217_v41, 0.0  ;;  %vm15837_vm0 = vmand %vm2891_vm9, %vm2843_vm8  ;;  %v2118_v11 = vadd.f32 %v2059_v32, %v19462_v40  ;;  %11728 = vmatprep.mubr.msk.bf16.mxu1 %vm19463_vm14, %v11674_v44  ;;  %v3446_v0 = vrot.slane %v15044_v62, 4  ;;  %v19466_v47 = vshll.u32 %v19465_v5, 16  ;;  %v2064_v32 = vpop.f32.mrf.mxu0 }
 0x2a6   : > { %v15849_v50 = vpack.c.bf16 %v3130_v61, %v3130_v61  ;;  %v3035_v41 = vsel %vm15837_vm0, %v2987_v36, %v2733_v3  ;;  %v2742_v34 = vshrl.u32 %v15823_v21, 4  ;;  %4011 = vst.msk [vmem:[#allocation2 + $0x88] sm:$0xf] %vm3996_vm5, %v3881_v60  ;;  %4925 = vmatmul.mubr.bf16.gmra.mxu1 %v11673_v15  ;;  %v11762_v44 = vcombine.high %v15825_v7, %v15843_v17  ;;  %vm19470_vm8 = vmmov %vm19459_vm11 }
 0x2a7   : > { %v3453_v52 = vor.u32 %v19466_v47, %v19464_v57  ;;  %v4246_v40 = vrot.slane %v4245_v31, 4  ;;  %v2171_v62 = vadd.f32 %v15755_v27, %v2116_v4  ;;  %vm3083_vm4 = vcmp.lt.s32.totalorder %v3035_v41, 16  ;;  %v2067_v36 = vpop.f32.mrf.mxu0  ;;  %v3883_v41 = vpop.permute.xlu1 %3882  ;;  %vm19472_vm9 = vmmov %vm19452_vm6 }
 0x2a8   : > { %v18829_v5 = vshrl.u32 %v15849_v50, 16  ;;  %v18828_v3 = vshll.u32 %v15849_v50, 16  ;;  %3932 = vrot.lane.b32.xlu0 %v15849_v50, %s12600_s30  ;;  %v3131_v21 = vsel %vm3083_vm4, %v2218_v53, 0.0  ;;  %v2743_v15 = vmul.u32 24, %v2742_v34  ;;  %11814 = vmatprep.mubr.msk.bf16.mxu0 %vm19452_vm6, %v11762_v44  ;;  %v19468_v44 = vld [vmem:[#allocation86_spill] sm:$0xff]  ;;  %vm19478_vm4 = vmmov %vm19452_vm6 }
 0x2a9   : > { %v3454_v61 = vsel %vm14375_vm12, %v3446_v0, %v3453_v52  ;;  %v15867_v4 = vadd.f32 %v15755_v27, %v2117_v25  ;;  %v15869_v31 = vpack.c.bf16 %v3131_v21, %v3131_v21  ;;  %v15880_v47 = vadd.f32 %v15755_v27, %v2118_v11  ;;  %v2069_v25 = vpop.f32.mrf.mxu0  ;;  %vm19479_vm6 = vmmov %vm19470_vm8 }
 0x2aa   : > { %3814 = vst.msk [vmem:[#allocation2 + $0x90] sm:$0xf] %vm19467_vm15, %v3454_v61  ;;  %v15872_v48 = vmul.u32.u64.low 2863311531, %v15828_v54  ;;  %v15873_v60 = vmul.u32.u64.high 2863311531, %v15828_v54, %v15872_v48  ;;  %v4247_v0 = vrot.slane %v18828_v3, 5  ;;  %v4249_v53 = vrot.slane %v18829_v5, 4 }
 0x2ab   : > { %v2744_v52 = vsub.s32 %v15805_v22, %v2743_v15  ;;  %v18831_v34 = vshrl.u32 %v15869_v31, 16  ;;  %v18830_v32 = vshll.u32 %v15869_v31, 16  ;;  %3934 = vrot.lane.b32.xlu1 %v15869_v31, %s12600_s30  ;;  %v2119_v61 = vadd.f32 %v2062_v13, %v19468_v44  ;;  %4012 = vst.msk [vmem:[#allocation2 + $0x90] sm:$0xf] %vm3996_vm5, %v3883_v41  ;;  %v15893_v15 = vld [vmem:[#allocation2 + $0x80] sm:$0xff]  ;;  %v15895_v48 = vpop.f32.mrf.mxu0 }
 0x2ac   : > { %v11761_v21 = vcombine.low %v15825_v7, %v15843_v17  ;;  %v4248_v11 = vsel %vm14356_vm2, %v4246_v40, %v4247_v0  ;;  %v4250_v22 = vor.u32 %v4249_v53, %v4247_v0  ;;  %v2219_v25 = vmax.f32 %v2171_v62, 0.0 }
 0x2ad   : > { %vm2844_vm10 = vcmp.ne.s32.totalorder %v2744_v52, 0  ;;  %vm2892_vm1 = vcmp.lt.s32.totalorder %v2744_v52, 0  ;;  %4380 = vst.msk [vmem:[#allocation2 + $0x154] sm:$0xf] %vm19469_vm13, %v4248_v11  ;;  %v4252_v13 = vrot.slane %v18830_v32, 5  ;;  %v4254_v41 = vrot.slane %v18831_v34, 4  ;;  %v2072_v3 = vpop.f32.mrf.mxu0 }
 0x2ae   : > { %vm2940_vm3 = vmand %vm2892_vm1, %vm2844_vm10  ;;  %v2988_v7 = vadd.s32 24, %v2744_v52  ;;  %5391 = vmatmul.mubr.bf16.gmra.mxu0 %v11761_v21  ;;  %v4251_v40 = vrot.slane %v4250_v22, 4  ;;  %v2220_v0 = vmax.f32 %v15867_v4, 0.0  ;;  %v2753_v53 = vshrl.u32 %v15873_v60, 4  ;;  %v15913_v22 = vld [vmem:[#allocation2 + $0x88] sm:$0xff]  ;;  %v19471_v60 = vld [vmem:[#allocation88_spill] sm:$0xff] }
 0x2af   : > { %v2270_v44 = vadd.s32 352, %v13217_v18  ;;  %v4255_v62 = vor.u32 %v4254_v41, %v4252_v13  ;;  %v11676_v32 = vcombine.high %v15843_v17, %v15893_v15  ;;  %v15911_v21 = vadd.f32 %v15755_v27, %v2119_v61  ;;  %vm19483_vm10 = vmmov %vm19479_vm6 }
 0x2b0   : > { %v3036_v5 = vsel %vm2940_vm3, %v2988_v7, %v2744_v52  ;;  %v4253_v34 = vsel %vm14356_vm2, %v4251_v40, %v4252_v13  ;;  %v2754_v4 = vmul.u32 24, %v2753_v53  ;;  %v2120_v41 = vadd.f32 %v2067_v36, %v19471_v60  ;;  %v19473_v13 = vld [vmem:[#allocation59_spill] sm:$0xff]  ;;  %v19474_v40 = vld [vmem:[#allocation8_spill] sm:$0xff]  ;;  %v12313_v60 = vld [vmem:[%s18677_s3 + $0x108] sm:$0xff]  }
 0x2b1   : > { %vm3084_vm7 = vcmp.lt.s32.totalorder %v3036_v5, 16  ;;  %4381 = vst.msk [vmem:[#allocation2 + $0x15c] sm:$0xf] %vm19470_vm8, %v4253_v34  ;;  %v15917_v11 = vmul.u32.u64.low 2863311531, %v2270_v44  ;;  %v15918_v52 = vmul.u32.u64.high 2863311531, %v2270_v44, %v15917_v11  ;;  %11729 = vmatprep.mubr.msk.bf16.mxu1 %vm19472_vm9, %v11676_v32  ;;  %v4256_v7 = vrot.slane %v4255_v62, 4  ;;  %5989 = vmatpush2.bf16.msra.mxu1 %v12313_v60  ;;  %vm19484_vm3 = vmmov %vm19479_vm6 }
 0x2b2   : > { %v3132_v3 = vsel %vm3084_vm7, %v2219_v25, 0.0  ;;  %v2755_v5 = vsub.s32 %v15828_v54, %v2754_v4  ;;  %v3455_v61 = vrot.slane %v19464_v57, 4  ;;  %v19475_v53 = vshll.u32 %v19474_v40, 16  ;;  %v3885_v54 = vpop.permute.xlu0 %3884  ;;  %5990 = vmatprep.subr.bf16.mxu1 %v19405_v12  ;;  %vm19485_vm8 = vmmov %vm19478_vm4 }
 0x2b3   : > { %v15921_v51 = vpack.c.bf16 %v3132_v3, %v3132_v3  ;;  %v11675_v34 = vcombine.low %v15843_v17, %v15893_v15  ;;  %v15931_v36 = vadd.s32 360, %v13217_v18  ;;  %v11764_v32 = vcombine.high %v15893_v15, %v15913_v22 }
 0x2b4   : > { %v3462_v33 = vor.u32 %v19475_v53, %v19473_v13  ;;  %vm2845_vm11 = vcmp.ne.s32.totalorder %v2755_v5, 0  ;;  %vm2893_vm0 = vcmp.lt.s32.totalorder %v2755_v5, 0  ;;  %v2989_v11 = vadd.s32 24, %v2755_v5 }
 0x2b5   : > { %v18835_v25 = vshrl.u32 %v15921_v51, 16  ;;  %v18834_v62 = vshll.u32 %v15921_v51, 16  ;;  %3936 = vrot.lane.b32.xlu0 %v15921_v51, %s12600_s30  ;;  %vm15940_vm14 = vmand %vm2893_vm0, %vm2845_vm11  ;;  %v2764_v4 = vshrl.u32 %v15918_v52, 4  ;;  %4933 = vmatmul.mubr.bf16.gmra.mxu1 %v11675_v34  ;;  %v15956_v57 = vadd.f32 %v15755_v27, %v2120_v41 }
 0x2b6   : > { %v3463_v3 = vsel %vm14375_vm12, %v3455_v61, %v3462_v33  ;;  %11815 = vmatprep.mubr.msk.bf16.mxu0 %vm19478_vm4, %v11764_v32  ;;  %v3464_v33 = vrot.slane %v19473_v13, 4  ;;  %v3037_v52 = vsel %vm15940_vm14, %v2989_v11, %v2755_v5  ;;  %v19481_v13 = vld [vmem:[#allocation56_spill] sm:$0xff]  ;;  %v3887_v11 = vpop.permute.xlu1 %3886  ;;  %v2272_v60 = vadd.s32 368, %v13217_v18  ;;  %vm19491_vm11 = vmmov %vm19484_vm3 }
 0x2b7   : > { %v4257_v40 = vrot.slane %v18834_v62, 5  ;;  %v4259_v53 = vrot.slane %v18835_v25, 4  ;;  %3815 = vst.msk [vmem:[#allocation2 + $0x98] sm:$0xf] %vm19479_vm6, %v3463_v3  ;;  %v2765_v61 = vmul.u32 24, %v2764_v4  ;;  %v15967_v62 = vld [vmem:[#allocation2 + $0x90] sm:$0xff]  ;;  %v11763_v4 = vcombine.low %v15893_v15, %v15913_v22  ;;  %vm19492_vm0 = vmmov %vm19484_vm3 }
 0x2b8   : > { %4013 = vst.msk [vmem:[#allocation2 + $0x98] sm:$0xf] %vm3996_vm5, %v3885_v54  ;;  %v15964_v34 = vmul.u32.u64.low 2863311531, %v15931_v36  ;;  %v15965_v32 = vmul.u32.u64.high 2863311531, %v15931_v36, %v15964_v34  ;;  %vm3085_vm15 = vcmp.lt.s32.totalorder %v3037_v52, 16  ;;  %v19480_v3 = vld [vmem:[#allocation48_spill] sm:$0xff] }
 0x2b9   : > { %v4258_v41 = vsel %vm14356_vm2, %v4256_v7, %v4257_v40  ;;  %v4260_v25 = vor.u32 %v4259_v53, %v4257_v40  ;;  %v19482_v20 = vshll.u32 %v19481_v13, 16  ;;  %v3133_v5 = vsel %vm3085_vm15, %v2220_v0, 0.0  ;;  %5399 = vmatmul.mubr.bf16.gmra.mxu0 %v11763_v4 }
 0x2ba   : > { %4382 = vst.msk [vmem:[#allocation2 + $0x164] sm:$0xf] %vm19483_vm10, %v4258_v41  ;;  %v2766_v54 = vsub.s32 %v2270_v44, %v2765_v61  ;;  %v15979_v7 = vpack.c.bf16 %v3133_v5, %v3133_v5  ;;  %v2775_v0 = vshrl.u32 %v15965_v32, 4  ;;  %v3473_v61 = vrot.slane %v19480_v3, 4  ;;  %v19486_v32 = vld [vmem:[#allocation42_spill] sm:$0xff]  ;;  %v19487_v41 = vld [vmem:[#allocation45_spill] sm:$0xff]  ;;  %vm19497_vm10 = vmmov %vm19492_vm0 }
 0x2bb   : > { %v3471_v17 = vor.u32 %v19482_v20, %v19480_v3  ;;  %v4261_v34 = vrot.slane %v4260_v25, 4  ;;  %v11678_v20 = vcombine.high %v15913_v22, %v15967_v62  ;;  %v19488_v13 = vshll.u32 %v19487_v41, 16 }
 0x2bc   : > { %vm2846_vm1 = vcmp.ne.s32.totalorder %v2766_v54, 0  ;;  %vm2894_vm13 = vcmp.lt.s32.totalorder %v2766_v54, 0  ;;  %v2990_v12 = vadd.s32 24, %v2766_v54  ;;  %v3700_v15 = vshrl.u32 %v15979_v7, 16  ;;  %3938 = vrot.lane.b32.xlu1 %v15979_v7, %s12600_s30 }
 0x2bd   : > { %v3472_v40 = vsel %vm14375_vm12, %v3464_v33, %v3471_v17  ;;  %v18838_v44 = vshll.u32 %v15979_v7, 16  ;;  %vm2942_vm7 = vmand %vm2894_vm13, %vm2846_vm1  ;;  %v15992_v25 = vmul.u32.u64.low 2863311531, %v2272_v60  ;;  %v15993_v53 = vmul.u32.u64.high 2863311531, %v2272_v60, %v15992_v25  ;;  %11730 = vmatprep.mubr.msk.bf16.mxu1 %vm19485_vm8, %v11678_v20 }
 0x2be   : > { %3816 = vst.msk [vmem:[#allocation2 + $0xa0] sm:$0xf] %vm19484_vm3, %v3472_v40  ;;  %v3038_v33 = vsel %vm2942_vm7, %v2990_v12, %v2766_v54  ;;  %v2776_v52 = vmul.u32 24, %v2775_v0  ;;  %v3480_v17 = vor.u32 %v19488_v13, %v19486_v32  ;;  %v4264_v4 = vrot.slane %v3700_v15, 4  ;;  %v3889_v25 = vpop.permute.xlu0 %3888  ;;  %vm19498_vm3 = vmmov %vm19485_vm8 }
 0x2bf   : > { %4014 = vst.msk [vmem:[#allocation2 + $0xa0] sm:$0xf] %vm3996_vm5, %v3887_v11  ;;  %v4262_v5 = vrot.slane %v18838_v44, 5  ;;  %vm3086_vm9 = vcmp.lt.s32.totalorder %v3038_v33, 16  ;;  %v19489_v11 = vld [vmem:[#allocation94_spill] sm:$0xff]  ;;  %v19490_v54 = vmax.f32 %v15880_v47, 0.0  ;;  %v11677_v0 = vcombine.low %v15913_v22, %v15967_v62  ;;  %vm19499_vm8 = vmmov %vm19492_vm0 }
 0x2c0   : > { %v2121_v40 = vadd.f32 %v15895_v48, %v19489_v11  ;;  %v2777_v3 = vsub.s32 %v15931_v36, %v2776_v52  ;;  %v3481_v12 = vsel %vm14375_vm12, %v3473_v61, %v3480_v17  ;;  %v2786_v48 = vshrl.u32 %v15993_v53, 4  ;;  %v16026_v61 = vld [vmem:[#allocation2 + $0x98] sm:$0xff] }
 0x2c1   : > { %v3134_v20 = vsel %vm3086_vm9, %v19490_v54, 0.0  ;;  %v4263_v41 = vsel %vm14356_vm2, %v4261_v34, %v4262_v5  ;;  %v4265_v13 = vor.u32 %v4264_v4, %v4262_v5  ;;  %3817 = vst.msk [vmem:[#allocation2 + $0xa8] sm:$0xf] %vm19491_vm11, %v3481_v12  ;;  %4941 = vmatmul.mubr.bf16.gmra.mxu1 %v11677_v0  ;;  %v2273_v22 = vadd.s32 376, %v13217_v18  ;;  %vm19500_vm11 = vmmov %vm19498_vm3  ;;  %v5539_v18 = vld [vmem:[#allocation2 + $0x90] sm:$0xff] }
 0x2c2   : > { %v16015_v33 = vpack.c.bf16 %v3134_v20, %v3134_v20  ;;  %4383 = vst.msk [vmem:[#allocation2 + $0x16c] sm:$0xf] %vm19492_vm0, %v4263_v41  ;;  %vm2847_vm14 = vcmp.ne.s32.totalorder %v2777_v3, 0  ;;  %vm2895_vm4 = vcmp.lt.s32.totalorder %v2777_v3, 0  ;;  %v2991_v47 = vadd.s32 24, %v2777_v3 }
 0x2c3   : > { %4015 = vst.msk [vmem:[#allocation2 + $0xa8] sm:$0xf] %vm3996_vm5, %v3889_v25  ;;  %v4266_v36 = vrot.slane %v4265_v13, 4  ;;  %vm2943_vm6 = vmand %vm2895_vm4, %vm2847_vm14  ;;  %v2787_v53 = vmul.u32 24, %v2786_v48  ;;  %v2223_v17 = vmax.f32 %v15956_v57, 0.0  ;;  %v16037_v20 = vadd.f32 %v15755_v27, %v2121_v40 }
 0x2c4   : > { %v18839_v34 = vshrl.u32 %v16015_v33, 16  ;;  %v18837_v52 = vshll.u32 %v16015_v33, 16  ;;  %3940 = vrot.lane.b32.xlu0 %v16015_v33, %s12600_s30  ;;  %v3039_v5 = vsel %vm2943_vm6, %v2991_v47, %v2777_v3  ;;  %v19493_v12 = vmax.f32 %v15911_v21, 0.0 }
 0x2c5   : > { %v16029_v4 = vmul.u32.u64.low 2863311531, %v2273_v22  ;;  %v16030_v11 = vmul.u32.u64.high 2863311531, %v2273_v22, %v16029_v4  ;;  %vm3087_vm15 = vcmp.lt.s32.totalorder %v3039_v5, 16  ;;  %v2788_v41 = vsub.s32 %v2272_v60, %v2787_v53  ;;  %v16057_v53 = vpop.f32.mrf.mxu0 }
 0x2c6   : > { %v4267_v25 = vrot.slane %v18837_v52, 5  ;;  %v4269_v54 = vrot.slane %v18839_v34, 4  ;;  %v3135_v0 = vsel %vm3087_vm15, %v19493_v12, 0.0  ;;  %v11766_v57 = vcombine.high %v15967_v62, %v16026_v61  ;;  %v19494_v4 = vld [vmem:[#allocation10_spill] sm:$0xff]  ;;  %v19495_v52 = vld [vmem:[#allocation41_spill] sm:$0xff]  ;;  %vm19502_vm15 = vmmov %vm19492_vm0 }
 0x2c7   : > { %v3482_v3 = vrot.slane %v19486_v32, 4  ;;  %v16046_v47 = vpack.c.bf16 %v3135_v0, %v3135_v0  ;;  %v19496_v27 = vshll.u32 %v19495_v52, 16  ;;  %v4412_v5 = vld [vmem:[#allocation2 + $0xa0] sm:$0xff]  ;;  %vm2848_vm1 = vcmp.ne.s32.totalorder %v2788_v41, 0  ;;  %v3891_v32 = vpop.permute.xlu1 %3890 }
 0x2c8   : > { %v4268_v13 = vsel %vm14356_vm2, %v4266_v36, %v4267_v25  ;;  %v4270_v48 = vor.u32 %v4269_v54, %v4267_v25  ;;  %vm2896_vm13 = vcmp.lt.s32.totalorder %v2788_v41, 0  ;;  %v2992_v21 = vadd.s32 24, %v2788_v41  ;;  %11816 = vmatprep.mubr.msk.bf16.mxu0 %vm19498_vm3, %v11766_v57  ;;  %v12314_v36 = vld [vmem:[%s18677_s3 + $0x100] sm:$0xff]  }
 0x2c9   : > { %v3489_v40 = vor.u32 %v19496_v27, %v19494_v4  ;;  %4384 = vst.msk [vmem:[#allocation2 + $0x174] sm:$0xf] %vm19497_vm10, %v4268_v13  ;;  %v2797_v60 = vshrl.u32 %v16030_v11, 4  ;;  %v3718_v52 = vshrl.u32 %v16046_v47, 16  ;;  %v3721_v54 = vshll.u32 %v16046_v47, 16  ;;  %3942 = vrot.lane.b32.xlu1 %v16046_v47, %s12600_s30  ;;  %vm2944_vm7 = vmand %vm2896_vm13, %vm2848_vm1  ;;  %5991 = vmatpush2.bf16.msra.mxu1 %v12314_v36 }
 0x2ca   : > { %v4271_v25 = vrot.slane %v4270_v48, 4  ;;  %v3040_v12 = vsel %vm2944_vm7, %v2992_v21, %v2788_v41  ;;  %v11765_v57 = vcombine.low %v15967_v62, %v16026_v61  ;;  %v11680_v13 = vcombine.high %v16026_v61, %v4412_v5  ;;  %v5338_v48 = vpop.f32.mrf.mxu0  ;;  %v16080_v21 = vld [vmem:[#allocation2 + $0xa8] sm:$0xff]  ;;  %vm19505_vm1 = vmmov %vm19498_vm3 }
 0x2cb   : > { %v3490_v11 = vsel %vm14375_vm12, %v3482_v3, %v3489_v40  ;;  %v2798_v0 = vmul.u32 24, %v2797_v60  ;;  %v2224_v27 = vmax.f32 %v16037_v20, 0.0  ;;  %v4272_v44 = vrot.slane %v3721_v54, 5  ;;  %vm19507_vm3 = vmmov %vm19492_vm0 }
 0x2cc   : > { %3818 = vst.msk [vmem:[#allocation2 + $0xb0] sm:$0xf] %vm19499_vm8, %v3490_v11  ;;  %v4274_v34 = vrot.slane %v3718_v52, 4  ;;  %vm3088_vm9 = vcmp.lt.s32.totalorder %v3040_v12, 16  ;;  %5407 = vmatmul.mubr.bf16.gmra.mxu0 %v11765_v57  ;;  %11731 = vmatprep.mubr.msk.bf16.mxu1 %vm19500_vm11, %v11680_v13  ;;  %v3491_v62 = vrot.slane %v19494_v4, 4  ;;  %v19501_v40 = vshll.u32 %v14988_v26, 16  ;;  %vm19508_vm7 = vmmov %vm19492_vm0 }
 0x2cd   : > { %4016 = vst.msk [vmem:[#allocation2 + $0xb0] sm:$0xf] %vm3996_vm5, %v3891_v32  ;;  %v3136_v41 = vsel %vm3088_vm9, %v2223_v17, 0.0  ;;  %v2799_v3 = vsub.s32 %v2273_v22, %v2798_v0  ;;  %v4273_v60 = vsel %vm14356_vm2, %v4271_v25, %v4272_v44  ;;  %v3893_v32 = vpop.permute.xlu0 %3892  ;;  %v11679_v22 = vcombine.low %v16026_v61, %v4412_v5  ;;  %vm19509_vm8 = vmmov %vm19492_vm0 }
 0x2ce   : > { %v3498_v20 = vor.u32 %v19501_v40, %v15188_v6  ;;  %v4275_v36 = vor.u32 %v4274_v34, %v4272_v44  ;;  %v16084_v11 = vpack.c.bf16 %v3136_v41, %v3136_v41  ;;  %4385 = vst.msk [vmem:[#allocation2 + $0x17c] sm:$0xf] %vm19492_vm0, %v4273_v60  ;;  %v16096_v44 = vcombine.high %v4412_v5, %v16080_v21  ;;  %v3895_v34 = vpop.permute.xlu1 %3894  ;;  %vm19511_vm9 = vmmov %vm19505_vm1 }
 0x2cf   : > { %vm2849_vm14 = vcmp.ne.s32.totalorder %v2799_v3, 0  ;;  %vm2897_vm4 = vcmp.lt.s32.totalorder %v2799_v3, 0  ;;  %v2993_v17 = vadd.s32 24, %v2799_v3  ;;  %4949 = vmatmul.mubr.bf16.gmra.mxu1 %v11679_v22  ;;  %v3500_v25 = vrot.slane %v15188_v6, 4 }
 0x2d0   : > { %v3499_v26 = vsel %vm14375_vm12, %v3491_v62, %v3498_v20  ;;  %v4276_v4 = vrot.slane %v4275_v36, 4  ;;  %v3727_v12 = vshrl.u32 %v16084_v11, 16  ;;  %v3730_v0 = vshll.u32 %v16084_v11, 16  ;;  %3944 = vrot.lane.b32.xlu0 %v16084_v11, %s12600_s30  ;;  %vm2945_vm6 = vmand %vm2897_vm4, %vm2849_vm14  ;;  %11817 = vmatprep.mubr.msk.bf16.mxu0 %vm19505_vm1, %v16096_v44 }
 0x2d1   : > { %3819 = vst.msk [vmem:[#allocation2 + $0xb8] sm:$0xf] %vm19502_vm15, %v3499_v26  ;;  %v3041_v61 = vsel %vm2945_vm6, %v2993_v17, %v2799_v3  ;;  %v19503_v57 = vshll.u32 %v15037_v29, 16  ;;  %v16104_v48 = vcombine.low %v4412_v5, %v16080_v21  ;;  %v19504_v41 = vshrl.u32 %v15667_v8, 16  ;;  %vm19518_vm14 = vmmov %vm19507_vm3 }
 0x2d2   : > { %4017 = vst.msk [vmem:[#allocation2 + $0xb8] sm:$0xf] %vm3996_vm5, %v3893_v32  ;;  %v4277_v40 = vrot.slane %v3730_v0, 5  ;;  %v4279_v3 = vrot.slane %v3727_v12, 4  ;;  %vm3089_vm10 = vcmp.lt.s32.totalorder %v3041_v61, 16  ;;  %v3509_v20 = vrot.slane %v15216_v28, 4  ;;  %v3897_v32 = vpop.permute.xlu0 %3896  ;;  %v16127_v61 = vpop.f32.mrf.mxu0  ;;  %vm19521_vm4 = vmmov %vm19507_vm3 }
 0x2d3   : > { %v3507_v13 = vor.u32 %v19503_v57, %v15216_v28  ;;  %v16108_v62 = vrot.slane %v19504_v41, 7  ;;  %v3137_v6 = vsel %vm3089_vm10, %v2224_v27, 0.0  ;;  %v19506_v60 = vshll.u32 %v15073_v56, 16  ;;  %v3899_v27 = vpop.permute.xlu1 %3898  ;;  %vm19522_vm6 = vmmov %vm19507_vm3 }
 0x2d4   : > { %v4414_v5 = vld [vmem:[#allocation2 + $0xb0] sm:$0xff]  ;;  %v4278_v22 = vsel %vm14356_vm2, %v4276_v4, %v4277_v40  ;;  %v4280_v17 = vor.u32 %v4279_v3, %v4277_v40  ;;  %v16124_v26 = vpack.c.bf16 %v3137_v6, %v3137_v6  ;;  %vm3847_vm13 = vcmask 516096   ;;  %5415 = vmatmul.mubr.bf16.gmra.mxu0 %v16104_v48  ;;  %v5341_v3 = vpop.f32.mrf.mxu0  ;;  %vm19523_vm15 = vmmov %vm19507_vm3 }
 0x2d5   : > { %v3508_v29 = vsel %vm14375_vm12, %v3500_v25, %v3507_v13  ;;  %v3516_v36 = vor.u32 %v19506_v60, %v15257_v30  ;;  %4386 = vst.msk [vmem:[#allocation2 + $0x184] sm:$0xf] %vm19508_vm7, %v4278_v22  ;;  %v11682_v56 = vcombine.high %v16080_v21, %v4414_v5  ;;  %v11681_v4 = vcombine.low %v16080_v21, %v4414_v5  ;;  %vm19524_vm10 = vmmov %vm19505_vm1 }
 0x2d6   : > { %3820 = vst.msk [vmem:[#allocation2 + $0xc0] sm:$0xf] %vm19507_vm3, %v3508_v29  ;;  %v3518_v25 = vrot.slane %v15257_v30, 4  ;;  %v4281_v57 = vrot.slane %v4280_v17, 4  ;;  %v3736_v13 = vshrl.u32 %v16124_v26, 16  ;;  %v3739_v41 = vshll.u32 %v16124_v26, 16  ;;  %3946 = vrot.lane.b32.xlu1 %v16124_v26, %s12600_s30  ;;  %v3901_v29 = vpop.permute.xlu0 %3900  ;;  %vm19539_vm7 = vmmov %vm19511_vm9 }
 0x2d7   : > { %4018 = vst.msk [vmem:[#allocation2 + $0xc0] sm:$0xf] %vm3996_vm5, %v3895_v34  ;;  %v3517_v28 = vsel %vm14375_vm12, %v3509_v20, %v3516_v36  ;;  %v19510_v34 = vshll.u32 %v15127_v43, 16  ;;  %11732 = vmatprep.mubr.msk.bf16.mxu1 %vm19511_vm9, %v11682_v56  ;;  %v3527_v30 = vrot.slane %v15341_v35, 4  ;;  %v19512_v21 = vshll.u32 %v15149_v45, 16  ;;  %v3903_v17 = vpop.permute.xlu1 %3902  ;;  %s12543_s30 = scalar_lea.vmem %s12542_s25, 96 }
 0x2d8   : > { %3821 = vst.msk [vmem:[#allocation2 + $0xc8] sm:$0xf] %vm19509_vm8, %v3517_v28  ;;  %v3536_v20 = vrot.slane %v15351_v55, 4  ;;  %v19513_v60 = vshll.u32 %v15196_v37, 16  ;;  %v19514_v43 = vshrl.u32 %v15712_v23, 16  ;;  %4957 = vmatmul.mubr.bf16.gmra.mxu1 %v11681_v4  ;;  %v19525_v24 = vshll.u32 %v15220_v16, 16  ;;  %p12545_p1 = scmp.lt.s32.totalorder %s12543_s30, %s12537_s24 }
 0x2d9   : > { %v3525_v40 = vor.u32 %v19510_v34, %v15341_v35  ;;  %4019 = vst.msk [vmem:[#allocation2 + $0xc8] sm:$0xf] %vm3996_vm5, %v3897_v32  ;;  %v3534_v6 = vor.u32 %v19512_v21, %v15351_v55  ;;  %v16161_v32 = vrot.slane %v3736_v13, 7  ;;  %v16165_v35 = vrot.slane %v3739_v41, 5  ;;  %v4415_v45 = vld [vmem:[#allocation2 + $0xb8] sm:$0xff] }
 0x2da   : > { %v3543_v36 = vor.u32 %v19513_v60, %v15474_v9  ;;  %v16157_v22 = vrot.slane %v19514_v43, 7  ;;  %vm19515_vm11 = vsmask.f32 256  ;;  %v3849_v56 = vld [vmem:[#allocation2 + $0x198] sm:$0x1]  ;;  %v16175_v28 = vcombine.high %v4414_v5, %v4415_v45  ;;  %p12546_p2 = por %p12545_p1, %p12544_p0 }
 0x2db   : > { %v3526_v55 = vsel %vm14375_vm12, %v3518_v25, %v3525_v40  ;;  %vm16171_vm0 = vmand %vm3847_vm13, %vm19515_vm11  ;;  %v16178_v34 = vcombine.low %v4414_v5, %v4415_v45  ;;  %v3535_v4 = vsel %vm14375_vm12, %v3527_v30, %v3534_v6  ;;  %v19519_v40 = vshrl.u32 %v15849_v50, 16 }
 0x2dc   : > { %3822 = vst.msk [vmem:[#allocation2 + $0xd0] sm:$0xf] %vm19518_vm14, %v3526_v55  ;;  %v3544_v25 = vsel %vm14375_vm12, %v3536_v20, %v3543_v36  ;;  %v19520_v21 = vshrl.u32 %v15869_v31, 16  ;;  %v3743_v43 = vrot.slane %v16161_v32, 4  ;;  %v4283_v5 = vsel %vm14356_vm2, %v4281_v57, %v16165_v35  ;;  %11818 = vmatprep.mubr.msk.bf16.mxu0 %vm19524_vm10, %v16175_v28  ;;  %vm19529_vm2 = vmmov %vm19507_vm3  ;;  %p12547_p3 = pnand %p12546_p2, %p12540_p13 }
 0x2dd   : > { %v16186_v3 = vrot.slane %v19519_v40, 7  ;;  %4020 = vst.msk [vmem:[#allocation2 + $0xd0] sm:$0xf] %vm3996_vm5, %v3899_v27  ;;  %v3545_v30 = vrot.slane %v15474_v9, 4  ;;  %v3552_v57 = vor.u32 %v19525_v24, %v15540_v38  ;;  %v3905_v27 = vpop.permute.xlu0 %3904  ;;  %v3554_v6 = vrot.slane %v15540_v38, 4  ;;  %v3907_v9 = vpop.permute.xlu1 %3906  ;;  %5423 = vmatmul.mubr.bf16.gmra.mxu0 %v16178_v34  ;;  %vm19530_vm1 = vmmov %vm19529_vm2 }
 0x2de   : > { %v16190_v60 = vrot.slane %v19520_v21, 7  ;;  %3823 = vst.msk [vmem:[#allocation2 + $0xd8] sm:$0xf] %vm19521_vm4, %v3535_v4  ;;  %v19526_v20 = vshll.u32 %v15265_v1, 16  ;;  %v19527_v55 = vshrl.u32 %v15921_v51, 16  ;;  %v19528_v16 = vshll.u32 %v15285_v10, 16  ;;  %vm19532_vm13 = vmmov %vm19511_vm9 }
 0x2df   : > { %3824 = vst.msk [vmem:[#allocation2 + $0xe0] sm:$0xf] %vm19522_vm6, %v3544_v25  ;;  %v3563_v25 = vrot.slane %v15599_v46, 4  ;;  %v3553_v21 = vsel %vm14375_vm12, %v3545_v30, %v3552_v57  ;;  %vm19533_vm3 = vmmov %vm19530_vm1  ;;  %v3581_v24 = vrot.slane %v15664_v14, 4 }
 0x2e0   : > { %4387 = vst.msk [vmem:[#allocation2 + $0x18c] sm:$0xf] %vm19523_vm15, %v4283_v5  ;;  %v3561_v36 = vor.u32 %v19526_v20, %v15599_v46  ;;  %v16214_v4 = vrot.slane %v19527_v55, 7  ;;  %v3570_v40 = vor.u32 %v19528_v16, %v15649_v2  ;;  %v16231_v46 = vld [vmem:[#allocation2 + $0xc8] sm:$0xff]  ;;  %vm19540_vm8 = vmmov %vm19530_vm1 }
 0x2e1   : > { %4021 = vst.msk [vmem:[#allocation2 + $0xd8] sm:$0xf] %vm3996_vm5, %v3901_v29  ;;  %4022 = vst.msk [vmem:[#allocation2 + $0xe0] sm:$0xf] %vm3996_vm5, %v3903_v17  ;;  %v3850_v29 = vsel %vm16171_vm0, %v3743_v43, %v3849_v56  ;;  %v4416_v17 = vld [vmem:[#allocation2 + $0xc0] sm:$0xff]  ;;  %v16229_v56 = vrot.slane %v3700_v15, 7  ;;  %v3909_v30 = vpop.permute.xlu0 %3908 }
 0x2e2   : > { %3851 = vst [vmem:[#allocation2 + $0x198] sm:$0x1] %v3850_v29  ;;  %v11684_v1 = vcombine.high %v4415_v45, %v4416_v17  ;;  %v11683_v38 = vcombine.low %v4415_v45, %v4416_v17  ;;  %v3562_v37 = vsel %vm14375_vm12, %v3554_v6, %v3561_v36  ;;  %3825 = vst.msk [vmem:[#allocation2 + $0xe8] sm:$0xf] %vm19529_vm2, %v3553_v21  ;;  %v3572_v45 = vrot.slane %v15649_v2, 4  ;;  %v19542_v16 = vld [vmem:[#allocation62_spill] sm:$0xff] }
 0x2e3   : > { %3826 = vst.msk [vmem:[#allocation2 + $0xf0] sm:$0xf] %vm19530_vm1, %v3562_v37  ;;  %v3571_v10 = vsel %vm14375_vm12, %v3563_v25, %v3570_v40  ;;  %v19531_v43 = vshll.u32 %v15354_v58, 16  ;;  %v16243_v15 = vcombine.high %v4416_v17, %v16231_v46  ;;  %v19534_v2 = vshll.u32 %v15373_v59, 16  ;;  %vm19544_vm9 = vmmov %vm19530_vm1 }
 0x2e4   : > { %11733 = vmatprep.mubr.msk.bf16.mxu1 %vm19532_vm13, %v11684_v1  ;;  %4023 = vst.msk [vmem:[#allocation2 + $0xe8] sm:$0xf] %vm3996_vm5, %v3905_v27  ;;  %4024 = vst.msk [vmem:[#allocation2 + $0xf0] sm:$0xf] %vm3996_vm5, %v3907_v9  ;;  %v3590_v58 = vrot.slane %v15675_v39, 4  ;;  %v19535_v27 = vshll.u32 %v15422_v49, 16 }
 0x2e5   : > { %v3579_v5 = vor.u32 %v19531_v43, %v15664_v14  ;;  %3827 = vst.msk [vmem:[#allocation2 + $0xf8] sm:$0xf] %vm19533_vm3, %v3571_v10  ;;  %v3588_v57 = vor.u32 %v19534_v2, %v15675_v39  ;;  %4965 = vmatmul.mubr.bf16.gmra.mxu1 %v11683_v38  ;;  %v3599_v36 = vrot.slane %v15683_v19, 4  ;;  %v19536_v14 = vld [vmem:[#allocation11_spill] sm:$0xff]  ;;  %v19538_v59 = vshrl.u32 %v16015_v33, 16  ;;  %11819 = vmatprep.mubr.msk.bf16.mxu0 %vm19539_vm7, %v16243_v15  ;;  %vm19545_vm11 = vmmov %vm19530_vm1  ;;  %v3911_v2 = vpop.permute.xlu1 %3910 }
 0x2e6   : > { %4025 = vst.msk [vmem:[#allocation2 + $0xf8] sm:$0xf] %vm3996_vm5, %v3909_v30  ;;  %v3597_v20 = vor.u32 %v19535_v27, %v15683_v19  ;;  %v19537_v55 = vshll.u32 %v19536_v14, 16  ;;  %v16270_v39 = vcombine.low %v4416_v17, %v16231_v46  ;;  %v4418_v25 = vld [vmem:[#allocation2 + $0xd0] sm:$0xff]  ;;  %v19541_v19 = vld [vmem:[#allocation49_spill] sm:$0xff]  ;;  %v19543_v40 = vshll.u32 %v19542_v16, 16  ;;  %vm19546_vm0 = vmmov %vm19530_vm1 }
 0x2e7   : > { %v3580_v6 = vsel %vm14375_vm12, %v3572_v45, %v3579_v5  ;;  %v16265_v9 = vrot.slane %v19538_v59, 7  ;;  %v3589_v49 = vsel %vm14375_vm12, %v3581_v24, %v3588_v57  ;;  %v11686_v38 = vcombine.high %v16231_v46, %v4418_v25  ;;  %vm19547_vm14 = vmmov %vm19539_vm7  ;;  %v19548_v57 = vld [vmem:[#allocation12_spill] sm:$0xff]  ;;  %v19551_v27 = vld [vmem:[#allocation13_spill] sm:$0xff] }
 0x2e8   : > { %v3606_v29 = vor.u32 %v19537_v55, %v15725_v42  ;;  %3828 = vst.msk [vmem:[#allocation2 + $0x100] sm:$0xf] %vm19540_vm8, %v3580_v6  ;;  %v3615_v1 = vor.u32 %v19543_v40, %v19541_v19  ;;  %v16279_v21 = vld [vmem:[#allocation2 + $0xd8] sm:$0xff]  ;;  %v16281_v37 = vld [vmem:[#allocation2 + $0xe0] sm:$0xff]  ;;  %v3598_v17 = vsel %vm14375_vm12, %v3590_v58, %v3597_v20  ;;  %v3608_v45 = vrot.slane %v15725_v42, 4  ;;  %v19552_v20 = vld [vmem:[#allocation46_spill] sm:$0xff]  ;;  %5431 = vmatmul.mubr.bf16.gmra.mxu0 %v16270_v39 }
 0x2e9   : > { %3829 = vst.msk [vmem:[#allocation2 + $0x108] sm:$0xf] %vm19544_vm9, %v3589_v49  ;;  %v16291_v43 = vrot.slane %v3718_v52, 7  ;;  %v11685_v5 = vcombine.low %v16231_v46, %v4418_v25  ;;  %v16295_v30 = vcombine.high %v4418_v25, %v16279_v21  ;;  %v3617_v24 = vrot.slane %v19541_v19, 4  ;;  %11734 = vmatprep.mubr.msk.bf16.mxu1 %vm19547_vm14, %v11686_v38  ;;  %v19549_v52 = vld [vmem:[#allocation50_spill] sm:$0xff]  ;;  %vm19554_vm4 = vmmov %vm19546_vm0  ;;  %v19555_v59 = vld [vmem:[#allocation64_spill] sm:$0xff] }
 0x2ea   : > { %v3607_v10 = vsel %vm14375_vm12, %v3599_v36, %v3606_v29  ;;  %3830 = vst.msk [vmem:[#allocation2 + $0x110] sm:$0xf] %vm19545_vm11, %v3598_v17  ;;  %v3616_v42 = vsel %vm14375_vm12, %v3608_v45, %v3615_v1  ;;  %v19550_v58 = vshll.u32 %v19549_v52, 16  ;;  %v3626_v46 = vrot.slane %v19548_v57, 4  ;;  %v19556_v49 = vld [vmem:[#allocation63_spill] sm:$0xff]  ;;  %v19558_v40 = vld [vmem:[#allocation60_spill] sm:$0xff]  ;;  %vm19561_vm6 = vmmov %vm19539_vm7 }
 0x2eb   : > { %3831 = vst.msk [vmem:[#allocation2 + $0x118] sm:$0xf] %vm19546_vm0, %v3607_v10  ;;  %v19553_v36 = vshll.u32 %v19552_v20, 16  ;;  %v11688_v55 = vcombine.high %v16279_v21, %v16281_v37  ;;  %v3635_v29 = vrot.slane %v19551_v27, 4  ;;  %v19557_v19 = vshll.u32 %v19556_v49, 16  ;;  %v19559_v1 = vld [vmem:[#allocation57_spill] sm:$0xff]  ;;  %11820 = vmatprep.mubr.msk.bf16.mxu0 %vm19561_vm6, %v16295_v30  ;;  %vm19563_vm15 = vmmov %vm19546_vm0 }
 0x2ec   : > { %v3624_v6 = vor.u32 %v19550_v58, %v19548_v57  ;;  %4026 = vst.msk [vmem:[#allocation2 + $0x100] sm:$0xf] %vm3996_vm5, %v3911_v2  ;;  %v19560_v38 = vshll.u32 %v19559_v1, 16  ;;  %v16324_v10 = vld [vmem:[#allocation2 + $0xe8] sm:$0xff]  ;;  %v19562_v57 = vshll.u32 %v15667_v8, 16  ;;  %v16336_v58 = vrot.slane %v3727_v12, 7  ;;  %vm19564_vm10 = vmmov %vm19546_vm0 }
 0x2ed   : > { %v3633_v14 = vor.u32 %v19553_v36, %v19551_v27  ;;  %3832 = vst.msk [vmem:[#allocation2 + $0x120] sm:$0xf] %vm19554_vm4, %v3616_v42  ;;  %v3642_v16 = vor.u32 %v19557_v19, %v19555_v59  ;;  %v3644_v42 = vrot.slane %v19555_v59, 4  ;;  %v16341_v27 = vor.u32 %v3739_v41, %v16161_v32  ;;  %4973 = vmatmul.mubr.bf16.gmra.mxu1 %v11685_v5  ;;  %vm19565_vm2 = vmmov %vm19561_vm6 }
 0x2ee   : > { %v3651_v17 = vor.u32 %v19560_v38, %v19558_v40  ;;  %v3625_v45 = vsel %vm14375_vm12, %v3617_v24, %v3624_v6  ;;  %v3660_v52 = vor.u32 %v19562_v57, %v16108_v62  ;;  %v16344_v24 = vcombine.low %v4418_v25, %v16279_v21  ;;  %v3913_v6 = vpop.permute.xlu0 %3912  ;;  %11735 = vmatprep.mubr.msk.bf16.mxu1 %vm19565_vm2, %v11688_v55  ;;  %vm19566_vm1 = vmmov %vm19546_vm0 }
 0x2ef   : > { %v3634_v2 = vsel %vm14375_vm12, %v3626_v46, %v3633_v14  ;;  %3833 = vst.msk [vmem:[#allocation2 + $0x128] sm:$0xf] %vm19563_vm15, %v3625_v45  ;;  %v3653_v8 = vrot.slane %v19558_v40, 4  ;;  %v11687_v12 = vcombine.low %v16279_v21, %v16281_v37  ;;  %v16353_v46 = vcombine.high %v16281_v37, %v16324_v10  ;;  %vm19567_vm13 = vmmov %vm19546_vm0  ;;  %v16370_v14 = vld [vmem:[#allocation2 + $0xf0] sm:$0xff] }
 0x2f0   : > { %3834 = vst.msk [vmem:[#allocation2 + $0x130] sm:$0xf] %vm19564_vm10, %v3634_v2  ;;  %v3643_v41 = vsel %vm14375_vm12, %v3635_v29, %v3642_v16  ;;  %v3652_v32 = vsel %vm14375_vm12, %v3644_v42, %v3651_v17  ;;  %v3662_v21 = vrot.slane %v16108_v62, 4  ;;  %v19568_v5 = vshll.u32 %v15712_v23, 16  ;;  %vm19569_vm3 = vmmov %vm19546_vm0  ;;  %5439 = vmatmul.mubr.bf16.gmra.mxu0 %v16344_v24 }
 0x2f1   : > { %4027 = vst.msk [vmem:[#allocation2 + $0x108] sm:$0xf] %vm3996_vm5, %v3913_v6  ;;  %v3661_v25 = vsel %vm14375_vm12, %v3653_v8, %v3660_v52  ;;  %v3671_v36 = vrot.slane %v16157_v22, 4  ;;  %v19570_v55 = vshll.u32 %v15849_v50, 16  ;;  %v3680_v59 = vrot.slane %v16186_v3, 4  ;;  %vm19574_vm7 = vmmov %vm19546_vm0  ;;  %v4423_v52 = vld [vmem:[#allocation2 + $0xf8] sm:$0xff] }
 0x2f2   : > { %3835 = vst.msk [vmem:[#allocation2 + $0x138] sm:$0xf] %vm19566_vm1, %v3643_v41  ;;  %v3669_v20 = vor.u32 %v19568_v5, %v16157_v22  ;;  %v19571_v49 = vshll.u32 %v15869_v31, 16  ;;  %v3689_v19 = vrot.slane %v16190_v60, 4  ;;  %v19572_v22 = vshll.u32 %v15921_v51, 16  ;;  %vm19576_vm8 = vmmov %vm19546_vm0  ;;  %v3917_v6 = vpop.permute.xlu0 %3916 }
 0x2f3   : > { %3836 = vst.msk [vmem:[#allocation2 + $0x140] sm:$0xf] %vm19567_vm13, %v3652_v32  ;;  %v3678_v29 = vor.u32 %v19570_v55, %v16186_v3  ;;  %v3698_v40 = vrot.slane %v16214_v4, 4  ;;  %v19573_v50 = vshll.u32 %v15979_v7, 16  ;;  %v3915_v3 = vpop.permute.xlu1 %3914  ;;  %v3707_v38 = vrot.slane %v16229_v56, 4  ;;  %vm19577_vm9 = vmmov %vm19546_vm0 }
 0x2f4   : > { %3837 = vst.msk [vmem:[#allocation2 + $0x148] sm:$0xf] %vm19569_vm3, %v3661_v25  ;;  %v3687_v62 = vor.u32 %v19571_v49, %v16190_v60  ;;  %v3670_v23 = vsel %vm14375_vm12, %v3662_v21, %v3669_v20  ;;  %v3696_v16 = vor.u32 %v19572_v22, %v16214_v4  ;;  %v19575_v51 = vshll.u32 %v16015_v33, 16  ;;  %vm19578_vm11 = vmmov %vm19565_vm2 }
 0x2f5   : > { %v3705_v1 = vor.u32 %v19573_v50, %v16229_v56  ;;  %3838 = vst.msk [vmem:[#allocation2 + $0x150] sm:$0xf] %vm19574_vm7, %v3670_v23  ;;  %v3679_v31 = vsel %vm14375_vm12, %v3671_v36, %v3678_v29  ;;  %v3734_v4 = vrot.slane %v16336_v58, 4  ;;  %v11690_v7 = vcombine.high %v16324_v10, %v16370_v14  ;;  %11821 = vmatprep.mubr.msk.bf16.mxu0 %vm19578_vm11, %v16353_v46  ;;  %vm19579_vm14 = vmmov %vm19546_vm0 }
 0x2f6   : > { %v3688_v60 = vsel %vm14375_vm12, %v3680_v59, %v3687_v62  ;;  %v3714_v17 = vor.u32 %v19575_v51, %v16265_v9  ;;  %4028 = vst.msk [vmem:[#allocation2 + $0x110] sm:$0xf] %vm3996_vm5, %v3915_v3  ;;  %v3697_v56 = vsel %vm14375_vm12, %v3689_v19, %v3696_v16  ;;  %v3716_v2 = vrot.slane %v16265_v9, 4  ;;  %vm19580_vm4 = vmmov %vm19546_vm0  ;;  %4981 = vmatmul.mubr.bf16.gmra.mxu1 %v11687_v12  ;;  %v3921_v32 = vpop.permute.xlu0 %3920 }
 0x2f7   : > { %3839 = vst.msk [vmem:[#allocation2 + $0x158] sm:$0xf] %vm19576_vm8, %v3679_v31  ;;  %v3706_v33 = vsel %vm14375_vm12, %v3698_v40, %v3705_v1  ;;  %v3723_v42 = vor.u32 %v3721_v54, %v16291_v43  ;;  %v3725_v57 = vrot.slane %v16291_v43, 4  ;;  %v3732_v8 = vor.u32 %v3730_v0, %v16336_v58  ;;  %v3185_v54 = vld [vmem:[#allocation2 + $0x190] sm:$0x88]  ;;  %vm19582_vm13 = vmmov %vm19578_vm11  ;;  %v4424_v43 = vld [vmem:[#allocation2 + $0x100] sm:$0xff]  ;;  %v3919_v12 = vpop.permute.xlu1 %3918 }
 0x2f8   : > { %3840 = vst.msk [vmem:[#allocation2 + $0x160] sm:$0xf] %vm19577_vm9, %v3688_v60  ;;  %v3715_v45 = vsel %vm14375_vm12, %v3707_v38, %v3714_v17  ;;  %vm3178_vm6 = vcmask 1043459   ;;  %vm3181_vm15 = vcmask 523271   ;;  %vm3182_vm10 = vsmask.f32 7966  ;;  %11736 = vmatprep.mubr.msk.bf16.mxu1 %vm19582_vm13, %v11690_v7  ;;  %vm19583_vm3 = vmmov %vm19546_vm0 }
 0x2f9   : > { %3841 = vst.msk [vmem:[#allocation2 + $0x168] sm:$0xf] %vm19546_vm0, %v3697_v56  ;;  %v4284_v9 = vrot.slane %v3736_v13, 4  ;;  %v3724_v47 = vsel %vm14375_vm12, %v3716_v2, %v3723_v42  ;;  %vm19581_vm2 = vsmask.f32 7950  ;;  %v3742_v11 = vsel %vm14375_vm12, %v3734_v4, %v16341_v27  ;;  %vm3183_vm7 = vmand %vm3181_vm15, %vm3182_vm10  ;;  %v4425_v41 = vld [vmem:[#allocation2 + $0x108] sm:$0xff] }
 0x2fa   : > { %3842 = vst.msk [vmem:[#allocation2 + $0x170] sm:$0xf] %vm19579_vm14, %v3706_v33  ;;  %vm3180_vm1 = vmand %vm3178_vm6, %vm19581_vm2  ;;  %v16436_v0 = vcombine.low %v16281_v37, %v16324_v10  ;;  %v3733_v26 = vsel %vm14375_vm12, %v3725_v57, %v3732_v8  ;;  %v16443_v13 = vcombine.high %v16370_v14, %v4423_v52  ;;  %v11689_v37 = vcombine.low %v16324_v10, %v16370_v14  ;;  %v3925_v59 = vpop.permute.xlu0 %3924 }
 0x2fb   : > { %3843 = vst.msk [vmem:[#allocation2 + $0x178] sm:$0xf] %vm19580_vm4, %v3715_v45  ;;  %vm19584_vm8 = vmmov %vm19546_vm0  ;;  %v4285_v27 = vor.u32 %v4284_v9, %v16165_v35  ;;  %v11692_v63 = vcombine.high %v4423_v52, %v4424_v43  ;;  %v16456_v35 = vcombine.low %v16370_v14, %v4423_v52  ;;  %vm19587_vm14 = vsmask.f32 3328  ;;  %v3923_v36 = vpop.permute.xlu1 %3922 }
 0x2fc   : > { %4029 = vst.msk [vmem:[#allocation2 + $0x118] sm:$0xf] %vm3996_vm5, %v3917_v6  ;;  %vm3184_vm9 = vmor %vm3183_vm7, %vm3180_vm1  ;;  %5447 = vmatmul.mubr.bf16.gmra.mxu0 %v16436_v0  ;;  %v16461_v10 = vcombine.high %v4424_v43, %v4425_v41  ;;  %v11691_v20 = vcombine.low %v4423_v52, %v4424_v43  ;;  %v16468_v49 = vcombine.low %v4424_v43, %v4425_v41 }
 0x2fd   : > { %3844 = vst.msk [vmem:[#allocation2 + $0x180] sm:$0xf] %vm19583_vm3, %v3724_v47  ;;  %v3186_v58 = vsel %vm3184_vm9, 0, %v3185_v54  ;;  %vm19585_vm12 = vmmov %vm19546_vm0  ;;  %11822 = vmatprep.mubr.msk.bf16.mxu0 %vm19578_vm11, %v16443_v13  ;;  %v4286_v25 = vrot.slane %v4285_v27, 4  ;;  %v4426_v21 = vld [vmem:[#allocation2 + $0x110] sm:$0xff] }
 0x2fe   : > { %3845 = vst.msk [vmem:[#allocation2 + $0x188] sm:$0xf] %vm19584_vm8, %v3733_v26  ;;  %3187 = vst [vmem:[#allocation2 + $0x190] sm:$0x88] %v3186_v58  ;;  %4989 = vmatmul.mubr.bf16.gmra.mxu1 %v11689_v37  ;;  %v11694_v29 = vcombine.high %v4425_v41, %v4426_v21  ;;  %v11693_v23 = vcombine.low %v4425_v41, %v4426_v21 }
 0x2ff   : > { %4030 = vst.msk [vmem:[#allocation2 + $0x120] sm:$0xf] %vm3996_vm5, %v3919_v12  ;;  %4031 = vst.msk [vmem:[#allocation2 + $0x128] sm:$0xf] %vm3996_vm5, %v3921_v32  ;;  %v3927_v22 = vpop.permute.xlu1 %3926 }
 0x300   : > { %3846 = vst.msk [vmem:[#allocation2 + $0x190] sm:$0xf] %vm19585_vm12, %v3742_v11  ;;  %vm19586_vm0 = vmmov %vm19578_vm11 }
 0x301   : > { %11737 = vmatprep.mubr.msk.bf16.mxu1 %vm19586_vm0, %v11692_v63  ;;  %vm19588_vm4 = vmmov %vm19583_vm3  ;;  %4032 = vst.msk [vmem:[#allocation2 + $0x130] sm:$0xf] %vm3996_vm5, %v3923_v36 }
 0x302   : > { %vm4388_vm6 = vmand %vm19588_vm4, %vm19587_vm14  ;;  %4033 = vst.msk [vmem:[#allocation2 + $0x138] sm:$0xf] %vm3996_vm5, %v3925_v59 }
 0x303   : > { %vm19589_vm15 = vmmov %vm19586_vm0  ;;  %v4427_v14 = vld [vmem:[#allocation2 + $0x118] sm:$0xff]  ;;  %4034 = vst.msk [vmem:[#allocation2 + $0x140] sm:$0xf] %vm3996_vm5, %v3927_v22  ;;  %v3929_v50 = vpop.permute.xlu0 %3928 }
 0x304   : > { %5455 = vmatmul.mubr.bf16.gmra.mxu0 %v16456_v35  ;;  %vm19590_vm10 = vmmov %vm19586_vm0  ;;  %v16471_v62 = vcombine.high %v4426_v21, %v4427_v14  ;;  %4035 = vst.msk [vmem:[#allocation2 + $0x148] sm:$0xf] %vm3996_vm5, %v3929_v50  ;;  %v16478_v1 = vcombine.low %v4426_v21, %v4427_v14 }
 0x305   : > { %v4389_v5 = vld [vmem:[#allocation2 + $0x194] sm:$0xf]  ;;  %11823 = vmatprep.mubr.msk.bf16.mxu0 %vm19589_vm15, %v16461_v10  ;;  %vm19591_vm2 = vmmov %vm19586_vm0 }
 0x306   : > { %v4390_v55 = vsel %vm4388_vm6, %v4286_v25, %v4389_v5  ;;  %4997 = vmatmul.mubr.bf16.gmra.mxu1 %v11691_v20  ;;  %v4428_v19 = vld [vmem:[#allocation2 + $0x120] sm:$0xff]  ;;  %v4429_v40 = vld [vmem:[#allocation2 + $0x128] sm:$0xff]  ;;  %vm19592_vm1 = vmmov %vm19586_vm0 }
 0x307   : > { %4391 = vst [vmem:[#allocation2 + $0x194] sm:$0xf] %v4390_v55  ;;  %11738 = vmatprep.mubr.msk.bf16.mxu1 %vm19590_vm10, %v11694_v29  ;;  %v11696_v16 = vcombine.high %v4427_v14, %v4428_v19  ;;  %v16481_v3 = vcombine.high %v4428_v19, %v4429_v40  ;;  %v11695_v60 = vcombine.low %v4427_v14, %v4428_v19  ;;  %vm19593_vm13 = vmmov %vm19586_vm0 }
 0x308   : > { %v4430_v31 = vld [vmem:[#allocation2 + $0x130] sm:$0xff]  ;;  %v3931_v38 = vpop.permute.xlu1 %3930  ;;  %v16487_v4 = vcombine.low %v4428_v19, %v4429_v40  ;;  %vm19594_vm3 = vmmov %vm19586_vm0 }
 0x309   : > { %v11698_v51 = vcombine.high %v4429_v40, %v4430_v31  ;;  %4036 = vst.msk [vmem:[#allocation2 + $0x150] sm:$0xf] %vm3996_vm5, %v3931_v38  ;;  %v4431_v17 = vld [vmem:[#allocation2 + $0x138] sm:$0xff]  ;;  %v11697_v33 = vcombine.low %v4429_v40, %v4430_v31  ;;  %vm19595_vm7 = vmmov %vm19586_vm0 }
 0x30a   : > { %v16490_v7 = vcombine.high %v4430_v31, %v4431_v17  ;;  %v4432_v56 = vld [vmem:[#allocation2 + $0x140] sm:$0xff]  ;;  %v16495_v42 = vcombine.low %v4430_v31, %v4431_v17  ;;  %vm19596_vm8 = vmmov %vm19586_vm0 }
 0x30b   : > { %v11700_v45 = vcombine.high %v4431_v17, %v4432_v56  ;;  %v4433_v2 = vld [vmem:[#allocation2 + $0x148] sm:$0xff]  ;;  %v11699_v8 = vcombine.low %v4431_v17, %v4432_v56  ;;  %vm19597_vm9 = vmmov %vm19586_vm0 }
 0x30c   : > { %5463 = vmatmul.mubr.bf16.gmra.mxu0 %v16468_v49  ;;  %v16498_v57 = vcombine.high %v4432_v56, %v4433_v2  ;;  %v16505_v54 = vcombine.low %v4432_v56, %v4433_v2  ;;  %vm19598_vm12 = vmmov %vm19586_vm0 }
 0x30d   : > { %11824 = vmatprep.mubr.msk.bf16.mxu0 %vm19591_vm2, %v16471_v62  ;;  %vm19599_vm11 = vmmov %vm19586_vm0 }
 0x30e   : > { %5005 = vmatmul.mubr.bf16.gmra.mxu1 %v11693_v23  ;;  %vm19600_vm14 = vmmov %vm19586_vm0 }
 0x30f   : > { %11739 = vmatprep.mubr.msk.bf16.mxu1 %vm19592_vm1, %v11696_v16  ;;  %vm19601_vm4 = vmmov %vm19586_vm0 }
 0x310   : > { %v4434_v52 = vld [vmem:[#allocation2 + $0x150] sm:$0xff]  ;;  %vm19602_vm6 = vmmov %vm19586_vm0 }
 0x311   : > { %v11702_v9 = vcombine.high %v4433_v2, %v4434_v52  ;;  %v11701_v11 = vcombine.low %v4433_v2, %v4434_v52  ;;  %vm19603_vm15 = vmmov %vm19586_vm0 }
 0x312   : > { %vm19605_vm10 = vmmov %vm19586_vm0 }
 0x313   : > { %vm19606_vm2 = vmmov %vm19586_vm0 }
 0x314   : > { %5471 = vmatmul.mubr.bf16.gmra.mxu0 %v16478_v1  ;;  %vm19607_vm1 = vmmov %vm19586_vm0 }
 0x315   : > { %11825 = vmatprep.mubr.msk.bf16.mxu0 %vm19593_vm13, %v16481_v3  ;;  %vm19608_vm13 = vmmov %vm19586_vm0 }
 0x316   : > { %5013 = vmatmul.mubr.bf16.gmra.mxu1 %v11695_v60 }
 0x317   : > { %11740 = vmatprep.mubr.msk.bf16.mxu1 %vm19594_vm3, %v11698_v51  ;;  %vm19610_vm3 = vmmov %vm19586_vm0 }
 0x31a   : > { %v3933_v6 = vpop.permute.xlu0 %3932 }
 0x31b   : > { %4037 = vst.msk [vmem:[#allocation2 + $0x158] sm:$0xf] %vm3996_vm5, %v3933_v6 }
 0x31c   : > { %5479 = vmatmul.mubr.bf16.gmra.mxu0 %v16487_v4 }
 0x31d   : > { %11826 = vmatprep.mubr.msk.bf16.mxu0 %vm19595_vm7, %v16490_v7  ;;  %v3935_v47 = vpop.permute.xlu1 %3934  ;;  %vm19613_vm7 = vmmov %vm19586_vm0 }
 0x31e   : > { %5021 = vmatmul.mubr.bf16.gmra.mxu1 %v11697_v33  ;;  %4038 = vst.msk [vmem:[#allocation2 + $0x160] sm:$0xf] %vm3996_vm5, %v3935_v47 }
 0x31f   : > { %11741 = vmatprep.mubr.msk.bf16.mxu1 %vm19596_vm8, %v11700_v45  ;;  %vm19614_vm8 = vmmov %vm19586_vm0 }
 0x322   : > { %v4435_v26 = vld [vmem:[#allocation2 + $0x158] sm:$0xff] }
 0x323   : > { %v16509_v43 = vcombine.high %v4434_v52, %v4435_v26  ;;  %v16514_v12 = vcombine.low %v4434_v52, %v4435_v26 }
 0x324   : > { %5487 = vmatmul.mubr.bf16.gmra.mxu0 %v16495_v42 }
 0x325   : > { %11827 = vmatprep.mubr.msk.bf16.mxu0 %vm19597_vm9, %v16498_v57  ;;  %v4436_v58 = vld [vmem:[#allocation2 + $0x160] sm:$0xff]  ;;  %vm19615_vm9 = vmmov %vm19586_vm0 }
 0x326   : > { %5029 = vmatmul.mubr.bf16.gmra.mxu1 %v11699_v8  ;;  %v11704_v37 = vcombine.high %v4435_v26, %v4436_v58  ;;  %v11703_v63 = vcombine.low %v4435_v26, %v4436_v58 }
 0x327   : > { %11742 = vmatprep.mubr.msk.bf16.mxu1 %vm19598_vm12, %v11702_v9  ;;  %v3937_v27 = vpop.permute.xlu0 %3936  ;;  %vm19616_vm12 = vmmov %vm19586_vm0 }
 0x328   : > { %4039 = vst.msk [vmem:[#allocation2 + $0x168] sm:$0xf] %vm3996_vm5, %v3937_v27 }
 0x32c   : > { %5495 = vmatmul.mubr.bf16.gmra.mxu0 %v16505_v54 }
 0x32d   : > { %11828 = vmatprep.mubr.msk.bf16.mxu0 %vm19599_vm11, %v16509_v43  ;;  %vm19617_vm11 = vmmov %vm19586_vm0 }
 0x32e   : > { %5037 = vmatmul.mubr.bf16.gmra.mxu1 %v11701_v11  ;;  %v3939_v41 = vpop.permute.xlu1 %3938 }
 0x32f   : > { %11743 = vmatprep.mubr.msk.bf16.mxu1 %vm19586_vm0, %v11704_v37  ;;  %v4437_v32 = vld [vmem:[#allocation2 + $0x168] sm:$0xff]  ;;  %4040 = vst.msk [vmem:[#allocation2 + $0x170] sm:$0xf] %vm3996_vm5, %v3939_v41 }
 0x330   : > { %v16519_v25 = vcombine.high %v4436_v58, %v4437_v32  ;;  %v16521_v21 = vcombine.low %v4436_v58, %v4437_v32 }
 0x334   : > { %5503 = vmatmul.mubr.bf16.gmra.mxu0 %v16514_v12 }
 0x335   : > { %11829 = vmatprep.mubr.msk.bf16.mxu0 %vm19600_vm14, %v16519_v25  ;;  %vm19618_vm14 = vmmov %vm19586_vm0 }
 0x336   : > { %5045 = vmatmul.mubr.bf16.gmra.mxu1 %v11703_v63  ;;  %v3941_v5 = vpop.permute.xlu0 %3940  ;;  %v4438_v20 = vld [vmem:[#allocation2 + $0x170] sm:$0xff]  ;;  %v5344_v29 = vpop.f32.mrf.mxu0  ;;  %v12332_v63 = vld [vmem:[#allocation2 + $0x84] ss:$8 sps:$4 sm:$0xff]  }
 0x337   : > { %4041 = vst.msk [vmem:[#allocation2 + $0x178] sm:$0xf] %vm3996_vm5, %v3941_v5  ;;  %v11706_v36 = vcombine.high %v4437_v32, %v4438_v20  ;;  %v11705_v55 = vcombine.low %v4437_v32, %v4438_v20 }
 0x338   : > { %v5346_v59 = vpop.f32.mrf.mxu0 }
 0x339   : > { %11744 = vmatprep.mubr.msk.bf16.mxu1 %vm19601_vm4, %v11706_v36  ;;  %v16533_v16 = vpop.f32.mrf.mxu1  ;;  %vm19619_vm4 = vmmov %vm19586_vm0 }
 0x33a   : > { %v5347_v40 = vpop.f32.mrf.mxu0 }
 0x33b   : > { %v3943_v14 = vpop.permute.xlu1 %3942  ;;  %v4888_v50 = vpop.f32.mrf.mxu1 }
 0x33c   : > { %5511 = vmatmul.mubr.bf16.gmra.mxu0 %v16521_v21  ;;  %4042 = vst.msk [vmem:[#allocation2 + $0x180] sm:$0xf] %vm3996_vm5, %v3943_v14  ;;  %v5349_v31 = vpop.f32.mrf.mxu0 }
 0x33d   : > { %v16539_v38 = vpop.f32.mrf.mxu1 }
 0x33e   : > { %5053 = vmatmul.mubr.bf16.gmra.mxu1 %v11705_v55  ;;  %v4439_v19 = vld [vmem:[#allocation2 + $0x178] sm:$0xff] }
 0x33f   : > { %v16529_v23 = vcombine.high %v4438_v20, %v4439_v19  ;;  %v16531_v22 = vcombine.low %v4438_v20, %v4439_v19  ;;  %v5352_v51 = vpop.f32.mrf.mxu0  ;;  %v4891_v45 = vpop.f32.mrf.mxu1 }
 0x341   : > { %11830 = vmatprep.mubr.msk.bf16.mxu0 %vm19602_vm6, %v16529_v23  ;;  %v5354_v2 = vpop.f32.mrf.mxu0  ;;  %vm19620_vm6 = vmmov %vm19586_vm0 }
 0x342   : > { %v3945_v60 = vpop.permute.xlu0 %3944  ;;  %v4894_v52 = vpop.f32.mrf.mxu1 }
 0x343   : > { %4043 = vst.msk [vmem:[#allocation2 + $0x188] sm:$0xf] %vm3996_vm5, %v3945_v60  ;;  %v16541_v17 = vld [vmem:[#allocation2 + $0x180] sm:$0xff]  ;;  %v5355_v6 = vpop.f32.mrf.mxu0  ;;  %v16546_v9 = vadd.f32 %v5344_v29, %v4894_v52 }
 0x344   : > { %5519 = vmatmul.mubr.bf16.gmra.mxu0 %v16531_v22  ;;  %v11708_v56 = vcombine.high %v4439_v19, %v16541_v17  ;;  %v11707_v33 = vcombine.low %v4439_v19, %v16541_v17  ;;  %v4896_v47 = vpop.f32.mrf.mxu1 }
 0x345   : > { %v5357_v11 = vpop.f32.mrf.mxu0  ;;  %v12317_v47 = vld [vmem:[#allocation2 + $0x30] ss:$8 sps:$4 sm:$0xff]  }
 0x346   : > { %11745 = vmatprep.mubr.msk.bf16.mxu1 %vm19603_vm15, %v11708_v56  ;;  %v4897_v58 = vpop.f32.mrf.mxu1  ;;  %vm19621_vm15 = vmmov %vm19586_vm0 }
 0x347   : > { %5061 = vmatmul.mubr.bf16.gmra.mxu1 %v11707_v33  ;;  %v5360_v27 = vpop.f32.mrf.mxu0  ;;  %v16555_v41 = vadd.f32 %v5347_v40, %v4897_v58  ;;  %v12319_v40 = vld [vmem:[#allocation2 + $0x34] ss:$8 sps:$4 sm:$0xff]   ;;  %v12320_v58 = vld [vmem:[#allocation2 + $0x44] ss:$8 sps:$4 sm:$0xff]  }
 0x348   : > { %v3947_v8 = vpop.permute.xlu1 %3946  ;;  %v4899_v32 = vpop.f32.mrf.mxu1 }
 0x349   : > { %4044 = vst.msk [vmem:[#allocation2 + $0x190] sm:$0xf] %vm3996_vm5, %v3947_v8  ;;  %v5362_v5 = vpop.f32.mrf.mxu0  ;;  %vm19604_vm5 = vmmov %vm19586_vm0 }
 0x34a   : > { %v16549_v26 = vld [vmem:[#allocation2 + $0x188] sm:$0xff] }
 0x34b   : > { %v4902_v20 = vpop.f32.mrf.mxu1  ;;  %v5363_v36 = vpop.f32.mrf.mxu0 }
 0x34c   : > { %v16559_v29 = vadd.f32 %v5352_v51, %v4902_v20 }
 0x34d   : > { %v4904_v19 = vpop.f32.mrf.mxu1  ;;  %v5365_v50 = vpop.f32.mrf.mxu0 }
 0x34f   : > { %v4905_v31 = vpop.f32.mrf.mxu1  ;;  %v5368_v60 = vpop.f32.mrf.mxu0 }
 0x350   : > { %v16557_v55 = vld [vmem:[#allocation2 + $0x190] sm:$0xff]  ;;  %v16566_v56 = vadd.f32 %v5355_v6, %v4905_v31 }
 0x351   : > { %v11710_v14 = vcombine.high %v16549_v26, %v16557_v55  ;;  %v11709_v59 = vcombine.low %v16549_v26, %v16557_v55  ;;  %v4907_v51 = vpop.f32.mrf.mxu1  ;;  %v5370_v33 = vpop.f32.mrf.mxu0 }
 0x352   : > { %v12323_v51 = vld [vmem:[#allocation2 + $0x54] ss:$8 sps:$4 sm:$0xff]  }
 0x353   : > { %11746 = vmatprep.mubr.msk.bf16.mxu1 %vm19604_vm5, %v11710_v14  ;;  %v5371_v45 = vpop.f32.mrf.mxu0  ;;  %vm19622_vm5 = vmmov %vm19586_vm0 }
 0x354   : > { %5069 = vmatmul.mubr.bf16.gmra.mxu1 %v11709_v59  ;;  %v4910_v2 = vpop.f32.mrf.mxu1 }
 0x355   : > { %11915 = vmatprep.mubr.msk.bf16.mxu1 %vm19605_vm10, %v12319_v40  ;;  %v16569_v52 = vadd.f32 %v5360_v27, %v4910_v2  ;;  %v5373_v8 = vpop.f32.mrf.mxu0  ;;  %v12322_v27 = vld [vmem:[#allocation2 + $0x40] ss:$8 sps:$4 sm:$0xff]   ;;  %vm19623_vm10 = vmmov %vm19586_vm0 }
 0x356   : > { %v4912_v11 = vpop.f32.mrf.mxu1 }
 0x357   : > { %v5376_v32 = vpop.f32.mrf.mxu0 }
 0x358   : > { %v4913_v5 = vpop.f32.mrf.mxu1 }
 0x359   : > { %v16572_v20 = vadd.f32 %v5363_v36, %v4913_v5  ;;  %v5378_v6 = vpop.f32.mrf.mxu0 }
 0x35a   : > { %v4915_v14 = vpop.f32.mrf.mxu1 }
 0x35b   : > { %v5379_v59 = vpop.f32.mrf.mxu0 }
 0x35c   : > { %5993 = vmatmul.mubr.bf16.vlgmr.msra.gmra.mxu1 %v12317_v47  ;;  %v4918_v19 = vpop.f32.mrf.mxu1 }
 0x35d   : > { %11916 = vmatprep.mubr.msk.bf16.mxu1 %vm19606_vm2, %v12320_v58  ;;  %v16574_v50 = vadd.f32 %v5368_v60, %v4918_v19  ;;  %v5381_v40 = vpop.f32.mrf.mxu0  ;;  %v12325_v60 = vld [vmem:[#allocation2 + $0x50] ss:$8 sps:$4 sm:$0xff]   ;;  %v12326_v19 = vld [vmem:[#allocation2 + $0x64] ss:$8 sps:$4 sm:$0xff]   ;;  %vm19624_vm2 = vmmov %vm19586_vm0 }
 0x35e   : > { %v4920_v31 = vpop.f32.mrf.mxu1 }
 0x360   : > { %v5384_v33 = vpop.f32.mrf.mxu0  ;;  %v4921_v2 = vpop.f32.mrf.mxu1 }
 0x361   : > { %v16577_v8 = vadd.f32 %v5371_v45, %v4921_v2  ;;  %v12328_v2 = vld [vmem:[#allocation2 + $0x60] ss:$8 sps:$4 sm:$0xff]  }
 0x362   : > { %v5386_v47 = vpop.f32.mrf.mxu0  ;;  %v4923_v36 = vpop.f32.mrf.mxu1 }
 0x363   : > { %v12329_v47 = vld [vmem:[#allocation2 + $0x74] ss:$8 sps:$4 sm:$0xff]  }
 0x364   : > { %6001 = vmatmul.mubr.bf16.gmra.mxu1 %v12322_v27  ;;  %v5387_v11 = vpop.f32.mrf.mxu0 }
 0x365   : > { %11917 = vmatprep.mubr.msk.bf16.mxu1 %vm19607_vm1, %v12323_v51  ;;  %vm19625_vm1 = vmmov %vm19586_vm0 }
 0x366   : > { %v4926_v58 = vpop.f32.mrf.mxu1  ;;  %v5389_v6 = vpop.f32.mrf.mxu0 }
 0x367   : > { %v16579_v5 = vadd.f32 %v5376_v32, %v4926_v58 }
 0x368   : > { %v4928_v14 = vpop.f32.mrf.mxu1 }
 0x36a   : > { %v4929_v40 = vpop.f32.mrf.mxu1 }
 0x36b   : > { %v16582_v27 = vadd.f32 %v5379_v59, %v4929_v40 }
 0x36c   : > { %6009 = vmatmul.mubr.bf16.gmra.mxu1 %v12325_v60  ;;  %v4931_v31 = vpop.f32.mrf.mxu1  ;;  %v12331_v60 = vld [vmem:[#allocation2 + $0x70] ss:$8 sps:$4 sm:$0xff]  }
 0x36d   : > { %11918 = vmatprep.mubr.msk.bf16.mxu1 %vm19608_vm13, %v12326_v19  ;;  %19609 = vst [vmem:[#allocation51_spill] sm:$0xff] %v16582_v27  ;;  %vm19626_vm13 = vmmov %vm19586_vm0 }
 0x36e   : > { %v5392_v51 = vpop.f32.mrf.mxu0 }
 0x370   : > { %v5394_v45 = vpop.f32.mrf.mxu0 }
 0x372   : > { %v5395_v36 = vpop.f32.mrf.mxu0 }
 0x374   : > { %6017 = vmatmul.mubr.bf16.gmra.mxu1 %v12328_v2  ;;  %v5397_v32 = vpop.f32.mrf.mxu0  ;;  %v12334_v2 = vld [vmem:[#allocation2 + $0x80] ss:$8 sps:$4 sm:$0xff]  }
 0x375   : > { %11919 = vmatprep.mubr.msk.bf16.mxu1 %vm19610_vm3, %v12329_v47  ;;  %v4934_v58 = vpop.f32.mrf.mxu1  ;;  %v12536_v47 = vld [vmem:[#allocation2 + $0x98] sm:$0xff]  ;;  %vm19627_vm3 = vmmov %vm19586_vm0 }
 0x376   : > { %v16585_v6 = vadd.f32 %v5384_v33, %v4934_v58  ;;  %v11868_v32 = vcombine.high %v5539_v18, %v12536_v47 }
 0x377   : > { %v4936_v14 = vpop.f32.mrf.mxu1 }
 0x378   : > { %19611 = vst [vmem:[#allocation66_spill] sm:$0xff] %v16585_v6 }
 0x379   : > { %v4937_v37 = vpop.f32.mrf.mxu1  ;;  %v5400_v19 = vpop.f32.mrf.mxu0 }
 0x37a   : > { %v16587_v59 = vadd.f32 %v5387_v11, %v4937_v37 }
 0x37b   : > { %v4939_v40 = vpop.f32.mrf.mxu1  ;;  %v5402_v31 = vpop.f32.mrf.mxu0 }
 0x37c   : > { %6025 = vmatmul.mubr.bf16.gmra.mxu1 %v12331_v60  ;;  %19612 = vst [vmem:[#allocation67_spill] sm:$0xff] %v16587_v59  ;;  %v11867_v60 = vcombine.low %v5539_v18, %v12536_v47 }
 0x37d   : > { %11920 = vmatprep.mubr.msk.bf16.mxu1 %vm19613_vm7, %v12332_v63  ;;  %v5403_v45 = vpop.f32.mrf.mxu0  ;;  %vm19629_vm7 = vmmov %vm19586_vm0 }
 0x37f   : > { %v5405_v33 = vpop.f32.mrf.mxu0 }
 0x381   : > { %v4942_v27 = vpop.f32.mrf.mxu1 }
 0x382   : > { %v16590_v58 = vadd.f32 %v5392_v51, %v4942_v27 }
 0x383   : > { %v4944_v14 = vpop.f32.mrf.mxu1 }
 0x384   : > { %6033 = vmatmul.mubr.bf16.gmra.mxu1 %v12334_v2 }
 0x385   : > { %11921 = vmatprep.mubr.msk.bf16.mxu1 %vm19614_vm8, %v11868_v32  ;;  %v4945_v37 = vpop.f32.mrf.mxu1  ;;  %vm19631_vm8 = vmmov %vm19586_vm0 }
 0x386   : > { %v16593_v11 = vadd.f32 %v5395_v36, %v4945_v37 }
 0x387   : > { %v4947_v63 = vpop.f32.mrf.mxu1 }
 0x38c   : > { %6041 = vmatmul.mubr.bf16.gmra.mxu1 %v11867_v60  ;;  %v5408_v40 = vpop.f32.mrf.mxu0 }
 0x38d   : > { %11922 = vmatprep.mubr.msk.bf16.mxu1 %vm19615_vm9, %v16096_v44  ;;  %vm19632_vm9 = vmmov %vm19586_vm0 }
 0x38e   : > { %v5410_v31 = vpop.f32.mrf.mxu0 }
 0x38f   : > { %v4950_v59 = vpop.f32.mrf.mxu1 }
 0x390   : > { %v16597_v6 = vadd.f32 %v5400_v19, %v4950_v59  ;;  %v5411_v2 = vpop.f32.mrf.mxu0 }
 0x391   : > { %v4952_v27 = vpop.f32.mrf.mxu1 }
 0x392   : > { %v5413_v51 = vpop.f32.mrf.mxu0 }
 0x393   : > { %v4953_v32 = vpop.f32.mrf.mxu1 }
 0x394   : > { %6049 = vmatmul.mubr.bf16.gmra.mxu1 %v16104_v48  ;;  %v16602_v36 = vadd.f32 %v5403_v45, %v4953_v32  ;;  %v5416_v18 = vpop.f32.mrf.mxu0 }
 0x395   : > { %11923 = vmatprep.mubr.msk.bf16.mxu1 %vm19616_vm12, %v16175_v28  ;;  %v4955_v47 = vpop.f32.mrf.mxu1  ;;  %vm19633_vm12 = vmmov %vm19586_vm0 }
 0x396   : > { %v5418_v33 = vpop.f32.mrf.mxu0 }
 0x398   : > { %v4958_v44 = vpop.f32.mrf.mxu1  ;;  %v5419_v37 = vpop.f32.mrf.mxu0 }
 0x399   : > { %v16604_v14 = vadd.f32 %v5408_v40, %v4958_v44 }
 0x39a   : > { %v4960_v59 = vpop.f32.mrf.mxu1  ;;  %v5421_v19 = vpop.f32.mrf.mxu0 }
 0x39c   : > { %6057 = vmatmul.mubr.bf16.gmra.mxu1 %v16178_v34  ;;  %v4961_v63 = vpop.f32.mrf.mxu1 }
 0x39d   : > { %11924 = vmatprep.mubr.msk.bf16.mxu1 %vm19617_vm11, %v16243_v15  ;;  %v16609_v48 = vadd.f32 %v5411_v2, %v4961_v63  ;;  %v5424_v28 = vpop.f32.mrf.mxu0  ;;  %vm19634_vm11 = vmmov %vm19586_vm0 }
 0x39e   : > { %v4963_v45 = vpop.f32.mrf.mxu1 }
 0x39f   : > { %v5426_v60 = vpop.f32.mrf.mxu0 }
 0x3a1   : > { %v5427_v51 = vpop.f32.mrf.mxu0 }
 0x3a3   : > { %v5429_v32 = vpop.f32.mrf.mxu0 }
 0x3a4   : > { %6065 = vmatmul.mubr.bf16.gmra.mxu1 %v16270_v39 }
 0x3a5   : > { %v4966_v31 = vpop.f32.mrf.mxu1  ;;  %11925 = vmatprep.mubr.msk.bf16.mxu1 %vm19586_vm0, %v16295_v30 }
 0x3a6   : > { %v16611_v27 = vadd.f32 %v5416_v18, %v4966_v31 }
 0x3a7   : > { %v4968_v40 = vpop.f32.mrf.mxu1 }
 0x3a8   : > { %v5432_v15 = vpop.f32.mrf.mxu0 }
 0x3a9   : > { %v4969_v47 = vpop.f32.mrf.mxu1 }
 0x3aa   : > { %v16616_v34 = vadd.f32 %v5419_v37, %v4969_v47  ;;  %v5434_v33 = vpop.f32.mrf.mxu0 }
 0x3ab   : > { %v4971_v2 = vpop.f32.mrf.mxu1 }
 0x3ac   : > { %v5435_v19 = vpop.f32.mrf.mxu0  ;;  %6073 = vmatmul.mubr.bf16.gmra.mxu1 %v16344_v24 }
 0x3ad   : > { %v4974_v44 = vpop.f32.mrf.mxu1  ;;  %11926 = vmatprep.mubr.msk.bf16.mxu1 %vm19618_vm14, %v16353_v46  ;;  %vm19635_vm14 = vmmov %vm19586_vm0 }
 0x3ae   : > { %v16618_v59 = vadd.f32 %v5424_v28, %v4974_v44  ;;  %v5437_v63 = vpop.f32.mrf.mxu0 }
 0x3af   : > { %v4976_v18 = vpop.f32.mrf.mxu1 }
 0x3b0   : > { %v5440_v30 = vpop.f32.mrf.mxu0 }
 0x3b1   : > { %v4977_v45 = vpop.f32.mrf.mxu1 }
 0x3b2   : > { %v16623_v39 = vadd.f32 %v5427_v51, %v4977_v45  ;;  %v5442_v60 = vpop.f32.mrf.mxu0 }
 0x3b3   : > { %v4979_v37 = vpop.f32.mrf.mxu1 }
 0x3b4   : > { %v5443_v32 = vpop.f32.mrf.mxu0  ;;  %6081 = vmatmul.mubr.bf16.gmra.mxu1 %v16436_v0 }
 0x3b5   : > { %11927 = vmatprep.mubr.msk.bf16.mxu1 %vm19619_vm4, %v16443_v13  ;;  %vm19636_vm4 = vmmov %vm19586_vm0 }
 0x3b6   : > { %v4982_v31 = vpop.f32.mrf.mxu1  ;;  %v5445_v47 = vpop.f32.mrf.mxu0 }
 0x3b7   : > { %v16625_v40 = vadd.f32 %v5432_v15, %v4982_v31 }
 0x3b8   : > { %v4984_v28 = vpop.f32.mrf.mxu1 }
 0x3ba   : > { %v4985_v2 = vpop.f32.mrf.mxu1 }
 0x3bb   : > { %v16630_v24 = vadd.f32 %v5435_v19, %v4985_v2 }
 0x3bc   : > { %v5448_v46 = vpop.f32.mrf.mxu0  ;;  %v4987_v51 = vpop.f32.mrf.mxu1  ;;  %6089 = vmatmul.mubr.bf16.gmra.mxu1 %v16456_v35 }
 0x3bd   : > { %11928 = vmatprep.mubr.msk.bf16.mxu1 %vm19620_vm6, %v16461_v10  ;;  %vm19637_vm6 = vmmov %vm19586_vm0 }
 0x3be   : > { %v5450_v33 = vpop.f32.mrf.mxu0  ;;  %v4990_v44 = vpop.f32.mrf.mxu1 }
 0x3bf   : > { %v16632_v18 = vadd.f32 %v5440_v30, %v4990_v44 }
 0x3c0   : > { %v5451_v63 = vpop.f32.mrf.mxu0  ;;  %v4992_v15 = vpop.f32.mrf.mxu1 }
 0x3c2   : > { %v5453_v45 = vpop.f32.mrf.mxu0  ;;  %v4993_v37 = vpop.f32.mrf.mxu1 }
 0x3c3   : > { %v16637_v0 = vadd.f32 %v5443_v32, %v4993_v37 }
 0x3c4   : > { %v5456_v13 = vpop.f32.mrf.mxu0  ;;  %v4995_v19 = vpop.f32.mrf.mxu1  ;;  %6097 = vmatmul.mubr.bf16.gmra.mxu1 %v16468_v49 }
 0x3c5   : > { %11929 = vmatprep.mubr.msk.bf16.mxu1 %vm19621_vm15, %v16471_v62  ;;  %vm19638_vm15 = vmmov %vm19586_vm0 }
 0x3c6   : > { %v5458_v60 = vpop.f32.mrf.mxu0  ;;  %v4998_v31 = vpop.f32.mrf.mxu1 }
 0x3c7   : > { %v16639_v28 = vadd.f32 %v5448_v46, %v4998_v31 }
 0x3c8   : > { %v5459_v47 = vpop.f32.mrf.mxu0  ;;  %v5000_v30 = vpop.f32.mrf.mxu1 }
 0x3ca   : > { %v5461_v2 = vpop.f32.mrf.mxu0  ;;  %v5001_v51 = vpop.f32.mrf.mxu1 }
 0x3cb   : > { %v16644_v35 = vadd.f32 %v5451_v63, %v5001_v51 }
 0x3cc   : > { %v5464_v10 = vpop.f32.mrf.mxu0  ;;  %v5003_v32 = vpop.f32.mrf.mxu1  ;;  %6105 = vmatmul.mubr.bf16.gmra.mxu1 %v16478_v1 }
 0x3cd   : > { %11930 = vmatprep.mubr.msk.bf16.mxu1 %vm19622_vm5, %v16481_v3  ;;  %vm19639_vm5 = vmmov %vm19586_vm0 }
 0x3ce   : > { %v5466_v33 = vpop.f32.mrf.mxu0  ;;  %v5006_v44 = vpop.f32.mrf.mxu1 }
 0x3cf   : > { %v16646_v15 = vadd.f32 %v5456_v13, %v5006_v44 }
 0x3d0   : > { %v5467_v45 = vpop.f32.mrf.mxu0  ;;  %v5008_v46 = vpop.f32.mrf.mxu1 }
 0x3d2   : > { %v5469_v37 = vpop.f32.mrf.mxu0  ;;  %v5009_v19 = vpop.f32.mrf.mxu1 }
 0x3d3   : > { %v16651_v49 = vadd.f32 %v5459_v47, %v5009_v19 }
 0x3d4   : > { %v5472_v62 = vpop.f32.mrf.mxu0  ;;  %v5011_v63 = vpop.f32.mrf.mxu1  ;;  %6113 = vmatmul.mubr.bf16.gmra.mxu1 %v16487_v4 }
 0x3d5   : > { %11931 = vmatprep.mubr.msk.bf16.mxu1 %vm19623_vm10, %v16490_v7  ;;  %vm19640_vm10 = vmmov %vm19586_vm0 }
 0x3d6   : > { %v5474_v60 = vpop.f32.mrf.mxu0  ;;  %v5014_v31 = vpop.f32.mrf.mxu1 }
 0x3d7   : > { %v16653_v30 = vadd.f32 %v5464_v10, %v5014_v31 }
 0x3d8   : > { %v5475_v2 = vpop.f32.mrf.mxu0  ;;  %v5016_v13 = vpop.f32.mrf.mxu1 }
 0x3da   : > { %v5477_v51 = vpop.f32.mrf.mxu0  ;;  %v5017_v32 = vpop.f32.mrf.mxu1 }
 0x3db   : > { %v16658_v1 = vadd.f32 %v5467_v45, %v5017_v32 }
 0x3dc   : > { %v5480_v3 = vpop.f32.mrf.mxu0  ;;  %v5019_v47 = vpop.f32.mrf.mxu1  ;;  %6121 = vmatmul.mubr.bf16.gmra.mxu1 %v16495_v42 }
 0x3dd   : > { %11932 = vmatprep.mubr.msk.bf16.mxu1 %vm19624_vm2, %v16498_v57  ;;  %vm19642_vm2 = vmmov %vm19586_vm0 }
 0x3de   : > { %v5482_v33 = vpop.f32.mrf.mxu0  ;;  %v5022_v44 = vpop.f32.mrf.mxu1 }
 0x3df   : > { %v16660_v46 = vadd.f32 %v5472_v62, %v5022_v44 }
 0x3e0   : > { %v5483_v37 = vpop.f32.mrf.mxu0  ;;  %v5024_v10 = vpop.f32.mrf.mxu1 }
 0x3e2   : > { %v5485_v19 = vpop.f32.mrf.mxu0  ;;  %v5025_v63 = vpop.f32.mrf.mxu1 }
 0x3e3   : > { %v16665_v4 = vadd.f32 %v5475_v2, %v5025_v63 }
 0x3e4   : > { %v5488_v7 = vpop.f32.mrf.mxu0  ;;  %v5027_v45 = vpop.f32.mrf.mxu1  ;;  %6129 = vmatmul.mubr.bf16.gmra.mxu1 %v16505_v54 }
 0x3e5   : > { %11933 = vmatprep.mubr.msk.bf16.mxu1 %vm19625_vm1, %v16509_v43  ;;  %vm19644_vm1 = vmmov %vm19586_vm0 }
 0x3e6   : > { %v5490_v60 = vpop.f32.mrf.mxu0  ;;  %v5030_v31 = vpop.f32.mrf.mxu1 }
 0x3e7   : > { %v16667_v13 = vadd.f32 %v5480_v3, %v5030_v31 }
 0x3e8   : > { %v5491_v51 = vpop.f32.mrf.mxu0  ;;  %v5032_v62 = vpop.f32.mrf.mxu1 }
 0x3ea   : > { %v5493_v32 = vpop.f32.mrf.mxu0  ;;  %v5033_v47 = vpop.f32.mrf.mxu1 }
 0x3eb   : > { %v16672_v42 = vadd.f32 %v5483_v37, %v5033_v47 }
 0x3ec   : > { %v5496_v57 = vpop.f32.mrf.mxu0  ;;  %v5035_v2 = vpop.f32.mrf.mxu1  ;;  %6137 = vmatmul.mubr.bf16.gmra.mxu1 %v16514_v12 }
 0x3ed   : > { %11934 = vmatprep.mubr.msk.bf16.mxu1 %vm19626_vm13, %v16519_v25  ;;  %vm19646_vm13 = vmmov %vm19586_vm0 }
 0x3ee   : > { %v5498_v33 = vpop.f32.mrf.mxu0  ;;  %v5038_v44 = vpop.f32.mrf.mxu1 }
 0x3ef   : > { %v16674_v10 = vadd.f32 %v5488_v7, %v5038_v44 }
 0x3f0   : > { %v5499_v19 = vpop.f32.mrf.mxu0  ;;  %v5040_v3 = vpop.f32.mrf.mxu1 }
 0x3f2   : > { %v5501_v63 = vpop.f32.mrf.mxu0  ;;  %v5041_v45 = vpop.f32.mrf.mxu1 }
 0x3f3   : > { %v16679_v54 = vadd.f32 %v5491_v51, %v5041_v45  ;;  %v19628_v63 = vcombine.high %v16541_v17, %v16549_v26 }
 0x3f4   : > { %v5504_v43 = vpop.f32.mrf.mxu0  ;;  %v5043_v37 = vpop.f32.mrf.mxu1  ;;  %6145 = vmatmul.mubr.bf16.gmra.mxu1 %v16521_v21 }
 0x3f5   : > { %11935 = vmatprep.mubr.msk.bf16.mxu1 %vm19627_vm3, %v16529_v23  ;;  %vm19647_vm3 = vmmov %vm19586_vm0 }
 0x3f6   : > { %v5506_v60 = vpop.f32.mrf.mxu0  ;;  %v5046_v31 = vpop.f32.mrf.mxu1 }
 0x3f7   : > { %v16681_v62 = vadd.f32 %v5496_v57, %v5046_v31 }
 0x3f8   : > { %v5507_v32 = vpop.f32.mrf.mxu0  ;;  %v5048_v7 = vpop.f32.mrf.mxu1 }
 0x3fa   : > { %v5509_v47 = vpop.f32.mrf.mxu0  ;;  %v5049_v2 = vpop.f32.mrf.mxu1 }
 0x3fb   : > { %v16686_v12 = vadd.f32 %v5499_v19, %v5049_v2  ;;  %v5572_v19 = vld [vmem:[#allocation2 + $0x198] sm:$0xff] }
 0x3fc   : > { %v5512_v25 = vpop.f32.mrf.mxu0  ;;  %v5051_v51 = vpop.f32.mrf.mxu1  ;;  %6153 = vmatmul.mubr.bf16.gmra.mxu1 %v16531_v22  ;;  %v11900_v7 = vcombine.high %v16557_v55, %v5572_v19  ;;  %v19630_v22 = vcombine.low %v16541_v17, %v16549_v26  ;;  %v12341_v26 = vld [vmem:[#allocation2 + $0x1a0] ss:$8 sps:$4 sm:$0xff]  }
 0x3fd   : > { %11936 = vmatprep.mubr.msk.bf16.mxu1 %vm19629_vm7, %v19628_v63  ;;  %vm19648_vm7 = vmmov %vm19586_vm0 }
 0x3fe   : > { %v5514_v33 = vpop.f32.mrf.mxu0  ;;  %v5054_v57 = vpop.f32.mrf.mxu1 }
 0x3ff   : > { %v16693_v21 = vadd.f32 %v5504_v43, %v5054_v57 }
 0x400   : > { %v5515_v44 = vpop.f32.mrf.mxu0  ;;  %v5056_v45 = vpop.f32.mrf.mxu1 }
 0x402   : > { %v5517_v3 = vpop.f32.mrf.mxu0  ;;  %v5057_v37 = vpop.f32.mrf.mxu1 }
 0x403   : > { %v16695_v23 = vadd.f32 %v5507_v32, %v5057_v37  ;;  %v12339_v3 = vld [vmem:[#allocation2 + $0x1a4] ss:$8 sps:$4 sm:$0xff]   ;;  %v11899_v32 = vcombine.low %v16557_v55, %v5572_v19  ;;  %v5337_v55 = vadd.f32 %v16057_v53, %v16533_v16 }
 0x404   : > { %v5520_v60 = vpop.f32.mrf.mxu0  ;;  %v5059_v31 = vpop.f32.mrf.mxu1  ;;  %6161 = vmatmul.mubr.bf16.gmra.mxu1 %v19630_v22 }
 0x405   : > { %11937 = vmatprep.mubr.msk.bf16.mxu1 %vm19631_vm8, %v11900_v7  ;;  %vm19649_vm8 = vmmov %vm19586_vm0 }
 0x406   : > { %v5522_v47 = vpop.f32.mrf.mxu0 }
 0x407   : > { %v5062_v51 = vpop.f32.mrf.mxu1 }
 0x408   : > { %v5523_v2 = vpop.f32.mrf.mxu0  ;;  %v16702_v33 = vadd.f32 %v5512_v25, %v5062_v51 }
 0x409   : > { %v5064_v57 = vpop.f32.mrf.mxu1 }
 0x40a   : > { %v5525_v43 = vpop.f32.mrf.mxu0 }
 0x40b   : > { %v5065_v63 = vpop.f32.mrf.mxu1 }
 0x40c   : > { %6169 = vmatmul.mubr.bf16.gmra.mxu1 %v11899_v32  ;;  %v16705_v45 = vadd.f32 %v5515_v44, %v5065_v63  ;;  %v16717_v44 = vld [vmem:[%s18678_s4] ss:$0 sm:$0xff] }
 0x40d   : > { %11938 = vmatprep.mubr.msk.bf16.mxu1 %vm19632_vm9, %v12339_v3  ;;  %v5067_v17 = vpop.f32.mrf.mxu1  ;;  %vm19650_vm9 = vmmov %vm19586_vm0 }
 0x414   : > { %v5070_v37 = vpop.f32.mrf.mxu1  ;;  %6177 = vmatmul.mubr.bf16.gmra.mxu1 %v12341_v26 }
 0x415   : > { %v16708_v31 = vadd.f32 %v5520_v60, %v5070_v37  ;;  %v5340_v60 = vadd.f32 %v16127_v61, %v16539_v38 }
 0x416   : > { %v5072_v7 = vpop.f32.mrf.mxu1 }
 0x418   : > { %v5073_v22 = vpop.f32.mrf.mxu1 }
 0x419   : > { %v16710_v25 = vadd.f32 %v5523_v2, %v5073_v22  ;;  %v16725_v2 = vld [vmem:[%s18679_s5] ss:$0 sm:$0xff] }
 0x41a   : > { %v5075_v47 = vpop.f32.mrf.mxu1 }
 0x41c   : > { %v5994_v19 = vpop.f32.mrf.mxu1 }
 0x41d   : > { %v6185_v51 = vadd.f32 %v5994_v19, %v5337_v55 }
 0x41e   : > { %v5996_v43 = vpop.f32.mrf.mxu1 }
 0x41f   : > { %v6240_v3 = vadd.f32 %v16717_v44, %v6185_v51 }
 0x420   : > { %v5997_v32 = vpop.f32.mrf.mxu1 }
 0x421   : > { %v6288_v53 = vmax.f32 %v6240_v3, 0.0  ;;  %v6186_v16 = vadd.f32 %v5997_v32, %v5340_v60 }
 0x422   : > { %v5999_v57 = vpop.f32.mrf.mxu1 }
 0x423   : > { %v6241_v63 = vadd.f32 %v16717_v44, %v6186_v16  ;;  %v6343_v17 = vmul.f32 %v16725_v2, %v6288_v53 }
 0x424   : > { %v6002_v26 = vpop.f32.mrf.mxu1 }
 0x425   : > { %v6289_v37 = vmax.f32 %v6241_v63, 0.0  ;;  %v6187_v7 = vadd.f32 %v6002_v26, %v16546_v9  ;;  %v6391_v61 = vsel %vm19633_vm12, %v6343_v17, 0.0  ;;  %vm19651_vm12 = vmmov %vm19586_vm0 }
 0x426   : > { %6392 = vadd.xlane.f32.xlu0 %v6391_v61  ;;  %v6004_v38 = vpop.f32.mrf.mxu1 }
 0x427   : > { %v6242_v22 = vadd.f32 %v16717_v44, %v6187_v7  ;;  %v6344_v47 = vmul.f32 %v16725_v2, %v6289_v37 }
 0x428   : > { %v6005_v55 = vpop.f32.mrf.mxu1 }
 0x429   : > { %v6290_v19 = vmax.f32 %v6242_v22, 0.0  ;;  %v6188_v51 = vadd.f32 %v6005_v55, %v16555_v41  ;;  %v6394_v43 = vsel %vm19634_vm11, %v6344_v47, 0.0  ;;  %vm19652_vm11 = vmmov %vm19586_vm0 }
 0x42a   : > { %6395 = vadd.xlane.f32.xlu1 %v6394_v43  ;;  %v6007_v60 = vpop.f32.mrf.mxu1 }
 0x42b   : > { %v6243_v3 = vadd.f32 %v16717_v44, %v6188_v51  ;;  %v6345_v9 = vmul.f32 %v16725_v2, %v6290_v19 }
 0x42c   : > { %v6010_v32 = vpop.f32.mrf.mxu1 }
 0x42d   : > { %v6291_v53 = vmax.f32 %v6243_v3, 0.0  ;;  %v6189_v16 = vadd.f32 %v6010_v32, %v16559_v29  ;;  %v6397_v57 = vsel %vm19586_vm0, %v6345_v9, 0.0 }
 0x42e   : > { %6398 = vadd.xlane.f32.xlu0 %v6397_v57  ;;  %v6012_v63 = vpop.f32.mrf.mxu1 }
 0x42f   : > { %v6244_v17 = vadd.f32 %v16717_v44, %v6189_v16  ;;  %v6346_v41 = vmul.f32 %v16725_v2, %v6291_v53 }
 0x430   : > { %v6013_v26 = vpop.f32.mrf.mxu1 }
 0x431   : > { %v6292_v37 = vmax.f32 %v6244_v17, 0.0  ;;  %v6190_v7 = vadd.f32 %v6013_v26, %v16566_v56  ;;  %v6400_v61 = vsel %vm19635_vm14, %v6346_v41, 0.0  ;;  %vm19653_vm14 = vmmov %vm19586_vm0 }
 0x432   : > { %6401 = vadd.xlane.f32.xlu0 %v6400_v61  ;;  %v6015_v38 = vpop.f32.mrf.mxu1 }
 0x433   : > { %v6245_v22 = vadd.f32 %v16717_v44, %v6190_v7  ;;  %v6347_v29 = vmul.f32 %v16725_v2, %v6292_v37 }
 0x434   : > { %v6018_v47 = vpop.f32.mrf.mxu1 }
 0x435   : > { %v6293_v55 = vmax.f32 %v6245_v22, 0.0  ;;  %v6191_v19 = vadd.f32 %v6018_v47, %v16569_v52  ;;  %v6403_v51 = vsel %vm19636_vm4, %v6347_v29, 0.0  ;;  %vm19654_vm4 = vmmov %vm19586_vm0 }
 0x436   : > { %6404 = vadd.xlane.f32.xlu1 %v6403_v51  ;;  %v6020_v43 = vpop.f32.mrf.mxu1 }
 0x437   : > { %v6246_v60 = vadd.f32 %v16717_v44, %v6191_v19  ;;  %v6348_v56 = vmul.f32 %v16725_v2, %v6293_v55 }
 0x438   : > { %v6021_v3 = vpop.f32.mrf.mxu1 }
 0x439   : > { %v6294_v9 = vmax.f32 %v6246_v60, 0.0  ;;  %v6192_v32 = vadd.f32 %v6021_v3, %v16572_v20  ;;  %v6406_v53 = vsel %vm19637_vm6, %v6348_v56, 0.0  ;;  %vm19655_vm6 = vmmov %vm19586_vm0 }
 0x43a   : > { %6407 = vadd.xlane.f32.xlu0 %v6406_v53  ;;  %v6023_v16 = vpop.f32.mrf.mxu1  ;;  %v19641_v53 = vld [vmem:[#allocation51_spill] sm:$0xff] }
 0x43b   : > { %v6247_v57 = vadd.f32 %v16717_v44, %v6192_v32  ;;  %v6349_v52 = vmul.f32 %v16725_v2, %v6294_v9 }
 0x43c   : > { %v6026_v63 = vpop.f32.mrf.mxu1 }
 0x43d   : > { %v6295_v17 = vmax.f32 %v6247_v57, 0.0  ;;  %v6193_v41 = vadd.f32 %v6026_v63, %v16574_v50  ;;  %v6409_v26 = vsel %vm19638_vm15, %v6349_v52, 0.0  ;;  %vm19656_vm15 = vmmov %vm19586_vm0 }
 0x43e   : > { %6410 = vadd.xlane.f32.xlu1 %v6409_v26  ;;  %v6028_v37 = vpop.f32.mrf.mxu1  ;;  %v19643_v26 = vld [vmem:[#allocation66_spill] sm:$0xff] }
 0x43f   : > { %v6248_v7 = vadd.f32 %v16717_v44, %v6193_v41  ;;  %v6350_v20 = vmul.f32 %v16725_v2, %v6295_v17 }
 0x440   : > { %v6029_v61 = vpop.f32.mrf.mxu1 }
 0x441   : > { %v6296_v38 = vmax.f32 %v6248_v7, 0.0  ;;  %v6194_v22 = vadd.f32 %v6029_v61, %v16577_v8  ;;  %v6412_v29 = vsel %vm19639_vm5, %v6350_v20, 0.0  ;;  %vm19657_vm5 = vmmov %vm19586_vm0 }
 0x442   : > { %6413 = vadd.xlane.f32.xlu0 %v6412_v29  ;;  %v6031_v47 = vpop.f32.mrf.mxu1 }
 0x443   : > { %v6249_v55 = vadd.f32 %v16717_v44, %v6194_v22  ;;  %v6351_v50 = vmul.f32 %v16725_v2, %v6296_v38  ;;  %v19645_v47 = vld [vmem:[#allocation67_spill] sm:$0xff] }
 0x444   : > { %v6034_v19 = vpop.f32.mrf.mxu1 }
 0x445   : > { %v6297_v51 = vmax.f32 %v6249_v55, 0.0  ;;  %v6195_v43 = vadd.f32 %v6034_v19, %v16579_v5  ;;  %v6415_v60 = vsel %vm19640_vm10, %v6351_v50, 0.0  ;;  %vm19658_vm10 = vmmov %vm19586_vm0 }
 0x446   : > { %6416 = vadd.xlane.f32.xlu1 %v6415_v60  ;;  %v6036_v56 = vpop.f32.mrf.mxu1 }
 0x447   : > { %v6250_v3 = vadd.f32 %v16717_v44, %v6195_v43  ;;  %v6352_v8 = vmul.f32 %v16725_v2, %v6297_v51 }
 0x448   : > { %v6037_v9 = vpop.f32.mrf.mxu1 }
 0x449   : > { %v6298_v32 = vmax.f32 %v6250_v3, 0.0  ;;  %v6196_v16 = vadd.f32 %v6037_v9, %v19641_v53  ;;  %v6418_v57 = vsel %vm19642_vm2, %v6352_v8, 0.0  ;;  %vm19659_vm2 = vmmov %vm19586_vm0 }
 0x44a   : > { %6419 = vadd.xlane.f32.xlu0 %v6418_v57  ;;  %v6039_v52 = vpop.f32.mrf.mxu1 }
 0x44b   : > { %v6251_v63 = vadd.f32 %v16717_v44, %v6196_v16  ;;  %v6353_v5 = vmul.f32 %v16725_v2, %v6298_v32 }
 0x44c   : > { %v6042_v17 = vpop.f32.mrf.mxu1 }
 0x44d   : > { %v6299_v41 = vmax.f32 %v6251_v63, 0.0  ;;  %v6197_v37 = vadd.f32 %v6042_v17, %v19643_v26  ;;  %v6421_v7 = vsel %vm19644_vm1, %v6353_v5, 0.0  ;;  %vm19660_vm1 = vmmov %vm19586_vm0 }
 0x44e   : > { %6422 = vadd.xlane.f32.xlu1 %v6421_v7  ;;  %v6044_v20 = vpop.f32.mrf.mxu1 }
 0x44f   : > { %v6252_v61 = vadd.f32 %v16717_v44, %v6197_v37  ;;  %v6354_v38 = vmul.f32 %v16725_v2, %v6299_v41 }
 0x450   : > { %v6045_v22 = vpop.f32.mrf.mxu1 }
 0x451   : > { %v6300_v29 = vmax.f32 %v6252_v61, 0.0  ;;  %v6198_v55 = vadd.f32 %v6045_v22, %v19645_v47  ;;  %v6424_v50 = vsel %vm19646_vm13, %v6354_v38, 0.0  ;;  %vm19661_vm13 = vmmov %vm19586_vm0 }
 0x452   : > { %6425 = vadd.xlane.f32.xlu0 %v6424_v50  ;;  %v6047_v19 = vpop.f32.mrf.mxu1 }
 0x453   : > { %v6253_v51 = vadd.f32 %v16717_v44, %v6198_v55  ;;  %v6355_v43 = vmul.f32 %v16725_v2, %v6300_v29 }
 0x454   : > { %v6050_v60 = vpop.f32.mrf.mxu1 }
 0x455   : > { %v6301_v56 = vmax.f32 %v6253_v51, 0.0  ;;  %v6199_v3 = vadd.f32 %v6050_v60, %v16590_v58  ;;  %v6427_v8 = vsel %vm19647_vm3, %v6355_v43, 0.0  ;;  %vm19662_vm3 = vmmov %vm19586_vm0 }
 0x456   : > { %6428 = vadd.xlane.f32.xlu1 %v6427_v8  ;;  %v6052_v9 = vpop.f32.mrf.mxu1 }
 0x457   : > { %v6254_v32 = vadd.f32 %v16717_v44, %v6199_v3  ;;  %v6356_v53 = vmul.f32 %v16725_v2, %v6301_v56 }
 0x458   : > { %v6053_v16 = vpop.f32.mrf.mxu1 }
 0x459   : > { %v6302_v57 = vmax.f32 %v6254_v32, 0.0  ;;  %v6200_v52 = vadd.f32 %v6053_v16, %v16593_v11  ;;  %v6430_v63 = vsel %vm19648_vm7, %v6356_v53, 0.0  ;;  %vm19663_vm7 = vmmov %vm19586_vm0 }
 0x45a   : > { %6431 = vadd.xlane.f32.xlu0 %v6430_v63  ;;  %v6055_v5 = vpop.f32.mrf.mxu1 }
 0x45b   : > { %v6255_v17 = vadd.f32 %v16717_v44, %v6200_v52  ;;  %v6357_v58 = vmul.f32 %v16725_v2, %v6302_v57 }
 0x45c   : > { %v6058_v41 = vpop.f32.mrf.mxu1 }
 0x45d   : > { %v6303_v26 = vmax.f32 %v6255_v17, 0.0  ;;  %v6201_v37 = vadd.f32 %v6058_v41, %v16597_v6  ;;  %v6433_v7 = vsel %vm19649_vm8, %v6357_v58, 0.0  ;;  %vm19664_vm8 = vmmov %vm19586_vm0 }
 0x45e   : > { %6434 = vadd.xlane.f32.xlu1 %v6433_v7  ;;  %v6060_v20 = vpop.f32.mrf.mxu1 }
 0x45f   : > { %v6256_v61 = vadd.f32 %v16717_v44, %v6201_v37  ;;  %v6358_v11 = vmul.f32 %v16725_v2, %v6303_v26 }
 0x460   : > { %v6061_v38 = vpop.f32.mrf.mxu1 }
 0x461   : > { %v6304_v22 = vmax.f32 %v6256_v61, 0.0  ;;  %v6202_v29 = vadd.f32 %v6061_v38, %v16602_v36  ;;  %v6436_v47 = vsel %vm19650_vm9, %v6358_v11, 0.0  ;;  %vm19665_vm9 = vmmov %vm19586_vm0 }
 0x462   : > { %6437 = vadd.xlane.f32.xlu0 %v6436_v47  ;;  %v6063_v55 = vpop.f32.mrf.mxu1 }
 0x463   : > { %v6257_v50 = vadd.f32 %v16717_v44, %v6202_v29  ;;  %v6359_v6 = vmul.f32 %v16725_v2, %v6304_v22 }
 0x464   : > { %v6066_v19 = vpop.f32.mrf.mxu1 }
 0x465   : > { %v6305_v51 = vmax.f32 %v6257_v50, 0.0  ;;  %v6203_v43 = vadd.f32 %v6066_v19, %v16604_v14  ;;  %v6439_v60 = vsel %vm19651_vm12, %v6359_v6, 0.0  ;;  %vm19666_vm12 = vmmov %vm19586_vm0 }
 0x466   : > { %6440 = vadd.xlane.f32.xlu1 %v6439_v60  ;;  %v6068_v56 = vpop.f32.mrf.mxu1 }
 0x467   : > { %v6258_v3 = vadd.f32 %v16717_v44, %v6203_v43  ;;  %v6360_v36 = vmul.f32 %v16725_v2, %v6305_v51 }
 0x468   : > { %v6069_v8 = vpop.f32.mrf.mxu1 }
 0x469   : > { %v6306_v9 = vmax.f32 %v6258_v3, 0.0  ;;  %v6204_v32 = vadd.f32 %v6069_v8, %v16609_v48  ;;  %v6442_v53 = vsel %vm19652_vm11, %v6360_v36, 0.0  ;;  %vm19667_vm11 = vmmov %vm19586_vm0 }
 0x46a   : > { %6443 = vadd.xlane.f32.xlu0 %v6442_v53  ;;  %v6071_v16 = vpop.f32.mrf.mxu1 }
 0x46b   : > { %v6259_v57 = vadd.f32 %v16717_v44, %v6204_v32  ;;  %v6361_v14 = vmul.f32 %v16725_v2, %v6306_v9 }
 0x46c   : > { %v6074_v52 = vpop.f32.mrf.mxu1 }
 0x46d   : > { %v6307_v63 = vmax.f32 %v6259_v57, 0.0  ;;  %v6205_v5 = vadd.f32 %v6074_v52, %v16611_v27  ;;  %v6445_v17 = vsel %vm19586_vm0, %v6361_v14, 0.0 }
 0x46e   : > { %6446 = vadd.xlane.f32.xlu1 %v6445_v17  ;;  %v6076_v58 = vpop.f32.mrf.mxu1 }
 0x46f   : > { %v6260_v41 = vadd.f32 %v16717_v44, %v6205_v5  ;;  %v6362_v48 = vmul.f32 %v16725_v2, %v6307_v63 }
 0x470   : > { %v6077_v26 = vpop.f32.mrf.mxu1 }
 0x471   : > { %v6308_v37 = vmax.f32 %v6260_v41, 0.0  ;;  %v6206_v7 = vadd.f32 %v6077_v26, %v16616_v34  ;;  %v6448_v20 = vsel %vm19653_vm14, %v6362_v48, 0.0  ;;  %vm19668_vm14 = vmmov %vm19586_vm0 }
 0x472   : > { %6449 = vadd.xlane.f32.xlu0 %v6448_v20  ;;  %v6079_v61 = vpop.f32.mrf.mxu1 }
 0x473   : > { %v6261_v11 = vadd.f32 %v16717_v44, %v6206_v7  ;;  %v6363_v27 = vmul.f32 %v16725_v2, %v6308_v37 }
 0x474   : > { %v6082_v38 = vpop.f32.mrf.mxu1 }
 0x475   : > { %v6309_v22 = vmax.f32 %v6261_v11, 0.0  ;;  %v6207_v29 = vadd.f32 %v6082_v38, %v16618_v59  ;;  %v6451_v47 = vsel %vm19654_vm4, %v6363_v27, 0.0  ;;  %vm19669_vm4 = vmmov %vm19586_vm0 }
 0x476   : > { %6452 = vadd.xlane.f32.xlu1 %v6451_v47  ;;  %v6084_v55 = vpop.f32.mrf.mxu1 }
 0x477   : > { %v6262_v50 = vadd.f32 %v16717_v44, %v6207_v29  ;;  %v6364_v34 = vmul.f32 %v16725_v2, %v6309_v22 }
 0x478   : > { %v6085_v6 = vpop.f32.mrf.mxu1 }
 0x479   : > { %v6310_v19 = vmax.f32 %v6262_v50, 0.0  ;;  %v6208_v51 = vadd.f32 %v6085_v6, %v16623_v39  ;;  %v6454_v43 = vsel %vm19655_vm6, %v6364_v34, 0.0  ;;  %vm19670_vm6 = vmmov %vm19586_vm0 }
 0x47a   : > { %6455 = vadd.xlane.f32.xlu0 %v6454_v43  ;;  %v6087_v60 = vpop.f32.mrf.mxu1 }
 0x47b   : > { %v6263_v56 = vadd.f32 %v16717_v44, %v6208_v51  ;;  %v6365_v59 = vmul.f32 %v16725_v2, %v6310_v19 }
 0x47c   : > { %v6090_v3 = vpop.f32.mrf.mxu1 }
 0x47d   : > { %v6311_v36 = vmax.f32 %v6263_v56, 0.0  ;;  %v6209_v8 = vadd.f32 %v6090_v3, %v16625_v40  ;;  %v6457_v9 = vsel %vm19656_vm15, %v6365_v59, 0.0  ;;  %vm19671_vm15 = vmmov %vm19586_vm0 }
 0x47e   : > { %6458 = vadd.xlane.f32.xlu1 %v6457_v9  ;;  %v6092_v32 = vpop.f32.mrf.mxu1 }
 0x47f   : > { %v6264_v53 = vadd.f32 %v16717_v44, %v6209_v8  ;;  %v6366_v39 = vmul.f32 %v16725_v2, %v6311_v36 }
 0x480   : > { %v6093_v16 = vpop.f32.mrf.mxu1 }
 0x481   : > { %v6312_v57 = vmax.f32 %v6264_v53, 0.0  ;;  %v6210_v14 = vadd.f32 %v6093_v16, %v16630_v24  ;;  %v6460_v52 = vsel %vm19657_vm5, %v6366_v39, 0.0  ;;  %vm19672_vm5 = vmmov %vm19586_vm0 }
 0x482   : > { %6461 = vadd.xlane.f32.xlu0 %v6460_v52  ;;  %v6095_v63 = vpop.f32.mrf.mxu1 }
 0x483   : > { %v6265_v5 = vadd.f32 %v16717_v44, %v6210_v14  ;;  %v6367_v40 = vmul.f32 %v16725_v2, %v6312_v57 }
 0x484   : > { %v6098_v17 = vpop.f32.mrf.mxu1 }
 0x485   : > { %v6313_v58 = vmax.f32 %v6265_v5, 0.0  ;;  %v6211_v41 = vadd.f32 %v6098_v17, %v16632_v18  ;;  %v6463_v48 = vsel %vm19658_vm10, %v6367_v40, 0.0  ;;  %vm19673_vm10 = vmmov %vm19586_vm0 }
 0x486   : > { %6464 = vadd.xlane.f32.xlu1 %v6463_v48  ;;  %v6100_v26 = vpop.f32.mrf.mxu1 }
 0x487   : > { %v6266_v37 = vadd.f32 %v16717_v44, %v6211_v41  ;;  %v6368_v24 = vmul.f32 %v16725_v2, %v6313_v58 }
 0x488   : > { %v6101_v7 = vpop.f32.mrf.mxu1 }
 0x489   : > { %v6314_v20 = vmax.f32 %v6266_v37, 0.0  ;;  %v6212_v61 = vadd.f32 %v6101_v7, %v16637_v0  ;;  %v6466_v11 = vsel %vm19659_vm2, %v6368_v24, 0.0  ;;  %vm19674_vm2 = vmmov %vm19586_vm0 }
 0x48a   : > { %6467 = vadd.xlane.f32.xlu0 %v6466_v11  ;;  %v6103_v27 = vpop.f32.mrf.mxu1 }
 0x48b   : > { %v6267_v38 = vadd.f32 %v16717_v44, %v6212_v61  ;;  %v6369_v18 = vmul.f32 %v16725_v2, %v6314_v20 }
 0x48c   : > { %v6106_v22 = vpop.f32.mrf.mxu1 }
 0x48d   : > { %v6315_v29 = vmax.f32 %v6267_v38, 0.0  ;;  %v6213_v47 = vadd.f32 %v6106_v22, %v16639_v28  ;;  %v6469_v55 = vsel %vm19660_vm1, %v6369_v18, 0.0  ;;  %vm19675_vm1 = vmmov %vm19586_vm0 }
 0x48e   : > { %6470 = vadd.xlane.f32.xlu1 %v6469_v55  ;;  %v6108_v50 = vpop.f32.mrf.mxu1 }
 0x48f   : > { %v6268_v34 = vadd.f32 %v16717_v44, %v6213_v47  ;;  %v6370_v0 = vmul.f32 %v16725_v2, %v6315_v29 }
 0x490   : > { %v6109_v6 = vpop.f32.mrf.mxu1 }
 0x491   : > { %v6316_v19 = vmax.f32 %v6268_v34, 0.0  ;;  %v6214_v51 = vadd.f32 %v6109_v6, %v16644_v35  ;;  %v6472_v43 = vsel %vm19661_vm13, %v6370_v0, 0.0  ;;  %vm19676_vm13 = vmmov %vm19586_vm0 }
 0x492   : > { %6473 = vadd.xlane.f32.xlu0 %v6472_v43  ;;  %v6111_v60 = vpop.f32.mrf.mxu1 }
 0x493   : > { %v6269_v56 = vadd.f32 %v16717_v44, %v6214_v51  ;;  %v6371_v28 = vmul.f32 %v16725_v2, %v6316_v19 }
 0x494   : > { %v6114_v59 = vpop.f32.mrf.mxu1 }
 0x495   : > { %v6317_v3 = vmax.f32 %v6269_v56, 0.0  ;;  %v6215_v36 = vadd.f32 %v6114_v59, %v16646_v15  ;;  %v6475_v8 = vsel %vm19662_vm3, %v6371_v28, 0.0  ;;  %vm19677_vm3 = vmmov %vm19586_vm0 }
 0x496   : > { %6476 = vadd.xlane.f32.xlu1 %v6475_v8  ;;  %v6116_v9 = vpop.f32.mrf.mxu1 }
 0x497   : > { %v6270_v32 = vadd.f32 %v16717_v44, %v6215_v36  ;;  %v6372_v35 = vmul.f32 %v16725_v2, %v6317_v3 }
 0x498   : > { %v6117_v53 = vpop.f32.mrf.mxu1 }
 0x499   : > { %v6318_v39 = vmax.f32 %v6270_v32, 0.0  ;;  %v6216_v16 = vadd.f32 %v6117_v53, %v16651_v49  ;;  %v6478_v57 = vsel %vm19663_vm7, %v6372_v35, 0.0  ;;  %vm19678_vm7 = vmmov %vm19586_vm0 }
 0x49a   : > { %6479 = vadd.xlane.f32.xlu0 %v6478_v57  ;;  %v6119_v14 = vpop.f32.mrf.mxu1 }
 0x49b   : > { %v6271_v52 = vadd.f32 %v16717_v44, %v6216_v16  ;;  %v6373_v15 = vmul.f32 %v16725_v2, %v6318_v39 }
 0x49c   : > { %v6122_v63 = vpop.f32.mrf.mxu1 }
 0x49d   : > { %v6319_v5 = vmax.f32 %v6271_v52, 0.0  ;;  %v6217_v40 = vadd.f32 %v6122_v63, %v16653_v30  ;;  %v6481_v17 = vsel %vm19664_vm8, %v6373_v15, 0.0  ;;  %vm19679_vm8 = vmmov %vm19586_vm0 }
 0x49e   : > { %6482 = vadd.xlane.f32.xlu1 %v6481_v17  ;;  %v6124_v58 = vpop.f32.mrf.mxu1 }
 0x49f   : > { %v6272_v41 = vadd.f32 %v16717_v44, %v6217_v40  ;;  %v6374_v49 = vmul.f32 %v16725_v2, %v6319_v5 }
 0x4a0   : > { %v6125_v48 = vpop.f32.mrf.mxu1 }
 0x4a1   : > { %v6320_v26 = vmax.f32 %v6272_v41, 0.0  ;;  %v6218_v37 = vadd.f32 %v6125_v48, %v16658_v1  ;;  %v6484_v24 = vsel %vm19665_vm9, %v6374_v49, 0.0  ;;  %vm19680_vm9 = vmmov %vm19586_vm0 }
 0x4a2   : > { %6485 = vadd.xlane.f32.xlu0 %v6484_v24  ;;  %v6127_v7 = vpop.f32.mrf.mxu1 }
 0x4a3   : > { %v6273_v20 = vadd.f32 %v16717_v44, %v6218_v37  ;;  %v6375_v30 = vmul.f32 %v16725_v2, %v6320_v26 }
 0x4a4   : > { %v6130_v61 = vpop.f32.mrf.mxu1 }
 0x4a5   : > { %v6321_v11 = vmax.f32 %v6273_v20, 0.0  ;;  %v6219_v27 = vadd.f32 %v6130_v61, %v16660_v46  ;;  %v6487_v38 = vsel %vm19666_vm12, %v6375_v30, 0.0  ;;  %vm10924_vm12 = vcmask 130112  }
 0x4a6   : > { %6488 = vadd.xlane.f32.xlu1 %v6487_v38  ;;  %v6132_v18 = vpop.f32.mrf.mxu1 }
 0x4a7   : > { %v6274_v22 = vadd.f32 %v16717_v44, %v6219_v27  ;;  %v6376_v1 = vmul.f32 %v16725_v2, %v6321_v11 }
 0x4a8   : > { %v6133_v29 = vpop.f32.mrf.mxu1 }
 0x4a9   : > { %v6322_v47 = vmax.f32 %v6274_v22, 0.0  ;;  %v6220_v55 = vadd.f32 %v6133_v29, %v16665_v4  ;;  %v6490_v50 = vsel %vm19667_vm11, %v6376_v1, 0.0  ;;  %vm10931_vm11 = vcmask 195712  }
 0x4aa   : > { %6491 = vadd.xlane.f32.xlu0 %v6490_v50  ;;  %v6135_v34 = vpop.f32.mrf.mxu1 }
 0x4ab   : > { %v6275_v0 = vadd.f32 %v16717_v44, %v6220_v55  ;;  %v6377_v46 = vmul.f32 %v16725_v2, %v6322_v47 }
 0x4ac   : > { %v6138_v6 = vpop.f32.mrf.mxu1 }
 0x4ad   : > { %v6323_v19 = vmax.f32 %v6275_v0, 0.0  ;;  %v6221_v51 = vadd.f32 %v6138_v6, %v16667_v13  ;;  %v6493_v43 = vsel %vm19586_vm0, %v6377_v46, 0.0  ;;  %vm10938_vm0 = vcmask 261312  }
 0x4ae   : > { %6494 = vadd.xlane.f32.xlu1 %v6493_v43  ;;  %v6140_v60 = vpop.f32.mrf.mxu1 }
 0x4af   : > { %v6276_v56 = vadd.f32 %v16717_v44, %v6221_v51  ;;  %v6378_v4 = vmul.f32 %v16725_v2, %v6323_v19 }
 0x4b0   : > { %v6141_v28 = vpop.f32.mrf.mxu1 }
 0x4b1   : > { %v6324_v59 = vmax.f32 %v6276_v56, 0.0  ;;  %v6222_v3 = vadd.f32 %v6141_v28, %v16672_v42  ;;  %v6496_v36 = vsel %vm19668_vm14, %v6378_v4, 0.0  ;;  %vm10945_vm14 = vcmask 326912  }
 0x4b2   : > { %6497 = vadd.xlane.f32.xlu0 %v6496_v36  ;;  %v6143_v8 = vpop.f32.mrf.mxu1 }
 0x4b3   : > { %v6277_v9 = vadd.f32 %v16717_v44, %v6222_v3  ;;  %v6379_v13 = vmul.f32 %v16725_v2, %v6324_v59 }
 0x4b4   : > { %v6146_v32 = vpop.f32.mrf.mxu1 }
 0x4b5   : > { %v6325_v35 = vmax.f32 %v6277_v9, 0.0  ;;  %v6223_v53 = vadd.f32 %v6146_v32, %v16674_v10  ;;  %v6499_v39 = vsel %vm19669_vm4, %v6379_v13, 0.0  ;;  %vm10952_vm4 = vcmask 392512  }
 0x4b6   : > { %6500 = vadd.xlane.f32.xlu1 %v6499_v39  ;;  %v6148_v16 = vpop.f32.mrf.mxu1 }
 0x4b7   : > { %v6278_v57 = vadd.f32 %v16717_v44, %v6223_v53  ;;  %v6380_v42 = vmul.f32 %v16725_v2, %v6325_v35 }
 0x4b8   : > { %v6149_v14 = vpop.f32.mrf.mxu1 }
 0x4b9   : > { %v6326_v52 = vmax.f32 %v6278_v57, 0.0  ;;  %v6224_v15 = vadd.f32 %v6149_v14, %v16679_v54  ;;  %v6502_v63 = vsel %vm19670_vm6, %v6380_v42, 0.0  ;;  %vm10959_vm6 = vcmask 458112  }
 0x4ba   : > { %6503 = vadd.xlane.f32.xlu0 %v6502_v63  ;;  %v6151_v5 = vpop.f32.mrf.mxu1 }
 0x4bb   : > { %v6279_v40 = vadd.f32 %v16717_v44, %v6224_v15  ;;  %v6381_v10 = vmul.f32 %v16725_v2, %v6326_v52 }
 0x4bc   : > { %v6154_v17 = vpop.f32.mrf.mxu1 }
 0x4bd   : > { %v6327_v58 = vmax.f32 %v6279_v40, 0.0  ;;  %v6225_v41 = vadd.f32 %v6154_v17, %v16681_v62  ;;  %v6505_v49 = vsel %vm19671_vm15, %v6381_v10, 0.0  ;;  %v6535_v10 = vld [vmem:[#allocation3] sm:$0x1]  ;;  %vm10966_vm15 = vcmask 523712  }
 0x4be   : > { %6506 = vadd.xlane.f32.xlu1 %v6505_v49  ;;  %v6156_v48 = vpop.f32.mrf.mxu1 }
 0x4bf   : > { %v6280_v26 = vadd.f32 %v16717_v44, %v6225_v41  ;;  %v6382_v54 = vmul.f32 %v16725_v2, %v6327_v58  ;;  %v16920_v58 = vpop.xlane.xlu0 %6392 }
 0x4c0   : > { %v6157_v37 = vpop.f32.mrf.mxu1 }
 0x4c1   : > { %v6328_v24 = vmax.f32 %v6280_v26, 0.0  ;;  %v6226_v7 = vadd.f32 %v6157_v37, %v16686_v12  ;;  %v6508_v20 = vsel %vm19672_vm5, %v6382_v54, 0.0  ;;  %vm10973_vm5 = vcmask 589312  }
 0x4c2   : > { %6509 = vadd.xlane.f32.xlu0 %v6508_v20  ;;  %v6159_v30 = vpop.f32.mrf.mxu1 }
 0x4c3   : > { %v6281_v61 = vadd.f32 %v16717_v44, %v6226_v7  ;;  %v6383_v62 = vmul.f32 %v16725_v2, %v6328_v24  ;;  %v16924_v41 = vpop.xlane.xlu0 %6398 }
 0x4c4   : > { %v6162_v11 = vpop.f32.mrf.mxu1 }
 0x4c5   : > { %v6329_v27 = vmax.f32 %v6281_v61, 0.0  ;;  %v6227_v38 = vadd.f32 %v6162_v11, %v16693_v21  ;;  %v6511_v18 = vsel %vm19673_vm10, %v6383_v62, 0.0  ;;  %vm10980_vm10 = vcmask 654912  }
 0x4c6   : > { %6512 = vadd.xlane.f32.xlu1 %v6511_v18  ;;  %v6164_v22 = vpop.f32.mrf.mxu1 }
 0x4c7   : > { %v6282_v1 = vadd.f32 %v16717_v44, %v6227_v38  ;;  %v6384_v12 = vmul.f32 %v16725_v2, %v6329_v27  ;;  %v16928_v48 = vpop.xlane.xlu0 %6401 }
 0x4c8   : > { %v6165_v29 = vpop.f32.mrf.mxu1 }
 0x4c9   : > { %v6330_v47 = vmax.f32 %v6282_v1, 0.0  ;;  %v6228_v55 = vadd.f32 %v6165_v29, %v16695_v23  ;;  %v6514_v50 = vsel %vm19674_vm2, %v6384_v12, 0.0  ;;  %vm10987_vm2 = vcmask 720512  }
 0x4ca   : > { %6515 = vadd.xlane.f32.xlu0 %v6514_v50  ;;  %v6167_v34 = vpop.f32.mrf.mxu1 }
 0x4cb   : > { %v6283_v0 = vadd.f32 %v16717_v44, %v6228_v55  ;;  %v6385_v21 = vmul.f32 %v16725_v2, %v6330_v47  ;;  %v16932_v26 = vpop.xlane.xlu0 %6407 }
 0x4cc   : > { %v6170_v46 = vpop.f32.mrf.mxu1 }
 0x4cd   : > { %v6331_v6 = vmax.f32 %v6283_v0, 0.0  ;;  %v6229_v19 = vadd.f32 %v6170_v46, %v16702_v33  ;;  %v6517_v51 = vsel %vm19675_vm1, %v6385_v21, 0.0  ;;  %vm10994_vm1 = vcmask 786112  }
 0x4ce   : > { %6518 = vadd.xlane.f32.xlu1 %v6517_v51  ;;  %v6172_v43 = vpop.f32.mrf.mxu1 }
 0x4cf   : > { %v6284_v60 = vadd.f32 %v16717_v44, %v6229_v19  ;;  %v6386_v23 = vmul.f32 %v16725_v2, %v6331_v6  ;;  %v16936_v37 = vpop.xlane.xlu0 %6413 }
 0x4d0   : > { %v6173_v56 = vpop.f32.mrf.mxu1 }
 0x4d1   : > { %v6332_v4 = vmax.f32 %v6284_v60, 0.0  ;;  %v6230_v28 = vadd.f32 %v6173_v56, %v16705_v45  ;;  %v6520_v59 = vsel %vm19676_vm13, %v6386_v23, 0.0  ;;  %vm11001_vm13 = vcmask 851712  }
 0x4d2   : > { %6521 = vadd.xlane.f32.xlu0 %v6520_v59  ;;  %v6175_v3 = vpop.f32.mrf.mxu1 }
 0x4d3   : > { %v6285_v36 = vadd.f32 %v16717_v44, %v6230_v28  ;;  %v6387_v33 = vmul.f32 %v16725_v2, %v6332_v4  ;;  %v16940_v7 = vpop.xlane.xlu0 %6419 }
 0x4d4   : > { %v6178_v8 = vpop.f32.mrf.mxu1 }
 0x4d5   : > { %v6333_v9 = vmax.f32 %v6285_v36, 0.0  ;;  %v6231_v13 = vadd.f32 %v6178_v8, %v16708_v31  ;;  %v6523_v32 = vsel %vm19677_vm3, %v6387_v33, 0.0  ;;  %v19681_v8 = vld [vmem:[#allocation30_spill] sm:$0xff]  ;;  %vm11008_vm3 = vcmask 917312  }
 0x4d6   : > { %6524 = vadd.xlane.f32.xlu1 %v6523_v32  ;;  %v6180_v35 = vpop.f32.mrf.mxu1 }
 0x4d7   : > { %v6286_v53 = vadd.f32 %v16717_v44, %v6231_v13  ;;  %v6388_v45 = vmul.f32 %v16725_v2, %v6333_v9  ;;  %v16983_v9 = vsub.s32 0, %v19681_v8 }
 0x4d8   : > { %v6181_v39 = vpop.f32.mrf.mxu1 }
 0x4d9   : > { %v6334_v16 = vmax.f32 %v6286_v53, 0.0  ;;  %v6232_v57 = vadd.f32 %v6181_v39, %v16710_v25  ;;  %v6526_v42 = vsel %vm19678_vm7, %v6388_v45, 0.0  ;;  %v16916_v25 = vpop.xlane.xlu1 %6395  ;;  %vm11015_vm7 = vcmask 982912  }
 0x4da   : > { %6527 = vadd.xlane.f32.xlu0 %v6526_v42  ;;  %v6183_v14 = vpop.f32.mrf.mxu1 }
 0x4db   : > { %v6287_v52 = vadd.f32 %v16717_v44, %v6232_v57  ;;  %v6389_v31 = vmul.f32 %v16725_v2, %v6334_v16  ;;  %v16944_v30 = vpop.xlane.xlu0 %6425 }
 0x4dd   : > { %v6335_v15 = vmax.f32 %v6287_v52, 0.0  ;;  %v6529_v63 = vsel %vm19679_vm8, %v6389_v31, 0.0  ;;  %v16918_v17 = vpop.xlane.xlu1 %6404  ;;  %vm11022_vm8 = vcmask 1048512  }
 0x4de   : > { %6530 = vadd.xlane.f32.xlu1 %v6529_v63 }
 0x4df   : > { %v6390_v5 = vmul.f32 %v16725_v2, %v6335_v15 }
 0x4e1   : > { %v6532_v40 = vsel %vm19680_vm9, %v6390_v5, 0.0  ;;  %v16922_v44 = vpop.xlane.xlu1 %6410 }
 0x4e2   : > { %6533 = vadd.xlane.f32.xlu0 %v6532_v40 }
 0x4e3   : > { %v16948_v62 = vpop.xlane.xlu0 %6431 }
 0x4e5   : > { %v16926_v49 = vpop.xlane.xlu1 %6416 }
 0x4e9   : > { %v16930_v2 = vpop.xlane.xlu1 %6422 }
 0x4eb   : > { %v16952_v27 = vpop.xlane.xlu0 %6437 }
 0x4ed   : > { %v16934_v54 = vpop.xlane.xlu1 %6428 }
 0x4ef   : > { %6538 = vperm.xlu1 %12133, %v6535_v10  }
 0x4f1   : > { %v16938_v24 = vpop.xlane.xlu1 %6434 }
 0x4f3   : > { %v16956_v18 = vpop.xlane.xlu0 %6443 }
 0x4f5   : > { %v16942_v20 = vpop.xlane.xlu1 %6440 }
 0x4f9   : > { %v16946_v61 = vpop.xlane.xlu1 %6446 }
 0x4fb   : > { %v16960_v1 = vpop.xlane.xlu0 %6449 }
 0x4ff   : > { %v16950_v11 = vpop.xlane.xlu1 %6452 }
 0x503   : > { %v16964_v29 = vpop.xlane.xlu0 %6455 }
 0x507   : > { %v16954_v38 = vpop.xlane.xlu1 %6458 }
 0x50b   : > { %v16968_v55 = vpop.xlane.xlu0 %6461 }
 0x50f   : > { %v16958_v22 = vpop.xlane.xlu1 %6464 }
 0x513   : > { %v16972_v34 = vpop.xlane.xlu0 %6467 }
 0x517   : > { %v16962_v12 = vpop.xlane.xlu1 %6470 }
 0x51b   : > { %v16974_v21 = vpop.xlane.xlu0 %6473 }
 0x51f   : > { %v16966_v47 = vpop.xlane.xlu1 %6476 }
 0x523   : > { %v16976_v6 = vpop.xlane.xlu0 %6479 }
 0x527   : > { %v16970_v50 = vpop.xlane.xlu1 %6482 }
 0x52b   : > { %v16978_v51 = vpop.xlane.xlu0 %6485 }
 0x52f   : > { %v6489_v0 = vpop.xlane.xlu1 %6488 }
 0x533   : > { %v6492_v60 = vpop.xlane.xlu0 %6491 }
 0x537   : > { %v6495_v46 = vpop.xlane.xlu1 %6494 }
 0x53b   : > { %v6498_v56 = vpop.xlane.xlu0 %6497 }
 0x53f   : > { %v6501_v19 = vpop.xlane.xlu1 %6500 }
 0x543   : > { %v6504_v28 = vpop.xlane.xlu0 %6503 }
 0x547   : > { %v6507_v43 = vpop.xlane.xlu1 %6506 }
 0x54b   : > { %v6510_v3 = vpop.xlane.xlu0 %6509 }
 0x54f   : > { %v6513_v23 = vpop.xlane.xlu1 %6512 }
 0x553   : > { %v16980_v33 = vpop.xlane.xlu0 %6515 }
 0x557   : > { %v6519_v4 = vpop.xlane.xlu1 %6518 }
 0x55b   : > { %v16985_v32 = vpop.xlane.xlu0 %6521 }
 0x55f   : > { %v6525_v59 = vpop.xlane.xlu1 %6524 }
 0x563   : > { %v16990_v53 = vpop.xlane.xlu0 %6527 }
 0x567   : > { %v6531_v36 = vpop.xlane.xlu1 %6530 }
 0x56b   : > { %v6539_v13 = vpop.permute.xlu1 %6538  ;;  %v6534_v5 = vpop.xlane.xlu0 %6533 }
 0x56c   : > { %v16988_v35 = vrot.slane %v6539_v13, %v16983_v9  ;;  %v17047_v13 = vsub.s32 2, %v19681_v8 }
 0x56e   : > { %v16993_v45 = vadd.f32 %v16988_v35, %v6489_v0  ;;  %v16996_v39 = vadd.f32 %v16988_v35, %v6492_v60  ;;  %v16999_v16 = vadd.f32 %v16988_v35, %v6495_v46  ;;  %v17002_v57 = vadd.f32 %v16988_v35, %v6498_v56 }
 0x56f   : > { %v17005_v42 = vadd.f32 %v16988_v35, %v6501_v19  ;;  %v17008_v14 = vadd.f32 %v16988_v35, %v6504_v28  ;;  %v17011_v52 = vadd.f32 %v16988_v35, %v6507_v43  ;;  %v17014_v31 = vadd.f32 %v16988_v35, %v6510_v3 }
 0x570   : > { %v17017_v15 = vadd.f32 %v16988_v35, %v6513_v23  ;;  %v17020_v63 = vadd.f32 %v16988_v35, %v6519_v4  ;;  %v17023_v40 = vadd.f32 %v16988_v35, %v6525_v59  ;;  %v17026_v10 = vadd.f32 %v16988_v35, %v6531_v36 }
 0x571   : > { %v6592_v0 = vadd.f32 %v16988_v35, %v6534_v5  ;;  %v6545_v43 = vadd.f32 %v16988_v35, %v16920_v58  ;;  %v6546_v60 = vadd.f32 %v16988_v35, %v16916_v25  ;;  %v6547_v23 = vadd.f32 %v16988_v35, %v16924_v41 }
 0x572   : > { %19682 = vst [vmem:[#allocation53_spill] sm:$0xff] %v17017_v15  ;;  %19683 = vst [vmem:[#allocation14_spill] sm:$0xff] %v17020_v63  ;;  %v6548_v56 = vadd.f32 %v16988_v35, %v16928_v48  ;;  %v6549_v4 = vadd.f32 %v16988_v35, %v16918_v17  ;;  %v6550_v28 = vadd.f32 %v16988_v35, %v16932_v26  ;;  %v17044_v25 = vsub.s32 1, %v19681_v8 }
 0x573   : > { %19684 = vst [vmem:[#allocation15_spill] sm:$0xff] %v17023_v40  ;;  %19685 = vst [vmem:[#allocation68_spill] sm:$0xff] %v17026_v10  ;;  %v6640_v46 = vsub.f32 0.0, %v6592_v0  ;;  %v6551_v59 = vadd.f32 %v16988_v35, %v16922_v44  ;;  %v6593_v58 = vsub.f32 0.0, %v6545_v43  ;;  %v6594_v3 = vsub.f32 0.0, %v6546_v60 }
 0x574   : > { %v6595_v36 = vsub.f32 0.0, %v6547_v23  ;;  %v6596_v41 = vsub.f32 0.0, %v6548_v56  ;;  %v17050_v48 = vsub.s32 3, %v19681_v8  ;;  %v6552_v17 = vadd.f32 %v16988_v35, %v16936_v37 }
 0x575   : > { %v6735_v19 = vmul.f32 1.442695, %v6640_v46  ;;  %v6597_v26 = vsub.f32 0.0, %v6549_v4  ;;  %v17055_v5 = vsub.s32 4, %v19681_v8  ;;  %v17058_v44 = vsub.s32 5, %v19681_v8 }
 0x576   : > { %v6553_v0 = vadd.f32 %v16988_v35, %v16926_v49  ;;  %v6598_v46 = vsub.f32 0.0, %v6550_v28  ;;  %v17066_v43 = vsub.s32 7, %v19681_v8  ;;  %v6554_v37 = vadd.f32 %v16988_v35, %v16940_v7 }
 0x577   : > { %12342 = vpow2.f32 %v6735_v19  ;;  %v17063_v19 = vsub.s32 6, %v19681_v8  ;;  %v6599_v60 = vsub.f32 0.0, %v6551_v59  ;;  %v6641_v23 = vmul.f32 1.442695, %v6593_v58 }
 0x578   : > { %19687 = vst [vmem:[#allocation54_spill] sm:$0xff] %v17066_v43  ;;  %v6643_v56 = vmul.f32 1.442695, %v6594_v3  ;;  %v6555_v4 = vadd.f32 %v16988_v35, %v16930_v2  ;;  %v6645_v10 = vmul.f32 1.442695, %v6595_v36  ;;  %v6556_v49 = vadd.f32 %v16988_v35, %v16944_v30 }
 0x579   : > { %19686 = vst [vmem:[#allocation69_spill] sm:$0xff] %v17063_v19  ;;  %v6647_v40 = vmul.f32 1.442695, %v6596_v41  ;;  %v6600_v28 = vsub.f32 0.0, %v6552_v17  ;;  %v6649_v63 = vmul.f32 1.442695, %v6597_v26  ;;  %v6557_v15 = vadd.f32 %v16988_v35, %v16934_v54 }
 0x57a   : > { %12344 = vpow2.f32 %v6643_v56  ;;  %v6601_v43 = vsub.f32 0.0, %v6553_v0  ;;  %v6651_v19 = vmul.f32 1.442695, %v6598_v46  ;;  %v6558_v7 = vadd.f32 %v16988_v35, %v16948_v62 }
 0x57b   : > { %12346 = vpow2.f32 %v6641_v23  ;;  %v6602_v59 = vsub.f32 0.0, %v6554_v37  ;;  %v6653_v58 = vmul.f32 1.442695, %v6599_v60  ;;  %v6559_v2 = vadd.f32 %v16988_v35, %v16938_v24 }
 0x57c   : > { %12348 = vpow2.f32 %v6645_v10  ;;  %v6603_v3 = vsub.f32 0.0, %v6555_v4  ;;  %v12601_v30 = vmov 1966171168   ;;  %v6560_v54 = vadd.f32 %v16988_v35, %v16952_v27 }
 0x57d   : > { %v17080_v36 = vunpack.c.l.s4 %v12601_v30  ;;  %12350 = vpow2.f32 %v6647_v40  ;;  %v6604_v17 = vsub.f32 0.0, %v6556_v49  ;;  %v6655_v26 = vmul.f32 1.442695, %v6600_v28 }
 0x57e   : > { %12352 = vpow2.f32 %v6649_v63  ;;  %v6605_v62 = vsub.f32 0.0, %v6557_v15  ;;  %v6657_v46 = vmul.f32 1.442695, %v6601_v43  ;;  %v6561_v10 = vadd.f32 %v16988_v35, %v16942_v20 }
 0x57f   : > { %12354 = vpow2.f32 %v6651_v19  ;;  %v6606_v24 = vsub.f32 0.0, %v6558_v7  ;;  %v6659_v37 = vmul.f32 1.442695, %v6602_v59  ;;  %v6562_v40 = vadd.f32 %v16988_v35, %v16956_v18 }
 0x580   : > { %12356 = vpow2.f32 %v6653_v58  ;;  %v6607_v60 = vsub.f32 0.0, %v6559_v2  ;;  %v6661_v23 = vmul.f32 1.442695, %v6603_v3  ;;  %v6563_v27 = vadd.f32 %v16988_v35, %v16946_v61 }
 0x581   : > { %v6663_v63 = vmul.f32 1.442695, %v6604_v17  ;;  %v8423_v15 = vunpack.c.0.s8 %v17080_v36  ;;  %v6564_v19 = vadd.f32 %v16988_v35, %v16960_v1  ;;  %v6608_v20 = vsub.f32 0.0, %v6560_v54 }
 0x582   : > { %v6665_v43 = vmul.f32 1.442695, %v6605_v62  ;;  %v6565_v56 = vadd.f32 %v16988_v35, %v16950_v11  ;;  %v6609_v18 = vsub.f32 0.0, %v6561_v10  ;;  %v6667_v4 = vmul.f32 1.442695, %v6606_v24 }
 0x583   : > { %v6566_v49 = vadd.f32 %v16988_v35, %v16964_v29  ;;  %v6610_v61 = vsub.f32 0.0, %v6562_v40  ;;  %v6669_v28 = vmul.f32 1.442695, %v6607_v60  ;;  %v6567_v7 = vadd.f32 %v16988_v35, %v16954_v38 }
 0x584   : > { %v12343_v41 = vpop.eup %12342  ;;  %v6568_v1 = vadd.f32 %v16988_v35, %v16968_v55  ;;  %v6611_v59 = vsub.f32 0.0, %v6563_v27  ;;  %v6569_v11 = vadd.f32 %v16988_v35, %v16958_v22  ;;  %v6612_v2 = vsub.f32 0.0, %v6564_v19 }
 0x585   : > { %v6784_v0 = vadd.f32 1.0, %v12343_v41  ;;  %v6671_v3 = vmul.f32 1.442695, %v6608_v20  ;;  %v6613_v29 = vsub.f32 0.0, %v6565_v56  ;;  %v6673_v41 = vmul.f32 1.442695, %v6609_v18 }
 0x586   : > { %v6570_v38 = vadd.f32 %v16988_v35, %v16972_v34  ;;  %v6614_v55 = vsub.f32 0.0, %v6566_v49  ;;  %v6571_v22 = vadd.f32 %v16988_v35, %v16962_v12  ;;  %v6615_v62 = vsub.f32 0.0, %v6567_v7 }
 0x587   : > { %12358 = vrcp.f32 %v6784_v0  ;;  %v12345_v58 = vpop.eup %12344  ;;  %v6572_v24 = vadd.f32 %v16988_v35, %v16974_v21  ;;  %v6679_v40 = vmul.f32 1.442695, %v6612_v2  ;;  %v6573_v60 = vadd.f32 %v16988_v35, %v16966_v47 }
 0x588   : > { %12360 = vpow2.f32 %v6655_v26  ;;  %v17103_v30 = vpop.eup %12346  ;;  %v6738_v54 = vadd.f32 1.0, %v12345_v58  ;;  %v6675_v26 = vmul.f32 1.442695, %v6610_v61  ;;  %v6681_v27 = vmul.f32 1.442695, %v6613_v29 }
 0x589   : > { %12362 = vpow2.f32 %v6657_v46  ;;  %v17105_v17 = vpop.eup %12348  ;;  %v6677_v46 = vmul.f32 1.442695, %v6611_v59  ;;  %v6618_v19 = vsub.f32 0.0, %v6570_v38  ;;  %v6683_v20 = vmul.f32 1.442695, %v6614_v55 }
 0x58a   : > { %12364 = vpow2.f32 %v6659_v37  ;;  %v17109_v0 = vpop.eup %12350  ;;  %v6616_v37 = vsub.f32 0.0, %v6568_v1  ;;  %v6619_v56 = vsub.f32 0.0, %v6571_v22  ;;  %v6685_v18 = vmul.f32 1.442695, %v6615_v62 }
 0x58b   : > { %12366 = vpow2.f32 %v6661_v23  ;;  %v17113_v10 = vpop.eup %12352  ;;  %v6617_v23 = vsub.f32 0.0, %v6569_v11  ;;  %v6620_v49 = vsub.f32 0.0, %v6572_v24  ;;  %v17152_v59 = vadd.f32 %v16988_v35, %v16990_v53 }
 0x58c   : > { %12368 = vpow2.f32 %v6663_v63  ;;  %v17117_v34 = vpop.eup %12354  ;;  %v6574_v63 = vadd.f32 %v16988_v35, %v16976_v6  ;;  %v6687_v61 = vmul.f32 1.442695, %v6616_v37  ;;  %v6691_v58 = vmul.f32 1.442695, %v6618_v19 }
 0x58d   : > { %12370 = vpow2.f32 %v6665_v43  ;;  %v17121_v12 = vpop.eup %12356  ;;  %v6575_v43 = vadd.f32 %v16988_v35, %v16970_v50  ;;  %v6689_v7 = vmul.f32 1.442695, %v6617_v23  ;;  %v17142_v50 = vsub.s32 %v8423_v15, %v19681_v8 }
 0x58e   : > { %12372 = vpow2.f32 %v6667_v4  ;;  %v6576_v4 = vadd.f32 %v16988_v35, %v16978_v51  ;;  %v17148_v51 = vadd.f32 %v16988_v35, %v16985_v32  ;;  %v6621_v11 = vsub.f32 0.0, %v6573_v60 }
 0x58f   : > { %12374 = vpow2.f32 %v6669_v28  ;;  %v17137_v28 = vadd.f32 %v16988_v35, %v16980_v33  ;;  %v6622_v2 = vsub.f32 0.0, %v6574_v63  ;;  %v6693_v36 = vmul.f32 1.442695, %v6619_v56  ;;  %v19689_v63 = vld [vmem:[#allocation69_spill] sm:$0xff] }
 0x590   : > { %12376 = vrcp.f32 %v6738_v54  ;;  %v6624_v29 = vsub.f32 0.0, %v6576_v4  ;;  %v6625_v54 = vsub.f32 0.0, %v16993_v45  ;;  %v6626_v35 = vsub.f32 0.0, %v16996_v39 }
 0x591   : > { %12378 = vpow2.f32 %v6671_v3  ;;  %v6623_v3 = vsub.f32 0.0, %v6575_v43  ;;  %v6627_v53 = vsub.f32 0.0, %v16999_v16  ;;  %v6628_v55 = vsub.f32 0.0, %v17002_v57 }
 0x592   : > { %12380 = vpow2.f32 %v6673_v41  ;;  %v6695_v41 = vmul.f32 1.442695, %v6620_v49  ;;  %v6630_v22 = vsub.f32 0.0, %v17008_v14  ;;  %v6632_v45 = vsub.f32 0.0, %v17014_v31 }
 0x593   : > { %12382 = vpow2.f32 %v6675_v26  ;;  %v6629_v26 = vsub.f32 0.0, %v17005_v42  ;;  %v6697_v24 = vmul.f32 1.442695, %v6621_v11  ;;  %v6699_v16 = vmul.f32 1.442695, %v6622_v2 }
 0x594   : > { %v17125_v21 = vpop.eup %12358  ;;  %12384 = vpow2.f32 %v6677_v46  ;;  %v6631_v46 = vsub.f32 0.0, %v17011_v52  ;;  %v6701_v37 = vmul.f32 1.442695, %v6623_v3 }
 0x595   : > { %19688 = vst [vmem:[#allocation70_spill] sm:$0xff] %v17125_v21  ;;  %v17129_v47 = vpop.eup %12360  ;;  %12386 = vpow2.f32 %v6679_v40  ;;  %v6703_v40 = vmul.f32 1.442695, %v6624_v29 }
 0x596   : > { %v17133_v6 = vpop.eup %12362  ;;  %12388 = vpow2.f32 %v6681_v27 }
 0x597   : > { %v17144_v1 = vpop.eup %12364  ;;  %12390 = vpow2.f32 %v6683_v20  ;;  %v19690_v20 = vld [vmem:[#allocation54_spill] sm:$0xff] }
 0x598   : > { %v17154_v33 = vpop.eup %12366  ;;  %12392 = vpow2.f32 %v6685_v18  ;;  %v6705_v18 = vmul.f32 1.442695, %v6625_v54  ;;  %v6711_v54 = vmul.f32 1.442695, %v6628_v55 }
 0x599   : > { %v17156_v15 = vpop.eup %12368  ;;  %12394 = vpow2.f32 %v6687_v61 }
 0x59a   : > { %v17158_v32 = vpop.eup %12370  ;;  %12396 = vpow2.f32 %v6689_v7  ;;  %v6707_v7 = vmul.f32 1.442695, %v6626_v35 }
 0x59b   : > { %v17163_v38 = vpop.eup %12372  ;;  %12398 = vpow2.f32 %v6691_v58 }
 0x59c   : > { %v17168_v62 = vpop.eup %12374  ;;  %12400 = vpow2.f32 %v6693_v36  ;;  %v6709_v36 = vmul.f32 1.442695, %v6627_v53 }
 0x59d   : > { %v12377_v39 = vpop.eup %12376  ;;  %12402 = vpow2.f32 %v6695_v41 }
 0x59e   : > { %v17172_v60 = vpop.eup %12378  ;;  %v6916_v57 = vrot.slane %v12377_v39, %v16983_v9  ;;  %v6920_v42 = vrot.slane %v12377_v39, %v17044_v25  ;;  %v6924_v14 = vrot.slane %v12377_v39, %v17047_v13  ;;  %v6928_v23 = vrot.slane %v12377_v39, %v17050_v48 }
 0x59f   : > { %v17178_v52 = vpop.eup %12380  ;;  %v6932_v31 = vrot.slane %v12377_v39, %v17055_v5  ;;  %v6936_v27 = vrot.slane %v12377_v39, %v17058_v44  ;;  %v6940_v19 = vrot.slane %v12377_v39, %v19689_v63  ;;  %v6944_v43 = vrot.slane %v12377_v39, %v19690_v20 }
 0x5a0   : > { %v17184_v56 = vpop.eup %12382  ;;  %v8466_v4 = vcombine.low %v6916_v57, %v6920_v42  ;;  %v8467_v49 = vcombine.low %v6924_v14, %v6928_v23  ;;  %12404 = vpow2.f32 %v6697_v24  ;;  %v19691_v57 = vld [vmem:[#allocation53_spill] sm:$0xff]  ;;  %v6713_v42 = vmul.f32 1.442695, %v6629_v26 }
 0x5a1   : > { %v17186_v61 = vpop.eup %12384  ;;  %v8468_v58 = vcombine.low %v6932_v31, %v6936_v27  ;;  %v8469_v11 = vcombine.low %v6940_v19, %v6944_v43  ;;  %12406 = vpow2.f32 %v6699_v16  ;;  %v6633_v16 = vsub.f32 0.0, %v19691_v57  ;;  %v19692_v27 = vld [vmem:[#allocation14_spill] sm:$0xff] }
 0x5a2   : > { %v17188_v2 = vpop.eup %12386  ;;  %v8476_v3 = vrot.slane %v8466_v4, %v17142_v50  ;;  %v8483_v29 = vrot.slane %v8467_v49, %v17142_v50  ;;  %12408 = vpow2.f32 %v6701_v37  ;;  %v6634_v23 = vsub.f32 0.0, %v17137_v28 }
 0x5a3   : > { %v17192_v41 = vpop.eup %12388  ;;  %v8490_v39 = vrot.slane %v8468_v58, %v17142_v50  ;;  %v8497_v24 = vrot.slane %v8469_v11, %v17142_v50  ;;  %12410 = vpow2.f32 %v6703_v40  ;;  %v6715_v37 = vmul.f32 1.442695, %v6630_v22  ;;  %v19693_v22 = vld [vmem:[#allocation15_spill] sm:$0xff] }
 0x5a4   : > { %v17196_v35 = vpop.eup %12390  ;;  %v8498_v14 = vcombine.low %v8476_v3, %v8483_v29  ;;  %12412 = vpow2.f32 %v6705_v18  ;;  %v6635_v19 = vsub.f32 0.0, %v19692_v27  ;;  %v6717_v43 = vmul.f32 1.442695, %v6631_v46 }
 0x5a5   : > { %v17199_v53 = vpop.eup %12392  ;;  %v8499_v31 = vcombine.low %v8490_v39, %v8497_v24  ;;  %12414 = vpow2.f32 %v6707_v7  ;;  %v6636_v26 = vsub.f32 0.0, %v17148_v51  ;;  %v6719_v18 = vmul.f32 1.442695, %v6632_v45  ;;  %v19694_v51 = vld [vmem:[#allocation68_spill] sm:$0xff] }
 0x5a6   : > { %v17202_v55 = vpop.eup %12394  ;;  %v8506_v40 = vrot.slane %v8498_v14, %v17142_v50  ;;  %12416 = vpow2.f32 %v6709_v36  ;;  %v6637_v7 = vsub.f32 0.0, %v19693_v22  ;;  %v6721_v58 = vmul.f32 1.442695, %v6633_v16 }
 0x5a7   : > { %v17206_v4 = vpop.eup %12396  ;;  %v8513_v49 = vrot.slane %v8499_v31, %v17142_v50  ;;  %12418 = vpow2.f32 %v6711_v54  ;;  %v6638_v46 = vsub.f32 0.0, %v17152_v59  ;;  %v6723_v3 = vmul.f32 1.442695, %v6634_v23 }
 0x5a8   : > { %v17210_v28 = vpop.eup %12398  ;;  %12420 = vpow2.f32 %v6713_v42  ;;  %v6639_v45 = vsub.f32 0.0, %v19694_v51  ;;  %v6725_v39 = vmul.f32 1.442695, %v6635_v19  ;;  %v6727_v54 = vmul.f32 1.442695, %v6636_v26 }
 0x5a9   : > { %v17213_v11 = vpop.eup %12400  ;;  %v8514_v36 = vcombine.low %v8506_v40, %v8513_v49  ;;  %12422 = vpow2.f32 %v6715_v37  ;;  %v6729_v24 = vmul.f32 1.442695, %v6637_v7  ;;  %v6731_v16 = vmul.f32 1.442695, %v6638_v46 }
 0x5aa   : > { %v17216_v29 = vpop.eup %12402  ;;  %12424 = vpow2.f32 %v6717_v43  ;;  %v6733_v14 = vmul.f32 1.442695, %v6639_v45  ;;  %v6737_v23 = vadd.f32 1.0, %v17103_v30  ;;  %v6739_v31 = vadd.f32 1.0, %v17105_v17 }
 0x5ab   : > { %10773 = vperm.xlu1 %12133, %v8514_v36   ;;  %12426 = vpow2.f32 %v6719_v18  ;;  %v6740_v19 = vadd.f32 1.0, %v17109_v0  ;;  %v6741_v40 = vadd.f32 1.0, %v17113_v10  ;;  %v6742_v18 = vadd.f32 1.0, %v17117_v34 }
 0x5ac   : > { %12428 = vpow2.f32 %v6721_v58  ;;  %v6743_v49 = vadd.f32 1.0, %v17121_v12  ;;  %v6744_v30 = vadd.f32 1.0, %v17129_v47  ;;  %v6745_v7 = vadd.f32 1.0, %v17133_v6 }
 0x5ad   : > { %v12405_v57 = vpop.eup %12404  ;;  %12430 = vpow2.f32 %v6723_v3  ;;  %v6746_v17 = vadd.f32 1.0, %v17144_v1  ;;  %v6747_v58 = vadd.f32 1.0, %v17154_v33  ;;  %v6748_v46 = vadd.f32 1.0, %v17156_v15 }
 0x5ae   : > { %v12407_v42 = vpop.eup %12406  ;;  %12432 = vpow2.f32 %v6725_v39  ;;  %v6749_v10 = vadd.f32 1.0, %v17158_v32  ;;  %v6750_v3 = vadd.f32 1.0, %v17163_v38  ;;  %v6751_v12 = vadd.f32 1.0, %v17168_v62 }
 0x5af   : > { %v12409_v59 = vpop.eup %12408  ;;  %12434 = vpow2.f32 %v6727_v54  ;;  %v17234_v47 = vadd.f32 1.0, %v17172_v60  ;;  %v17237_v6 = vadd.f32 1.0, %v17178_v52  ;;  %v17240_v33 = vadd.f32 1.0, %v17184_v56 }
 0x5b0   : > { %v12411_v37 = vpop.eup %12410  ;;  %12436 = vpow2.f32 %v6729_v24  ;;  %v17243_v15 = vadd.f32 1.0, %v17186_v61  ;;  %v17246_v32 = vadd.f32 1.0, %v17188_v2  ;;  %v17249_v62 = vadd.f32 1.0, %v17192_v41 }
 0x5b1   : > { %v12413_v27 = vpop.eup %12412  ;;  %12438 = vpow2.f32 %v6731_v16  ;;  %v17252_v60 = vadd.f32 1.0, %v17196_v35  ;;  %v17255_v52 = vadd.f32 1.0, %v17199_v53  ;;  %v17258_v36 = vadd.f32 1.0, %v17202_v55 }
 0x5b2   : > { %v12415_v43 = vpop.eup %12414  ;;  %12440 = vpow2.f32 %v6733_v14  ;;  %v17261_v61 = vadd.f32 1.0, %v17206_v4  ;;  %v17264_v2 = vadd.f32 1.0, %v17210_v28  ;;  %v17267_v51 = vadd.f32 1.0, %v17213_v11 }
 0x5b3   : > { %v12417_v26 = vpop.eup %12416  ;;  %12442 = vrcp.f32 %v6737_v23  ;;  %v17270_v35 = vadd.f32 1.0, %v17216_v29  ;;  %v17272_v53 = vadd.f32 1.0, %v12405_v57  ;;  %v17274_v55 = vadd.f32 1.0, %v12407_v42 }
 0x5b4   : > { %v12419_v22 = vpop.eup %12418  ;;  %12444 = vrcp.f32 %v6739_v31  ;;  %v17276_v39 = vadd.f32 1.0, %v12409_v59  ;;  %v17278_v4 = vadd.f32 1.0, %v12411_v37  ;;  %v17280_v54 = vadd.f32 1.0, %v12413_v27 }
 0x5b5   : > { %v12421_v0 = vpop.eup %12420  ;;  %12446 = vrcp.f32 %v6740_v19  ;;  %v17282_v24 = vadd.f32 1.0, %v12415_v43  ;;  %v17284_v11 = vadd.f32 1.0, %v12417_v26  ;;  %v17286_v57 = vadd.f32 1.0, %v12419_v22 }
 0x5b6   : > { %v12423_v34 = vpop.eup %12422  ;;  %12448 = vrcp.f32 %v6741_v40  ;;  %v17288_v16 = vadd.f32 1.0, %v12421_v0 }
 0x5b7   : > { %v12425_v1 = vpop.eup %12424  ;;  %12450 = vrcp.f32 %v6742_v18  ;;  %v17290_v42 = vadd.f32 1.0, %v12423_v34 }
 0x5b8   : > { %v12427_v38 = vpop.eup %12426  ;;  %12452 = vrcp.f32 %v6743_v49  ;;  %v17292_v59 = vadd.f32 1.0, %v12425_v1 }
 0x5b9   : > { %v12429_v56 = vpop.eup %12428  ;;  %12454 = vrcp.f32 %v6744_v30  ;;  %v17294_v23 = vadd.f32 1.0, %v12427_v38 }
 0x5ba   : > { %v12431_v41 = vpop.eup %12430  ;;  %12456 = vrcp.f32 %v6745_v7  ;;  %v17296_v37 = vadd.f32 1.0, %v12429_v56 }
 0x5bb   : > { %v12433_v45 = vpop.eup %12432  ;;  %12458 = vrcp.f32 %v6746_v17  ;;  %v17298_v27 = vadd.f32 1.0, %v12431_v41 }
 0x5bc   : > { %v12435_v28 = vpop.eup %12434  ;;  %12460 = vrcp.f32 %v6747_v58  ;;  %v17300_v19 = vadd.f32 1.0, %v12433_v45 }
 0x5bd   : > { %v12437_v29 = vpop.eup %12436  ;;  %12462 = vrcp.f32 %v6748_v46  ;;  %v17302_v43 = vadd.f32 1.0, %v12435_v28 }
 0x5be   : > { %v12439_v14 = vpop.eup %12438  ;;  %12464 = vrcp.f32 %v6749_v10  ;;  %v17304_v26 = vadd.f32 1.0, %v12437_v29 }
 0x5bf   : > { %v12441_v31 = vpop.eup %12440  ;;  %12466 = vrcp.f32 %v6750_v3  ;;  %v17306_v18 = vadd.f32 1.0, %v12439_v14 }
 0x5c0   : > { %v12443_v40 = vpop.eup %12442  ;;  %19695 = vst [vmem:[#allocation71_spill] sm:$0xff] %v17304_v26  ;;  %v17308_v49 = vadd.f32 1.0, %v12441_v31  ;;  %12468 = vrcp.f32 %v6751_v12 }
 0x5c1   : > { %19696 = vst [vmem:[#allocation55_spill] sm:$0xff] %v17306_v18  ;;  %v12445_v30 = vpop.eup %12444  ;;  %v6884_v22 = vrot.slane %v12443_v40, %v16983_v9  ;;  %v6888_v7 = vrot.slane %v12443_v40, %v17044_v25  ;;  %v6892_v17 = vrot.slane %v12443_v40, %v17047_v13  ;;  %v6896_v58 = vrot.slane %v12443_v40, %v17050_v48 }
 0x5c2   : > { %19697 = vst [vmem:[#allocation16_spill] sm:$0xff] %v17308_v49  ;;  %v17314_v0 = vpop.eup %12446  ;;  %v6900_v46 = vrot.slane %v12443_v40, %v17055_v5  ;;  %v6904_v10 = vrot.slane %v12443_v40, %v17058_v44  ;;  %v6908_v3 = vrot.slane %v12443_v40, %v19689_v63  ;;  %v6912_v34 = vrot.slane %v12443_v40, %v19690_v20 }
 0x5c3   : > { %v17320_v12 = vpop.eup %12448  ;;  %v8417_v1 = vcombine.low %v6884_v22, %v6888_v7  ;;  %v8418_v38 = vcombine.low %v6892_v17, %v6896_v58  ;;  %v6948_v56 = vrot.slane %v12445_v30, %v16983_v9  ;;  %v6952_v41 = vrot.slane %v12445_v30, %v17044_v25 }
 0x5c4   : > { %v17324_v45 = vpop.eup %12450  ;;  %v8419_v28 = vcombine.low %v6900_v46, %v6904_v10  ;;  %v8420_v29 = vcombine.low %v6908_v3, %v6912_v34  ;;  %v6956_v14 = vrot.slane %v12445_v30, %v17047_v13  ;;  %v6960_v31 = vrot.slane %v12445_v30, %v17050_v48 }
 0x5c5   : > { %19698 = vst [vmem:[#allocation17_spill] sm:$0xff] %v17324_v45  ;;  %v17328_v8 = vpop.eup %12452  ;;  %v8427_v40 = vrot.slane %v8417_v1, %v17142_v50  ;;  %v8434_v21 = vrot.slane %v8418_v38, %v17142_v50  ;;  %v6964_v22 = vrot.slane %v12445_v30, %v17055_v5  ;;  %v6968_v7 = vrot.slane %v12445_v30, %v17058_v44 }
 0x5c6   : > { %19699 = vst [vmem:[#allocation73_spill] sm:$0xff] %v17328_v8  ;;  %v17334_v17 = vpop.eup %12454  ;;  %v8441_v58 = vrot.slane %v8419_v28, %v17142_v50  ;;  %v8448_v46 = vrot.slane %v8420_v29, %v17142_v50  ;;  %v6972_v10 = vrot.slane %v12445_v30, %v19689_v63  ;;  %v6976_v3 = vrot.slane %v12445_v30, %v19690_v20 }
 0x5c7   : > { %19700 = vst [vmem:[#allocation72_spill] sm:$0xff] %v17334_v17  ;;  %v17340_v34 = vpop.eup %12456  ;;  %v8449_v8 = vcombine.low %v8427_v40, %v8434_v21  ;;  %v8515_v1 = vcombine.low %v6948_v56, %v6952_v41  ;;  %v8516_v45 = vcombine.low %v6956_v14, %v6960_v31  ;;  %v8517_v38 = vcombine.low %v6964_v22, %v6968_v7 }
 0x5c8   : > { %19701 = vst [vmem:[#allocation61_spill] sm:$0xff] %v17340_v34  ;;  %v12459_v49 = vpop.eup %12458  ;;  %v8450_v18 = vcombine.low %v8441_v58, %v8448_v46  ;;  %v8518_v26 = vcombine.low %v6972_v10, %v6976_v3  ;;  %12470 = vrcp.f32 %v17234_v47  ;;  %v6980_v28 = vrot.slane %v17314_v0, %v16983_v9 }
 0x5c9   : > { %v17345_v17 = vpop.eup %12460  ;;  %v8457_v29 = vrot.slane %v8449_v8, %v17142_v50  ;;  %v8525_v30 = vrot.slane %v8515_v1, %v17142_v50  ;;  %v8532_v34 = vrot.slane %v8516_v45, %v17142_v50  ;;  %v8539_v21 = vrot.slane %v8517_v38, %v17142_v50 }
 0x5ca   : > { %v17351_v56 = vpop.eup %12462  ;;  %v8464_v41 = vrot.slane %v8450_v18, %v17142_v50  ;;  %v8546_v14 = vrot.slane %v8518_v26, %v17142_v50  ;;  %12472 = vrcp.f32 %v17237_v6  ;;  %v7172_v47 = vrot.slane %v12459_v49, %v16983_v9 }
 0x5cb   : > { %v17357_v31 = vpop.eup %12464  ;;  %v8547_v40 = vcombine.low %v8525_v30, %v8532_v34  ;;  %12474 = vrcp.f32 %v17240_v33  ;;  %v7176_v8 = vrot.slane %v12459_v49, %v17044_v25  ;;  %v7180_v45 = vrot.slane %v12459_v49, %v17047_v13 }
 0x5cc   : > { %v17362_v22 = vpop.eup %12466  ;;  %v8465_v7 = vcombine.low %v8457_v29, %v8464_v41  ;;  %v8548_v58 = vcombine.low %v8539_v21, %v8546_v14  ;;  %12476 = vrcp.f32 %v17243_v15  ;;  %v7184_v26 = vrot.slane %v12459_v49, %v17050_v48 }
 0x5cd   : > { %v17366_v6 = vpop.eup %12468  ;;  %v8555_v18 = vrot.slane %v8547_v40, %v17142_v50  ;;  %12478 = vrcp.f32 %v17246_v32  ;;  %v7188_v33 = vrot.slane %v12459_v49, %v17055_v5  ;;  %v7192_v46 = vrot.slane %v12459_v49, %v17058_v44 }
 0x5ce   : > { %10770 = vperm.xlu0 %12134, %v8465_v7   ;;  %v8562_v10 = vrot.slane %v8548_v58, %v17142_v50  ;;  %12480 = vrcp.f32 %v17249_v62  ;;  %v7196_v3 = vrot.slane %v12459_v49, %v19689_v63  ;;  %v7200_v15 = vrot.slane %v12459_v49, %v19690_v20 }
 0x5cf   : > { %12482 = vrcp.f32 %v17252_v60  ;;  %v8858_v34 = vcombine.low %v7172_v47, %v7176_v8  ;;  %v8859_v1 = vcombine.low %v7180_v45, %v7184_v26  ;;  %v8860_v38 = vcombine.low %v7188_v33, %v7192_v46 }
 0x5d0   : > { %v8563_v29 = vcombine.low %v8555_v18, %v8562_v10  ;;  %12484 = vrcp.f32 %v17255_v52  ;;  %v8861_v32 = vcombine.low %v7196_v3, %v7200_v15  ;;  %v6984_v30 = vrot.slane %v17314_v0, %v17044_v25 }
 0x5d1   : > { %12486 = vrcp.f32 %v17258_v36  ;;  %v8868_v62 = vrot.slane %v8858_v34, %v17142_v50  ;;  %v8875_v21 = vrot.slane %v8859_v1, %v17142_v50  ;;  %v8882_v49 = vrot.slane %v8860_v38, %v17142_v50 }
 0x5d2   : > { %10776 = vperm.xlu1 %12133, %v8563_v29   ;;  %12488 = vrcp.f32 %v17261_v61  ;;  %v8889_v60 = vrot.slane %v8861_v32, %v17142_v50  ;;  %v6988_v52 = vrot.slane %v17314_v0, %v17047_v13  ;;  %v6992_v41 = vrot.slane %v17314_v0, %v17050_v48 }
 0x5d3   : > { %12490 = vrcp.f32 %v17264_v2  ;;  %v8890_v36 = vcombine.low %v8868_v62, %v8875_v21  ;;  %v6996_v14 = vrot.slane %v17314_v0, %v17055_v5  ;;  %v7000_v47 = vrot.slane %v17314_v0, %v17058_v44 }
 0x5d4   : > { %12492 = vrcp.f32 %v17267_v51  ;;  %v8891_v61 = vcombine.low %v8882_v49, %v8889_v60  ;;  %v7004_v40 = vrot.slane %v17314_v0, %v19689_v63  ;;  %v7008_v8 = vrot.slane %v17314_v0, %v19690_v20 }
 0x5d5   : > { %v17400_v45 = vpop.eup %12470  ;;  %12494 = vrcp.f32 %v17270_v35  ;;  %v8898_v2 = vrot.slane %v8890_v36, %v17142_v50  ;;  %v8564_v7 = vcombine.low %v6980_v28, %v6984_v30  ;;  %v8565_v58 = vcombine.low %v6988_v52, %v6992_v41 }
 0x5d6   : > { %12496 = vrcp.f32 %v17272_v53  ;;  %v8905_v26 = vrot.slane %v8891_v61, %v17142_v50  ;;  %v8566_v51 = vcombine.low %v6996_v14, %v7000_v47  ;;  %v8567_v18 = vcombine.low %v7004_v40, %v7008_v8 }
 0x5d7   : > { %v17406_v33 = vpop.eup %12472  ;;  %12498 = vrcp.f32 %v17274_v55  ;;  %v8574_v0 = vrot.slane %v8564_v7, %v17142_v50  ;;  %v8581_v46 = vrot.slane %v8565_v58, %v17142_v50  ;;  %v7236_v35 = vrot.slane %v17351_v56, %v16983_v9 }
 0x5d8   : > { %v17413_v10 = vpop.eup %12474  ;;  %12500 = vrcp.f32 %v17276_v39  ;;  %v8906_v53 = vcombine.low %v8898_v2, %v8905_v26  ;;  %v8588_v28 = vrot.slane %v8566_v51, %v17142_v50  ;;  %v8595_v3 = vrot.slane %v8567_v18, %v17142_v50 }
 0x5d9   : > { %v17418_v15 = vpop.eup %12476  ;;  %12502 = vrcp.f32 %v17278_v4  ;;  %v8596_v55 = vcombine.low %v8574_v0, %v8581_v46  ;;  %v7240_v34 = vrot.slane %v17351_v56, %v17044_v25  ;;  %v7244_v1 = vrot.slane %v17351_v56, %v17047_v13 }
 0x5da   : > { %v17425_v38 = vpop.eup %12478  ;;  %12504 = vrcp.f32 %v17280_v54  ;;  %10797 = vperm.xlu0 %12134, %v8906_v53   ;;  %v8597_v39 = vcombine.low %v8588_v28, %v8595_v3  ;;  %v7248_v29 = vrot.slane %v17351_v56, %v17050_v48  ;;  %v7252_v32 = vrot.slane %v17351_v56, %v17055_v5 }
 0x5db   : > { %v17432_v4 = vpop.eup %12480  ;;  %12506 = vrcp.f32 %v17282_v24  ;;  %v8604_v30 = vrot.slane %v8596_v55, %v17142_v50  ;;  %v7256_v62 = vrot.slane %v17351_v56, %v17058_v44  ;;  %v7260_v54 = vrot.slane %v17351_v56, %v19689_v63 }
 0x5dc   : > { %v17440_v21 = vpop.eup %12482  ;;  %12508 = vrcp.f32 %v17284_v11  ;;  %v8611_v49 = vrot.slane %v8597_v39, %v17142_v50  ;;  %v7264_v60 = vrot.slane %v17351_v56, %v19690_v20  ;;  %v8956_v52 = vcombine.low %v7236_v35, %v7240_v34 }
 0x5dd   : > { %v17446_v41 = vpop.eup %12484  ;;  %12510 = vrcp.f32 %v17286_v57  ;;  %v8957_v24 = vcombine.low %v7244_v1, %v7248_v29  ;;  %v8958_v36 = vcombine.low %v7252_v32, %v7256_v62  ;;  %v7012_v14 = vrot.slane %v17320_v12, %v16983_v9  ;;  %v19703_v62 = vld [vmem:[#allocation71_spill] sm:$0xff] }
 0x5de   : > { %v17451_v47 = vpop.eup %12486  ;;  %12512 = vrcp.f32 %v17288_v16  ;;  %v8612_v11 = vcombine.low %v8604_v30, %v8611_v49  ;;  %v8959_v61 = vcombine.low %v7260_v54, %v7264_v60  ;;  %v8966_v40 = vrot.slane %v8956_v52, %v17142_v50  ;;  %v19704_v52 = vld [vmem:[#allocation55_spill] sm:$0xff] }
 0x5df   : > { %v17455_v8 = vpop.eup %12488  ;;  %12514 = vrcp.f32 %v17290_v42  ;;  %v8973_v56 = vrot.slane %v8957_v24, %v17142_v50  ;;  %v8980_v57 = vrot.slane %v8958_v36, %v17142_v50  ;;  %v7016_v2 = vrot.slane %v17320_v12, %v17044_v25 }
 0x5e0   : > { %v17462_v7 = vpop.eup %12490  ;;  %12516 = vrcp.f32 %v17292_v59  ;;  %10779 = vperm.xlu1 %12133, %v8612_v11   ;;  %v8987_v16 = vrot.slane %v8959_v61, %v17142_v50  ;;  %v7020_v58 = vrot.slane %v17320_v12, %v17047_v13  ;;  %v7024_v42 = vrot.slane %v17320_v12, %v17050_v48  ;;  %v19705_v11 = vld [vmem:[#allocation16_spill] sm:$0xff] }
 0x5e1   : > { %v17470_v26 = vpop.eup %12492  ;;  %12518 = vrcp.f32 %v17294_v23  ;;  %v8988_v51 = vcombine.low %v8966_v40, %v8973_v56  ;;  %v7028_v18 = vrot.slane %v17320_v12, %v17055_v5  ;;  %v7032_v59 = vrot.slane %v17320_v12, %v17058_v44 }
 0x5e2   : > { %v17477_v0 = vpop.eup %12494  ;;  %12520 = vrcp.f32 %v17296_v37  ;;  %v8989_v46 = vcombine.low %v8980_v57, %v8987_v16  ;;  %v7036_v35 = vrot.slane %v17320_v12, %v19689_v63  ;;  %v7040_v53 = vrot.slane %v17320_v12, %v19690_v20 }
 0x5e3   : > { %v17484_v28 = vpop.eup %12496  ;;  %12522 = vrcp.f32 %v17298_v27  ;;  %v8996_v23 = vrot.slane %v8988_v51, %v17142_v50  ;;  %v8613_v3 = vcombine.low %v7012_v14, %v7016_v2  ;;  %v8614_v55 = vcombine.low %v7020_v58, %v7024_v42 }
 0x5e4   : > { %v17488_v34 = vpop.eup %12498  ;;  %12524 = vrcp.f32 %v17300_v19  ;;  %v9003_v37 = vrot.slane %v8989_v46, %v17142_v50  ;;  %v8615_v1 = vcombine.low %v7028_v18, %v7032_v59  ;;  %v8616_v39 = vcombine.low %v7036_v35, %v7040_v53  ;;  %v19706_v35 = vld [vmem:[#allocation17_spill] sm:$0xff] }
 0x5e5   : > { %v17492_v29 = vpop.eup %12500  ;;  %12526 = vrcp.f32 %v17302_v43  ;;  %v8623_v12 = vrot.slane %v8613_v3, %v17142_v50  ;;  %v8630_v27 = vrot.slane %v8614_v55, %v17142_v50  ;;  %v7300_v32 = vrot.slane %v17362_v22, %v16983_v9 }
 0x5e6   : > { %v17499_v30 = vpop.eup %12502  ;;  %12528 = vrcp.f32 %v19703_v62  ;;  %v9004_v19 = vcombine.low %v8996_v23, %v9003_v37  ;;  %v8637_v54 = vrot.slane %v8615_v1, %v17142_v50  ;;  %v8644_v49 = vrot.slane %v8616_v39, %v17142_v50 }
 0x5e7   : > { %19702 = vst [vmem:[#allocation18_spill] sm:$0xff] %v17499_v30  ;;  %v17504_v60 = vpop.eup %12504  ;;  %12530 = vrcp.f32 %v19704_v52  ;;  %v8645_v43 = vcombine.low %v8623_v12, %v8630_v27  ;;  %v7304_v24 = vrot.slane %v17362_v22, %v17044_v25  ;;  %v7308_v36 = vrot.slane %v17362_v22, %v17047_v13 }
 0x5e8   : > { %v17511_v14 = vpop.eup %12506  ;;  %12532 = vrcp.f32 %v19705_v11  ;;  %10803 = vperm.xlu0 %12134, %v9004_v19   ;;  %v8646_v61 = vcombine.low %v8637_v54, %v8644_v49  ;;  %v7312_v40 = vrot.slane %v17362_v22, %v17050_v48  ;;  %v7316_v56 = vrot.slane %v17362_v22, %v17055_v5 }
 0x5e9   : > { %v17518_v57 = vpop.eup %12508  ;;  %v8653_v2 = vrot.slane %v8645_v43, %v17142_v50  ;;  %v7320_v16 = vrot.slane %v17362_v22, %v17058_v44  ;;  %v7324_v58 = vrot.slane %v17362_v22, %v19689_v63  ;;  %v7328_v42 = vrot.slane %v17362_v22, %v19690_v20 }
 0x5ea   : > { %v17527_v51 = vpop.eup %12510  ;;  %v8660_v18 = vrot.slane %v8646_v61, %v17142_v50  ;;  %v9054_v59 = vcombine.low %v7300_v32, %v7304_v24  ;;  %v9055_v46 = vcombine.low %v7308_v36, %v7312_v40  ;;  %v7044_v53 = vrot.slane %v19706_v35, %v16983_v9 }
 0x5eb   : > { %v17532_v23 = vpop.eup %12512  ;;  %v9056_v3 = vcombine.low %v7316_v56, %v7320_v16  ;;  %v9057_v55 = vcombine.low %v7324_v58, %v7328_v42  ;;  %v7048_v37 = vrot.slane %v19706_v35, %v17044_v25  ;;  %v7052_v1 = vrot.slane %v19706_v35, %v17047_v13 }
 0x5ec   : > { %v17538_v22 = vpop.eup %12514  ;;  %v8661_v39 = vcombine.low %v8653_v2, %v8660_v18  ;;  %v9064_v12 = vrot.slane %v9054_v59, %v17142_v50  ;;  %v9071_v27 = vrot.slane %v9055_v46, %v17142_v50  ;;  %v7056_v32 = vrot.slane %v19706_v35, %v17050_v48 }
 0x5ed   : > { %v17544_v62 = vpop.eup %12516  ;;  %v9078_v19 = vrot.slane %v9056_v3, %v17142_v50  ;;  %v9085_v54 = vrot.slane %v9057_v55, %v17142_v50  ;;  %v7060_v49 = vrot.slane %v19706_v35, %v17055_v5  ;;  %v7064_v52 = vrot.slane %v19706_v35, %v17058_v44 }
 0x5ee   : > { %v17552_v43 = vpop.eup %12518  ;;  %10782 = vperm.xlu1 %12133, %v8661_v39   ;;  %v9086_v24 = vcombine.low %v9064_v12, %v9071_v27  ;;  %v7068_v36 = vrot.slane %v19706_v35, %v19689_v63  ;;  %v7072_v11 = vrot.slane %v19706_v35, %v19690_v20  ;;  %v8662_v61 = vcombine.low %v7044_v53, %v7048_v37 }
 0x5ef   : > { %19707 = vst [vmem:[#allocation19_spill] sm:$0xff] %v17552_v43  ;;  %v17558_v40 = vpop.eup %12520  ;;  %v9087_v56 = vcombine.low %v9078_v19, %v9085_v54  ;;  %v8663_v2 = vcombine.low %v7052_v1, %v7056_v32  ;;  %v8664_v16 = vcombine.low %v7060_v49, %v7064_v52  ;;  %v7364_v58 = vrot.slane %v17400_v45, %v16983_v9 }
 0x5f0   : > { %v17562_v42 = vpop.eup %12522  ;;  %v9094_v18 = vrot.slane %v9086_v24, %v17142_v50  ;;  %v8665_v59 = vcombine.low %v7068_v36, %v7072_v11  ;;  %v8672_v46 = vrot.slane %v8662_v61, %v17142_v50  ;;  %v7368_v3 = vrot.slane %v17400_v45, %v17044_v25 }
 0x5f1   : > { %v17568_v35 = vpop.eup %12524  ;;  %v9101_v53 = vrot.slane %v9087_v56, %v17142_v50  ;;  %v8679_v55 = vrot.slane %v8663_v2, %v17142_v50  ;;  %v8686_v37 = vrot.slane %v8664_v16, %v17142_v50  ;;  %v7372_v1 = vrot.slane %v17400_v45, %v17047_v13 }
 0x5f2   : > { %v17575_v39 = vpop.eup %12526  ;;  %v8693_v12 = vrot.slane %v8665_v59, %v17142_v50  ;;  %v7376_v27 = vrot.slane %v17400_v45, %v17050_v48  ;;  %v7380_v32 = vrot.slane %v17400_v45, %v17055_v5  ;;  %v7384_v19 = vrot.slane %v17400_v45, %v17058_v44 }
 0x5f3   : > { %v17584_v54 = vpop.eup %12528  ;;  %v9102_v49 = vcombine.low %v9094_v18, %v9101_v53  ;;  %v8694_v52 = vcombine.low %v8672_v46, %v8679_v55  ;;  %v7388_v24 = vrot.slane %v17400_v45, %v19689_v63  ;;  %v7392_v36 = vrot.slane %v17400_v45, %v19690_v20  ;;  %v19708_v18 = vld [vmem:[#allocation73_spill] sm:$0xff] }
 0x5f4   : > { %v17590_v11 = vpop.eup %12530  ;;  %v8695_v61 = vcombine.low %v8686_v37, %v8693_v12  ;;  %v9152_v56 = vcombine.low %v7364_v58, %v7368_v3  ;;  %v9153_v2 = vcombine.low %v7372_v1, %v7376_v27  ;;  %v9154_v16 = vcombine.low %v7380_v32, %v7384_v19 }
 0x5f5   : > { %v17592_v59 = vpop.eup %12532  ;;  %10809 = vperm.xlu0 %12134, %v9102_v49   ;;  %v8702_v30 = vrot.slane %v8694_v52, %v17142_v50  ;;  %v9155_v43 = vcombine.low %v7388_v24, %v7392_v36  ;;  %v7076_v46 = vrot.slane %v19708_v18, %v16983_v9  ;;  %v7080_v53 = vrot.slane %v19708_v18, %v17044_v25 }
 0x5f6   : > { %v8709_v45 = vrot.slane %v8695_v61, %v17142_v50  ;;  %v9162_v55 = vrot.slane %v9152_v56, %v17142_v50  ;;  %v9169_v58 = vrot.slane %v9153_v2, %v17142_v50  ;;  %v9176_v3 = vrot.slane %v9154_v16, %v17142_v50 }
 0x5f7   : > { %v9183_v37 = vrot.slane %v9155_v43, %v17142_v50  ;;  %v7084_v1 = vrot.slane %v19708_v18, %v17047_v13  ;;  %v7088_v12 = vrot.slane %v19708_v18, %v17050_v48  ;;  %v7092_v27 = vrot.slane %v19708_v18, %v17055_v5 }
 0x5f8   : > { %v8710_v32 = vcombine.low %v8702_v30, %v8709_v45  ;;  %v9184_v19 = vcombine.low %v9162_v55, %v9169_v58  ;;  %v7096_v49 = vrot.slane %v19708_v18, %v17058_v44  ;;  %v7100_v52 = vrot.slane %v19708_v18, %v19689_v63 }
 0x5f9   : > { %v9185_v24 = vcombine.low %v9176_v3, %v9183_v37  ;;  %v7104_v43 = vrot.slane %v19708_v18, %v19690_v20  ;;  %v8711_v36 = vcombine.low %v7076_v46, %v7080_v53  ;;  %v8712_v61 = vcombine.low %v7084_v1, %v7088_v12 }
 0x5fa   : > { %10785 = vperm.xlu1 %12133, %v8710_v32   ;;  %v9192_v56 = vrot.slane %v9184_v19, %v17142_v50  ;;  %v8713_v2 = vcombine.low %v7092_v27, %v7096_v49  ;;  %v7428_v30 = vrot.slane %v17413_v10, %v16983_v9  ;;  %v7432_v16 = vrot.slane %v17413_v10, %v17044_v25 }
 0x5fb   : > { %v9199_v45 = vrot.slane %v9185_v24, %v17142_v50  ;;  %v8714_v55 = vcombine.low %v7100_v52, %v7104_v43  ;;  %v8721_v58 = vrot.slane %v8711_v36, %v17142_v50  ;;  %v8728_v3 = vrot.slane %v8712_v61, %v17142_v50 }
 0x5fc   : > { %v8735_v18 = vrot.slane %v8713_v2, %v17142_v50  ;;  %v7436_v46 = vrot.slane %v17413_v10, %v17047_v13  ;;  %v7440_v53 = vrot.slane %v17413_v10, %v17050_v48  ;;  %v7444_v37 = vrot.slane %v17413_v10, %v17055_v5 }
 0x5fd   : > { %v9200_v1 = vcombine.low %v9192_v56, %v9199_v45  ;;  %v8742_v12 = vrot.slane %v8714_v55, %v17142_v50  ;;  %v8743_v27 = vcombine.low %v8721_v58, %v8728_v3  ;;  %v7448_v32 = vrot.slane %v17413_v10, %v17058_v44  ;;  %v19709_v56 = vld [vmem:[#allocation72_spill] sm:$0xff] }
 0x5fe   : > { %v7452_v19 = vrot.slane %v17413_v10, %v19689_v63  ;;  %v7456_v49 = vrot.slane %v17413_v10, %v19690_v20  ;;  %v9250_v52 = vcombine.low %v7428_v30, %v7432_v16  ;;  %v9251_v24 = vcombine.low %v7436_v46, %v7440_v53 }
 0x5ff   : > { %10815 = vperm.xlu0 %12134, %v9200_v1   ;;  %v8744_v43 = vcombine.low %v8735_v18, %v8742_v12  ;;  %v8751_v36 = vrot.slane %v8743_v27, %v17142_v50  ;;  %v9252_v61 = vcombine.low %v7444_v37, %v7448_v32  ;;  %v7108_v2 = vrot.slane %v19709_v56, %v16983_v9 }
 0x600   : > { %v9253_v45 = vcombine.low %v7452_v19, %v7456_v49  ;;  %v9260_v55 = vrot.slane %v9250_v52, %v17142_v50  ;;  %v9267_v58 = vrot.slane %v9251_v24, %v17142_v50  ;;  %v7112_v3 = vrot.slane %v19709_v56, %v17044_v25 }
 0x601   : > { %v8758_v10 = vrot.slane %v8744_v43, %v17142_v50  ;;  %v9274_v30 = vrot.slane %v9252_v61, %v17142_v50  ;;  %v7116_v16 = vrot.slane %v19709_v56, %v17047_v13  ;;  %v7120_v18 = vrot.slane %v19709_v56, %v17050_v48 }
 0x602   : > { %v9281_v46 = vrot.slane %v9253_v45, %v17142_v50  ;;  %v9282_v53 = vcombine.low %v9260_v55, %v9267_v58  ;;  %v7124_v37 = vrot.slane %v19709_v56, %v17055_v5  ;;  %v7128_v1 = vrot.slane %v19709_v56, %v17058_v44 }
 0x603   : > { %v8759_v12 = vcombine.low %v8751_v36, %v8758_v10  ;;  %v7132_v27 = vrot.slane %v19709_v56, %v19689_v63  ;;  %v7136_v32 = vrot.slane %v19709_v56, %v19690_v20  ;;  %v8760_v19 = vcombine.low %v7108_v2, %v7112_v3 }
 0x604   : > { %v9283_v49 = vcombine.low %v9274_v30, %v9281_v46  ;;  %v9290_v52 = vrot.slane %v9282_v53, %v17142_v50  ;;  %v8761_v24 = vcombine.low %v7116_v16, %v7120_v18  ;;  %v8762_v43 = vcombine.low %v7124_v37, %v7128_v1 }
 0x605   : > { %10788 = vperm.xlu1 %12133, %v8759_v12   ;;  %v8763_v61 = vcombine.low %v7132_v27, %v7136_v32  ;;  %v8770_v45 = vrot.slane %v8760_v19, %v17142_v50  ;;  %v7492_v55 = vrot.slane %v17425_v38, %v16983_v9  ;;  %v7496_v36 = vrot.slane %v17425_v38, %v17044_v25 }
 0x606   : > { %v9297_v58 = vrot.slane %v9283_v49, %v17142_v50  ;;  %v8777_v56 = vrot.slane %v8761_v24, %v17142_v50  ;;  %v8784_v2 = vrot.slane %v8762_v43, %v17142_v50  ;;  %v7500_v3 = vrot.slane %v17425_v38, %v17047_v13  ;;  %v19710_v43 = vld [vmem:[#allocation61_spill] sm:$0xff] }
 0x607   : > { %v8791_v10 = vrot.slane %v8763_v61, %v17142_v50  ;;  %v7504_v30 = vrot.slane %v17425_v38, %v17050_v48  ;;  %v7508_v16 = vrot.slane %v17425_v38, %v17055_v5  ;;  %v7512_v18 = vrot.slane %v17425_v38, %v17058_v44 }
 0x608   : > { %v9298_v46 = vcombine.low %v9290_v52, %v9297_v58  ;;  %v8792_v53 = vcombine.low %v8770_v45, %v8777_v56  ;;  %v7516_v37 = vrot.slane %v17425_v38, %v19689_v63  ;;  %v7520_v1 = vrot.slane %v17425_v38, %v19690_v20 }
 0x609   : > { %v8793_v12 = vcombine.low %v8784_v2, %v8791_v10  ;;  %v9348_v27 = vcombine.low %v7492_v55, %v7496_v36  ;;  %v9349_v32 = vcombine.low %v7500_v3, %v7504_v30  ;;  %v9350_v19 = vcombine.low %v7508_v16, %v7512_v18 }
 0x60a   : > { %10821 = vperm.xlu0 %12134, %v9298_v46   ;;  %v8800_v49 = vrot.slane %v8792_v53, %v17142_v50  ;;  %v9351_v24 = vcombine.low %v7516_v37, %v7520_v1  ;;  %v7140_v61 = vrot.slane %v19710_v43, %v16983_v9  ;;  %v7144_v52 = vrot.slane %v19710_v43, %v17044_v25 }
 0x60b   : > { %v8807_v45 = vrot.slane %v8793_v12, %v17142_v50  ;;  %v9358_v58 = vrot.slane %v9348_v27, %v17142_v50  ;;  %v9365_v38 = vrot.slane %v9349_v32, %v17142_v50  ;;  %v9372_v55 = vrot.slane %v9350_v19, %v17142_v50 }
 0x60c   : > { %v9379_v36 = vrot.slane %v9351_v24, %v17142_v50  ;;  %v7148_v56 = vrot.slane %v19710_v43, %v17047_v13  ;;  %v7152_v2 = vrot.slane %v19710_v43, %v17050_v48  ;;  %v7156_v3 = vrot.slane %v19710_v43, %v17055_v5 }
 0x60d   : > { %v8808_v10 = vcombine.low %v8800_v49, %v8807_v45  ;;  %v9380_v30 = vcombine.low %v9358_v58, %v9365_v38  ;;  %v7160_v16 = vrot.slane %v19710_v43, %v17058_v44  ;;  %v7164_v18 = vrot.slane %v19710_v43, %v19689_v63 }
 0x60e   : > { %v9381_v46 = vcombine.low %v9372_v55, %v9379_v36  ;;  %v7168_v53 = vrot.slane %v19710_v43, %v19690_v20  ;;  %v8809_v37 = vcombine.low %v7140_v61, %v7144_v52  ;;  %v8810_v1 = vcombine.low %v7148_v56, %v7152_v2 }
 0x60f   : > { %10791 = vperm.xlu1 %12133, %v8808_v10   ;;  %v9388_v12 = vrot.slane %v9380_v30, %v17142_v50  ;;  %v8811_v27 = vcombine.low %v7156_v3, %v7160_v16  ;;  %v7556_v32 = vrot.slane %v17440_v21, %v16983_v9  ;;  %v7560_v19 = vrot.slane %v17440_v21, %v17044_v25 }
 0x610   : > { %v9395_v49 = vrot.slane %v9381_v46, %v17142_v50  ;;  %v8812_v24 = vcombine.low %v7164_v18, %v7168_v53  ;;  %v8819_v45 = vrot.slane %v8809_v37, %v17142_v50  ;;  %v8826_v58 = vrot.slane %v8810_v1, %v17142_v50 }
 0x611   : > { %v8833_v43 = vrot.slane %v8811_v27, %v17142_v50  ;;  %v7564_v61 = vrot.slane %v17440_v21, %v17047_v13  ;;  %v7568_v52 = vrot.slane %v17440_v21, %v17050_v48  ;;  %v7572_v38 = vrot.slane %v17440_v21, %v17055_v5 }
 0x612   : > { %v9396_v55 = vcombine.low %v9388_v12, %v9395_v49  ;;  %v8840_v36 = vrot.slane %v8812_v24, %v17142_v50  ;;  %v8841_v56 = vcombine.low %v8819_v45, %v8826_v58  ;;  %v7576_v2 = vrot.slane %v17440_v21, %v17058_v44 }
 0x613   : > { %v7580_v3 = vrot.slane %v17440_v21, %v19689_v63  ;;  %v7584_v10 = vrot.slane %v17440_v21, %v19690_v20  ;;  %v9446_v30 = vcombine.low %v7556_v32, %v7560_v19  ;;  %v9447_v16 = vcombine.low %v7564_v61, %v7568_v52 }
 0x614   : > { %10827 = vperm.xlu0 %12134, %v9396_v55   ;;  %v8842_v18 = vcombine.low %v8833_v43, %v8840_v36  ;;  %v8849_v46 = vrot.slane %v8841_v56, %v17142_v50  ;;  %v9448_v53 = vcombine.low %v7572_v38, %v7576_v2  ;;  %v7204_v37 = vrot.slane %v17345_v17, %v16983_v9 }
 0x615   : > { %v9449_v1 = vcombine.low %v7580_v3, %v7584_v10  ;;  %v9456_v12 = vrot.slane %v9446_v30, %v17142_v50  ;;  %v9463_v27 = vrot.slane %v9447_v16, %v17142_v50  ;;  %v7208_v49 = vrot.slane %v17345_v17, %v17044_v25 }
 0x616   : > { %v8856_v21 = vrot.slane %v8842_v18, %v17142_v50  ;;  %v9470_v32 = vrot.slane %v9448_v53, %v17142_v50  ;;  %v7212_v19 = vrot.slane %v17345_v17, %v17047_v13  ;;  %v7216_v24 = vrot.slane %v17345_v17, %v17050_v48 }
 0x617   : > { %v9477_v45 = vrot.slane %v9449_v1, %v17142_v50  ;;  %v9478_v58 = vcombine.low %v9456_v12, %v9463_v27  ;;  %v7220_v43 = vrot.slane %v17345_v17, %v17055_v5  ;;  %v7224_v61 = vrot.slane %v17345_v17, %v17058_v44 }
 0x618   : > { %v8857_v52 = vcombine.low %v8849_v46, %v8856_v21  ;;  %v7228_v38 = vrot.slane %v17345_v17, %v19689_v63  ;;  %v7232_v55 = vrot.slane %v17345_v17, %v19690_v20  ;;  %v8907_v36 = vcombine.low %v7204_v37, %v7208_v49 }
 0x619   : > { %v9479_v56 = vcombine.low %v9470_v32, %v9477_v45  ;;  %v9486_v2 = vrot.slane %v9478_v58, %v17142_v50  ;;  %v8908_v3 = vcombine.low %v7212_v19, %v7216_v24  ;;  %v8909_v10 = vcombine.low %v7220_v43, %v7224_v61 }
 0x61a   : > { %10794 = vperm.xlu1 %12133, %v8857_v52   ;;  %v8910_v30 = vcombine.low %v7228_v38, %v7232_v55  ;;  %v8917_v16 = vrot.slane %v8907_v36, %v17142_v50  ;;  %v7620_v18 = vrot.slane %v17451_v47, %v16983_v9  ;;  %v7624_v46 = vrot.slane %v17451_v47, %v17044_v25 }
 0x61b   : > { %v9493_v53 = vrot.slane %v9479_v56, %v17142_v50  ;;  %v8924_v17 = vrot.slane %v8908_v3, %v17142_v50  ;;  %v8931_v37 = vrot.slane %v8909_v10, %v17142_v50  ;;  %v7628_v1 = vrot.slane %v17451_v47, %v17047_v13 }
 0x61c   : > { %v8938_v12 = vrot.slane %v8910_v30, %v17142_v50  ;;  %v7632_v27 = vrot.slane %v17451_v47, %v17050_v48  ;;  %v7636_v49 = vrot.slane %v17451_v47, %v17055_v5  ;;  %v7640_v21 = vrot.slane %v17451_v47, %v17058_v44 }
 0x61d   : > { %v9494_v32 = vcombine.low %v9486_v2, %v9493_v53  ;;  %v8939_v19 = vcombine.low %v8917_v16, %v8924_v17  ;;  %v7644_v24 = vrot.slane %v17451_v47, %v19689_v63  ;;  %v7648_v45 = vrot.slane %v17451_v47, %v19690_v20 }
 0x61e   : > { %v8940_v58 = vcombine.low %v8931_v37, %v8938_v12  ;;  %v9544_v43 = vcombine.low %v7620_v18, %v7624_v46  ;;  %v9545_v61 = vcombine.low %v7628_v1, %v7632_v27  ;;  %v9546_v52 = vcombine.low %v7636_v49, %v7640_v21 }
 0x61f   : > { %10833 = vperm.xlu0 %12134, %v9494_v32   ;;  %v8947_v38 = vrot.slane %v8939_v19, %v17142_v50  ;;  %v9547_v55 = vcombine.low %v7644_v24, %v7648_v45  ;;  %v7268_v36 = vrot.slane %v17357_v31, %v16983_v9  ;;  %v7272_v56 = vrot.slane %v17357_v31, %v17044_v25 }
 0x620   : > { %v8954_v2 = vrot.slane %v8940_v58, %v17142_v50  ;;  %v9554_v3 = vrot.slane %v9544_v43, %v17142_v50  ;;  %v9561_v47 = vrot.slane %v9545_v61, %v17142_v50  ;;  %v9568_v10 = vrot.slane %v9546_v52, %v17142_v50 }
 0x621   : > { %v9575_v30 = vrot.slane %v9547_v55, %v17142_v50  ;;  %v7276_v16 = vrot.slane %v17357_v31, %v17047_v13  ;;  %v7280_v18 = vrot.slane %v17357_v31, %v17050_v48  ;;  %v7284_v46 = vrot.slane %v17357_v31, %v17055_v5 }
 0x622   : > { %v8955_v53 = vcombine.low %v8947_v38, %v8954_v2  ;;  %v9576_v17 = vcombine.low %v9554_v3, %v9561_v47  ;;  %v7288_v37 = vrot.slane %v17357_v31, %v17058_v44  ;;  %v7292_v1 = vrot.slane %v17357_v31, %v19689_v63 }
 0x623   : > { %v9577_v12 = vcombine.low %v9568_v10, %v9575_v30  ;;  %v7296_v27 = vrot.slane %v17357_v31, %v19690_v20  ;;  %v9005_v49 = vcombine.low %v7268_v36, %v7272_v56  ;;  %v9006_v21 = vcombine.low %v7276_v16, %v7280_v18 }
 0x624   : > { %10800 = vperm.xlu1 %12133, %v8955_v53   ;;  %v9584_v32 = vrot.slane %v9576_v17, %v17142_v50  ;;  %v9007_v19 = vcombine.low %v7284_v46, %v7288_v37  ;;  %v7684_v24 = vrot.slane %v17462_v7, %v16983_v9  ;;  %v7688_v45 = vrot.slane %v17462_v7, %v17044_v25 }
 0x625   : > { %v9591_v58 = vrot.slane %v9577_v12, %v17142_v50  ;;  %v9008_v43 = vcombine.low %v7292_v1, %v7296_v27  ;;  %v9015_v61 = vrot.slane %v9005_v49, %v17142_v50  ;;  %v9022_v52 = vrot.slane %v9006_v21, %v17142_v50 }
 0x626   : > { %v9029_v31 = vrot.slane %v9007_v19, %v17142_v50  ;;  %v7692_v38 = vrot.slane %v17462_v7, %v17047_v13  ;;  %v7696_v55 = vrot.slane %v17462_v7, %v17050_v48  ;;  %v7700_v36 = vrot.slane %v17462_v7, %v17055_v5 }
 0x627   : > { %v9592_v56 = vcombine.low %v9584_v32, %v9591_v58  ;;  %v9036_v2 = vrot.slane %v9008_v43, %v17142_v50  ;;  %v9037_v3 = vcombine.low %v9015_v61, %v9022_v52  ;;  %v7704_v47 = vrot.slane %v17462_v7, %v17058_v44 }
 0x628   : > { %v7708_v10 = vrot.slane %v17462_v7, %v19689_v63  ;;  %v7712_v30 = vrot.slane %v17462_v7, %v19690_v20  ;;  %v9642_v16 = vcombine.low %v7684_v24, %v7688_v45  ;;  %v9643_v18 = vcombine.low %v7692_v38, %v7696_v55 }
 0x629   : > { %10839 = vperm.xlu0 %12134, %v9592_v56   ;;  %v9038_v46 = vcombine.low %v9029_v31, %v9036_v2  ;;  %v9045_v53 = vrot.slane %v9037_v3, %v17142_v50  ;;  %v9644_v17 = vcombine.low %v7700_v36, %v7704_v47  ;;  %v7332_v37 = vrot.slane %v17366_v6, %v16983_v9 }
 0x62a   : > { %v9645_v1 = vcombine.low %v7708_v10, %v7712_v30  ;;  %v9652_v12 = vrot.slane %v9642_v16, %v17142_v50  ;;  %v9659_v27 = vrot.slane %v9643_v18, %v17142_v50  ;;  %v7336_v49 = vrot.slane %v17366_v6, %v17044_v25 }
 0x62b   : > { %v9052_v7 = vrot.slane %v9038_v46, %v17142_v50  ;;  %v9666_v21 = vrot.slane %v9644_v17, %v17142_v50  ;;  %v7340_v32 = vrot.slane %v17366_v6, %v17047_v13  ;;  %v7344_v19 = vrot.slane %v17366_v6, %v17050_v48 }
 0x62c   : > { %v9673_v24 = vrot.slane %v9645_v1, %v17142_v50  ;;  %v9674_v45 = vcombine.low %v9652_v12, %v9659_v27  ;;  %v7348_v58 = vrot.slane %v17366_v6, %v17055_v5  ;;  %v7352_v43 = vrot.slane %v17366_v6, %v17058_v44 }
 0x62d   : > { %v9053_v61 = vcombine.low %v9045_v53, %v9052_v7  ;;  %v7356_v52 = vrot.slane %v17366_v6, %v19689_v63  ;;  %v7360_v31 = vrot.slane %v17366_v6, %v19690_v20  ;;  %v9103_v38 = vcombine.low %v7332_v37, %v7336_v49 }
 0x62e   : > { %v9675_v55 = vcombine.low %v9666_v21, %v9673_v24  ;;  %v9682_v36 = vrot.slane %v9674_v45, %v17142_v50  ;;  %v9104_v56 = vcombine.low %v7340_v32, %v7344_v19  ;;  %v9105_v2 = vcombine.low %v7348_v58, %v7352_v43 }
 0x62f   : > { %10806 = vperm.xlu1 %12133, %v9053_v61   ;;  %v9106_v3 = vcombine.low %v7356_v52, %v7360_v31  ;;  %v9113_v47 = vrot.slane %v9103_v38, %v17142_v50  ;;  %v7908_v10 = vrot.slane %v17504_v60, %v16983_v9  ;;  %v7912_v30 = vrot.slane %v17504_v60, %v17044_v25 }
 0x630   : > { %v9689_v16 = vrot.slane %v9675_v55, %v17142_v50  ;;  %v9120_v6 = vrot.slane %v9104_v56, %v17142_v50  ;;  %v9127_v18 = vrot.slane %v9105_v2, %v17142_v50  ;;  %v7916_v46 = vrot.slane %v17504_v60, %v17047_v13 }
 0x631   : > { %v9134_v53 = vrot.slane %v9106_v3, %v17142_v50  ;;  %v7920_v17 = vrot.slane %v17504_v60, %v17050_v48  ;;  %v7924_v37 = vrot.slane %v17504_v60, %v17055_v5  ;;  %v7928_v1 = vrot.slane %v17504_v60, %v17058_v44 }
 0x632   : > { %v9690_v12 = vcombine.low %v9682_v36, %v9689_v16  ;;  %v9135_v27 = vcombine.low %v9113_v47, %v9120_v6  ;;  %v7932_v49 = vrot.slane %v17504_v60, %v19689_v63  ;;  %v7936_v7 = vrot.slane %v17504_v60, %v19690_v20 }
 0x633   : > { %v9136_v21 = vcombine.low %v9127_v18, %v9134_v53  ;;  %v9985_v32 = vcombine.low %v7908_v10, %v7912_v30  ;;  %v9986_v19 = vcombine.low %v7916_v46, %v7920_v17  ;;  %v9987_v24 = vcombine.low %v7924_v37, %v7928_v1 }
 0x634   : > { %10845 = vperm.xlu0 %12134, %v9690_v12   ;;  %v9143_v45 = vrot.slane %v9135_v27, %v17142_v50  ;;  %v9988_v58 = vcombine.low %v7932_v49, %v7936_v7  ;;  %v7396_v43 = vrot.slane %v17406_v33, %v16983_v9  ;;  %v7400_v61 = vrot.slane %v17406_v33, %v17044_v25 }
 0x635   : > { %v9150_v52 = vrot.slane %v9136_v21, %v17142_v50  ;;  %v9995_v31 = vrot.slane %v9985_v32, %v17142_v50  ;;  %v10002_v60 = vrot.slane %v9986_v19, %v17142_v50  ;;  %v10009_v38 = vrot.slane %v9987_v24, %v17142_v50 }
 0x636   : > { %v10016_v55 = vrot.slane %v9988_v58, %v17142_v50  ;;  %v7404_v36 = vrot.slane %v17406_v33, %v17047_v13  ;;  %v7408_v56 = vrot.slane %v17406_v33, %v17050_v48  ;;  %v7412_v2 = vrot.slane %v17406_v33, %v17055_v5 }
 0x637   : > { %v9151_v3 = vcombine.low %v9143_v45, %v9150_v52  ;;  %v10017_v47 = vcombine.low %v9995_v31, %v10002_v60  ;;  %v7416_v10 = vrot.slane %v17406_v33, %v17058_v44  ;;  %v7420_v30 = vrot.slane %v17406_v33, %v19689_v63 }
 0x638   : > { %v10018_v16 = vcombine.low %v10009_v38, %v10016_v55  ;;  %v7424_v6 = vrot.slane %v17406_v33, %v19690_v20  ;;  %v9201_v18 = vcombine.low %v7396_v43, %v7400_v61  ;;  %v9202_v46 = vcombine.low %v7404_v36, %v7408_v56 }
 0x639   : > { %10812 = vperm.xlu1 %12133, %v9151_v3   ;;  %v10025_v53 = vrot.slane %v10017_v47, %v17142_v50  ;;  %v9203_v17 = vcombine.low %v7412_v2, %v7416_v10  ;;  %v7972_v37 = vrot.slane %v17518_v57, %v16983_v9  ;;  %v7976_v1 = vrot.slane %v17518_v57, %v17044_v25 }
 0x63a   : > { %v10032_v12 = vrot.slane %v10018_v16, %v17142_v50  ;;  %v9204_v27 = vcombine.low %v7420_v30, %v7424_v6  ;;  %v9211_v49 = vrot.slane %v9201_v18, %v17142_v50  ;;  %v9218_v7 = vrot.slane %v9202_v46, %v17142_v50 }
 0x63b   : > { %v9225_v33 = vrot.slane %v9203_v17, %v17142_v50  ;;  %v7980_v21 = vrot.slane %v17518_v57, %v17047_v13  ;;  %v7984_v32 = vrot.slane %v17518_v57, %v17050_v48  ;;  %v7988_v19 = vrot.slane %v17518_v57, %v17055_v5 }
 0x63c   : > { %v10033_v24 = vcombine.low %v10025_v53, %v10032_v12  ;;  %v9232_v45 = vrot.slane %v9204_v27, %v17142_v50  ;;  %v9233_v58 = vcombine.low %v9211_v49, %v9218_v7  ;;  %v7992_v43 = vrot.slane %v17518_v57, %v17058_v44 }
 0x63d   : > { %v7996_v61 = vrot.slane %v17518_v57, %v19689_v63  ;;  %v8000_v52 = vrot.slane %v17518_v57, %v19690_v20  ;;  %v10083_v31 = vcombine.low %v7972_v37, %v7976_v1  ;;  %v10084_v60 = vcombine.low %v7980_v21, %v7984_v32 }
 0x63e   : > { %10866 = vperm.xlu0 %12134, %v10033_v24   ;;  %v9234_v38 = vcombine.low %v9225_v33, %v9232_v45  ;;  %v9241_v55 = vrot.slane %v9233_v58, %v17142_v50  ;;  %v10085_v36 = vcombine.low %v7988_v19, %v7992_v43  ;;  %v7460_v56 = vrot.slane %v17418_v15, %v16983_v9 }
 0x63f   : > { %v10086_v2 = vcombine.low %v7996_v61, %v8000_v52  ;;  %v10093_v3 = vrot.slane %v10083_v31, %v17142_v50  ;;  %v10100_v47 = vrot.slane %v10084_v60, %v17142_v50  ;;  %v7464_v10 = vrot.slane %v17418_v15, %v17044_v25 }
 0x640   : > { %v9248_v57 = vrot.slane %v9234_v38, %v17142_v50  ;;  %v10107_v30 = vrot.slane %v10085_v36, %v17142_v50  ;;  %v7468_v16 = vrot.slane %v17418_v15, %v17047_v13  ;;  %v7472_v6 = vrot.slane %v17418_v15, %v17050_v48 }
 0x641   : > { %v10114_v18 = vrot.slane %v10086_v2, %v17142_v50  ;;  %v10115_v46 = vcombine.low %v10093_v3, %v10100_v47  ;;  %v7476_v53 = vrot.slane %v17418_v15, %v17055_v5  ;;  %v7480_v17 = vrot.slane %v17418_v15, %v17058_v44 }
 0x642   : > { %v9249_v37 = vcombine.low %v9241_v55, %v9248_v57  ;;  %v7484_v1 = vrot.slane %v17418_v15, %v19689_v63  ;;  %v7488_v12 = vrot.slane %v17418_v15, %v19690_v20  ;;  %v9299_v27 = vcombine.low %v7460_v56, %v7464_v10 }
 0x643   : > { %v10116_v49 = vcombine.low %v10107_v30, %v10114_v18  ;;  %v10123_v7 = vrot.slane %v10115_v46, %v17142_v50  ;;  %v9300_v33 = vcombine.low %v7468_v16, %v7472_v6  ;;  %v9301_v21 = vcombine.low %v7476_v53, %v7480_v17 }
 0x644   : > { %10818 = vperm.xlu1 %12133, %v9249_v37   ;;  %v9302_v32 = vcombine.low %v7484_v1, %v7488_v12  ;;  %v9309_v19 = vrot.slane %v9299_v27, %v17142_v50  ;;  %v8036_v24 = vrot.slane %v17532_v23, %v16983_v9  ;;  %v8040_v45 = vrot.slane %v17532_v23, %v17044_v25 }
 0x645   : > { %v10130_v58 = vrot.slane %v10116_v49, %v17142_v50  ;;  %v9316_v15 = vrot.slane %v9300_v33, %v17142_v50  ;;  %v9323_v43 = vrot.slane %v9301_v21, %v17142_v50  ;;  %v8044_v61 = vrot.slane %v17532_v23, %v17047_v13 }
 0x646   : > { %v9330_v52 = vrot.slane %v9302_v32, %v17142_v50  ;;  %v8048_v31 = vrot.slane %v17532_v23, %v17050_v48  ;;  %v8052_v60 = vrot.slane %v17532_v23, %v17055_v5  ;;  %v8056_v38 = vrot.slane %v17532_v23, %v17058_v44 }
 0x647   : > { %v10131_v55 = vcombine.low %v10123_v7, %v10130_v58  ;;  %v9331_v36 = vcombine.low %v9309_v19, %v9316_v15  ;;  %v8060_v56 = vrot.slane %v17532_v23, %v19689_v63  ;;  %v8064_v2 = vrot.slane %v17532_v23, %v19690_v20 }
 0x648   : > { %v9332_v3 = vcombine.low %v9323_v43, %v9330_v52  ;;  %v10181_v47 = vcombine.low %v8036_v24, %v8040_v45  ;;  %v10182_v10 = vcombine.low %v8044_v61, %v8048_v31  ;;  %v10183_v57 = vcombine.low %v8052_v60, %v8056_v38 }
 0x649   : > { %10872 = vperm.xlu0 %12134, %v10131_v55   ;;  %v9339_v30 = vrot.slane %v9331_v36, %v17142_v50  ;;  %v10184_v16 = vcombine.low %v8060_v56, %v8064_v2  ;;  %v7524_v6 = vrot.slane %v17432_v4, %v16983_v9  ;;  %v7528_v18 = vrot.slane %v17432_v4, %v17044_v25 }
 0x64a   : > { %v9346_v46 = vrot.slane %v9332_v3, %v17142_v50  ;;  %v10191_v53 = vrot.slane %v10181_v47, %v17142_v50  ;;  %v10198_v23 = vrot.slane %v10182_v10, %v17142_v50  ;;  %v10205_v17 = vrot.slane %v10183_v57, %v17142_v50 }
 0x64b   : > { %v10212_v37 = vrot.slane %v10184_v16, %v17142_v50  ;;  %v7532_v1 = vrot.slane %v17432_v4, %v17047_v13  ;;  %v7536_v12 = vrot.slane %v17432_v4, %v17050_v48  ;;  %v7540_v27 = vrot.slane %v17432_v4, %v17055_v5 }
 0x64c   : > { %v9347_v49 = vcombine.low %v9339_v30, %v9346_v46  ;;  %v10213_v7 = vcombine.low %v10191_v53, %v10198_v23  ;;  %v7544_v33 = vrot.slane %v17432_v4, %v17058_v44  ;;  %v7548_v21 = vrot.slane %v17432_v4, %v19689_v63 }
 0x64d   : > { %v10214_v32 = vcombine.low %v10205_v17, %v10212_v37  ;;  %v7552_v19 = vrot.slane %v17432_v4, %v19690_v20  ;;  %v9397_v24 = vcombine.low %v7524_v6, %v7528_v18  ;;  %v9398_v45 = vcombine.low %v7532_v1, %v7536_v12 }
 0x64e   : > { %10824 = vperm.xlu1 %12133, %v9347_v49   ;;  %v10221_v58 = vrot.slane %v10213_v7, %v17142_v50  ;;  %v9399_v15 = vcombine.low %v7540_v27, %v7544_v33  ;;  %v8100_v43 = vrot.slane %v17544_v62, %v16983_v9  ;;  %v8104_v61 = vrot.slane %v17544_v62, %v17044_v25 }
 0x64f   : > { %v10228_v52 = vrot.slane %v10214_v32, %v17142_v50  ;;  %v9400_v31 = vcombine.low %v7548_v21, %v7552_v19  ;;  %v9407_v60 = vrot.slane %v9397_v24, %v17142_v50  ;;  %v9414_v38 = vrot.slane %v9398_v45, %v17142_v50 }
 0x650   : > { %v9421_v4 = vrot.slane %v9399_v15, %v17142_v50  ;;  %v8108_v55 = vrot.slane %v17544_v62, %v17047_v13  ;;  %v8112_v36 = vrot.slane %v17544_v62, %v17050_v48  ;;  %v8116_v56 = vrot.slane %v17544_v62, %v17055_v5 }
 0x651   : > { %v10229_v2 = vcombine.low %v10221_v58, %v10228_v52  ;;  %v9428_v3 = vrot.slane %v9400_v31, %v17142_v50  ;;  %v9429_v47 = vcombine.low %v9407_v60, %v9414_v38  ;;  %v8120_v10 = vrot.slane %v17544_v62, %v17058_v44 }
 0x652   : > { %v8124_v57 = vrot.slane %v17544_v62, %v19689_v63  ;;  %v8128_v30 = vrot.slane %v17544_v62, %v19690_v20  ;;  %v10279_v16 = vcombine.low %v8100_v43, %v8104_v61  ;;  %v10280_v6 = vcombine.low %v8108_v55, %v8112_v36 }
 0x653   : > { %10878 = vperm.xlu0 %12134, %v10229_v2   ;;  %v9430_v18 = vcombine.low %v9421_v4, %v9428_v3  ;;  %v9437_v46 = vrot.slane %v9429_v47, %v17142_v50  ;;  %v10281_v53 = vcombine.low %v8116_v56, %v8120_v10  ;;  %v7588_v23 = vrot.slane %v17446_v41, %v16983_v9 }
 0x654   : > { %v10282_v17 = vcombine.low %v8124_v57, %v8128_v30  ;;  %v10289_v37 = vrot.slane %v10279_v16, %v17142_v50  ;;  %v10296_v1 = vrot.slane %v10280_v6, %v17142_v50  ;;  %v7592_v12 = vrot.slane %v17446_v41, %v17044_v25 }
 0x655   : > { %v9444_v62 = vrot.slane %v9430_v18, %v17142_v50  ;;  %v10303_v27 = vrot.slane %v10281_v53, %v17142_v50  ;;  %v7596_v49 = vrot.slane %v17446_v41, %v17047_v13  ;;  %v7600_v7 = vrot.slane %v17446_v41, %v17050_v48 }
 0x656   : > { %v10310_v33 = vrot.slane %v10282_v17, %v17142_v50  ;;  %v10311_v21 = vcombine.low %v10289_v37, %v10296_v1  ;;  %v7604_v32 = vrot.slane %v17446_v41, %v17055_v5  ;;  %v7608_v19 = vrot.slane %v17446_v41, %v17058_v44 }
 0x657   : > { %v9445_v24 = vcombine.low %v9437_v46, %v9444_v62  ;;  %v7612_v45 = vrot.slane %v17446_v41, %v19689_v63  ;;  %v7616_v58 = vrot.slane %v17446_v41, %v19690_v20  ;;  %v9495_v15 = vcombine.low %v7588_v23, %v7592_v12 }
 0x658   : > { %v10312_v43 = vcombine.low %v10303_v27, %v10310_v33  ;;  %v10319_v61 = vrot.slane %v10311_v21, %v17142_v50  ;;  %v9496_v52 = vcombine.low %v7596_v49, %v7600_v7  ;;  %v9497_v31 = vcombine.low %v7604_v32, %v7608_v19 }
 0x659   : > { %10830 = vperm.xlu1 %12133, %v9445_v24   ;;  %v9498_v60 = vcombine.low %v7612_v45, %v7616_v58  ;;  %v9505_v38 = vrot.slane %v9495_v15, %v17142_v50  ;;  %v8164_v4 = vrot.slane %v17558_v40, %v16983_v9  ;;  %v8168_v55 = vrot.slane %v17558_v40, %v17044_v25 }
 0x65a   : > { %v10326_v36 = vrot.slane %v10312_v43, %v17142_v50  ;;  %v9512_v41 = vrot.slane %v9496_v52, %v17142_v50  ;;  %v9519_v56 = vrot.slane %v9497_v31, %v17142_v50  ;;  %v8172_v2 = vrot.slane %v17558_v40, %v17047_v13 }
 0x65b   : > { %v9526_v3 = vrot.slane %v9498_v60, %v17142_v50  ;;  %v8176_v47 = vrot.slane %v17558_v40, %v17050_v48  ;;  %v8180_v10 = vrot.slane %v17558_v40, %v17055_v5  ;;  %v8184_v57 = vrot.slane %v17558_v40, %v17058_v44 }
 0x65c   : > { %v10327_v30 = vcombine.low %v10319_v61, %v10326_v36  ;;  %v9527_v16 = vcombine.low %v9505_v38, %v9512_v41  ;;  %v8188_v6 = vrot.slane %v17558_v40, %v19689_v63  ;;  %v8192_v18 = vrot.slane %v17558_v40, %v19690_v20 }
 0x65d   : > { %v9528_v46 = vcombine.low %v9519_v56, %v9526_v3  ;;  %v10377_v53 = vcombine.low %v8164_v4, %v8168_v55  ;;  %v10378_v23 = vcombine.low %v8172_v2, %v8176_v47  ;;  %v10379_v17 = vcombine.low %v8180_v10, %v8184_v57 }
 0x65e   : > { %10884 = vperm.xlu0 %12134, %v10327_v30   ;;  %v9535_v37 = vrot.slane %v9527_v16, %v17142_v50  ;;  %v10380_v1 = vcombine.low %v8188_v6, %v8192_v18  ;;  %v7652_v12 = vrot.slane %v17455_v8, %v16983_v9  ;;  %v7656_v62 = vrot.slane %v17455_v8, %v17044_v25 }
 0x65f   : > { %v9542_v27 = vrot.slane %v9528_v46, %v17142_v50  ;;  %v10387_v49 = vrot.slane %v10377_v53, %v17142_v50  ;;  %v10394_v40 = vrot.slane %v10378_v23, %v17142_v50  ;;  %v10401_v7 = vrot.slane %v10379_v17, %v17142_v50 }
 0x660   : > { %v10408_v33 = vrot.slane %v10380_v1, %v17142_v50  ;;  %v7660_v21 = vrot.slane %v17455_v8, %v17047_v13  ;;  %v7664_v32 = vrot.slane %v17455_v8, %v17050_v48  ;;  %v7668_v19 = vrot.slane %v17455_v8, %v17055_v5 }
 0x661   : > { %v9543_v24 = vcombine.low %v9535_v37, %v9542_v27  ;;  %v10409_v45 = vcombine.low %v10387_v49, %v10394_v40  ;;  %v7672_v58 = vrot.slane %v17455_v8, %v17058_v44  ;;  %v7676_v15 = vrot.slane %v17455_v8, %v19689_v63 }
 0x662   : > { %v10410_v43 = vcombine.low %v10401_v7, %v10408_v33  ;;  %v7680_v61 = vrot.slane %v17455_v8, %v19690_v20  ;;  %v9593_v52 = vcombine.low %v7652_v12, %v7656_v62  ;;  %v9594_v31 = vcombine.low %v7660_v21, %v7664_v32 }
 0x663   : > { %10836 = vperm.xlu1 %12133, %v9543_v24   ;;  %v10417_v60 = vrot.slane %v10409_v45, %v17142_v50  ;;  %v9595_v38 = vcombine.low %v7668_v19, %v7672_v58  ;;  %v8196_v4 = vrot.slane %v17562_v42, %v16983_v9  ;;  %v8200_v55 = vrot.slane %v17562_v42, %v17044_v25 }
 0x664   : > { %v10424_v36 = vrot.slane %v10410_v43, %v17142_v50  ;;  %v9596_v41 = vcombine.low %v7676_v15, %v7680_v61  ;;  %v9603_v56 = vrot.slane %v9593_v52, %v17142_v50  ;;  %v9610_v2 = vrot.slane %v9594_v31, %v17142_v50 }
 0x665   : > { %v9617_v8 = vrot.slane %v9595_v38, %v17142_v50  ;;  %v8204_v3 = vrot.slane %v17562_v42, %v17047_v13  ;;  %v8208_v47 = vrot.slane %v17562_v42, %v17050_v48  ;;  %v8212_v10 = vrot.slane %v17562_v42, %v17055_v5 }
 0x666   : > { %v10425_v57 = vcombine.low %v10417_v60, %v10424_v36  ;;  %v9624_v30 = vrot.slane %v9596_v41, %v17142_v50  ;;  %v9625_v16 = vcombine.low %v9603_v56, %v9610_v2  ;;  %v8216_v6 = vrot.slane %v17562_v42, %v17058_v44 }
 0x667   : > { %v8220_v18 = vrot.slane %v17562_v42, %v19689_v63  ;;  %v8224_v46 = vrot.slane %v17562_v42, %v19690_v20  ;;  %v10426_v53 = vcombine.low %v8196_v4, %v8200_v55  ;;  %v10427_v23 = vcombine.low %v8204_v3, %v8208_v47 }
 0x668   : > { %10890 = vperm.xlu0 %12134, %v10425_v57   ;;  %v9626_v17 = vcombine.low %v9617_v8, %v9624_v30  ;;  %v9633_v37 = vrot.slane %v9625_v16, %v17142_v50  ;;  %v10428_v1 = vcombine.low %v8212_v10, %v8216_v6  ;;  %v7716_v12 = vrot.slane %v17470_v26, %v16983_v9 }
 0x669   : > { %v10429_v62 = vcombine.low %v8220_v18, %v8224_v46  ;;  %v10436_v27 = vrot.slane %v10426_v53, %v17142_v50  ;;  %v10443_v49 = vrot.slane %v10427_v23, %v17142_v50  ;;  %v7720_v40 = vrot.slane %v17470_v26, %v17044_v25 }
 0x66a   : > { %v9640_v42 = vrot.slane %v9626_v17, %v17142_v50  ;;  %v10450_v7 = vrot.slane %v10428_v1, %v17142_v50  ;;  %v7724_v33 = vrot.slane %v17470_v26, %v17047_v13  ;;  %v7728_v21 = vrot.slane %v17470_v26, %v17050_v48 }
 0x66b   : > { %v10457_v32 = vrot.slane %v10429_v62, %v17142_v50  ;;  %v10458_v19 = vcombine.low %v10436_v27, %v10443_v49  ;;  %v7732_v24 = vrot.slane %v17470_v26, %v17055_v5  ;;  %v7736_v45 = vrot.slane %v17470_v26, %v17058_v44 }
 0x66c   : > { %v9641_v58 = vcombine.low %v9633_v37, %v9640_v42  ;;  %v7740_v15 = vrot.slane %v17470_v26, %v19689_v63  ;;  %v7744_v43 = vrot.slane %v17470_v26, %v19690_v20  ;;  %v9691_v61 = vcombine.low %v7716_v12, %v7720_v40 }
 0x66d   : > { %v10459_v52 = vcombine.low %v10450_v7, %v10457_v32  ;;  %v10466_v31 = vrot.slane %v10458_v19, %v17142_v50  ;;  %v9692_v60 = vcombine.low %v7724_v33, %v7728_v21  ;;  %v9693_v38 = vcombine.low %v7732_v24, %v7736_v45 }
 0x66e   : > { %10842 = vperm.xlu1 %12133, %v9641_v58   ;;  %v9694_v4 = vcombine.low %v7740_v15, %v7744_v43  ;;  %v9701_v55 = vrot.slane %v9691_v61, %v17142_v50  ;;  %v8228_v36 = vrot.slane %v17568_v35, %v16983_v9  ;;  %v8232_v41 = vrot.slane %v17568_v35, %v17044_v25 }
 0x66f   : > { %v10473_v56 = vrot.slane %v10459_v52, %v17142_v50  ;;  %v9708_v26 = vrot.slane %v9692_v60, %v17142_v50  ;;  %v9715_v2 = vrot.slane %v9693_v38, %v17142_v50  ;;  %v8236_v8 = vrot.slane %v17568_v35, %v17047_v13 }
 0x670   : > { %v9722_v3 = vrot.slane %v9694_v4, %v17142_v50  ;;  %v8240_v47 = vrot.slane %v17568_v35, %v17050_v48  ;;  %v8244_v10 = vrot.slane %v17568_v35, %v17055_v5  ;;  %v8248_v57 = vrot.slane %v17568_v35, %v17058_v44 }
 0x671   : > { %v10474_v30 = vcombine.low %v10466_v31, %v10473_v56  ;;  %v9723_v16 = vcombine.low %v9701_v55, %v9708_v26  ;;  %v8252_v6 = vrot.slane %v17568_v35, %v19689_v63  ;;  %v8256_v18 = vrot.slane %v17568_v35, %v19690_v20 }
 0x672   : > { %v9724_v46 = vcombine.low %v9715_v2, %v9722_v3  ;;  %v10475_v53 = vcombine.low %v8228_v36, %v8232_v41  ;;  %v10476_v23 = vcombine.low %v8236_v8, %v8240_v47  ;;  %v10477_v17 = vcombine.low %v8244_v10, %v8248_v57 }
 0x673   : > { %10893 = vperm.xlu0 %12134, %v10474_v30   ;;  %v9731_v37 = vrot.slane %v9723_v16, %v17142_v50  ;;  %v10478_v1 = vcombine.low %v8252_v6, %v8256_v18  ;;  %v7748_v12 = vrot.slane %v17477_v0, %v16983_v9  ;;  %v7752_v62 = vrot.slane %v17477_v0, %v17044_v25 }
 0x674   : > { %v9738_v27 = vrot.slane %v9724_v46, %v17142_v50  ;;  %v10485_v49 = vrot.slane %v10475_v53, %v17142_v50  ;;  %v10492_v35 = vrot.slane %v10476_v23, %v17142_v50  ;;  %v10499_v40 = vrot.slane %v10477_v17, %v17142_v50 }
 0x675   : > { %v10506_v42 = vrot.slane %v10478_v1, %v17142_v50  ;;  %v7756_v7 = vrot.slane %v17477_v0, %v17047_v13  ;;  %v7760_v33 = vrot.slane %v17477_v0, %v17050_v48  ;;  %v7764_v21 = vrot.slane %v17477_v0, %v17055_v5 }
 0x676   : > { %v9739_v32 = vcombine.low %v9731_v37, %v9738_v27  ;;  %v10507_v19 = vcombine.low %v10485_v49, %v10492_v35  ;;  %v7768_v24 = vrot.slane %v17477_v0, %v17058_v44  ;;  %v7772_v45 = vrot.slane %v17477_v0, %v19689_v63 }
 0x677   : > { %v10508_v58 = vcombine.low %v10499_v40, %v10506_v42  ;;  %v7776_v15 = vrot.slane %v17477_v0, %v19690_v20  ;;  %v9740_v43 = vcombine.low %v7748_v12, %v7752_v62  ;;  %v9741_v61 = vcombine.low %v7756_v7, %v7760_v33 }
 0x678   : > { %10848 = vperm.xlu1 %12133, %v9739_v32   ;;  %v10515_v52 = vrot.slane %v10507_v19, %v17142_v50  ;;  %v9742_v31 = vcombine.low %v7764_v21, %v7768_v24  ;;  %v8260_v60 = vrot.slane %v17575_v39, %v16983_v9  ;;  %v8264_v38 = vrot.slane %v17575_v39, %v17044_v25 }
 0x679   : > { %v10522_v4 = vrot.slane %v10508_v58, %v17142_v50  ;;  %v9743_v55 = vcombine.low %v7772_v45, %v7776_v15  ;;  %v9750_v36 = vrot.slane %v9740_v43, %v17142_v50  ;;  %v9757_v41 = vrot.slane %v9741_v61, %v17142_v50 }
 0x67a   : > { %v9764_v0 = vrot.slane %v9742_v31, %v17142_v50  ;;  %v8268_v56 = vrot.slane %v17575_v39, %v17047_v13  ;;  %v8272_v26 = vrot.slane %v17575_v39, %v17050_v48  ;;  %v8276_v2 = vrot.slane %v17575_v39, %v17055_v5 }
 0x67b   : > { %v10523_v8 = vcombine.low %v10515_v52, %v10522_v4  ;;  %v9771_v3 = vrot.slane %v9743_v55, %v17142_v50  ;;  %v9772_v47 = vcombine.low %v9750_v36, %v9757_v41  ;;  %v8280_v10 = vrot.slane %v17575_v39, %v17058_v44 }
 0x67c   : > { %v8284_v57 = vrot.slane %v17575_v39, %v19689_v63  ;;  %v8288_v30 = vrot.slane %v17575_v39, %v19690_v20  ;;  %v10524_v16 = vcombine.low %v8260_v60, %v8264_v38  ;;  %v10525_v6 = vcombine.low %v8268_v56, %v8272_v26 }
 0x67d   : > { %10896 = vperm.xlu0 %12134, %v10523_v8   ;;  %v9773_v18 = vcombine.low %v9764_v0, %v9771_v3  ;;  %v9780_v46 = vrot.slane %v9772_v47, %v17142_v50  ;;  %v10526_v53 = vcombine.low %v8276_v2, %v8280_v10  ;;  %v7780_v23 = vrot.slane %v17484_v28, %v16983_v9 }
 0x67e   : > { %v10527_v17 = vcombine.low %v8284_v57, %v8288_v30  ;;  %v10534_v37 = vrot.slane %v10524_v16, %v17142_v50  ;;  %v10541_v1 = vrot.slane %v10525_v6, %v17142_v50  ;;  %v7784_v12 = vrot.slane %v17484_v28, %v17044_v25 }
 0x67f   : > { %v9787_v39 = vrot.slane %v9773_v18, %v17142_v50  ;;  %v10548_v62 = vrot.slane %v10526_v53, %v17142_v50  ;;  %v7788_v27 = vrot.slane %v17484_v28, %v17047_v13  ;;  %v7792_v49 = vrot.slane %v17484_v28, %v17050_v48 }
 0x680   : > { %v10555_v35 = vrot.slane %v10527_v17, %v17142_v50  ;;  %v10556_v40 = vcombine.low %v10534_v37, %v10541_v1  ;;  %v7796_v42 = vrot.slane %v17484_v28, %v17055_v5  ;;  %v7800_v7 = vrot.slane %v17484_v28, %v17058_v44 }
 0x681   : > { %v9788_v33 = vcombine.low %v9780_v46, %v9787_v39  ;;  %v7804_v21 = vrot.slane %v17484_v28, %v19689_v63  ;;  %v7808_v32 = vrot.slane %v17484_v28, %v19690_v20  ;;  %v9789_v19 = vcombine.low %v7780_v23, %v7784_v12 }
 0x682   : > { %v10557_v24 = vcombine.low %v10548_v62, %v10555_v35  ;;  %v10564_v45 = vrot.slane %v10556_v40, %v17142_v50  ;;  %v9790_v58 = vcombine.low %v7788_v27, %v7792_v49  ;;  %v9791_v15 = vcombine.low %v7796_v42, %v7800_v7 }
 0x683   : > { %10851 = vperm.xlu1 %12133, %v9788_v33   ;;  %v9792_v43 = vcombine.low %v7804_v21, %v7808_v32  ;;  %v9799_v61 = vrot.slane %v9789_v19, %v17142_v50  ;;  %v8292_v52 = vrot.slane %v17584_v54, %v16983_v9  ;;  %v8296_v31 = vrot.slane %v17584_v54, %v17044_v25 }
 0x684   : > { %v10571_v60 = vrot.slane %v10557_v24, %v17142_v50  ;;  %v9806_v28 = vrot.slane %v9790_v58, %v17142_v50  ;;  %v9813_v38 = vrot.slane %v9791_v15, %v17142_v50  ;;  %v8300_v4 = vrot.slane %v17584_v54, %v17047_v13 }
 0x685   : > { %v9820_v55 = vrot.slane %v9792_v43, %v17142_v50  ;;  %v8304_v36 = vrot.slane %v17584_v54, %v17050_v48  ;;  %v8308_v41 = vrot.slane %v17584_v54, %v17055_v5  ;;  %v8312_v0 = vrot.slane %v17584_v54, %v17058_v44 }
 0x686   : > { %v10572_v56 = vcombine.low %v10564_v45, %v10571_v60  ;;  %v9821_v26 = vcombine.low %v9799_v61, %v9806_v28  ;;  %v8316_v2 = vrot.slane %v17584_v54, %v19689_v63  ;;  %v8320_v8 = vrot.slane %v17584_v54, %v19690_v20 }
 0x687   : > { %v9822_v3 = vcombine.low %v9813_v38, %v9820_v55  ;;  %v10573_v47 = vcombine.low %v8292_v52, %v8296_v31  ;;  %v10574_v10 = vcombine.low %v8300_v4, %v8304_v36  ;;  %v10575_v57 = vcombine.low %v8308_v41, %v8312_v0 }
 0x688   : > { %10899 = vperm.xlu0 %12134, %v10572_v56   ;;  %v9829_v30 = vrot.slane %v9821_v26, %v17142_v50  ;;  %v10576_v16 = vcombine.low %v8316_v2, %v8320_v8  ;;  %v7812_v6 = vrot.slane %v17488_v34, %v16983_v9  ;;  %v7816_v18 = vrot.slane %v17488_v34, %v17044_v25 }
 0x689   : > { %v9836_v46 = vrot.slane %v9822_v3, %v17142_v50  ;;  %v10583_v53 = vrot.slane %v10573_v47, %v17142_v50  ;;  %v10590_v54 = vrot.slane %v10574_v10, %v17142_v50  ;;  %v10597_v23 = vrot.slane %v10575_v57, %v17142_v50 }
 0x68a   : > { %v10604_v17 = vrot.slane %v10576_v16, %v17142_v50  ;;  %v7820_v37 = vrot.slane %v17488_v34, %v17047_v13  ;;  %v7824_v1 = vrot.slane %v17488_v34, %v17050_v48  ;;  %v7828_v12 = vrot.slane %v17488_v34, %v17055_v5 }
 0x68b   : > { %v9837_v39 = vcombine.low %v9829_v30, %v9836_v46  ;;  %v10605_v62 = vcombine.low %v10583_v53, %v10590_v54  ;;  %v7832_v27 = vrot.slane %v17488_v34, %v17058_v44  ;;  %v7836_v49 = vrot.slane %v17488_v34, %v19689_v63 }
 0x68c   : > { %v10606_v35 = vcombine.low %v10597_v23, %v10604_v17  ;;  %v7840_v40 = vrot.slane %v17488_v34, %v19690_v20  ;;  %v9838_v42 = vcombine.low %v7812_v6, %v7816_v18  ;;  %v9839_v7 = vcombine.low %v7820_v37, %v7824_v1 }
 0x68d   : > { %10854 = vperm.xlu1 %12133, %v9837_v39   ;;  %v10613_v33 = vrot.slane %v10605_v62, %v17142_v50  ;;  %v9840_v21 = vcombine.low %v7828_v12, %v7832_v27  ;;  %v8324_v32 = vrot.slane %v17590_v11, %v16983_v9  ;;  %v8328_v19 = vrot.slane %v17590_v11, %v17044_v25 }
 0x68e   : > { %v10620_v24 = vrot.slane %v10606_v35, %v17142_v50  ;;  %v9841_v45 = vcombine.low %v7836_v49, %v7840_v40  ;;  %v9848_v58 = vrot.slane %v9838_v42, %v17142_v50  ;;  %v9855_v15 = vrot.slane %v9839_v7, %v17142_v50  ;;  %v19711_v35 = vld [vmem:[#allocation70_spill] sm:$0xff] }
 0x68f   : > { %v9862_v34 = vrot.slane %v9840_v21, %v17142_v50  ;;  %v8332_v43 = vrot.slane %v17590_v11, %v17047_v13  ;;  %v8336_v61 = vrot.slane %v17590_v11, %v17050_v48  ;;  %v8340_v52 = vrot.slane %v17590_v11, %v17055_v5 }
 0x690   : > { %v10621_v31 = vcombine.low %v10613_v33, %v10620_v24  ;;  %v9869_v60 = vrot.slane %v9841_v45, %v17142_v50  ;;  %v9870_v28 = vcombine.low %v9848_v58, %v9855_v15  ;;  %v8344_v38 = vrot.slane %v17590_v11, %v17058_v44 }
 0x691   : > { %v8348_v4 = vrot.slane %v17590_v11, %v19689_v63  ;;  %v8352_v55 = vrot.slane %v17590_v11, %v19690_v20  ;;  %v10622_v36 = vcombine.low %v8324_v32, %v8328_v19  ;;  %v10623_v41 = vcombine.low %v8332_v43, %v8336_v61  ;;  %v18287_v32 = vpop.permute.xlu1 %10773 }
 0x692   : > { %10902 = vperm.xlu0 %12134, %v10621_v31   ;;  %v9871_v0 = vcombine.low %v9862_v34, %v9869_v60  ;;  %v9878_v56 = vrot.slane %v9870_v28, %v17142_v50  ;;  %v10624_v26 = vcombine.low %v8340_v52, %v8344_v38  ;;  %v7844_v2 = vrot.slane %v17492_v29, %v16983_v9 }
 0x693   : > { %v10625_v8 = vcombine.low %v8348_v4, %v8352_v55  ;;  %v10632_v3 = vrot.slane %v10622_v36, %v17142_v50  ;;  %v10639_v47 = vrot.slane %v10623_v41, %v17142_v50  ;;  %v7848_v10 = vrot.slane %v17492_v29, %v17044_v25 }
 0x694   : > { %v9885_v11 = vrot.slane %v9871_v0, %v17142_v50  ;;  %v10646_v57 = vrot.slane %v10624_v26, %v17142_v50  ;;  %v7852_v30 = vrot.slane %v17492_v29, %v17047_v13  ;;  %v7856_v16 = vrot.slane %v17492_v29, %v17050_v48 }
 0x695   : > { %v10653_v6 = vrot.slane %v10625_v8, %v17142_v50  ;;  %v10654_v18 = vcombine.low %v10632_v3, %v10639_v47  ;;  %v7860_v46 = vrot.slane %v17492_v29, %v17055_v5  ;;  %v7864_v53 = vrot.slane %v17492_v29, %v17058_v44 }
 0x696   : > { %v9886_v54 = vcombine.low %v9878_v56, %v9885_v11  ;;  %v7868_v23 = vrot.slane %v17492_v29, %v19689_v63  ;;  %v7872_v17 = vrot.slane %v17492_v29, %v19690_v20  ;;  %v9887_v37 = vcombine.low %v7844_v2, %v7848_v10  ;;  %v18316_v10 = vpop.permute.xlu1 %10776 }
 0x697   : > { %v10655_v1 = vcombine.low %v10646_v57, %v10653_v6  ;;  %v10662_v12 = vrot.slane %v10654_v18, %v17142_v50  ;;  %v9888_v39 = vcombine.low %v7852_v30, %v7856_v16  ;;  %v9889_v62 = vcombine.low %v7860_v46, %v7864_v53 }
 0x698   : > { %10857 = vperm.xlu1 %12133, %v9886_v54   ;;  %v9890_v27 = vcombine.low %v7868_v23, %v7872_v17  ;;  %v9897_v49 = vrot.slane %v9887_v37, %v17142_v50  ;;  %v8388_v40 = vrot.slane %v19711_v35, %v16983_v9  ;;  %v8392_v42 = vrot.slane %v19711_v35, %v17044_v25 }
 0x699   : > { %v10669_v7 = vrot.slane %v10655_v1, %v17142_v50  ;;  %v9904_v29 = vrot.slane %v9888_v39, %v17142_v50  ;;  %v9911_v33 = vrot.slane %v9889_v62, %v17142_v50  ;;  %v8396_v21 = vrot.slane %v19711_v35, %v17047_v13 }
 0x69a   : > { %v9918_v19 = vrot.slane %v9890_v27, %v17142_v50  ;;  %v8400_v24 = vrot.slane %v19711_v35, %v17050_v48  ;;  %v8404_v45 = vrot.slane %v19711_v35, %v17055_v5  ;;  %v8408_v58 = vrot.slane %v19711_v35, %v17058_v44 }
 0x69b   : > { %v10670_v15 = vcombine.low %v10662_v12, %v10669_v7  ;;  %v9919_v34 = vcombine.low %v9897_v49, %v9904_v29  ;;  %v8412_v43 = vrot.slane %v19711_v35, %v19689_v63  ;;  %v8416_v61 = vrot.slane %v19711_v35, %v19690_v20 }
 0x69c   : > { %v9920_v52 = vcombine.low %v9911_v33, %v9918_v19  ;;  %v10720_v31 = vcombine.low %v8388_v40, %v8392_v42  ;;  %v10721_v60 = vcombine.low %v8396_v21, %v8400_v24  ;;  %v10722_v28 = vcombine.low %v8404_v45, %v8408_v58  ;;  %v18342_v33 = vpop.permute.xlu1 %10779 }
 0x69d   : > { %10905 = vperm.xlu0 %12134, %v10670_v15   ;;  %v9927_v38 = vrot.slane %v9919_v34, %v17142_v50  ;;  %v10723_v4 = vcombine.low %v8412_v43, %v8416_v61  ;;  %v7940_v55 = vrot.slane %v17511_v14, %v16983_v9  ;;  %v7944_v36 = vrot.slane %v17511_v14, %v17044_v25 }
 0x69e   : > { %v9934_v41 = vrot.slane %v9920_v52, %v17142_v50  ;;  %v10730_v0 = vrot.slane %v10720_v31, %v17142_v50  ;;  %v10737_v56 = vrot.slane %v10721_v60, %v17142_v50  ;;  %v10744_v26 = vrot.slane %v10722_v28, %v17142_v50 }
 0x69f   : > { %v10751_v2 = vrot.slane %v10723_v4, %v17142_v50  ;;  %v7948_v8 = vrot.slane %v17511_v14, %v17047_v13  ;;  %v7952_v3 = vrot.slane %v17511_v14, %v17050_v48  ;;  %v7956_v47 = vrot.slane %v17511_v14, %v17055_v5 }
 0x6a0   : > { %v9935_v11 = vcombine.low %v9927_v38, %v9934_v41  ;;  %v10752_v57 = vcombine.low %v10730_v0, %v10737_v56  ;;  %v7960_v30 = vrot.slane %v17511_v14, %v17058_v44  ;;  %v7964_v16 = vrot.slane %v17511_v14, %v19689_v63 }
 0x6a1   : > { %v10753_v6 = vcombine.low %v10744_v26, %v10751_v2  ;;  %v7968_v18 = vrot.slane %v17511_v14, %v19690_v20  ;;  %v10034_v46 = vcombine.low %v7940_v55, %v7944_v36  ;;  %v10035_v53 = vcombine.low %v7948_v8, %v7952_v3  ;;  %v18370_v3 = vpop.permute.xlu1 %10782 }
 0x6a2   : > { %10860 = vperm.xlu1 %12133, %v9935_v11   ;;  %v10760_v54 = vrot.slane %v10752_v57, %v17142_v50  ;;  %v10036_v23 = vcombine.low %v7956_v47, %v7960_v30  ;;  %v8004_v17 = vrot.slane %v17527_v51, %v16983_v9  ;;  %v8008_v37 = vrot.slane %v17527_v51, %v17044_v25 }
 0x6a3   : > { %v10767_v1 = vrot.slane %v10753_v6, %v17142_v50  ;;  %v10037_v12 = vcombine.low %v7964_v16, %v7968_v18  ;;  %v10044_v39 = vrot.slane %v10034_v46, %v17142_v50  ;;  %v10051_v62 = vrot.slane %v10035_v53, %v17142_v50  ;;  %v19712_v18 = vld [vmem:[#allocation19_spill] sm:$0xff] }
 0x6a4   : > { %v10058_v14 = vrot.slane %v10036_v23, %v17142_v50  ;;  %v8012_v27 = vrot.slane %v17527_v51, %v17047_v13  ;;  %v8016_v49 = vrot.slane %v17527_v51, %v17050_v48  ;;  %v8020_v35 = vrot.slane %v17527_v51, %v17055_v5 }
 0x6a5   : > { %v10768_v40 = vcombine.low %v10760_v54, %v10767_v1  ;;  %v10065_v42 = vrot.slane %v10037_v12, %v17142_v50  ;;  %v10066_v7 = vcombine.low %v10044_v39, %v10051_v62  ;;  %v8024_v29 = vrot.slane %v17527_v51, %v17058_v44 }
 0x6a6   : > { %v8028_v21 = vrot.slane %v17527_v51, %v19689_v63  ;;  %v8032_v19 = vrot.slane %v17527_v51, %v19690_v20  ;;  %v10132_v24 = vcombine.low %v8004_v17, %v8008_v37  ;;  %v10133_v45 = vcombine.low %v8012_v27, %v8016_v49 }
 0x6a7   : > { %10911 = vperm.xlu0 %12134, %v10768_v40   ;;  %v10067_v58 = vcombine.low %v10058_v14, %v10065_v42  ;;  %v10074_v15 = vrot.slane %v10066_v7, %v17142_v50  ;;  %v10134_v34 = vcombine.low %v8020_v35, %v8024_v29  ;;  %v8068_v43 = vrot.slane %v17538_v22, %v16983_v9  ;;  %v18394_v29 = vpop.permute.xlu1 %10785 }
 0x6a8   : > { %v10135_v61 = vcombine.low %v8028_v21, %v8032_v19  ;;  %v10142_v52 = vrot.slane %v10132_v24, %v17142_v50  ;;  %v10149_v31 = vrot.slane %v10133_v45, %v17142_v50  ;;  %v8072_v60 = vrot.slane %v17538_v22, %v17044_v25  ;;  %v19713_v24 = vld [vmem:[#allocation18_spill] sm:$0xff] }
 0x6a9   : > { %v10081_v51 = vrot.slane %v10067_v58, %v17142_v50  ;;  %v10156_v28 = vrot.slane %v10134_v34, %v17142_v50  ;;  %v8076_v38 = vrot.slane %v17538_v22, %v17047_v13  ;;  %v8080_v4 = vrot.slane %v17538_v22, %v17050_v48 }
 0x6aa   : > { %v10163_v55 = vrot.slane %v10135_v61, %v17142_v50  ;;  %v10164_v36 = vcombine.low %v10142_v52, %v10149_v31  ;;  %v8084_v41 = vrot.slane %v17538_v22, %v17055_v5  ;;  %v8088_v0 = vrot.slane %v17538_v22, %v17058_v44 }
 0x6ab   : > { %v10082_v56 = vcombine.low %v10074_v15, %v10081_v51  ;;  %v8092_v26 = vrot.slane %v17538_v22, %v19689_v63  ;;  %v8096_v2 = vrot.slane %v17538_v22, %v19690_v20  ;;  %v10230_v8 = vcombine.low %v8068_v43, %v8072_v60 }
 0x6ac   : > { %v10165_v47 = vcombine.low %v10156_v28, %v10163_v55  ;;  %v10172_v11 = vrot.slane %v10164_v36, %v17142_v50  ;;  %v10231_v57 = vcombine.low %v8076_v38, %v8080_v4  ;;  %v10232_v30 = vcombine.low %v8084_v41, %v8088_v0 }
 0x6ad   : > { %10869 = vperm.xlu1 %12133, %v10082_v56   ;;  %v10233_v16 = vcombine.low %v8092_v26, %v8096_v2  ;;  %v10240_v6 = vrot.slane %v10230_v8, %v17142_v50  ;;  %v8132_v46 = vrot.slane %v19712_v18, %v16983_v9  ;;  %v8136_v53 = vrot.slane %v19712_v18, %v17044_v25 }
 0x6ae   : > { %v10179_v22 = vrot.slane %v10165_v47, %v17142_v50  ;;  %v10247_v54 = vrot.slane %v10231_v57, %v17142_v50  ;;  %v10254_v23 = vrot.slane %v10232_v30, %v17142_v50  ;;  %v8140_v17 = vrot.slane %v19712_v18, %v17047_v13 }
 0x6af   : > { %v10261_v37 = vrot.slane %v10233_v16, %v17142_v50  ;;  %v8144_v1 = vrot.slane %v19712_v18, %v17050_v48  ;;  %v8148_v12 = vrot.slane %v19712_v18, %v17055_v5  ;;  %v8152_v39 = vrot.slane %v19712_v18, %v17058_v44 }
 0x6b0   : > { %v10180_v62 = vcombine.low %v10172_v11, %v10179_v22  ;;  %v10262_v14 = vcombine.low %v10240_v6, %v10247_v54  ;;  %v8156_v27 = vrot.slane %v19712_v18, %v19689_v63  ;;  %v8160_v49 = vrot.slane %v19712_v18, %v19690_v20  ;;  %v18423_v11 = vpop.permute.xlu1 %10788 }
 0x6b1   : > { %v10263_v35 = vcombine.low %v10254_v23, %v10261_v37  ;;  %v10328_v40 = vcombine.low %v8132_v46, %v8136_v53  ;;  %v10329_v42 = vcombine.low %v8140_v17, %v8144_v1  ;;  %v10330_v7 = vcombine.low %v8148_v12, %v8152_v39 }
 0x6b2   : > { %10875 = vperm.xlu1 %12133, %v10180_v62   ;;  %v10270_v21 = vrot.slane %v10262_v14, %v17142_v50  ;;  %v10331_v19 = vcombine.low %v8156_v27, %v8160_v49  ;;  %v7876_v45 = vrot.slane %v19713_v24, %v16983_v9  ;;  %v7880_v58 = vrot.slane %v19713_v24, %v17044_v25 }
 0x6b3   : > { %v10277_v15 = vrot.slane %v10263_v35, %v17142_v50  ;;  %v10338_v34 = vrot.slane %v10328_v40, %v17142_v50  ;;  %v10345_v43 = vrot.slane %v10329_v42, %v17142_v50  ;;  %v10352_v61 = vrot.slane %v10330_v7, %v17142_v50  ;;  %v10771_v42 = vpop.permute.xlu0 %10770 }
 0x6b4   : > { %v10359_v52 = vrot.slane %v10331_v19, %v17142_v50  ;;  %v7884_v31 = vrot.slane %v19713_v24, %v17047_v13  ;;  %v7888_v60 = vrot.slane %v19713_v24, %v17050_v48  ;;  %v7892_v51 = vrot.slane %v19713_v24, %v17055_v5  ;;  %v18448_v49 = vpop.permute.xlu1 %10791  ;;  %v19715_v19 = vld [vmem:[#allocation30_spill] sm:$0xff] }
 0x6b5   : > { %v10278_v28 = vcombine.low %v10270_v21, %v10277_v15  ;;  %v10360_v38 = vcombine.low %v10338_v34, %v10345_v43  ;;  %v7896_v4 = vrot.slane %v19713_v24, %v17058_v44  ;;  %v7900_v55 = vrot.slane %v19713_v24, %v19689_v63 }
 0x6b6   : > { %v10361_v36 = vcombine.low %v10352_v61, %v10359_v52  ;;  %v7904_v41 = vrot.slane %v19713_v24, %v19690_v20  ;;  %v9936_v0 = vcombine.low %v7876_v45, %v7880_v58  ;;  %v9937_v56 = vcombine.low %v7884_v31, %v7888_v60 }
 0x6b7   : > { %10881 = vperm.xlu1 %12133, %v10278_v28   ;;  %v10368_v26 = vrot.slane %v10360_v38, %v17142_v50  ;;  %v9938_v2 = vcombine.low %v7892_v51, %v7896_v4  ;;  %v8356_v8 = vrot.slane %v17592_v59, %v16983_v9  ;;  %v8360_v47 = vrot.slane %v17592_v59, %v17044_v25 }
 0x6b8   : > { %v10375_v57 = vrot.slane %v10361_v36, %v17142_v50  ;;  %v9939_v30 = vcombine.low %v7900_v55, %v7904_v41  ;;  %v9946_v16 = vrot.slane %v9936_v0, %v17142_v50  ;;  %v9953_v6 = vrot.slane %v9937_v56, %v17142_v50  ;;  %v10795_v60 = vpop.permute.xlu1 %10794  ;;  %v10798_v55 = vpop.permute.xlu0 %10797 }
 0x6b9   : > { %v9960_v18 = vrot.slane %v9938_v2, %v17142_v50  ;;  %v8364_v46 = vrot.slane %v17592_v59, %v17047_v13  ;;  %v8368_v9 = vrot.slane %v17592_v59, %v17050_v48  ;;  %v8372_v25 = vrot.slane %v17592_v59, %v17055_v5 }
 0x6ba   : > { %v10376_v53 = vcombine.low %v10368_v26, %v10375_v57  ;;  %v9967_v22 = vrot.slane %v9939_v30, %v17142_v50  ;;  %v9968_v54 = vcombine.low %v9946_v16, %v9953_v6  ;;  %v8376_v23 = vrot.slane %v17592_v59, %v17058_v44 }
 0x6bb   : > { %v8380_v17 = vrot.slane %v17592_v59, %v19689_v63  ;;  %v8384_v37 = vrot.slane %v17592_v59, %v19690_v20  ;;  %v10671_v13 = vcombine.low %v8356_v8, %v8360_v47  ;;  %v10672_v1 = vcombine.low %v8364_v46, %v8368_v9 }
 0x6bc   : > { %10887 = vperm.xlu1 %12133, %v10376_v53   ;;  %v9969_v48 = vcombine.low %v9960_v18, %v9967_v22  ;;  %v9976_v12 = vrot.slane %v9968_v54, %v17142_v50  ;;  %v10673_v5 = vcombine.low %v8372_v25, %v8376_v23  ;;  %v19714_v39 = vlaneseq  ;;  %v10801_v57 = vpop.permute.xlu1 %10800  ;;  %v10804_v6 = vpop.permute.xlu0 %10803 }
 0x6bd   : > { %v10674_v14 = vcombine.low %v8380_v17, %v8384_v37  ;;  %v10681_v27 = vrot.slane %v10671_v13, %v17142_v50  ;;  %v10688_v44 = vrot.slane %v10672_v1, %v17142_v50 }
 0x6be   : > { %v18444_v62 = vand.u32 127, %v19714_v39  ;;  %v9983_v63 = vrot.slane %v9969_v48, %v17142_v50  ;;  %v10695_v20 = vrot.slane %v10673_v5, %v17142_v50  ;;  %vm11208_vm9 = vcmp.lt.s32.totalorder %v19714_v39, 384 }
 0x6bf   : > { %v10702_v35 = vrot.slane %v10674_v14, %v17142_v50  ;;  %v10703_v40 = vcombine.low %v10681_v27, %v10688_v44 }
 0x6c0   : > { %v10919_v59 = vadd.s32 4294967288, %v18444_v62  ;;  %v10926_v7 = vadd.s32 4294967280, %v18444_v62  ;;  %v9984_v21 = vcombine.low %v9976_v12, %v9983_v63  ;;  %v18460_v45 = vsub.s32 %v18444_v62, %v19715_v19  ;;  %v10807_v5 = vpop.permute.xlu1 %10806 }
 0x6c1   : > { %v10704_v58 = vcombine.low %v10695_v20, %v10702_v35  ;;  %v10711_v15 = vrot.slane %v10703_v40, %v17142_v50  ;;  %v10933_v43 = vadd.s32 4294967272, %v18444_v62  ;;  %v10940_v31 = vadd.s32 4294967264, %v18444_v62 }
 0x6c2   : > { %v18456_v24 = vsub.s32 %v10919_v59, %v19715_v19  ;;  %v18464_v34 = vsub.s32 %v10926_v7, %v19715_v19  ;;  %10863 = vperm.xlu1 %12133, %v9984_v21   ;;  %v10918_v28 = vrot.slane %v10771_v42, %v18460_v45  ;;  %v10947_v0 = vadd.s32 4294967256, %v18444_v62 }
 0x6c3   : > { %v10718_v61 = vrot.slane %v10704_v58, %v17142_v50  ;;  %v18469_v52 = vsub.s32 %v10933_v43, %v19715_v19  ;;  %v18478_v36 = vsub.s32 %v10940_v31, %v19715_v19  ;;  %v10975_v26 = vadd.s32 4294967224, %v18444_v62 }
 0x6c4   : > { %v10923_v51 = vrot.slane %v18287_v32, %v18456_v24  ;;  %v10930_v4 = vrot.slane %v18316_v10, %v18464_v34  ;;  %v10954_v32 = vadd.s32 4294967248, %v18444_v62  ;;  %v18489_v2 = vsub.s32 %v10947_v0, %v19715_v19 }
 0x6c5   : > { %v10719_v38 = vcombine.low %v10711_v15, %v10718_v61  ;;  %v10937_v41 = vrot.slane %v18342_v33, %v18469_v52  ;;  %v10944_v10 = vrot.slane %v18370_v3, %v18478_v36  ;;  %v10961_v47 = vadd.s32 4294967240, %v18444_v62  ;;  %v18549_v61 = vpop.permute.xlu1 %10812 }
 0x6c6   : > { %v10925_v56 = vsel %vm10924_vm12, %v10923_v51, %v10918_v28  ;;  %v18493_v33 = vsub.s32 %v10954_v32, %v19715_v19  ;;  %v10989_v16 = vadd.s32 4294967208, %v18444_v62  ;;  %v10951_v3 = vrot.slane %v18394_v29, %v18489_v2 }
 0x6c7   : > { %10908 = vperm.xlu1 %12133, %v10719_v38   ;;  %v10932_v8 = vsel %vm10931_vm11, %v10930_v4, %v10925_v56  ;;  %v18503_v46 = vsub.s32 %v10961_v47, %v19715_v19  ;;  %v10968_v9 = vadd.s32 4294967232, %v18444_v62  ;;  %v18507_v25 = vsub.s32 %v10975_v26, %v19715_v19 }
 0x6c8   : > { %v10939_v30 = vsel %vm10938_vm0, %v10937_v41, %v10932_v8  ;;  %v10958_v18 = vrot.slane %v18423_v11, %v18493_v33  ;;  %v11003_v22 = vadd.s32 4294967192, %v18444_v62  ;;  %v10982_v23 = vadd.s32 4294967216, %v18444_v62 }
 0x6c9   : > { %v10946_v53 = vsel %vm10945_vm14, %v10944_v10, %v10939_v30  ;;  %v10965_v54 = vrot.slane %v18448_v49, %v18503_v46  ;;  %v18515_v11 = vsub.s32 %v10968_v9, %v19715_v19  ;;  %v18519_v17 = vsub.s32 %v10989_v16, %v19715_v19  ;;  %v10810_v49 = vpop.permute.xlu0 %10809 }
 0x6ca   : > { %v10953_v29 = vsel %vm10952_vm4, %v10951_v3, %v10946_v53  ;;  %v10996_v13 = vadd.s32 4294967200, %v18444_v62  ;;  %v18526_v12 = vsub.s32 %v10982_v23, %v19715_v19  ;;  %v10979_v14 = vrot.slane %v10798_v55, %v18507_v25 }
 0x6cb   : > { %v10960_v37 = vsel %vm10959_vm6, %v10958_v18, %v10953_v29  ;;  %v10972_v48 = vrot.slane %v10795_v60, %v18515_v11  ;;  %v18530_v27 = vsub.s32 %v11003_v22, %v19715_v19  ;;  %v10993_v59 = vrot.slane %v10804_v6, %v18519_v17  ;;  %v10819_v60 = vpop.permute.xlu1 %10818 }
 0x6cc   : > { %v10967_v1 = vsel %vm10966_vm15, %v10965_v54, %v10960_v37  ;;  %v18533_v44 = vsub.s32 %v10996_v13, %v19715_v19  ;;  %v10986_v20 = vrot.slane %v10801_v57, %v18526_v12  ;;  %v11027_v9 = vrot.slane %v10819_v60, %v18460_v45 }
 0x6cd   : > { %v10974_v63 = vsel %vm10973_vm5, %v10972_v48, %v10967_v1  ;;  %v11007_v7 = vrot.slane %v10810_v49, %v18530_v27  ;;  %v18547_v43 = vpop.permute.xlu0 %10815 }
 0x6ce   : > { %v10981_v35 = vsel %vm10980_vm10, %v10979_v14, %v10974_v63  ;;  %v11000_v40 = vrot.slane %v10807_v5, %v18533_v44 }
 0x6cf   : > { %v10988_v42 = vsel %vm10987_vm2, %v10986_v20, %v10981_v35  ;;  %v10825_v28 = vpop.permute.xlu1 %10824 }
 0x6d0   : > { %v10995_v21 = vsel %vm10994_vm1, %v10993_v59, %v10988_v42  ;;  %v11036_v53 = vrot.slane %v10825_v28, %v18464_v34  ;;  %v11017_v28 = vadd.s32 4294967176, %v18444_v62 }
 0x6d1   : > { %v11002_v58 = vsel %vm11001_vm13, %v11000_v40, %v10995_v21  ;;  %v10822_v31 = vpop.permute.xlu0 %10821 }
 0x6d2   : > { %v18545_v15 = vsel %vm11008_vm3, %v11007_v7, %v11002_v58  ;;  %v11031_v22 = vrot.slane %v10822_v31, %v18456_v24  ;;  %v11010_v7 = vadd.s32 4294967184, %v18444_v62  ;;  %v11020_v62 = vsub.s32 %v11017_v28, %v19715_v19 }
 0x6d4   : > { %v10831_v4 = vpop.permute.xlu1 %10830  ;;  %v11032_v23 = vsel %vm10924_vm12, %v11031_v22, %v11027_v9 }
 0x6d5   : > { %v10828_v51 = vpop.permute.xlu0 %10827  ;;  %v11037_v13 = vsel %vm10931_vm11, %v11036_v53, %v11032_v23  ;;  %v11046_v1 = vrot.slane %v10831_v4, %v18478_v36  ;;  %v11013_v4 = vsub.s32 %v11010_v7, %v19715_v19 }
 0x6d6   : > { %v11041_v48 = vrot.slane %v10828_v51, %v18469_v52 }
 0x6d8   : > { %v11042_v49 = vsel %vm10938_vm0, %v11041_v48, %v11037_v13 }
 0x6d9   : > { %v10834_v38 = vpop.permute.xlu0 %10833  ;;  %v11047_v35 = vsel %vm10945_vm14, %v11046_v1, %v11042_v49 }
 0x6da   : > { %v11051_v42 = vrot.slane %v10834_v38, %v18489_v2 }
 0x6dc   : > { %v11052_v21 = vsel %vm10952_vm4, %v11051_v42, %v11047_v35 }
 0x6dd   : > { %v10840_v55 = vpop.permute.xlu0 %10839 }
 0x6de   : > { %v10837_v41 = vpop.permute.xlu1 %10836  ;;  %v11061_v38 = vrot.slane %v10840_v55, %v18503_v46 }
 0x6e1   : > { %v18551_v0 = vpop.permute.xlu0 %10845 }
 0x6e2   : > { %v11071_v55 = vrot.slane %v18551_v0, %v18507_v25 }
 0x6e5   : > { %v10867_v56 = vpop.permute.xlu0 %10866 }
 0x6e6   : > { %v11106_v5 = vrot.slane %v10867_v56, %v18460_v45 }
 0x6e9   : > { %v10843_v32 = vpop.permute.xlu1 %10842  ;;  %v10873_v10 = vpop.permute.xlu0 %10872 }
 0x6ea   : > { %v11115_v59 = vrot.slane %v10873_v10, %v18464_v34  ;;  %v11066_v60 = vrot.slane %v10843_v32, %v18515_v11 }
 0x6ed   : > { %v10879_v47 = vpop.permute.xlu0 %10878 }
 0x6f1   : > { %v10885_v30 = vpop.permute.xlu0 %10884 }
 0x6f3   : > { %v18553_v26 = vpop.permute.xlu1 %10848 }
 0x6f5   : > { %v10891_v3 = vpop.permute.xlu0 %10890 }
 0x6f9   : > { %v18563_v18 = vpop.permute.xlu0 %10893 }
 0x6fa   : > { %v11150_v19 = vrot.slane %v18563_v18, %v18507_v25 }
 0x6fd   : > { %v10897_v54 = vpop.permute.xlu0 %10896 }
 0x6fe   : > { %v18555_v8 = vpop.permute.xlu1 %10851 }
 0x6ff   : > { %v11081_v53 = vrot.slane %v18555_v8, %v18519_v17 }
 0x703   : > { %v10900_v40 = vpop.permute.xlu0 %10899 }
 0x704   : > { %v11160_v18 = vrot.slane %v10900_v40, %v18519_v17 }
 0x708   : > { %v18557_v57 = vpop.permute.xlu1 %10854 }
 0x713   : > { %v18559_v16 = vpop.permute.xlu1 %10857 }
 0x714   : > { %v11091_v0 = vrot.slane %v18559_v16, %v18530_v27 }
 0x71d   : > { %v18561_v6 = vpop.permute.xlu1 %10860 }
 0x728   : > { %v10870_v29 = vpop.permute.xlu1 %10869 }
 0x729   : > { %v11110_v37 = vrot.slane %v10870_v29, %v18456_v24  ;;  %v11056_v24 = vrot.slane %v10837_v41, %v18493_v33  ;;  %v10903_v41 = vpop.permute.xlu0 %10902  ;;  %v11014_v29 = vrot.slane %v18549_v61, %v11013_v4 }
 0x72a   : > { %v11165_v13 = vrot.slane %v10903_v41, %v18533_v44 }
 0x72b   : > { %v11111_v63 = vsel %vm10924_vm12, %v11110_v37, %v11106_v5  ;;  %v11057_v34 = vsel %vm10959_vm6, %v11056_v24, %v11052_v21  ;;  %v11016_v5 = vsel %vm11015_vm7, %v11014_v29, %v18545_v15 }
 0x72c   : > { %v11116_v45 = vsel %vm10931_vm11, %v11115_v59, %v11111_v63  ;;  %v11062_v10 = vsel %vm10966_vm15, %v11061_v38, %v11057_v34 }
 0x72d   : > { %v10876_v14 = vpop.permute.xlu1 %10875  ;;  %v10906_v61 = vpop.permute.xlu0 %10905 }
 0x72e   : > { %v11120_v20 = vrot.slane %v10876_v14, %v18469_v52  ;;  %v11125_v52 = vrot.slane %v10879_v47, %v18478_v36  ;;  %v11135_v36 = vrot.slane %v10885_v30, %v18493_v33  ;;  %v11067_v47 = vsel %vm10973_vm5, %v11066_v60, %v11062_v10 }
 0x72f   : > { %v11145_v33 = vrot.slane %v10891_v3, %v18515_v11  ;;  %v11086_v30 = vrot.slane %v18557_v57, %v18533_v44  ;;  %v11072_v23 = vsel %vm10980_vm10, %v11071_v55, %v11067_v47  ;;  %v11155_v11 = vrot.slane %v10897_v54, %v18526_v12 }
 0x730   : > { %v11121_v58 = vsel %vm10938_vm0, %v11120_v20, %v11116_v45  ;;  %v11096_v57 = vrot.slane %v18561_v6, %v11013_v4  ;;  %v11021_v44 = vrot.slane %v18547_v43, %v11020_v62  ;;  %v11170_v49 = vrot.slane %v10906_v61, %v18530_v27 }
 0x731   : > { %v11126_v56 = vsel %vm10945_vm14, %v11125_v52, %v11121_v58  ;;  %v10912_v20 = vpop.permute.xlu0 %10911 }
 0x732   : > { %v10882_v31 = vpop.permute.xlu1 %10881  ;;  %v11023_v59 = vsel %vm11022_vm8, %v11021_v44, %v11016_v5  ;;  %v11180_v15 = vrot.slane %v10912_v20, %v11020_v62 }
 0x733   : > { %v11130_v51 = vrot.slane %v10882_v31, %v18489_v2  ;;  %v11076_v2 = vrot.slane %v18553_v26, %v18526_v12 }
 0x735   : > { %v11131_v9 = vsel %vm10952_vm4, %v11130_v51, %v11126_v56 }
 0x736   : > { %v11136_v26 = vsel %vm10959_vm6, %v11135_v36, %v11131_v9 }
 0x737   : > { %v10888_v32 = vpop.permute.xlu1 %10887 }
 0x738   : > { %v11140_v22 = vrot.slane %v10888_v32, %v18503_v46  ;;  %v11077_v46 = vsel %vm10987_vm2, %v11076_v2, %v11072_v23 }
 0x739   : > { %v11082_v25 = vsel %vm10994_vm1, %v11081_v53, %v11077_v46 }
 0x73a   : > { %v11141_v8 = vsel %vm10966_vm15, %v11140_v22, %v11136_v26  ;;  %v11087_v16 = vsel %vm11001_vm13, %v11086_v30, %v11082_v25 }
 0x73b   : > { %v11146_v3 = vsel %vm10973_vm5, %v11145_v33, %v11141_v8  ;;  %v11092_v12 = vsel %vm11008_vm3, %v11091_v0, %v11087_v16 }
 0x73c   : > { %v11151_v37 = vsel %vm10980_vm10, %v11150_v19, %v11146_v3  ;;  %v11097_v17 = vsel %vm11015_vm7, %v11096_v57, %v11092_v12 }
 0x73d   : > { %v11156_v1 = vsel %vm10987_vm2, %v11155_v11, %v11151_v37  ;;  %v10864_v48 = vpop.permute.xlu1 %10863 }
 0x73e   : > { %v11101_v54 = vrot.slane %v10864_v48, %v11020_v62  ;;  %v11161_v6 = vsel %vm10994_vm1, %v11160_v18, %v11156_v1 }
 0x73f   : > { %v11166_v14 = vsel %vm11001_vm13, %v11165_v13, %v11161_v6 }
 0x740   : > { %v11102_v63 = vsel %vm11022_vm8, %v11101_v54, %v11097_v17  ;;  %v11171_v24 = vsel %vm11008_vm3, %v11170_v49, %v11166_v14 }
 0x741   : > { %v11182_v40 = vcombine.low %v11023_v59, %v11102_v63 }
 0x742   : > { %v10909_v35 = vpop.permute.xlu1 %10908 }
 0x743   : > { %v11175_v42 = vrot.slane %v10909_v35, %v11013_v4  ;;  %v11189_v21 = vrot.slane %v11182_v40, %v17142_v50 }
 0x745   : > { %v11176_v7 = vsel %vm11015_vm7, %v11175_v42, %v11171_v24 }
 0x746   : > { %v11181_v45 = vsel %vm11022_vm8, %v11180_v15, %v11176_v7 }
 0x747   : > { %v11196_v43 = vrot.slane %v11181_v45, %v17142_v50 }
 0x749   : > { %v11197_v27 = vcombine.low %v11189_v21, %v11196_v43 }
 0x74b   : > { %v11204_v58 = vrot.slane %v11197_v27, %v17142_v50 }
 0x74d   : > { %11210 = vst.msk [vmem:[%s273_s9] sm:$0x7] %vm11208_vm9, %v11204_v58 }
 0x74e   : > { %12550 = shalt.err (!%p12547_p3)
}
 0x74f   : > { %s12551_s10 = scalar_lea.hbm %s11224_s22, 48  ;;  %s12555_s16 = scalar_lea.hbm %s18681_s7, 96 }
 0x750   : > { %p12552_p4 = scmp.ne.s32.totalorder %s11224_s22, %s12551_s10  ;;  %p12556_p9 = scmp.lt.s32.totalorder %s11224_s22, %s18681_s7 }
 0x751   : > { %p12557_p10 = scmp.lt.s32.totalorder %s12555_s16, %s12551_s10 }
 0x752   : > { %p12553_p7 = pnand %p12552_p4, %p12684_p5 }
 0x753   : > { %p12558_p11 = por %p12557_p10, %p12556_p9 }
 0x754   : > { %p12554_p8 = pneg %p12553_p7 }
 0x756   : > { %p12559_p12 = pnand %p12558_p11, %p12554_p8 }
 0x758   : > { %12562 = shalt.err (!%p12559_p12)
}
 0x759   : > { %12091 = dma.vmem_to_hbm [thread:$0]  (%p12684_p5), %s11227_s19, 48, %s11224_s22, %s11212_s23  }
 0x75a PF: > { %p12097_p13 = scmp.ge.s32.totalorder %s12597_s29, 2  ;;  %s11238_s9 = sand.u32 1, %s12585_s26  }
 0x75b   : > { %s11239_s20 = scalar_lea.sflag [#allocation5], %s11238_s9 }
 0x75c   : > { %p12094_p0 = pnand %p12097_p13, %p12688_p6 }
 0x75e   : > { %p12095_p1 = pneg %p12094_p0 }
 0x760   : > { %12580 = dma.done.wait (%p12095_p1), %s11239_s20, 48  }
 0x761   : > { %12582 = vsyncadd (%p12095_p1), %s11239_s20, 4294967248  ;;  %p19_p2 = scmp.ge.s32.totalorder %s12671_s8, 4   ;;  %s19716_s26 = smov %s12589_s27 }
 0x762   : > { %s19717_s27 = smov %s12593_s28  ;;  %s19718_s28 = smov %s12682_s11 }
 0x763   : > { %s19719_s29 = smov %s12671_s8  ;;  %21 = sbr.rel (!%p19_p2) target bundleno = 6 (0x6), region = 87 }
 0x768   :  { %11244 = vsyncpa [#allocation5], 1 }
 0x769   :  { %11246 = vsyncpa [#allocation5 + $0x1], 1 }

</bundles_post_ra>
